<compile_context>
chip_gen: v7x
topology: tpu7x:2x2x1
jax: 0.10.0
libtpu: 0.0.40
codegen_flags: <defaults>
</compile_context>

<pallas_src>
import functools
import math

import jax
import jax.numpy as jnp
from jax.experimental import pallas as pl
from jax.experimental.pallas import tpu as pltpu

BF16 = jnp.bfloat16
F32 = jnp.float32


# ----------------------------- Pallas kernels ------------------------------

def _fused_encoder_decoder_kernel(t_ref, patch_ref, pw_ref, pb_ref,
                                  tw1_ref, tb1_ref, tw2_ref, tb2_ref,
                                  *rest, num_layers, nh, eps):
    """Whole encoder + decoder-ConvTranspose for ONE batch element per grid step.

    rest = 12*num_layers per-layer refs + [dect_w, dect_b, o_ref].
    """
    o_ref = rest[-1]
    dect_w_ref = rest[-3]
    dect_b_ref = rest[-2]
    layer_refs = rest[:12 * num_layers]

    b = pl.program_id(0)

    # ---- TimeEmbedding: Linear(1, E) -> ReLU -> Linear(E, E) ----
    t = t_ref[b]                                                   # SMEM scalar
    h = jnp.maximum(t * tw1_ref[...] + tb1_ref[...], 0.0)          # (1, E) f32
    temb = (jnp.dot(h.astype(BF16), tw2_ref[...],
                    preferred_element_type=F32) + tb2_ref[...])    # (1, E)

    # ---- PatchEmbedding (Conv2d k=P, s=P as per-token matmul) + broadcast add
    z = (jnp.dot(patch_ref[0].astype(BF16), pw_ref[...],
                 preferred_element_type=F32)
         + pb_ref[...] + temb)                                     # (N, E) f32

    N, E = z.shape
    hd = E // nh
    scale = 1.0 / math.sqrt(hd)

    def layer_norm(y, g_ref, bt_ref):
        mean = jnp.mean(y, axis=-1, keepdims=True)
        c = y - mean
        var = jnp.mean(c * c, axis=-1, keepdims=True)
        return c * jax.lax.rsqrt(var + eps) * g_ref[...] + bt_ref[...]

    # ---- Transformer encoder layers (post-norm; dropout = eval identity) ----
    for li in range(num_layers):
        (in_w, in_b, out_w, out_b, g1, be1,
         ff_w1, ff_b1, ff_w2, ff_b2, g2, be2) = layer_refs[12 * li:12 * (li + 1)]

        qkv = (jnp.dot(z.astype(BF16), in_w[...],
                       preferred_element_type=F32) + in_b[...])    # (N, 3E)

        heads = []
        for hix in range(nh):                                      # unrolled
            lo = hix * hd
            q = qkv[:, lo:lo + hd].astype(BF16)                    # (N, hd)
            k = qkv[:, E + lo:E + lo + hd].astype(BF16)
            v = qkv[:, 2 * E + lo:2 * E + lo + hd].astype(BF16)
            s = jax.lax.dot_general(q, k, (((1,), (1,)), ((), ())),
                                    preferred_element_type=F32) * scale
            s = s - jnp.max(s, axis=-1, keepdims=True)
            p = jnp.exp(s)
            p = p / jnp.sum(p, axis=-1, keepdims=True)             # exact softmax
            heads.append(jnp.dot(p.astype(BF16), v,
                                 preferred_element_type=F32))      # (N, hd)
        attn = jnp.concatenate(heads, axis=-1)                     # (N, E) f32
        proj = jnp.dot(attn.astype(BF16), out_w[...],
                       preferred_element_type=F32)
        z = layer_norm(proj + out_b[...] + z, g1, be1)             # LN(x + attn)

        hmid = jnp.maximum(
            jnp.dot(z.astype(BF16), ff_w1[...],
                    preferred_element_type=F32) + ff_b1[...], 0.0)
        y = (jnp.dot(hmid.astype(BF16), ff_w2[...],
                     preferred_element_type=F32) + ff_b2[...] + z)
        z = layer_norm(y, g2, be2)                                 # LN(x + ffn)

    # ---- Decoder ConvTranspose2d(E, M, k=P, s=P) as per-token matmul + ReLU ----
    y = (jnp.dot(z.astype(BF16), dect_w_ref[...],
                 preferred_element_type=F32) + dect_b_ref[...])    # (N, M*P*P)
    o_ref[0] = jnp.maximum(y, 0.0).astype(o_ref.dtype)             # bf16, lane-dense


def _conv3x3_matmul_kernel(x_ref, w_ref, b_ref, o_ref):
    """3x3 conv as ONE matmul over an im2col slab.

    x_ref: (1, 9*C_in, H*W) bf16; w_ref: (C_out, 9*C_in) bf16; b_ref: (C_out, 1).
    Accumulator is (C_out, H*W): lane-dense, no transpose needed.
    """
    out = jnp.dot(w_ref[...], x_ref[0], preferred_element_type=F32)
    o_ref[0] = (out + b_ref[...]).astype(o_ref.dtype)


# ----------------------------- model forward -------------------------------

def unet_forward(params, x, t, cfg):
    B, C, H, W = x.shape
    P = cfg["patch"]
    E = cfg["embed"]
    nh = cfg["heads"]
    M = cfg["dec_mid"]
    C_out = cfg["out_channels"]
    hh, ww = H // P, W // P
    N = hh * ww
    MPP = M * P * P
    num_layers = len(params["layers"])

    # ---- XLA glue: extract patches in (c, pi, pj) order per token ----
    patches = (x.reshape(B, C, hh, P, ww, P)
                 .transpose(0, 2, 4, 1, 3, 5)
                 .reshape(B, N, C * P * P))

    layer_args = []
    for lp in params["layers"]:
        layer_args += [lp["in_w"], lp["in_b"], lp["out_w"], lp["out_b"],
                       lp["ln1_g"], lp["ln1_b"],
                       lp["ff_w1"], lp["ff_b1"], lp["ff_w2"], lp["ff_b2"],
                       lp["ln2_g"], lp["ln2_b"]]

    args = [t.astype(F32), patches,
            params["patch_w"], params["patch_b"],
            params["time_w1"], params["time_b1"],
            params["time_w2"], params["time_b2"],
            *layer_args,
            params["dect_w"], params["dect_b_full"]]

    def const_spec(a):
        return pl.BlockSpec(a.shape, lambda b: (0, 0))

    in_specs = [pl.BlockSpec(memory_space=pltpu.MemorySpace.SMEM),   # t (B,) scalar
                pl.BlockSpec((1, N, C * P * P), lambda b: (b, 0, 0))]
    in_specs += [const_spec(a) for a in args[2:]]

    # ---- Fused kernel #1: whole encoder + ConvTranspose decoder matmul ----
    y = pl.pallas_call(
        functools.partial(_fused_encoder_decoder_kernel,
                          num_layers=num_layers, nh=nh, eps=1e-5),
        out_shape=jax.ShapeDtypeStruct((B, N, MPP), BF16),
        grid=(B,),
        in_specs=in_specs,
        out_specs=pl.BlockSpec((1, N, MPP), lambda b: (b, 0, 0)),
        compiler_params=pltpu.CompilerParams(dimension_semantics=("parallel",)),
    )(*args)                                                         # (B, N, M*P*P)

    # ---- XLA glue: token layout -> NHWC image, pad, im2col (bf16, tile-aligned)
    y_img = (y.reshape(B, hh, ww, M, P, P)
               .transpose(0, 1, 4, 2, 5, 3)
               .reshape(B, H, W, M))                                 # NHWC
    yp = jnp.pad(y_img, ((0, 0), (1, 1), (1, 1), (0, 0)))
    cols = jnp.concatenate(
        [yp[:, ki:ki + H, kj:kj + W, :] for ki in range(3) for kj in range(3)],
        axis=-1)                                                     # (B, H, W, 9M)
    cols = cols.reshape(B, H * W, 9 * M).swapaxes(1, 2)              # (B, 9M, H*W)

    # ---- Fused kernel #2: 3x3 conv as one lane-dense matmul per batch element
    out = pl.pallas_call(
        _conv3x3_matmul_kernel,
        out_shape=jax.ShapeDtypeStruct((B, C_out, H * W), F32),
        grid=(B,),
        in_specs=[
            pl.BlockSpec((1, 9 * M, H * W), lambda b: (b, 0, 0)),
            pl.BlockSpec((C_out, 9 * M), lambda b: (0, 0)),
            pl.BlockSpec((C_out, 1), lambda b: (0, 0)),
        ],
        out_specs=pl.BlockSpec((1, C_out, H * W), lambda b: (b, 0, 0)),
        compiler_params=pltpu.CompilerParams(dimension_semantics=("parallel",)),
    )(cols, params["conv_w"], params["conv_b"])

    return out.reshape(B, C_out, H, W)                               # NCHW


# ------------------------- deterministic parameters -------------------------
# Weights are generated directly in the layout / dtype the kernels consume
# (pre-transposed vs PyTorch tensors, matmul weights pre-cast to bf16 ONCE).

def init_params(key, cfg):
    C = cfg["in_channels"]
    E = cfg["embed"]
    P = cfg["patch"]
    F = cfg["ffn"]
    M = cfg["dec_mid"]
    C_out = cfg["out_channels"]
    L = cfg["layers"]

    keys = iter(jax.random.split(key, 64))

    def w(shape, dtype=BF16, scale=0.02):
        return (scale * jax.random.normal(next(keys), shape)).astype(dtype)

    params = {
        # Conv2d(C, E, k=P, s=P) weight (E,C,P,P) -> (C*P*P, E), bf16
        "patch_w": w((C * P * P, E)),
        "patch_b": w((1, E), F32),
        # TimeEmbedding MLP: Linear(1,E) weight^T (1,E) stays f32 (VPU math)
        "time_w1": w((1, E), F32),
        "time_b1": w((1, E), F32),
        "time_w2": w((E, E)),
        "time_b2": w((1, E), F32),
        # Decoder ConvTranspose2d(E, M, k=P, s=P) weight (E,M,P,P) -> (E, M*P*P)
        "dect_w": w((E, M * P * P)),
        # Decoder Conv2d(M, C_out, 3, padding=1) weight (C_out, M, 3, 3) rearranged
        # to w_flat[cout, (ki*3+kj)*M + cin]  (matches the im2col tap order)
        "conv_w": w((C_out, 9 * M)),
        "conv_b": w((C_out, 1), F32),
    }
    dect_b = w((M,), F32)
    params["dect_b_full"] = jnp.repeat(dect_b, P * P).reshape(1, M * P * P)

    layers = []
    for _ in range(L):
        layers.append({
            "in_w": w((E, 3 * E)), "in_b": w((1, 3 * E), F32),
            "out_w": w((E, E)), "out_b": w((1, E), F32),
            "ln1_g": jnp.ones((1, E), F32), "ln1_b": jnp.zeros((1, E), F32),
            "ff_w1": w((E, F)), "ff_b1": w((1, F), F32),
            "ff_w2": w((F, E)), "ff_b2": w((1, E), F32),
            "ln2_g": jnp.ones((1, E), F32), "ln2_b": jnp.zeros((1, E), F32),
        })
    params["layers"] = layers
    return params


# ----------------------------------- main -----------------------------------

if __name__ == "__main__":
    cfg = dict(in_channels=2, out_channels=2, embed=128, patch=4, heads=8,
               layers=2, ffn=256, dec_mid=128)

    key = jax.random.PRNGKey(0)
    kx, kt, kp = jax.random.split(key, 3)

    B, H, W = 2, 16, 16
    x = jax.random.normal(kx, (B, cfg["in_channels"], H, W), dtype=jnp.float32)
    t = jax.random.uniform(kt, (B,), dtype=jnp.float32)

    params = init_params(kp, cfg)

    fwd = jax.jit(functools.partial(unet_forward, cfg=cfg))
    out = fwd(params, x, t)
    out = jax.block_until_ready(out)

    assert out.shape == (B, cfg["out_channels"], H, W), out.shape
    assert out.dtype == jnp.float32
    print("KERNEL_OK")
</pallas_src>

<mosaic_0001>
module attributes {stable_mosaic.version = 11 : i64} {
  func.func @_fused_encoder_decoder_kernel(%arg0: i32, %arg1: memref<2xf32, #tpu.memory_space<smem>>, %arg2: memref<1x16x32xf32, #tpu.memory_space<vmem>>, %arg3: memref<32x128xbf16, #tpu.memory_space<vmem>>, %arg4: memref<1x128xf32, #tpu.memory_space<vmem>>, %arg5: memref<1x128xf32, #tpu.memory_space<vmem>>, %arg6: memref<1x128xf32, #tpu.memory_space<vmem>>, %arg7: memref<128x128xbf16, #tpu.memory_space<vmem>>, %arg8: memref<1x128xf32, #tpu.memory_space<vmem>>, %arg9: memref<128x384xbf16, #tpu.memory_space<vmem>>, %arg10: memref<1x384xf32, #tpu.memory_space<vmem>>, %arg11: memref<128x128xbf16, #tpu.memory_space<vmem>>, %arg12: memref<1x128xf32, #tpu.memory_space<vmem>>, %arg13: memref<1x128xf32, #tpu.memory_space<vmem>>, %arg14: memref<1x128xf32, #tpu.memory_space<vmem>>, %arg15: memref<128x256xbf16, #tpu.memory_space<vmem>>, %arg16: memref<1x256xf32, #tpu.memory_space<vmem>>, %arg17: memref<256x128xbf16, #tpu.memory_space<vmem>>, %arg18: memref<1x128xf32, #tpu.memory_space<vmem>>, %arg19: memref<1x128xf32, #tpu.memory_space<vmem>>, %arg20: memref<1x128xf32, #tpu.memory_space<vmem>>, %arg21: memref<128x384xbf16, #tpu.memory_space<vmem>>, %arg22: memref<1x384xf32, #tpu.memory_space<vmem>>, %arg23: memref<128x128xbf16, #tpu.memory_space<vmem>>, %arg24: memref<1x128xf32, #tpu.memory_space<vmem>>, %arg25: memref<1x128xf32, #tpu.memory_space<vmem>>, %arg26: memref<1x128xf32, #tpu.memory_space<vmem>>, %arg27: memref<128x256xbf16, #tpu.memory_space<vmem>>, %arg28: memref<1x256xf32, #tpu.memory_space<vmem>>, %arg29: memref<256x128xbf16, #tpu.memory_space<vmem>>, %arg30: memref<1x128xf32, #tpu.memory_space<vmem>>, %arg31: memref<1x128xf32, #tpu.memory_space<vmem>>, %arg32: memref<1x128xf32, #tpu.memory_space<vmem>>, %arg33: memref<128x2048xbf16, #tpu.memory_space<vmem>>, %arg34: memref<1x2048xf32, #tpu.memory_space<vmem>>, %arg35: memref<1x16x2048xbf16, #tpu.memory_space<vmem>>) attributes {dimension_semantics = [#tpu.dimension_semantics<parallel>], iteration_bounds = array<i64: 2>, scalar_prefetch = 0 : i64, scratch_operands = 0 : i64, tpu.core_type = #tpu.core_type<tc>, window_params = [{transform_indices = @transform_0, window_bounds = array<i64: 2>}, {transform_indices = @transform_1, window_bounds = array<i64: 1, 16, 32>}, {pipeline_mode = #tpu.pipeline_mode<synchronous>, transform_indices = @transform_2, window_bounds = array<i64: 32, 128>}, {pipeline_mode = #tpu.pipeline_mode<synchronous>, transform_indices = @transform_3, window_bounds = array<i64: 1, 128>}, {pipeline_mode = #tpu.pipeline_mode<synchronous>, transform_indices = @transform_4, window_bounds = array<i64: 1, 128>}, {pipeline_mode = #tpu.pipeline_mode<synchronous>, transform_indices = @transform_5, window_bounds = array<i64: 1, 128>}, {pipeline_mode = #tpu.pipeline_mode<synchronous>, transform_indices = @transform_6, window_bounds = array<i64: 128, 128>}, {pipeline_mode = #tpu.pipeline_mode<synchronous>, transform_indices = @transform_7, window_bounds = array<i64: 1, 128>}, {pipeline_mode = #tpu.pipeline_mode<synchronous>, transform_indices = @transform_8, window_bounds = array<i64: 128, 384>}, {pipeline_mode = #tpu.pipeline_mode<synchronous>, transform_indices = @transform_9, window_bounds = array<i64: 1, 384>}, {pipeline_mode = #tpu.pipeline_mode<synchronous>, transform_indices = @transform_10, window_bounds = array<i64: 128, 128>}, {pipeline_mode = #tpu.pipeline_mode<synchronous>, transform_indices = @transform_11, window_bounds = array<i64: 1, 128>}, {pipeline_mode = #tpu.pipeline_mode<synchronous>, transform_indices = @transform_12, window_bounds = array<i64: 1, 128>}, {pipeline_mode = #tpu.pipeline_mode<synchronous>, transform_indices = @transform_13, window_bounds = array<i64: 1, 128>}, {pipeline_mode = #tpu.pipeline_mode<synchronous>, transform_indices = @transform_14, window_bounds = array<i64: 128, 256>}, {pipeline_mode = #tpu.pipeline_mode<synchronous>, transform_indices = @transform_15, window_bounds = array<i64: 1, 256>}, {pipeline_mode = #tpu.pipeline_mode<synchronous>, transform_indices = @transform_16, window_bounds = array<i64: 256, 128>}, {pipeline_mode = #tpu.pipeline_mode<synchronous>, transform_indices = @transform_17, window_bounds = array<i64: 1, 128>}, {pipeline_mode = #tpu.pipeline_mode<synchronous>, transform_indices = @transform_18, window_bounds = array<i64: 1, 128>}, {pipeline_mode = #tpu.pipeline_mode<synchronous>, transform_indices = @transform_19, window_bounds = array<i64: 1, 128>}, {pipeline_mode = #tpu.pipeline_mode<synchronous>, transform_indices = @transform_20, window_bounds = array<i64: 128, 384>}, {pipeline_mode = #tpu.pipeline_mode<synchronous>, transform_indices = @transform_21, window_bounds = array<i64: 1, 384>}, {pipeline_mode = #tpu.pipeline_mode<synchronous>, transform_indices = @transform_22, window_bounds = array<i64: 128, 128>}, {pipeline_mode = #tpu.pipeline_mode<synchronous>, transform_indices = @transform_23, window_bounds = array<i64: 1, 128>}, {pipeline_mode = #tpu.pipeline_mode<synchronous>, transform_indices = @transform_24, window_bounds = array<i64: 1, 128>}, {pipeline_mode = #tpu.pipeline_mode<synchronous>, transform_indices = @transform_25, window_bounds = array<i64: 1, 128>}, {pipeline_mode = #tpu.pipeline_mode<synchronous>, transform_indices = @transform_26, window_bounds = array<i64: 128, 256>}, {pipeline_mode = #tpu.pipeline_mode<synchronous>, transform_indices = @transform_27, window_bounds = array<i64: 1, 256>}, {pipeline_mode = #tpu.pipeline_mode<synchronous>, transform_indices = @transform_28, window_bounds = array<i64: 256, 128>}, {pipeline_mode = #tpu.pipeline_mode<synchronous>, transform_indices = @transform_29, window_bounds = array<i64: 1, 128>}, {pipeline_mode = #tpu.pipeline_mode<synchronous>, transform_indices = @transform_30, window_bounds = array<i64: 1, 128>}, {pipeline_mode = #tpu.pipeline_mode<synchronous>, transform_indices = @transform_31, window_bounds = array<i64: 1, 128>}, {pipeline_mode = #tpu.pipeline_mode<synchronous>, transform_indices = @transform_32, window_bounds = array<i64: 128, 2048>}, {pipeline_mode = #tpu.pipeline_mode<synchronous>, transform_indices = @transform_33, window_bounds = array<i64: 1, 2048>}, {transform_indices = @transform_34, window_bounds = array<i64: 1, 16, 2048>}]} {
    %0 = arith.index_cast %arg0 : i32 to index
    %1 = memref.load %arg1[%0] : memref<2xf32, #tpu.memory_space<smem>>
    %c0 = arith.constant 0 : index
    %c0_0 = arith.constant 0 : index
    %2 = vector.load %arg5[%c0, %c0_0] : memref<1x128xf32, #tpu.memory_space<vmem>>, vector<1x128xf32>
    %3 = vector.broadcast %1 : f32 to vector<1x128xf32>
    %4 = arith.mulf %3, %2 : vector<1x128xf32>
    %c0_1 = arith.constant 0 : index
    %c0_2 = arith.constant 0 : index
    %5 = vector.load %arg6[%c0_1, %c0_2] : memref<1x128xf32, #tpu.memory_space<vmem>>, vector<1x128xf32>
    %6 = arith.addf %4, %5 : vector<1x128xf32>
    %cst = arith.constant 0.000000e+00 : f32
    %7 = vector.broadcast %cst : f32 to vector<1x128xf32>
    %8 = arith.maximumf %6, %7 : vector<1x128xf32>
    %9 = arith.truncf %8 : vector<1x128xf32> to vector<1x128xbf16>
    %c0_3 = arith.constant 0 : index
    %c0_4 = arith.constant 0 : index
    %10 = vector.load %arg7[%c0_3, %c0_4] : memref<128x128xbf16, #tpu.memory_space<vmem>>, vector<128x128xbf16>
    %cst_5 = arith.constant dense<0.000000e+00> : vector<1x128xf32>
    %11 = tpu.matmul %9, %10, %cst_5 {dimension_numbers = #tpu.dot_dimension_numbers<[1], [0], [0], [1], [0, 0, 1, 1], [], []>} : vector<1x128xbf16>, vector<128x128xbf16>, vector<1x128xf32> -> vector<1x128xf32>
    %c0_6 = arith.constant 0 : index
    %c0_7 = arith.constant 0 : index
    %12 = vector.load %arg8[%c0_6, %c0_7] : memref<1x128xf32, #tpu.memory_space<vmem>>, vector<1x128xf32>
    %13 = arith.addf %11, %12 : vector<1x128xf32>
    %c0_8 = arith.constant 0 : index
    %c0_9 = arith.constant 0 : index
    %c0_10 = arith.constant 0 : index
    %14 = vector.load %arg2[%c0_8, %c0_9, %c0_10] : memref<1x16x32xf32, #tpu.memory_space<vmem>>, vector<1x16x32xf32>
    %15 = vector.shape_cast %14 : vector<1x16x32xf32> to vector<16x32xf32>
    %16 = arith.truncf %15 : vector<16x32xf32> to vector<16x32xbf16>
    %c0_11 = arith.constant 0 : index
    %c0_12 = arith.constant 0 : index
    %17 = vector.load %arg3[%c0_11, %c0_12] : memref<32x128xbf16, #tpu.memory_space<vmem>>, vector<32x128xbf16>
    %cst_13 = arith.constant dense<0.000000e+00> : vector<16x128xf32>
    %18 = tpu.matmul %16, %17, %cst_13 {dimension_numbers = #tpu.dot_dimension_numbers<[1], [0], [0], [1], [0, 0, 1, 1], [], []>} : vector<16x32xbf16>, vector<32x128xbf16>, vector<16x128xf32> -> vector<16x128xf32>
    %c0_14 = arith.constant 0 : index
    %c0_15 = arith.constant 0 : index
    %19 = vector.load %arg4[%c0_14, %c0_15] : memref<1x128xf32, #tpu.memory_space<vmem>>, vector<1x128xf32>
    %20 = vector.broadcast %19 : vector<1x128xf32> to vector<16x128xf32>
    %21 = arith.addf %18, %20 : vector<16x128xf32>
    %22 = vector.broadcast %13 : vector<1x128xf32> to vector<16x128xf32>
    %23 = arith.addf %21, %22 : vector<16x128xf32>
    %24 = arith.truncf %23 : vector<16x128xf32> to vector<16x128xbf16>
    %c0_16 = arith.constant 0 : index
    %c0_17 = arith.constant 0 : index
    %25 = vector.load %arg9[%c0_16, %c0_17] : memref<128x384xbf16, #tpu.memory_space<vmem>>, vector<128x384xbf16>
    %cst_18 = arith.constant dense<0.000000e+00> : vector<16x384xf32>
    %26 = tpu.matmul %24, %25, %cst_18 {dimension_numbers = #tpu.dot_dimension_numbers<[1], [0], [0], [1], [0, 0, 1, 1], [], []>} : vector<16x128xbf16>, vector<128x384xbf16>, vector<16x384xf32> -> vector<16x384xf32>
    %c0_19 = arith.constant 0 : index
    %c0_20 = arith.constant 0 : index
    %27 = vector.load %arg10[%c0_19, %c0_20] : memref<1x384xf32, #tpu.memory_space<vmem>>, vector<1x384xf32>
    %28 = vector.broadcast %27 : vector<1x384xf32> to vector<16x384xf32>
    %29 = arith.addf %26, %28 : vector<16x384xf32>
    %30 = vector.extract_strided_slice %29 {offsets = [0, 0], sizes = [16, 16], strides = [1, 1]} : vector<16x384xf32> to vector<16x16xf32>
    %31 = arith.truncf %30 : vector<16x16xf32> to vector<16x16xbf16>
    %32 = vector.extract_strided_slice %29 {offsets = [0, 128], sizes = [16, 16], strides = [1, 1]} : vector<16x384xf32> to vector<16x16xf32>
    %33 = arith.truncf %32 : vector<16x16xf32> to vector<16x16xbf16>
    %34 = vector.extract_strided_slice %29 {offsets = [0, 256], sizes = [16, 16], strides = [1, 1]} : vector<16x384xf32> to vector<16x16xf32>
    %35 = arith.truncf %34 : vector<16x16xf32> to vector<16x16xbf16>
    %cst_21 = arith.constant dense<0.000000e+00> : vector<16x16xf32>
    %36 = tpu.matmul %31, %33, %cst_21 {dimension_numbers = #tpu.dot_dimension_numbers<[1], [1], [0], [0], [0, 0, 1, 0], [], []>} : vector<16x16xbf16>, vector<16x16xbf16>, vector<16x16xf32> -> vector<16x16xf32>
    %cst_22 = arith.constant 2.500000e-01 : f32
    %37 = vector.broadcast %cst_22 : f32 to vector<16x16xf32>
    %38 = arith.mulf %36, %37 : vector<16x16xf32>
    %cst_23 = arith.constant dense<0xFF800000> : vector<16xf32>
    %39 = vector.multi_reduction <maximumf>, %38, %cst_23 [1] : vector<16x16xf32> to vector<16xf32>
    %40 = vector.shape_cast %39 : vector<16xf32> to vector<16x1xf32>
    %41 = vector.broadcast %40 : vector<16x1xf32> to vector<16x16xf32>
    %42 = arith.subf %38, %41 : vector<16x16xf32>
    %43 = math.exp %42 : vector<16x16xf32>
    %cst_24 = arith.constant dense<0.000000e+00> : vector<16xf32>
    %44 = vector.multi_reduction <add>, %43, %cst_24 [1] : vector<16x16xf32> to vector<16xf32>
    %45 = vector.shape_cast %44 : vector<16xf32> to vector<16x1xf32>
    %46 = vector.broadcast %45 : vector<16x1xf32> to vector<16x16xf32>
    %47 = arith.divf %43, %46 : vector<16x16xf32>
    %48 = arith.truncf %47 : vector<16x16xf32> to vector<16x16xbf16>
    %cst_25 = arith.constant dense<0.000000e+00> : vector<16x16xf32>
    %49 = tpu.matmul %48, %35, %cst_25 {dimension_numbers = #tpu.dot_dimension_numbers<[1], [0], [0], [1], [0, 0, 1, 1], [], []>} : vector<16x16xbf16>, vector<16x16xbf16>, vector<16x16xf32> -> vector<16x16xf32>
    %50 = vector.extract_strided_slice %29 {offsets = [0, 16], sizes = [16, 16], strides = [1, 1]} : vector<16x384xf32> to vector<16x16xf32>
    %51 = arith.truncf %50 : vector<16x16xf32> to vector<16x16xbf16>
    %52 = vector.extract_strided_slice %29 {offsets = [0, 144], sizes = [16, 16], strides = [1, 1]} : vector<16x384xf32> to vector<16x16xf32>
    %53 = arith.truncf %52 : vector<16x16xf32> to vector<16x16xbf16>
    %54 = vector.extract_strided_slice %29 {offsets = [0, 272], sizes = [16, 16], strides = [1, 1]} : vector<16x384xf32> to vector<16x16xf32>
    %55 = arith.truncf %54 : vector<16x16xf32> to vector<16x16xbf16>
    %cst_26 = arith.constant dense<0.000000e+00> : vector<16x16xf32>
    %56 = tpu.matmul %51, %53, %cst_26 {dimension_numbers = #tpu.dot_dimension_numbers<[1], [1], [0], [0], [0, 0, 1, 0], [], []>} : vector<16x16xbf16>, vector<16x16xbf16>, vector<16x16xf32> -> vector<16x16xf32>
    %cst_27 = arith.constant 2.500000e-01 : f32
    %57 = vector.broadcast %cst_27 : f32 to vector<16x16xf32>
    %58 = arith.mulf %56, %57 : vector<16x16xf32>
    %cst_28 = arith.constant dense<0xFF800000> : vector<16xf32>
    %59 = vector.multi_reduction <maximumf>, %58, %cst_28 [1] : vector<16x16xf32> to vector<16xf32>
    %60 = vector.shape_cast %59 : vector<16xf32> to vector<16x1xf32>
    %61 = vector.broadcast %60 : vector<16x1xf32> to vector<16x16xf32>
    %62 = arith.subf %58, %61 : vector<16x16xf32>
    %63 = math.exp %62 : vector<16x16xf32>
    %cst_29 = arith.constant dense<0.000000e+00> : vector<16xf32>
    %64 = vector.multi_reduction <add>, %63, %cst_29 [1] : vector<16x16xf32> to vector<16xf32>
    %65 = vector.shape_cast %64 : vector<16xf32> to vector<16x1xf32>
    %66 = vector.broadcast %65 : vector<16x1xf32> to vector<16x16xf32>
    %67 = arith.divf %63, %66 : vector<16x16xf32>
    %68 = arith.truncf %67 : vector<16x16xf32> to vector<16x16xbf16>
    %cst_30 = arith.constant dense<0.000000e+00> : vector<16x16xf32>
    %69 = tpu.matmul %68, %55, %cst_30 {dimension_numbers = #tpu.dot_dimension_numbers<[1], [0], [0], [1], [0, 0, 1, 1], [], []>} : vector<16x16xbf16>, vector<16x16xbf16>, vector<16x16xf32> -> vector<16x16xf32>
    %70 = vector.extract_strided_slice %29 {offsets = [0, 32], sizes = [16, 16], strides = [1, 1]} : vector<16x384xf32> to vector<16x16xf32>
    %71 = arith.truncf %70 : vector<16x16xf32> to vector<16x16xbf16>
    %72 = vector.extract_strided_slice %29 {offsets = [0, 160], sizes = [16, 16], strides = [1, 1]} : vector<16x384xf32> to vector<16x16xf32>
    %73 = arith.truncf %72 : vector<16x16xf32> to vector<16x16xbf16>
    %74 = vector.extract_strided_slice %29 {offsets = [0, 288], sizes = [16, 16], strides = [1, 1]} : vector<16x384xf32> to vector<16x16xf32>
    %75 = arith.truncf %74 : vector<16x16xf32> to vector<16x16xbf16>
    %cst_31 = arith.constant dense<0.000000e+00> : vector<16x16xf32>
    %76 = tpu.matmul %71, %73, %cst_31 {dimension_numbers = #tpu.dot_dimension_numbers<[1], [1], [0], [0], [0, 0, 1, 0], [], []>} : vector<16x16xbf16>, vector<16x16xbf16>, vector<16x16xf32> -> vector<16x16xf32>
    %cst_32 = arith.constant 2.500000e-01 : f32
    %77 = vector.broadcast %cst_32 : f32 to vector<16x16xf32>
    %78 = arith.mulf %76, %77 : vector<16x16xf32>
    %cst_33 = arith.constant dense<0xFF800000> : vector<16xf32>
    %79 = vector.multi_reduction <maximumf>, %78, %cst_33 [1] : vector<16x16xf32> to vector<16xf32>
    %80 = vector.shape_cast %79 : vector<16xf32> to vector<16x1xf32>
    %81 = vector.broadcast %80 : vector<16x1xf32> to vector<16x16xf32>
    %82 = arith.subf %78, %81 : vector<16x16xf32>
    %83 = math.exp %82 : vector<16x16xf32>
    %cst_34 = arith.constant dense<0.000000e+00> : vector<16xf32>
    %84 = vector.multi_reduction <add>, %83, %cst_34 [1] : vector<16x16xf32> to vector<16xf32>
    %85 = vector.shape_cast %84 : vector<16xf32> to vector<16x1xf32>
    %86 = vector.broadcast %85 : vector<16x1xf32> to vector<16x16xf32>
    %87 = arith.divf %83, %86 : vector<16x16xf32>
    %88 = arith.truncf %87 : vector<16x16xf32> to vector<16x16xbf16>
    %cst_35 = arith.constant dense<0.000000e+00> : vector<16x16xf32>
    %89 = tpu.matmul %88, %75, %cst_35 {dimension_numbers = #tpu.dot_dimension_numbers<[1], [0], [0], [1], [0, 0, 1, 1], [], []>} : vector<16x16xbf16>, vector<16x16xbf16>, vector<16x16xf32> -> vector<16x16xf32>
    %90 = vector.extract_strided_slice %29 {offsets = [0, 48], sizes = [16, 16], strides = [1, 1]} : vector<16x384xf32> to vector<16x16xf32>
    %91 = arith.truncf %90 : vector<16x16xf32> to vector<16x16xbf16>
    %92 = vector.extract_strided_slice %29 {offsets = [0, 176], sizes = [16, 16], strides = [1, 1]} : vector<16x384xf32> to vector<16x16xf32>
    %93 = arith.truncf %92 : vector<16x16xf32> to vector<16x16xbf16>
    %94 = vector.extract_strided_slice %29 {offsets = [0, 304], sizes = [16, 16], strides = [1, 1]} : vector<16x384xf32> to vector<16x16xf32>
    %95 = arith.truncf %94 : vector<16x16xf32> to vector<16x16xbf16>
    %cst_36 = arith.constant dense<0.000000e+00> : vector<16x16xf32>
    %96 = tpu.matmul %91, %93, %cst_36 {dimension_numbers = #tpu.dot_dimension_numbers<[1], [1], [0], [0], [0, 0, 1, 0], [], []>} : vector<16x16xbf16>, vector<16x16xbf16>, vector<16x16xf32> -> vector<16x16xf32>
    %cst_37 = arith.constant 2.500000e-01 : f32
    %97 = vector.broadcast %cst_37 : f32 to vector<16x16xf32>
    %98 = arith.mulf %96, %97 : vector<16x16xf32>
    %cst_38 = arith.constant dense<0xFF800000> : vector<16xf32>
    %99 = vector.multi_reduction <maximumf>, %98, %cst_38 [1] : vector<16x16xf32> to vector<16xf32>
    %100 = vector.shape_cast %99 : vector<16xf32> to vector<16x1xf32>
    %101 = vector.broadcast %100 : vector<16x1xf32> to vector<16x16xf32>
    %102 = arith.subf %98, %101 : vector<16x16xf32>
    %103 = math.exp %102 : vector<16x16xf32>
    %cst_39 = arith.constant dense<0.000000e+00> : vector<16xf32>
    %104 = vector.multi_reduction <add>, %103, %cst_39 [1] : vector<16x16xf32> to vector<16xf32>
    %105 = vector.shape_cast %104 : vector<16xf32> to vector<16x1xf32>
    %106 = vector.broadcast %105 : vector<16x1xf32> to vector<16x16xf32>
    %107 = arith.divf %103, %106 : vector<16x16xf32>
    %108 = arith.truncf %107 : vector<16x16xf32> to vector<16x16xbf16>
    %cst_40 = arith.constant dense<0.000000e+00> : vector<16x16xf32>
    %109 = tpu.matmul %108, %95, %cst_40 {dimension_numbers = #tpu.dot_dimension_numbers<[1], [0], [0], [1], [0, 0, 1, 1], [], []>} : vector<16x16xbf16>, vector<16x16xbf16>, vector<16x16xf32> -> vector<16x16xf32>
    %110 = vector.extract_strided_slice %29 {offsets = [0, 64], sizes = [16, 16], strides = [1, 1]} : vector<16x384xf32> to vector<16x16xf32>
    %111 = arith.truncf %110 : vector<16x16xf32> to vector<16x16xbf16>
    %112 = vector.extract_strided_slice %29 {offsets = [0, 192], sizes = [16, 16], strides = [1, 1]} : vector<16x384xf32> to vector<16x16xf32>
    %113 = arith.truncf %112 : vector<16x16xf32> to vector<16x16xbf16>
    %114 = vector.extract_strided_slice %29 {offsets = [0, 320], sizes = [16, 16], strides = [1, 1]} : vector<16x384xf32> to vector<16x16xf32>
    %115 = arith.truncf %114 : vector<16x16xf32> to vector<16x16xbf16>
    %cst_41 = arith.constant dense<0.000000e+00> : vector<16x16xf32>
    %116 = tpu.matmul %111, %113, %cst_41 {dimension_numbers = #tpu.dot_dimension_numbers<[1], [1], [0], [0], [0, 0, 1, 0], [], []>} : vector<16x16xbf16>, vector<16x16xbf16>, vector<16x16xf32> -> vector<16x16xf32>
    %cst_42 = arith.constant 2.500000e-01 : f32
    %117 = vector.broadcast %cst_42 : f32 to vector<16x16xf32>
    %118 = arith.mulf %116, %117 : vector<16x16xf32>
    %cst_43 = arith.constant dense<0xFF800000> : vector<16xf32>
    %119 = vector.multi_reduction <maximumf>, %118, %cst_43 [1] : vector<16x16xf32> to vector<16xf32>
    %120 = vector.shape_cast %119 : vector<16xf32> to vector<16x1xf32>
    %121 = vector.broadcast %120 : vector<16x1xf32> to vector<16x16xf32>
    %122 = arith.subf %118, %121 : vector<16x16xf32>
    %123 = math.exp %122 : vector<16x16xf32>
    %cst_44 = arith.constant dense<0.000000e+00> : vector<16xf32>
    %124 = vector.multi_reduction <add>, %123, %cst_44 [1] : vector<16x16xf32> to vector<16xf32>
    %125 = vector.shape_cast %124 : vector<16xf32> to vector<16x1xf32>
    %126 = vector.broadcast %125 : vector<16x1xf32> to vector<16x16xf32>
    %127 = arith.divf %123, %126 : vector<16x16xf32>
    %128 = arith.truncf %127 : vector<16x16xf32> to vector<16x16xbf16>
    %cst_45 = arith.constant dense<0.000000e+00> : vector<16x16xf32>
    %129 = tpu.matmul %128, %115, %cst_45 {dimension_numbers = #tpu.dot_dimension_numbers<[1], [0], [0], [1], [0, 0, 1, 1], [], []>} : vector<16x16xbf16>, vector<16x16xbf16>, vector<16x16xf32> -> vector<16x16xf32>
    %130 = vector.extract_strided_slice %29 {offsets = [0, 80], sizes = [16, 16], strides = [1, 1]} : vector<16x384xf32> to vector<16x16xf32>
    %131 = arith.truncf %130 : vector<16x16xf32> to vector<16x16xbf16>
    %132 = vector.extract_strided_slice %29 {offsets = [0, 208], sizes = [16, 16], strides = [1, 1]} : vector<16x384xf32> to vector<16x16xf32>
    %133 = arith.truncf %132 : vector<16x16xf32> to vector<16x16xbf16>
    %134 = vector.extract_strided_slice %29 {offsets = [0, 336], sizes = [16, 16], strides = [1, 1]} : vector<16x384xf32> to vector<16x16xf32>
    %135 = arith.truncf %134 : vector<16x16xf32> to vector<16x16xbf16>
    %cst_46 = arith.constant dense<0.000000e+00> : vector<16x16xf32>
    %136 = tpu.matmul %131, %133, %cst_46 {dimension_numbers = #tpu.dot_dimension_numbers<[1], [1], [0], [0], [0, 0, 1, 0], [], []>} : vector<16x16xbf16>, vector<16x16xbf16>, vector<16x16xf32> -> vector<16x16xf32>
    %cst_47 = arith.constant 2.500000e-01 : f32
    %137 = vector.broadcast %cst_47 : f32 to vector<16x16xf32>
    %138 = arith.mulf %136, %137 : vector<16x16xf32>
    %cst_48 = arith.constant dense<0xFF800000> : vector<16xf32>
    %139 = vector.multi_reduction <maximumf>, %138, %cst_48 [1] : vector<16x16xf32> to vector<16xf32>
    %140 = vector.shape_cast %139 : vector<16xf32> to vector<16x1xf32>
    %141 = vector.broadcast %140 : vector<16x1xf32> to vector<16x16xf32>
    %142 = arith.subf %138, %141 : vector<16x16xf32>
    %143 = math.exp %142 : vector<16x16xf32>
    %cst_49 = arith.constant dense<0.000000e+00> : vector<16xf32>
    %144 = vector.multi_reduction <add>, %143, %cst_49 [1] : vector<16x16xf32> to vector<16xf32>
    %145 = vector.shape_cast %144 : vector<16xf32> to vector<16x1xf32>
    %146 = vector.broadcast %145 : vector<16x1xf32> to vector<16x16xf32>
    %147 = arith.divf %143, %146 : vector<16x16xf32>
    %148 = arith.truncf %147 : vector<16x16xf32> to vector<16x16xbf16>
    %cst_50 = arith.constant dense<0.000000e+00> : vector<16x16xf32>
    %149 = tpu.matmul %148, %135, %cst_50 {dimension_numbers = #tpu.dot_dimension_numbers<[1], [0], [0], [1], [0, 0, 1, 1], [], []>} : vector<16x16xbf16>, vector<16x16xbf16>, vector<16x16xf32> -> vector<16x16xf32>
    %150 = vector.extract_strided_slice %29 {offsets = [0, 96], sizes = [16, 16], strides = [1, 1]} : vector<16x384xf32> to vector<16x16xf32>
    %151 = arith.truncf %150 : vector<16x16xf32> to vector<16x16xbf16>
    %152 = vector.extract_strided_slice %29 {offsets = [0, 224], sizes = [16, 16], strides = [1, 1]} : vector<16x384xf32> to vector<16x16xf32>
    %153 = arith.truncf %152 : vector<16x16xf32> to vector<16x16xbf16>
    %154 = vector.extract_strided_slice %29 {offsets = [0, 352], sizes = [16, 16], strides = [1, 1]} : vector<16x384xf32> to vector<16x16xf32>
    %155 = arith.truncf %154 : vector<16x16xf32> to vector<16x16xbf16>
    %cst_51 = arith.constant dense<0.000000e+00> : vector<16x16xf32>
    %156 = tpu.matmul %151, %153, %cst_51 {dimension_numbers = #tpu.dot_dimension_numbers<[1], [1], [0], [0], [0, 0, 1, 0], [], []>} : vector<16x16xbf16>, vector<16x16xbf16>, vector<16x16xf32> -> vector<16x16xf32>
    %cst_52 = arith.constant 2.500000e-01 : f32
    %157 = vector.broadcast %cst_52 : f32 to vector<16x16xf32>
    %158 = arith.mulf %156, %157 : vector<16x16xf32>
    %cst_53 = arith.constant dense<0xFF800000> : vector<16xf32>
    %159 = vector.multi_reduction <maximumf>, %158, %cst_53 [1] : vector<16x16xf32> to vector<16xf32>
    %160 = vector.shape_cast %159 : vector<16xf32> to vector<16x1xf32>
    %161 = vector.broadcast %160 : vector<16x1xf32> to vector<16x16xf32>
    %162 = arith.subf %158, %161 : vector<16x16xf32>
    %163 = math.exp %162 : vector<16x16xf32>
    %cst_54 = arith.constant dense<0.000000e+00> : vector<16xf32>
    %164 = vector.multi_reduction <add>, %163, %cst_54 [1] : vector<16x16xf32> to vector<16xf32>
    %165 = vector.shape_cast %164 : vector<16xf32> to vector<16x1xf32>
    %166 = vector.broadcast %165 : vector<16x1xf32> to vector<16x16xf32>
    %167 = arith.divf %163, %166 : vector<16x16xf32>
    %168 = arith.truncf %167 : vector<16x16xf32> to vector<16x16xbf16>
    %cst_55 = arith.constant dense<0.000000e+00> : vector<16x16xf32>
    %169 = tpu.matmul %168, %155, %cst_55 {dimension_numbers = #tpu.dot_dimension_numbers<[1], [0], [0], [1], [0, 0, 1, 1], [], []>} : vector<16x16xbf16>, vector<16x16xbf16>, vector<16x16xf32> -> vector<16x16xf32>
    %170 = vector.extract_strided_slice %29 {offsets = [0, 112], sizes = [16, 16], strides = [1, 1]} : vector<16x384xf32> to vector<16x16xf32>
    %171 = arith.truncf %170 : vector<16x16xf32> to vector<16x16xbf16>
    %172 = vector.extract_strided_slice %29 {offsets = [0, 240], sizes = [16, 16], strides = [1, 1]} : vector<16x384xf32> to vector<16x16xf32>
    %173 = arith.truncf %172 : vector<16x16xf32> to vector<16x16xbf16>
    %174 = vector.extract_strided_slice %29 {offsets = [0, 368], sizes = [16, 16], strides = [1, 1]} : vector<16x384xf32> to vector<16x16xf32>
    %175 = arith.truncf %174 : vector<16x16xf32> to vector<16x16xbf16>
    %cst_56 = arith.constant dense<0.000000e+00> : vector<16x16xf32>
    %176 = tpu.matmul %171, %173, %cst_56 {dimension_numbers = #tpu.dot_dimension_numbers<[1], [1], [0], [0], [0, 0, 1, 0], [], []>} : vector<16x16xbf16>, vector<16x16xbf16>, vector<16x16xf32> -> vector<16x16xf32>
    %cst_57 = arith.constant 2.500000e-01 : f32
    %177 = vector.broadcast %cst_57 : f32 to vector<16x16xf32>
    %178 = arith.mulf %176, %177 : vector<16x16xf32>
    %cst_58 = arith.constant dense<0xFF800000> : vector<16xf32>
    %179 = vector.multi_reduction <maximumf>, %178, %cst_58 [1] : vector<16x16xf32> to vector<16xf32>
    %180 = vector.shape_cast %179 : vector<16xf32> to vector<16x1xf32>
    %181 = vector.broadcast %180 : vector<16x1xf32> to vector<16x16xf32>
    %182 = arith.subf %178, %181 : vector<16x16xf32>
    %183 = math.exp %182 : vector<16x16xf32>
    %cst_59 = arith.constant dense<0.000000e+00> : vector<16xf32>
    %184 = vector.multi_reduction <add>, %183, %cst_59 [1] : vector<16x16xf32> to vector<16xf32>
    %185 = vector.shape_cast %184 : vector<16xf32> to vector<16x1xf32>
    %186 = vector.broadcast %185 : vector<16x1xf32> to vector<16x16xf32>
    %187 = arith.divf %183, %186 : vector<16x16xf32>
    %188 = arith.truncf %187 : vector<16x16xf32> to vector<16x16xbf16>
    %cst_60 = arith.constant dense<0.000000e+00> : vector<16x16xf32>
    %189 = tpu.matmul %188, %175, %cst_60 {dimension_numbers = #tpu.dot_dimension_numbers<[1], [0], [0], [1], [0, 0, 1, 1], [], []>} : vector<16x16xbf16>, vector<16x16xbf16>, vector<16x16xf32> -> vector<16x16xf32>
    %190 = tpu.concatenate %49, %69, %89, %109, %129, %149, %169, %189 in 1 : vector<16x16xf32>, vector<16x16xf32>, vector<16x16xf32>, vector<16x16xf32>, vector<16x16xf32>, vector<16x16xf32>, vector<16x16xf32>, vector<16x16xf32> -> vector<16x128xf32>
    %191 = arith.truncf %190 : vector<16x128xf32> to vector<16x128xbf16>
    %c0_61 = arith.constant 0 : index
    %c0_62 = arith.constant 0 : index
    %192 = vector.load %arg11[%c0_61, %c0_62] : memref<128x128xbf16, #tpu.memory_space<vmem>>, vector<128x128xbf16>
    %cst_63 = arith.constant dense<0.000000e+00> : vector<16x128xf32>
    %193 = tpu.matmul %191, %192, %cst_63 {dimension_numbers = #tpu.dot_dimension_numbers<[1], [0], [0], [1], [0, 0, 1, 1], [], []>} : vector<16x128xbf16>, vector<128x128xbf16>, vector<16x128xf32> -> vector<16x128xf32>
    %c0_64 = arith.constant 0 : index
    %c0_65 = arith.constant 0 : index
    %194 = vector.load %arg12[%c0_64, %c0_65] : memref<1x128xf32, #tpu.memory_space<vmem>>, vector<1x128xf32>
    %195 = vector.broadcast %194 : vector<1x128xf32> to vector<16x128xf32>
    %196 = arith.addf %193, %195 : vector<16x128xf32>
    %197 = arith.addf %196, %23 : vector<16x128xf32>
    %cst_66 = arith.constant dense<0.000000e+00> : vector<16xf32>
    %198 = vector.multi_reduction <add>, %197, %cst_66 [1] : vector<16x128xf32> to vector<16xf32>
    %199 = vector.shape_cast %198 : vector<16xf32> to vector<16x1xf32>
    %cst_67 = arith.constant 1.280000e+02 : f32
    %200 = vector.broadcast %cst_67 : f32 to vector<16x1xf32>
    %201 = arith.divf %199, %200 : vector<16x1xf32>
    %202 = vector.broadcast %201 : vector<16x1xf32> to vector<16x128xf32>
    %203 = arith.subf %197, %202 : vector<16x128xf32>
    %204 = arith.mulf %203, %203 : vector<16x128xf32>
    %cst_68 = arith.constant dense<0.000000e+00> : vector<16xf32>
    %205 = vector.multi_reduction <add>, %204, %cst_68 [1] : vector<16x128xf32> to vector<16xf32>
    %206 = vector.shape_cast %205 : vector<16xf32> to vector<16x1xf32>
    %cst_69 = arith.constant 1.280000e+02 : f32
    %207 = vector.broadcast %cst_69 : f32 to vector<16x1xf32>
    %208 = arith.divf %206, %207 : vector<16x1xf32>
    %cst_70 = arith.constant 9.99999974E-6 : f32
    %209 = vector.broadcast %cst_70 : f32 to vector<16x1xf32>
    %210 = arith.addf %208, %209 : vector<16x1xf32>
    %211 = math.rsqrt %210 : vector<16x1xf32>
    %212 = vector.broadcast %211 : vector<16x1xf32> to vector<16x128xf32>
    %213 = arith.mulf %203, %212 : vector<16x128xf32>
    %c0_71 = arith.constant 0 : index
    %c0_72 = arith.constant 0 : index
    %214 = vector.load %arg13[%c0_71, %c0_72] : memref<1x128xf32, #tpu.memory_space<vmem>>, vector<1x128xf32>
    %215 = vector.broadcast %214 : vector<1x128xf32> to vector<16x128xf32>
    %216 = arith.mulf %213, %215 : vector<16x128xf32>
    %c0_73 = arith.constant 0 : index
    %c0_74 = arith.constant 0 : index
    %217 = vector.load %arg14[%c0_73, %c0_74] : memref<1x128xf32, #tpu.memory_space<vmem>>, vector<1x128xf32>
    %218 = vector.broadcast %217 : vector<1x128xf32> to vector<16x128xf32>
    %219 = arith.addf %216, %218 : vector<16x128xf32>
    %220 = arith.truncf %219 : vector<16x128xf32> to vector<16x128xbf16>
    %c0_75 = arith.constant 0 : index
    %c0_76 = arith.constant 0 : index
    %221 = vector.load %arg15[%c0_75, %c0_76] : memref<128x256xbf16, #tpu.memory_space<vmem>>, vector<128x256xbf16>
    %cst_77 = arith.constant dense<0.000000e+00> : vector<16x256xf32>
    %222 = tpu.matmul %220, %221, %cst_77 {dimension_numbers = #tpu.dot_dimension_numbers<[1], [0], [0], [1], [0, 0, 1, 1], [], []>} : vector<16x128xbf16>, vector<128x256xbf16>, vector<16x256xf32> -> vector<16x256xf32>
    %c0_78 = arith.constant 0 : index
    %c0_79 = arith.constant 0 : index
    %223 = vector.load %arg16[%c0_78, %c0_79] : memref<1x256xf32, #tpu.memory_space<vmem>>, vector<1x256xf32>
    %224 = vector.broadcast %223 : vector<1x256xf32> to vector<16x256xf32>
    %225 = arith.addf %222, %224 : vector<16x256xf32>
    %cst_80 = arith.constant 0.000000e+00 : f32
    %226 = vector.broadcast %cst_80 : f32 to vector<16x256xf32>
    %227 = arith.maximumf %225, %226 : vector<16x256xf32>
    %228 = arith.truncf %227 : vector<16x256xf32> to vector<16x256xbf16>
    %c0_81 = arith.constant 0 : index
    %c0_82 = arith.constant 0 : index
    %229 = vector.load %arg17[%c0_81, %c0_82] : memref<256x128xbf16, #tpu.memory_space<vmem>>, vector<256x128xbf16>
    %cst_83 = arith.constant dense<0.000000e+00> : vector<16x128xf32>
    %230 = tpu.matmul %228, %229, %cst_83 {dimension_numbers = #tpu.dot_dimension_numbers<[1], [0], [0], [1], [0, 0, 1, 1], [], []>} : vector<16x256xbf16>, vector<256x128xbf16>, vector<16x128xf32> -> vector<16x128xf32>
    %c0_84 = arith.constant 0 : index
    %c0_85 = arith.constant 0 : index
    %231 = vector.load %arg18[%c0_84, %c0_85] : memref<1x128xf32, #tpu.memory_space<vmem>>, vector<1x128xf32>
    %232 = vector.broadcast %231 : vector<1x128xf32> to vector<16x128xf32>
    %233 = arith.addf %230, %232 : vector<16x128xf32>
    %234 = arith.addf %233, %219 : vector<16x128xf32>
    %cst_86 = arith.constant dense<0.000000e+00> : vector<16xf32>
    %235 = vector.multi_reduction <add>, %234, %cst_86 [1] : vector<16x128xf32> to vector<16xf32>
    %236 = vector.shape_cast %235 : vector<16xf32> to vector<16x1xf32>
    %cst_87 = arith.constant 1.280000e+02 : f32
    %237 = vector.broadcast %cst_87 : f32 to vector<16x1xf32>
    %238 = arith.divf %236, %237 : vector<16x1xf32>
    %239 = vector.broadcast %238 : vector<16x1xf32> to vector<16x128xf32>
    %240 = arith.subf %234, %239 : vector<16x128xf32>
    %241 = arith.mulf %240, %240 : vector<16x128xf32>
    %cst_88 = arith.constant dense<0.000000e+00> : vector<16xf32>
    %242 = vector.multi_reduction <add>, %241, %cst_88 [1] : vector<16x128xf32> to vector<16xf32>
    %243 = vector.shape_cast %242 : vector<16xf32> to vector<16x1xf32>
    %cst_89 = arith.constant 1.280000e+02 : f32
    %244 = vector.broadcast %cst_89 : f32 to vector<16x1xf32>
    %245 = arith.divf %243, %244 : vector<16x1xf32>
    %cst_90 = arith.constant 9.99999974E-6 : f32
    %246 = vector.broadcast %cst_90 : f32 to vector<16x1xf32>
    %247 = arith.addf %245, %246 : vector<16x1xf32>
    %248 = math.rsqrt %247 : vector<16x1xf32>
    %249 = vector.broadcast %248 : vector<16x1xf32> to vector<16x128xf32>
    %250 = arith.mulf %240, %249 : vector<16x128xf32>
    %c0_91 = arith.constant 0 : index
    %c0_92 = arith.constant 0 : index
    %251 = vector.load %arg19[%c0_91, %c0_92] : memref<1x128xf32, #tpu.memory_space<vmem>>, vector<1x128xf32>
    %252 = vector.broadcast %251 : vector<1x128xf32> to vector<16x128xf32>
    %253 = arith.mulf %250, %252 : vector<16x128xf32>
    %c0_93 = arith.constant 0 : index
    %c0_94 = arith.constant 0 : index
    %254 = vector.load %arg20[%c0_93, %c0_94] : memref<1x128xf32, #tpu.memory_space<vmem>>, vector<1x128xf32>
    %255 = vector.broadcast %254 : vector<1x128xf32> to vector<16x128xf32>
    %256 = arith.addf %253, %255 : vector<16x128xf32>
    %257 = arith.truncf %256 : vector<16x128xf32> to vector<16x128xbf16>
    %c0_95 = arith.constant 0 : index
    %c0_96 = arith.constant 0 : index
    %258 = vector.load %arg21[%c0_95, %c0_96] : memref<128x384xbf16, #tpu.memory_space<vmem>>, vector<128x384xbf16>
    %cst_97 = arith.constant dense<0.000000e+00> : vector<16x384xf32>
    %259 = tpu.matmul %257, %258, %cst_97 {dimension_numbers = #tpu.dot_dimension_numbers<[1], [0], [0], [1], [0, 0, 1, 1], [], []>} : vector<16x128xbf16>, vector<128x384xbf16>, vector<16x384xf32> -> vector<16x384xf32>
    %c0_98 = arith.constant 0 : index
    %c0_99 = arith.constant 0 : index
    %260 = vector.load %arg22[%c0_98, %c0_99] : memref<1x384xf32, #tpu.memory_space<vmem>>, vector<1x384xf32>
    %261 = vector.broadcast %260 : vector<1x384xf32> to vector<16x384xf32>
    %262 = arith.addf %259, %261 : vector<16x384xf32>
    %263 = vector.extract_strided_slice %262 {offsets = [0, 0], sizes = [16, 16], strides = [1, 1]} : vector<16x384xf32> to vector<16x16xf32>
    %264 = arith.truncf %263 : vector<16x16xf32> to vector<16x16xbf16>
    %265 = vector.extract_strided_slice %262 {offsets = [0, 128], sizes = [16, 16], strides = [1, 1]} : vector<16x384xf32> to vector<16x16xf32>
    %266 = arith.truncf %265 : vector<16x16xf32> to vector<16x16xbf16>
    %267 = vector.extract_strided_slice %262 {offsets = [0, 256], sizes = [16, 16], strides = [1, 1]} : vector<16x384xf32> to vector<16x16xf32>
    %268 = arith.truncf %267 : vector<16x16xf32> to vector<16x16xbf16>
    %cst_100 = arith.constant dense<0.000000e+00> : vector<16x16xf32>
    %269 = tpu.matmul %264, %266, %cst_100 {dimension_numbers = #tpu.dot_dimension_numbers<[1], [1], [0], [0], [0, 0, 1, 0], [], []>} : vector<16x16xbf16>, vector<16x16xbf16>, vector<16x16xf32> -> vector<16x16xf32>
    %cst_101 = arith.constant 2.500000e-01 : f32
    %270 = vector.broadcast %cst_101 : f32 to vector<16x16xf32>
    %271 = arith.mulf %269, %270 : vector<16x16xf32>
    %cst_102 = arith.constant dense<0xFF800000> : vector<16xf32>
    %272 = vector.multi_reduction <maximumf>, %271, %cst_102 [1] : vector<16x16xf32> to vector<16xf32>
    %273 = vector.shape_cast %272 : vector<16xf32> to vector<16x1xf32>
    %274 = vector.broadcast %273 : vector<16x1xf32> to vector<16x16xf32>
    %275 = arith.subf %271, %274 : vector<16x16xf32>
    %276 = math.exp %275 : vector<16x16xf32>
    %cst_103 = arith.constant dense<0.000000e+00> : vector<16xf32>
    %277 = vector.multi_reduction <add>, %276, %cst_103 [1] : vector<16x16xf32> to vector<16xf32>
    %278 = vector.shape_cast %277 : vector<16xf32> to vector<16x1xf32>
    %279 = vector.broadcast %278 : vector<16x1xf32> to vector<16x16xf32>
    %280 = arith.divf %276, %279 : vector<16x16xf32>
    %281 = arith.truncf %280 : vector<16x16xf32> to vector<16x16xbf16>
    %cst_104 = arith.constant dense<0.000000e+00> : vector<16x16xf32>
    %282 = tpu.matmul %281, %268, %cst_104 {dimension_numbers = #tpu.dot_dimension_numbers<[1], [0], [0], [1], [0, 0, 1, 1], [], []>} : vector<16x16xbf16>, vector<16x16xbf16>, vector<16x16xf32> -> vector<16x16xf32>
    %283 = vector.extract_strided_slice %262 {offsets = [0, 16], sizes = [16, 16], strides = [1, 1]} : vector<16x384xf32> to vector<16x16xf32>
    %284 = arith.truncf %283 : vector<16x16xf32> to vector<16x16xbf16>
    %285 = vector.extract_strided_slice %262 {offsets = [0, 144], sizes = [16, 16], strides = [1, 1]} : vector<16x384xf32> to vector<16x16xf32>
    %286 = arith.truncf %285 : vector<16x16xf32> to vector<16x16xbf16>
    %287 = vector.extract_strided_slice %262 {offsets = [0, 272], sizes = [16, 16], strides = [1, 1]} : vector<16x384xf32> to vector<16x16xf32>
    %288 = arith.truncf %287 : vector<16x16xf32> to vector<16x16xbf16>
    %cst_105 = arith.constant dense<0.000000e+00> : vector<16x16xf32>
    %289 = tpu.matmul %284, %286, %cst_105 {dimension_numbers = #tpu.dot_dimension_numbers<[1], [1], [0], [0], [0, 0, 1, 0], [], []>} : vector<16x16xbf16>, vector<16x16xbf16>, vector<16x16xf32> -> vector<16x16xf32>
    %cst_106 = arith.constant 2.500000e-01 : f32
    %290 = vector.broadcast %cst_106 : f32 to vector<16x16xf32>
    %291 = arith.mulf %289, %290 : vector<16x16xf32>
    %cst_107 = arith.constant dense<0xFF800000> : vector<16xf32>
    %292 = vector.multi_reduction <maximumf>, %291, %cst_107 [1] : vector<16x16xf32> to vector<16xf32>
    %293 = vector.shape_cast %292 : vector<16xf32> to vector<16x1xf32>
    %294 = vector.broadcast %293 : vector<16x1xf32> to vector<16x16xf32>
    %295 = arith.subf %291, %294 : vector<16x16xf32>
    %296 = math.exp %295 : vector<16x16xf32>
    %cst_108 = arith.constant dense<0.000000e+00> : vector<16xf32>
    %297 = vector.multi_reduction <add>, %296, %cst_108 [1] : vector<16x16xf32> to vector<16xf32>
    %298 = vector.shape_cast %297 : vector<16xf32> to vector<16x1xf32>
    %299 = vector.broadcast %298 : vector<16x1xf32> to vector<16x16xf32>
    %300 = arith.divf %296, %299 : vector<16x16xf32>
    %301 = arith.truncf %300 : vector<16x16xf32> to vector<16x16xbf16>
    %cst_109 = arith.constant dense<0.000000e+00> : vector<16x16xf32>
    %302 = tpu.matmul %301, %288, %cst_109 {dimension_numbers = #tpu.dot_dimension_numbers<[1], [0], [0], [1], [0, 0, 1, 1], [], []>} : vector<16x16xbf16>, vector<16x16xbf16>, vector<16x16xf32> -> vector<16x16xf32>
    %303 = vector.extract_strided_slice %262 {offsets = [0, 32], sizes = [16, 16], strides = [1, 1]} : vector<16x384xf32> to vector<16x16xf32>
    %304 = arith.truncf %303 : vector<16x16xf32> to vector<16x16xbf16>
    %305 = vector.extract_strided_slice %262 {offsets = [0, 160], sizes = [16, 16], strides = [1, 1]} : vector<16x384xf32> to vector<16x16xf32>
    %306 = arith.truncf %305 : vector<16x16xf32> to vector<16x16xbf16>
    %307 = vector.extract_strided_slice %262 {offsets = [0, 288], sizes = [16, 16], strides = [1, 1]} : vector<16x384xf32> to vector<16x16xf32>
    %308 = arith.truncf %307 : vector<16x16xf32> to vector<16x16xbf16>
    %cst_110 = arith.constant dense<0.000000e+00> : vector<16x16xf32>
    %309 = tpu.matmul %304, %306, %cst_110 {dimension_numbers = #tpu.dot_dimension_numbers<[1], [1], [0], [0], [0, 0, 1, 0], [], []>} : vector<16x16xbf16>, vector<16x16xbf16>, vector<16x16xf32> -> vector<16x16xf32>
    %cst_111 = arith.constant 2.500000e-01 : f32
    %310 = vector.broadcast %cst_111 : f32 to vector<16x16xf32>
    %311 = arith.mulf %309, %310 : vector<16x16xf32>
    %cst_112 = arith.constant dense<0xFF800000> : vector<16xf32>
    %312 = vector.multi_reduction <maximumf>, %311, %cst_112 [1] : vector<16x16xf32> to vector<16xf32>
    %313 = vector.shape_cast %312 : vector<16xf32> to vector<16x1xf32>
    %314 = vector.broadcast %313 : vector<16x1xf32> to vector<16x16xf32>
    %315 = arith.subf %311, %314 : vector<16x16xf32>
    %316 = math.exp %315 : vector<16x16xf32>
    %cst_113 = arith.constant dense<0.000000e+00> : vector<16xf32>
    %317 = vector.multi_reduction <add>, %316, %cst_113 [1] : vector<16x16xf32> to vector<16xf32>
    %318 = vector.shape_cast %317 : vector<16xf32> to vector<16x1xf32>
    %319 = vector.broadcast %318 : vector<16x1xf32> to vector<16x16xf32>
    %320 = arith.divf %316, %319 : vector<16x16xf32>
    %321 = arith.truncf %320 : vector<16x16xf32> to vector<16x16xbf16>
    %cst_114 = arith.constant dense<0.000000e+00> : vector<16x16xf32>
    %322 = tpu.matmul %321, %308, %cst_114 {dimension_numbers = #tpu.dot_dimension_numbers<[1], [0], [0], [1], [0, 0, 1, 1], [], []>} : vector<16x16xbf16>, vector<16x16xbf16>, vector<16x16xf32> -> vector<16x16xf32>
    %323 = vector.extract_strided_slice %262 {offsets = [0, 48], sizes = [16, 16], strides = [1, 1]} : vector<16x384xf32> to vector<16x16xf32>
    %324 = arith.truncf %323 : vector<16x16xf32> to vector<16x16xbf16>
    %325 = vector.extract_strided_slice %262 {offsets = [0, 176], sizes = [16, 16], strides = [1, 1]} : vector<16x384xf32> to vector<16x16xf32>
    %326 = arith.truncf %325 : vector<16x16xf32> to vector<16x16xbf16>
    %327 = vector.extract_strided_slice %262 {offsets = [0, 304], sizes = [16, 16], strides = [1, 1]} : vector<16x384xf32> to vector<16x16xf32>
    %328 = arith.truncf %327 : vector<16x16xf32> to vector<16x16xbf16>
    %cst_115 = arith.constant dense<0.000000e+00> : vector<16x16xf32>
    %329 = tpu.matmul %324, %326, %cst_115 {dimension_numbers = #tpu.dot_dimension_numbers<[1], [1], [0], [0], [0, 0, 1, 0], [], []>} : vector<16x16xbf16>, vector<16x16xbf16>, vector<16x16xf32> -> vector<16x16xf32>
    %cst_116 = arith.constant 2.500000e-01 : f32
    %330 = vector.broadcast %cst_116 : f32 to vector<16x16xf32>
    %331 = arith.mulf %329, %330 : vector<16x16xf32>
    %cst_117 = arith.constant dense<0xFF800000> : vector<16xf32>
    %332 = vector.multi_reduction <maximumf>, %331, %cst_117 [1] : vector<16x16xf32> to vector<16xf32>
    %333 = vector.shape_cast %332 : vector<16xf32> to vector<16x1xf32>
    %334 = vector.broadcast %333 : vector<16x1xf32> to vector<16x16xf32>
    %335 = arith.subf %331, %334 : vector<16x16xf32>
    %336 = math.exp %335 : vector<16x16xf32>
    %cst_118 = arith.constant dense<0.000000e+00> : vector<16xf32>
    %337 = vector.multi_reduction <add>, %336, %cst_118 [1] : vector<16x16xf32> to vector<16xf32>
    %338 = vector.shape_cast %337 : vector<16xf32> to vector<16x1xf32>
    %339 = vector.broadcast %338 : vector<16x1xf32> to vector<16x16xf32>
    %340 = arith.divf %336, %339 : vector<16x16xf32>
    %341 = arith.truncf %340 : vector<16x16xf32> to vector<16x16xbf16>
    %cst_119 = arith.constant dense<0.000000e+00> : vector<16x16xf32>
    %342 = tpu.matmul %341, %328, %cst_119 {dimension_numbers = #tpu.dot_dimension_numbers<[1], [0], [0], [1], [0, 0, 1, 1], [], []>} : vector<16x16xbf16>, vector<16x16xbf16>, vector<16x16xf32> -> vector<16x16xf32>
    %343 = vector.extract_strided_slice %262 {offsets = [0, 64], sizes = [16, 16], strides = [1, 1]} : vector<16x384xf32> to vector<16x16xf32>
    %344 = arith.truncf %343 : vector<16x16xf32> to vector<16x16xbf16>
    %345 = vector.extract_strided_slice %262 {offsets = [0, 192], sizes = [16, 16], strides = [1, 1]} : vector<16x384xf32> to vector<16x16xf32>
    %346 = arith.truncf %345 : vector<16x16xf32> to vector<16x16xbf16>
    %347 = vector.extract_strided_slice %262 {offsets = [0, 320], sizes = [16, 16], strides = [1, 1]} : vector<16x384xf32> to vector<16x16xf32>
    %348 = arith.truncf %347 : vector<16x16xf32> to vector<16x16xbf16>
    %cst_120 = arith.constant dense<0.000000e+00> : vector<16x16xf32>
    %349 = tpu.matmul %344, %346, %cst_120 {dimension_numbers = #tpu.dot_dimension_numbers<[1], [1], [0], [0], [0, 0, 1, 0], [], []>} : vector<16x16xbf16>, vector<16x16xbf16>, vector<16x16xf32> -> vector<16x16xf32>
    %cst_121 = arith.constant 2.500000e-01 : f32
    %350 = vector.broadcast %cst_121 : f32 to vector<16x16xf32>
    %351 = arith.mulf %349, %350 : vector<16x16xf32>
    %cst_122 = arith.constant dense<0xFF800000> : vector<16xf32>
    %352 = vector.multi_reduction <maximumf>, %351, %cst_122 [1] : vector<16x16xf32> to vector<16xf32>
    %353 = vector.shape_cast %352 : vector<16xf32> to vector<16x1xf32>
    %354 = vector.broadcast %353 : vector<16x1xf32> to vector<16x16xf32>
    %355 = arith.subf %351, %354 : vector<16x16xf32>
    %356 = math.exp %355 : vector<16x16xf32>
    %cst_123 = arith.constant dense<0.000000e+00> : vector<16xf32>
    %357 = vector.multi_reduction <add>, %356, %cst_123 [1] : vector<16x16xf32> to vector<16xf32>
    %358 = vector.shape_cast %357 : vector<16xf32> to vector<16x1xf32>
    %359 = vector.broadcast %358 : vector<16x1xf32> to vector<16x16xf32>
    %360 = arith.divf %356, %359 : vector<16x16xf32>
    %361 = arith.truncf %360 : vector<16x16xf32> to vector<16x16xbf16>
    %cst_124 = arith.constant dense<0.000000e+00> : vector<16x16xf32>
    %362 = tpu.matmul %361, %348, %cst_124 {dimension_numbers = #tpu.dot_dimension_numbers<[1], [0], [0], [1], [0, 0, 1, 1], [], []>} : vector<16x16xbf16>, vector<16x16xbf16>, vector<16x16xf32> -> vector<16x16xf32>
    %363 = vector.extract_strided_slice %262 {offsets = [0, 80], sizes = [16, 16], strides = [1, 1]} : vector<16x384xf32> to vector<16x16xf32>
    %364 = arith.truncf %363 : vector<16x16xf32> to vector<16x16xbf16>
    %365 = vector.extract_strided_slice %262 {offsets = [0, 208], sizes = [16, 16], strides = [1, 1]} : vector<16x384xf32> to vector<16x16xf32>
    %366 = arith.truncf %365 : vector<16x16xf32> to vector<16x16xbf16>
    %367 = vector.extract_strided_slice %262 {offsets = [0, 336], sizes = [16, 16], strides = [1, 1]} : vector<16x384xf32> to vector<16x16xf32>
    %368 = arith.truncf %367 : vector<16x16xf32> to vector<16x16xbf16>
    %cst_125 = arith.constant dense<0.000000e+00> : vector<16x16xf32>
    %369 = tpu.matmul %364, %366, %cst_125 {dimension_numbers = #tpu.dot_dimension_numbers<[1], [1], [0], [0], [0, 0, 1, 0], [], []>} : vector<16x16xbf16>, vector<16x16xbf16>, vector<16x16xf32> -> vector<16x16xf32>
    %cst_126 = arith.constant 2.500000e-01 : f32
    %370 = vector.broadcast %cst_126 : f32 to vector<16x16xf32>
    %371 = arith.mulf %369, %370 : vector<16x16xf32>
    %cst_127 = arith.constant dense<0xFF800000> : vector<16xf32>
    %372 = vector.multi_reduction <maximumf>, %371, %cst_127 [1] : vector<16x16xf32> to vector<16xf32>
    %373 = vector.shape_cast %372 : vector<16xf32> to vector<16x1xf32>
    %374 = vector.broadcast %373 : vector<16x1xf32> to vector<16x16xf32>
    %375 = arith.subf %371, %374 : vector<16x16xf32>
    %376 = math.exp %375 : vector<16x16xf32>
    %cst_128 = arith.constant dense<0.000000e+00> : vector<16xf32>
    %377 = vector.multi_reduction <add>, %376, %cst_128 [1] : vector<16x16xf32> to vector<16xf32>
    %378 = vector.shape_cast %377 : vector<16xf32> to vector<16x1xf32>
    %379 = vector.broadcast %378 : vector<16x1xf32> to vector<16x16xf32>
    %380 = arith.divf %376, %379 : vector<16x16xf32>
    %381 = arith.truncf %380 : vector<16x16xf32> to vector<16x16xbf16>
    %cst_129 = arith.constant dense<0.000000e+00> : vector<16x16xf32>
    %382 = tpu.matmul %381, %368, %cst_129 {dimension_numbers = #tpu.dot_dimension_numbers<[1], [0], [0], [1], [0, 0, 1, 1], [], []>} : vector<16x16xbf16>, vector<16x16xbf16>, vector<16x16xf32> -> vector<16x16xf32>
    %383 = vector.extract_strided_slice %262 {offsets = [0, 96], sizes = [16, 16], strides = [1, 1]} : vector<16x384xf32> to vector<16x16xf32>
    %384 = arith.truncf %383 : vector<16x16xf32> to vector<16x16xbf16>
    %385 = vector.extract_strided_slice %262 {offsets = [0, 224], sizes = [16, 16], strides = [1, 1]} : vector<16x384xf32> to vector<16x16xf32>
    %386 = arith.truncf %385 : vector<16x16xf32> to vector<16x16xbf16>
    %387 = vector.extract_strided_slice %262 {offsets = [0, 352], sizes = [16, 16], strides = [1, 1]} : vector<16x384xf32> to vector<16x16xf32>
    %388 = arith.truncf %387 : vector<16x16xf32> to vector<16x16xbf16>
    %cst_130 = arith.constant dense<0.000000e+00> : vector<16x16xf32>
    %389 = tpu.matmul %384, %386, %cst_130 {dimension_numbers = #tpu.dot_dimension_numbers<[1], [1], [0], [0], [0, 0, 1, 0], [], []>} : vector<16x16xbf16>, vector<16x16xbf16>, vector<16x16xf32> -> vector<16x16xf32>
    %cst_131 = arith.constant 2.500000e-01 : f32
    %390 = vector.broadcast %cst_131 : f32 to vector<16x16xf32>
    %391 = arith.mulf %389, %390 : vector<16x16xf32>
    %cst_132 = arith.constant dense<0xFF800000> : vector<16xf32>
    %392 = vector.multi_reduction <maximumf>, %391, %cst_132 [1] : vector<16x16xf32> to vector<16xf32>
    %393 = vector.shape_cast %392 : vector<16xf32> to vector<16x1xf32>
    %394 = vector.broadcast %393 : vector<16x1xf32> to vector<16x16xf32>
    %395 = arith.subf %391, %394 : vector<16x16xf32>
    %396 = math.exp %395 : vector<16x16xf32>
    %cst_133 = arith.constant dense<0.000000e+00> : vector<16xf32>
    %397 = vector.multi_reduction <add>, %396, %cst_133 [1] : vector<16x16xf32> to vector<16xf32>
    %398 = vector.shape_cast %397 : vector<16xf32> to vector<16x1xf32>
    %399 = vector.broadcast %398 : vector<16x1xf32> to vector<16x16xf32>
    %400 = arith.divf %396, %399 : vector<16x16xf32>
    %401 = arith.truncf %400 : vector<16x16xf32> to vector<16x16xbf16>
    %cst_134 = arith.constant dense<0.000000e+00> : vector<16x16xf32>
    %402 = tpu.matmul %401, %388, %cst_134 {dimension_numbers = #tpu.dot_dimension_numbers<[1], [0], [0], [1], [0, 0, 1, 1], [], []>} : vector<16x16xbf16>, vector<16x16xbf16>, vector<16x16xf32> -> vector<16x16xf32>
    %403 = vector.extract_strided_slice %262 {offsets = [0, 112], sizes = [16, 16], strides = [1, 1]} : vector<16x384xf32> to vector<16x16xf32>
    %404 = arith.truncf %403 : vector<16x16xf32> to vector<16x16xbf16>
    %405 = vector.extract_strided_slice %262 {offsets = [0, 240], sizes = [16, 16], strides = [1, 1]} : vector<16x384xf32> to vector<16x16xf32>
    %406 = arith.truncf %405 : vector<16x16xf32> to vector<16x16xbf16>
    %407 = vector.extract_strided_slice %262 {offsets = [0, 368], sizes = [16, 16], strides = [1, 1]} : vector<16x384xf32> to vector<16x16xf32>
    %408 = arith.truncf %407 : vector<16x16xf32> to vector<16x16xbf16>
    %cst_135 = arith.constant dense<0.000000e+00> : vector<16x16xf32>
    %409 = tpu.matmul %404, %406, %cst_135 {dimension_numbers = #tpu.dot_dimension_numbers<[1], [1], [0], [0], [0, 0, 1, 0], [], []>} : vector<16x16xbf16>, vector<16x16xbf16>, vector<16x16xf32> -> vector<16x16xf32>
    %cst_136 = arith.constant 2.500000e-01 : f32
    %410 = vector.broadcast %cst_136 : f32 to vector<16x16xf32>
    %411 = arith.mulf %409, %410 : vector<16x16xf32>
    %cst_137 = arith.constant dense<0xFF800000> : vector<16xf32>
    %412 = vector.multi_reduction <maximumf>, %411, %cst_137 [1] : vector<16x16xf32> to vector<16xf32>
    %413 = vector.shape_cast %412 : vector<16xf32> to vector<16x1xf32>
    %414 = vector.broadcast %413 : vector<16x1xf32> to vector<16x16xf32>
    %415 = arith.subf %411, %414 : vector<16x16xf32>
    %416 = math.exp %415 : vector<16x16xf32>
    %cst_138 = arith.constant dense<0.000000e+00> : vector<16xf32>
    %417 = vector.multi_reduction <add>, %416, %cst_138 [1] : vector<16x16xf32> to vector<16xf32>
    %418 = vector.shape_cast %417 : vector<16xf32> to vector<16x1xf32>
    %419 = vector.broadcast %418 : vector<16x1xf32> to vector<16x16xf32>
    %420 = arith.divf %416, %419 : vector<16x16xf32>
    %421 = arith.truncf %420 : vector<16x16xf32> to vector<16x16xbf16>
    %cst_139 = arith.constant dense<0.000000e+00> : vector<16x16xf32>
    %422 = tpu.matmul %421, %408, %cst_139 {dimension_numbers = #tpu.dot_dimension_numbers<[1], [0], [0], [1], [0, 0, 1, 1], [], []>} : vector<16x16xbf16>, vector<16x16xbf16>, vector<16x16xf32> -> vector<16x16xf32>
    %423 = tpu.concatenate %282, %302, %322, %342, %362, %382, %402, %422 in 1 : vector<16x16xf32>, vector<16x16xf32>, vector<16x16xf32>, vector<16x16xf32>, vector<16x16xf32>, vector<16x16xf32>, vector<16x16xf32>, vector<16x16xf32> -> vector<16x128xf32>
    %424 = arith.truncf %423 : vector<16x128xf32> to vector<16x128xbf16>
    %c0_140 = arith.constant 0 : index
    %c0_141 = arith.constant 0 : index
    %425 = vector.load %arg23[%c0_140, %c0_141] : memref<128x128xbf16, #tpu.memory_space<vmem>>, vector<128x128xbf16>
    %cst_142 = arith.constant dense<0.000000e+00> : vector<16x128xf32>
    %426 = tpu.matmul %424, %425, %cst_142 {dimension_numbers = #tpu.dot_dimension_numbers<[1], [0], [0], [1], [0, 0, 1, 1], [], []>} : vector<16x128xbf16>, vector<128x128xbf16>, vector<16x128xf32> -> vector<16x128xf32>
    %c0_143 = arith.constant 0 : index
    %c0_144 = arith.constant 0 : index
    %427 = vector.load %arg24[%c0_143, %c0_144] : memref<1x128xf32, #tpu.memory_space<vmem>>, vector<1x128xf32>
    %428 = vector.broadcast %427 : vector<1x128xf32> to vector<16x128xf32>
    %429 = arith.addf %426, %428 : vector<16x128xf32>
    %430 = arith.addf %429, %256 : vector<16x128xf32>
    %cst_145 = arith.constant dense<0.000000e+00> : vector<16xf32>
    %431 = vector.multi_reduction <add>, %430, %cst_145 [1] : vector<16x128xf32> to vector<16xf32>
    %432 = vector.shape_cast %431 : vector<16xf32> to vector<16x1xf32>
    %cst_146 = arith.constant 1.280000e+02 : f32
    %433 = vector.broadcast %cst_146 : f32 to vector<16x1xf32>
    %434 = arith.divf %432, %433 : vector<16x1xf32>
    %435 = vector.broadcast %434 : vector<16x1xf32> to vector<16x128xf32>
    %436 = arith.subf %430, %435 : vector<16x128xf32>
    %437 = arith.mulf %436, %436 : vector<16x128xf32>
    %cst_147 = arith.constant dense<0.000000e+00> : vector<16xf32>
    %438 = vector.multi_reduction <add>, %437, %cst_147 [1] : vector<16x128xf32> to vector<16xf32>
    %439 = vector.shape_cast %438 : vector<16xf32> to vector<16x1xf32>
    %cst_148 = arith.constant 1.280000e+02 : f32
    %440 = vector.broadcast %cst_148 : f32 to vector<16x1xf32>
    %441 = arith.divf %439, %440 : vector<16x1xf32>
    %cst_149 = arith.constant 9.99999974E-6 : f32
    %442 = vector.broadcast %cst_149 : f32 to vector<16x1xf32>
    %443 = arith.addf %441, %442 : vector<16x1xf32>
    %444 = math.rsqrt %443 : vector<16x1xf32>
    %445 = vector.broadcast %444 : vector<16x1xf32> to vector<16x128xf32>
    %446 = arith.mulf %436, %445 : vector<16x128xf32>
    %c0_150 = arith.constant 0 : index
    %c0_151 = arith.constant 0 : index
    %447 = vector.load %arg25[%c0_150, %c0_151] : memref<1x128xf32, #tpu.memory_space<vmem>>, vector<1x128xf32>
    %448 = vector.broadcast %447 : vector<1x128xf32> to vector<16x128xf32>
    %449 = arith.mulf %446, %448 : vector<16x128xf32>
    %c0_152 = arith.constant 0 : index
    %c0_153 = arith.constant 0 : index
    %450 = vector.load %arg26[%c0_152, %c0_153] : memref<1x128xf32, #tpu.memory_space<vmem>>, vector<1x128xf32>
    %451 = vector.broadcast %450 : vector<1x128xf32> to vector<16x128xf32>
    %452 = arith.addf %449, %451 : vector<16x128xf32>
    %453 = arith.truncf %452 : vector<16x128xf32> to vector<16x128xbf16>
    %c0_154 = arith.constant 0 : index
    %c0_155 = arith.constant 0 : index
    %454 = vector.load %arg27[%c0_154, %c0_155] : memref<128x256xbf16, #tpu.memory_space<vmem>>, vector<128x256xbf16>
    %cst_156 = arith.constant dense<0.000000e+00> : vector<16x256xf32>
    %455 = tpu.matmul %453, %454, %cst_156 {dimension_numbers = #tpu.dot_dimension_numbers<[1], [0], [0], [1], [0, 0, 1, 1], [], []>} : vector<16x128xbf16>, vector<128x256xbf16>, vector<16x256xf32> -> vector<16x256xf32>
    %c0_157 = arith.constant 0 : index
    %c0_158 = arith.constant 0 : index
    %456 = vector.load %arg28[%c0_157, %c0_158] : memref<1x256xf32, #tpu.memory_space<vmem>>, vector<1x256xf32>
    %457 = vector.broadcast %456 : vector<1x256xf32> to vector<16x256xf32>
    %458 = arith.addf %455, %457 : vector<16x256xf32>
    %cst_159 = arith.constant 0.000000e+00 : f32
    %459 = vector.broadcast %cst_159 : f32 to vector<16x256xf32>
    %460 = arith.maximumf %458, %459 : vector<16x256xf32>
    %461 = arith.truncf %460 : vector<16x256xf32> to vector<16x256xbf16>
    %c0_160 = arith.constant 0 : index
    %c0_161 = arith.constant 0 : index
    %462 = vector.load %arg29[%c0_160, %c0_161] : memref<256x128xbf16, #tpu.memory_space<vmem>>, vector<256x128xbf16>
    %cst_162 = arith.constant dense<0.000000e+00> : vector<16x128xf32>
    %463 = tpu.matmul %461, %462, %cst_162 {dimension_numbers = #tpu.dot_dimension_numbers<[1], [0], [0], [1], [0, 0, 1, 1], [], []>} : vector<16x256xbf16>, vector<256x128xbf16>, vector<16x128xf32> -> vector<16x128xf32>
    %c0_163 = arith.constant 0 : index
    %c0_164 = arith.constant 0 : index
    %464 = vector.load %arg30[%c0_163, %c0_164] : memref<1x128xf32, #tpu.memory_space<vmem>>, vector<1x128xf32>
    %465 = vector.broadcast %464 : vector<1x128xf32> to vector<16x128xf32>
    %466 = arith.addf %463, %465 : vector<16x128xf32>
    %467 = arith.addf %466, %452 : vector<16x128xf32>
    %cst_165 = arith.constant dense<0.000000e+00> : vector<16xf32>
    %468 = vector.multi_reduction <add>, %467, %cst_165 [1] : vector<16x128xf32> to vector<16xf32>
    %469 = vector.shape_cast %468 : vector<16xf32> to vector<16x1xf32>
    %cst_166 = arith.constant 1.280000e+02 : f32
    %470 = vector.broadcast %cst_166 : f32 to vector<16x1xf32>
    %471 = arith.divf %469, %470 : vector<16x1xf32>
    %472 = vector.broadcast %471 : vector<16x1xf32> to vector<16x128xf32>
    %473 = arith.subf %467, %472 : vector<16x128xf32>
    %474 = arith.mulf %473, %473 : vector<16x128xf32>
    %cst_167 = arith.constant dense<0.000000e+00> : vector<16xf32>
    %475 = vector.multi_reduction <add>, %474, %cst_167 [1] : vector<16x128xf32> to vector<16xf32>
    %476 = vector.shape_cast %475 : vector<16xf32> to vector<16x1xf32>
    %cst_168 = arith.constant 1.280000e+02 : f32
    %477 = vector.broadcast %cst_168 : f32 to vector<16x1xf32>
    %478 = arith.divf %476, %477 : vector<16x1xf32>
    %cst_169 = arith.constant 9.99999974E-6 : f32
    %479 = vector.broadcast %cst_169 : f32 to vector<16x1xf32>
    %480 = arith.addf %478, %479 : vector<16x1xf32>
    %481 = math.rsqrt %480 : vector<16x1xf32>
    %482 = vector.broadcast %481 : vector<16x1xf32> to vector<16x128xf32>
    %483 = arith.mulf %473, %482 : vector<16x128xf32>
    %c0_170 = arith.constant 0 : index
    %c0_171 = arith.constant 0 : index
    %484 = vector.load %arg31[%c0_170, %c0_171] : memref<1x128xf32, #tpu.memory_space<vmem>>, vector<1x128xf32>
    %485 = vector.broadcast %484 : vector<1x128xf32> to vector<16x128xf32>
    %486 = arith.mulf %483, %485 : vector<16x128xf32>
    %c0_172 = arith.constant 0 : index
    %c0_173 = arith.constant 0 : index
    %487 = vector.load %arg32[%c0_172, %c0_173] : memref<1x128xf32, #tpu.memory_space<vmem>>, vector<1x128xf32>
    %488 = vector.broadcast %487 : vector<1x128xf32> to vector<16x128xf32>
    %489 = arith.addf %486, %488 : vector<16x128xf32>
    %490 = arith.truncf %489 : vector<16x128xf32> to vector<16x128xbf16>
    %c0_174 = arith.constant 0 : index
    %c0_175 = arith.constant 0 : index
    %491 = vector.load %arg33[%c0_174, %c0_175] : memref<128x2048xbf16, #tpu.memory_space<vmem>>, vector<128x2048xbf16>
    %cst_176 = arith.constant dense<0.000000e+00> : vector<16x2048xf32>
    %492 = tpu.matmul %490, %491, %cst_176 {dimension_numbers = #tpu.dot_dimension_numbers<[1], [0], [0], [1], [0, 0, 1, 1], [], []>} : vector<16x128xbf16>, vector<128x2048xbf16>, vector<16x2048xf32> -> vector<16x2048xf32>
    %c0_177 = arith.constant 0 : index
    %c0_178 = arith.constant 0 : index
    %493 = vector.load %arg34[%c0_177, %c0_178] : memref<1x2048xf32, #tpu.memory_space<vmem>>, vector<1x2048xf32>
    %494 = vector.broadcast %493 : vector<1x2048xf32> to vector<16x2048xf32>
    %495 = arith.addf %492, %494 : vector<16x2048xf32>
    %cst_179 = arith.constant 0.000000e+00 : f32
    %496 = vector.broadcast %cst_179 : f32 to vector<16x2048xf32>
    %497 = arith.maximumf %495, %496 : vector<16x2048xf32>
    %498 = arith.truncf %497 : vector<16x2048xf32> to vector<16x2048xbf16>
    %c0_180 = arith.constant 0 : index
    %c0_181 = arith.constant 0 : index
    %c0_182 = arith.constant 0 : index
    %499 = vector.load %arg35[%c0_180, %c0_181, %c0_182] : memref<1x16x2048xbf16, #tpu.memory_space<vmem>>, vector<1x16x2048xbf16>
    %500 = vector.shape_cast %499 : vector<1x16x2048xbf16> to vector<16x2048xbf16>
    %501 = vector.shape_cast %498 : vector<16x2048xbf16> to vector<1x16x2048xbf16>
    tpu.vector_store %arg35[%c0_180, %c0_181, %c0_182], %501 {strides = array<i32>} : memref<1x16x2048xbf16, #tpu.memory_space<vmem>>, vector<1x16x2048xbf16>,
    return
  }
  func.func @transform_0(%arg0: i32) -> i32 {
    %c0_i32 = arith.constant 0 : i32
    %c0_i32_0 = arith.constant 0 : i32
    return %c0_i32 : i32
  }
  func.func @transform_1(%arg0: i32) -> (i32, i32, i32) {
    %c0_i32 = arith.constant 0 : i32
    %c0_i32_0 = arith.constant 0 : i32
    %c0_i32_1 = arith.constant 0 : i32
    return %arg0, %c0_i32, %c0_i32_0 : i32, i32, i32
  }
  func.func @transform_2(%arg0: i32) -> (i32, i32) {
    %c0_i32 = arith.constant 0 : i32
    %c0_i32_0 = arith.constant 0 : i32
    %c0_i32_1 = arith.constant 0 : i32
    return %c0_i32, %c0_i32_0 : i32, i32
  }
  func.func @transform_3(%arg0: i32) -> (i32, i32) {
    %c0_i32 = arith.constant 0 : i32
    %c0_i32_0 = arith.constant 0 : i32
    %c0_i32_1 = arith.constant 0 : i32
    return %c0_i32, %c0_i32_0 : i32, i32
  }
  func.func @transform_4(%arg0: i32) -> (i32, i32) {
    %c0_i32 = arith.constant 0 : i32
    %c0_i32_0 = arith.constant 0 : i32
    %c0_i32_1 = arith.constant 0 : i32
    return %c0_i32, %c0_i32_0 : i32, i32
  }
  func.func @transform_5(%arg0: i32) -> (i32, i32) {
    %c0_i32 = arith.constant 0 : i32
    %c0_i32_0 = arith.constant 0 : i32
    %c0_i32_1 = arith.constant 0 : i32
    return %c0_i32, %c0_i32_0 : i32, i32
  }
  func.func @transform_6(%arg0: i32) -> (i32, i32) {
    %c0_i32 = arith.constant 0 : i32
    %c0_i32_0 = arith.constant 0 : i32
    %c0_i32_1 = arith.constant 0 : i32
    return %c0_i32, %c0_i32_0 : i32, i32
  }
  func.func @transform_7(%arg0: i32) -> (i32, i32) {
    %c0_i32 = arith.constant 0 : i32
    %c0_i32_0 = arith.constant 0 : i32
    %c0_i32_1 = arith.constant 0 : i32
    return %c0_i32, %c0_i32_0 : i32, i32
  }
  func.func @transform_8(%arg0: i32) -> (i32, i32) {
    %c0_i32 = arith.constant 0 : i32
    %c0_i32_0 = arith.constant 0 : i32
    %c0_i32_1 = arith.constant 0 : i32
    return %c0_i32, %c0_i32_0 : i32, i32
  }
  func.func @transform_9(%arg0: i32) -> (i32, i32) {
    %c0_i32 = arith.constant 0 : i32
    %c0_i32_0 = arith.constant 0 : i32
    %c0_i32_1 = arith.constant 0 : i32
    return %c0_i32, %c0_i32_0 : i32, i32
  }
  func.func @transform_10(%arg0: i32) -> (i32, i32) {
    %c0_i32 = arith.constant 0 : i32
    %c0_i32_0 = arith.constant 0 : i32
    %c0_i32_1 = arith.constant 0 : i32
    return %c0_i32, %c0_i32_0 : i32, i32
  }
  func.func @transform_11(%arg0: i32) -> (i32, i32) {
    %c0_i32 = arith.constant 0 : i32
    %c0_i32_0 = arith.constant 0 : i32
    %c0_i32_1 = arith.constant 0 : i32
    return %c0_i32, %c0_i32_0 : i32, i32
  }
  func.func @transform_12(%arg0: i32) -> (i32, i32) {
    %c0_i32 = arith.constant 0 : i32
    %c0_i32_0 = arith.constant 0 : i32
    %c0_i32_1 = arith.constant 0 : i32
    return %c0_i32, %c0_i32_0 : i32, i32
  }
  func.func @transform_13(%arg0: i32) -> (i32, i32) {
    %c0_i32 = arith.constant 0 : i32
    %c0_i32_0 = arith.constant 0 : i32
    %c0_i32_1 = arith.constant 0 : i32
    return %c0_i32, %c0_i32_0 : i32, i32
  }
  func.func @transform_14(%arg0: i32) -> (i32, i32) {
    %c0_i32 = arith.constant 0 : i32
    %c0_i32_0 = arith.constant 0 : i32
    %c0_i32_1 = arith.constant 0 : i32
    return %c0_i32, %c0_i32_0 : i32, i32
  }
  func.func @transform_15(%arg0: i32) -> (i32, i32) {
    %c0_i32 = arith.constant 0 : i32
    %c0_i32_0 = arith.constant 0 : i32
    %c0_i32_1 = arith.constant 0 : i32
    return %c0_i32, %c0_i32_0 : i32, i32
  }
  func.func @transform_16(%arg0: i32) -> (i32, i32) {
    %c0_i32 = arith.constant 0 : i32
    %c0_i32_0 = arith.constant 0 : i32
    %c0_i32_1 = arith.constant 0 : i32
    return %c0_i32, %c0_i32_0 : i32, i32
  }
  func.func @transform_17(%arg0: i32) -> (i32, i32) {
    %c0_i32 = arith.constant 0 : i32
    %c0_i32_0 = arith.constant 0 : i32
    %c0_i32_1 = arith.constant 0 : i32
    return %c0_i32, %c0_i32_0 : i32, i32
  }
  func.func @transform_18(%arg0: i32) -> (i32, i32) {
    %c0_i32 = arith.constant 0 : i32
    %c0_i32_0 = arith.constant 0 : i32
    %c0_i32_1 = arith.constant 0 : i32
    return %c0_i32, %c0_i32_0 : i32, i32
  }
  func.func @transform_19(%arg0: i32) -> (i32, i32) {
    %c0_i32 = arith.constant 0 : i32
    %c0_i32_0 = arith.constant 0 : i32
    %c0_i32_1 = arith.constant 0 : i32
    return %c0_i32, %c0_i32_0 : i32, i32
  }
  func.func @transform_20(%arg0: i32) -> (i32, i32) {
    %c0_i32 = arith.constant 0 : i32
    %c0_i32_0 = arith.constant 0 : i32
    %c0_i32_1 = arith.constant 0 : i32
    return %c0_i32, %c0_i32_0 : i32, i32
  }
  func.func @transform_21(%arg0: i32) -> (i32, i32) {
    %c0_i32 = arith.constant 0 : i32
    %c0_i32_0 = arith.constant 0 : i32
    %c0_i32_1 = arith.constant 0 : i32
    return %c0_i32, %c0_i32_0 : i32, i32
  }
  func.func @transform_22(%arg0: i32) -> (i32, i32) {
    %c0_i32 = arith.constant 0 : i32
    %c0_i32_0 = arith.constant 0 : i32
    %c0_i32_1 = arith.constant 0 : i32
    return %c0_i32, %c0_i32_0 : i32, i32
  }
  func.func @transform_23(%arg0: i32) -> (i32, i32) {
    %c0_i32 = arith.constant 0 : i32
    %c0_i32_0 = arith.constant 0 : i32
    %c0_i32_1 = arith.constant 0 : i32
    return %c0_i32, %c0_i32_0 : i32, i32
  }
  func.func @transform_24(%arg0: i32) -> (i32, i32) {
    %c0_i32 = arith.constant 0 : i32
    %c0_i32_0 = arith.constant 0 : i32
    %c0_i32_1 = arith.constant 0 : i32
    return %c0_i32, %c0_i32_0 : i32, i32
  }
  func.func @transform_25(%arg0: i32) -> (i32, i32) {
    %c0_i32 = arith.constant 0 : i32
    %c0_i32_0 = arith.constant 0 : i32
    %c0_i32_1 = arith.constant 0 : i32
    return %c0_i32, %c0_i32_0 : i32, i32
  }
  func.func @transform_26(%arg0: i32) -> (i32, i32) {
    %c0_i32 = arith.constant 0 : i32
    %c0_i32_0 = arith.constant 0 : i32
    %c0_i32_1 = arith.constant 0 : i32
    return %c0_i32, %c0_i32_0 : i32, i32
  }
  func.func @transform_27(%arg0: i32) -> (i32, i32) {
    %c0_i32 = arith.constant 0 : i32
    %c0_i32_0 = arith.constant 0 : i32
    %c0_i32_1 = arith.constant 0 : i32
    return %c0_i32, %c0_i32_0 : i32, i32
  }
  func.func @transform_28(%arg0: i32) -> (i32, i32) {
    %c0_i32 = arith.constant 0 : i32
    %c0_i32_0 = arith.constant 0 : i32
    %c0_i32_1 = arith.constant 0 : i32
    return %c0_i32, %c0_i32_0 : i32, i32
  }
  func.func @transform_29(%arg0: i32) -> (i32, i32) {
    %c0_i32 = arith.constant 0 : i32
    %c0_i32_0 = arith.constant 0 : i32
    %c0_i32_1 = arith.constant 0 : i32
    return %c0_i32, %c0_i32_0 : i32, i32
  }
  func.func @transform_30(%arg0: i32) -> (i32, i32) {
    %c0_i32 = arith.constant 0 : i32
    %c0_i32_0 = arith.constant 0 : i32
    %c0_i32_1 = arith.constant 0 : i32
    return %c0_i32, %c0_i32_0 : i32, i32
  }
  func.func @transform_31(%arg0: i32) -> (i32, i32) {
    %c0_i32 = arith.constant 0 : i32
    %c0_i32_0 = arith.constant 0 : i32
    %c0_i32_1 = arith.constant 0 : i32
    return %c0_i32, %c0_i32_0 : i32, i32
  }
  func.func @transform_32(%arg0: i32) -> (i32, i32) {
    %c0_i32 = arith.constant 0 : i32
    %c0_i32_0 = arith.constant 0 : i32
    %c0_i32_1 = arith.constant 0 : i32
    return %c0_i32, %c0_i32_0 : i32, i32
  }
  func.func @transform_33(%arg0: i32) -> (i32, i32) {
    %c0_i32 = arith.constant 0 : i32
    %c0_i32_0 = arith.constant 0 : i32
    %c0_i32_1 = arith.constant 0 : i32
    return %c0_i32, %c0_i32_0 : i32, i32
  }
  func.func @transform_34(%arg0: i32) -> (i32, i32, i32) {
    %c0_i32 = arith.constant 0 : i32
    %c0_i32_0 = arith.constant 0 : i32
    %c0_i32_1 = arith.constant 0 : i32
    return %arg0, %c0_i32, %c0_i32_0 : i32, i32, i32
  }
}

module attributes {stable_mosaic.version = 11 : i64} {
  func.func @_conv3x3_matmul_kernel(%arg0: i32, %arg1: memref<1x1152x256xbf16, #tpu.memory_space<vmem>>, %arg2: memref<2x1152xbf16, #tpu.memory_space<vmem>>, %arg3: memref<2x1xf32, #tpu.memory_space<vmem>>, %arg4: memref<1x2x256xf32, #tpu.memory_space<vmem>>) attributes {dimension_semantics = [#tpu.dimension_semantics<parallel>], iteration_bounds = array<i64: 2>, scalar_prefetch = 0 : i64, scratch_operands = 0 : i64, tpu.core_type = #tpu.core_type<tc>, window_params = [{transform_indices = @transform_0, window_bounds = array<i64: 1, 1152, 256>}, {pipeline_mode = #tpu.pipeline_mode<synchronous>, transform_indices = @transform_1, window_bounds = array<i64: 2, 1152>}, {pipeline_mode = #tpu.pipeline_mode<synchronous>, transform_indices = @transform_2, window_bounds = array<i64: 2, 1>}, {transform_indices = @transform_3, window_bounds = array<i64: 1, 2, 256>}]} {
    %c0 = arith.constant 0 : index
    %c0_0 = arith.constant 0 : index
    %0 = vector.load %arg2[%c0, %c0_0] : memref<2x1152xbf16, #tpu.memory_space<vmem>>, vector<2x1152xbf16>
    %c0_1 = arith.constant 0 : index
    %c0_2 = arith.constant 0 : index
    %c0_3 = arith.constant 0 : index
    %1 = vector.load %arg1[%c0_1, %c0_2, %c0_3] : memref<1x1152x256xbf16, #tpu.memory_space<vmem>>, vector<1x1152x256xbf16>
    %2 = vector.shape_cast %1 : vector<1x1152x256xbf16> to vector<1152x256xbf16>
    %cst = arith.constant dense<0.000000e+00> : vector<2x256xf32>
    %3 = tpu.matmul %0, %2, %cst {dimension_numbers = #tpu.dot_dimension_numbers<[1], [0], [0], [1], [0, 0, 1, 1], [], []>} : vector<2x1152xbf16>, vector<1152x256xbf16>, vector<2x256xf32> -> vector<2x256xf32>
    %c0_4 = arith.constant 0 : index
    %c0_5 = arith.constant 0 : index
    %4 = vector.load %arg3[%c0_4, %c0_5] : memref<2x1xf32, #tpu.memory_space<vmem>>, vector<2x1xf32>
    %5 = vector.broadcast %4 : vector<2x1xf32> to vector<2x256xf32>
    %6 = arith.addf %3, %5 : vector<2x256xf32>
    %c0_6 = arith.constant 0 : index
    %c0_7 = arith.constant 0 : index
    %c0_8 = arith.constant 0 : index
    %7 = vector.load %arg4[%c0_6, %c0_7, %c0_8] : memref<1x2x256xf32, #tpu.memory_space<vmem>>, vector<1x2x256xf32>
    %8 = vector.shape_cast %7 : vector<1x2x256xf32> to vector<2x256xf32>
    %9 = vector.shape_cast %6 : vector<2x256xf32> to vector<1x2x256xf32>
    tpu.vector_store %arg4[%c0_6, %c0_7, %c0_8], %9 {strides = array<i32>} : memref<1x2x256xf32, #tpu.memory_space<vmem>>, vector<1x2x256xf32>,
    return
  }
  func.func @transform_0(%arg0: i32) -> (i32, i32, i32) {
    %c0_i32 = arith.constant 0 : i32
    %c0_i32_0 = arith.constant 0 : i32
    %c0_i32_1 = arith.constant 0 : i32
    return %arg0, %c0_i32, %c0_i32_0 : i32, i32, i32
  }
  func.func @transform_1(%arg0: i32) -> (i32, i32) {
    %c0_i32 = arith.constant 0 : i32
    %c0_i32_0 = arith.constant 0 : i32
    %c0_i32_1 = arith.constant 0 : i32
    return %c0_i32, %c0_i32_0 : i32, i32
  }
  func.func @transform_2(%arg0: i32) -> (i32, i32) {
    %c0_i32 = arith.constant 0 : i32
    %c0_i32_0 = arith.constant 0 : i32
    %c0_i32_1 = arith.constant 0 : i32
    return %c0_i32, %c0_i32_0 : i32, i32
  }
  func.func @transform_3(%arg0: i32) -> (i32, i32, i32) {
    %c0_i32 = arith.constant 0 : i32
    %c0_i32_0 = arith.constant 0 : i32
    %c0_i32_1 = arith.constant 0 : i32
    return %arg0, %c0_i32, %c0_i32_0 : i32, i32, i32
  }
}

</mosaic_0001>

<bundles_post_ra>
// kernel: unet_forward.2
= control target key start
LH: loop header
LB: loop body
LE: loop exit
PB: predicated region body
PF: predicated region fallthrough
CT: control target
= control target key end

     0   :  { %s9594_s6 = smov 1   ;;  %s9595_s10 = smov 2   ;;  %s11053_s0 = inlined_call_operand.smem [shape: u32[35], index: -1, kind: input, shape index: {}] }
   0x1   :  { %s9686_s5 = sld [smem:[%s11053_s0]]   ;;  %s9596_s14 = smov 3  }
   0x2   :  { %s9691_s9 = sld [smem:[%s11053_s0 + %s9594_s6]]   ;;  %s9597_s18 = smov 4  }
   0x3   :  { %s9696_s13 = sld [smem:[%s11053_s0 + %s9595_s10]]   ;;  %s9598_s22 = smov 5  }
   0x4   :  { %s9701_s17 = sld [smem:[%s11053_s0 + %s9596_s14]]   ;;  %s9599_s26 = smov 6  }
   0x5   :  { %s9706_s21 = sld [smem:[%s11053_s0 + %s9597_s18]]   ;;  %s9600_s30 = smov 7  }
   0x6   :  { %s9711_s25 = sld [smem:[%s11053_s0 + %s9598_s22]]   ;;  %s9601_s4 = smov 8  }
   0x7   :  { %11094 = sst [smem:[#allocation71_spill]] %s9686_s5  ;;  %s9602_s10 = smov 9  }
   0x8   :  { %11095 = sst [smem:[#allocation72_spill]] %s9691_s9  ;;  %s9603_s15 = smov 10  }
   0x9   :  { %11096 = sst [smem:[#allocation73_spill]] %s9696_s13  ;;  %s9604_s20 = smov 11  }
   0xa   :  { %s9716_s29 = sld [smem:[%s11053_s0 + %s9599_s26]]   ;;  %s9605_s26 = smov 12  }
   0xb   :  { %11097 = sst [smem:[#allocation74_spill]] %s9706_s21  ;;  %s9606_s1 = smov 13  }
   0xc   :  { %s9721_s3 = sld [smem:[%s11053_s0 + %s9600_s30]]   ;;  %s9607_s7 = smov 14  }
   0xd   :  { %s9726_s8 = sld [smem:[%s11053_s0 + %s9601_s4]]   ;;  %s9609_s22 = smov 16  }
   0xe   :  { %s9731_s14 = sld [smem:[%s11053_s0 + %s9602_s10]]   ;;  %s9610_s28 = smov 17  }
   0xf   :  { %s9736_s19 = sld [smem:[%s11053_s0 + %s9603_s15]]   ;;  %s9608_s15 = smov 15  }
  0x10   :  { %11098 = sst [smem:[#allocation75_spill]] %s9716_s29 }
  0x11   :  { %s9741_s24 = sld [smem:[%s11053_s0 + %s9604_s20]]  }
  0x12   :  { %11099 = sst [smem:[#allocation76_spill]] %s9721_s3 }
  0x13   :  { %11100 = sst [smem:[#allocation77_spill]] %s9726_s8 }
  0x14   :  { %s9746_s30 = sld [smem:[%s11053_s0 + %s9605_s26]]  }
  0x15   :  { %11101 = sst [smem:[#allocation78_spill]] %s9736_s19 }
  0x16   :  { %s9751_s6 = sld [smem:[%s11053_s0 + %s9606_s1]]  }
  0x17   :  { %s9756_s12 = sld [smem:[%s11053_s0 + %s9607_s7]]   ;;  %s9611_s7 = smov 18  }
  0x18   :  { %s9761_s20 = sld [smem:[%s11053_s0 + %s9608_s15]]   ;;  %s9612_s15 = smov 19  }
  0x19   :  { %s9766_s27 = sld [smem:[%s11053_s0 + %s9609_s22]]   ;;  %s9613_s22 = smov 20  }
  0x1a   :  { %11102 = sst [smem:[#allocation79_spill]] %s9746_s30 }
  0x1b   :  { %s9771_s4 = sld [smem:[%s11053_s0 + %s9610_s28]]   ;;  %s9614_s28 = smov 21  }
  0x1c   :  { %11103 = sst [smem:[#allocation80_spill]] %s9751_s6 }
  0x1d   :  { %11104 = sst [smem:[#allocation81_spill]] %s9756_s12 }
  0x1e   :  { %s9776_s9 = sld [smem:[%s11053_s0 + %s9611_s7]]   ;;  %s9615_s7 = smov 22  }
  0x1f   :  { %11105 = sst [smem:[#allocation82_spill]] %s9766_s27 }
  0x20   :  { %s9781_s12 = sld [smem:[%s11053_s0 + %s9612_s15]]   ;;  %s9616_s15 = smov 23  }
  0x21   :  { %11106 = sst [smem:[#allocation83_spill]] %s9771_s4 }
  0x22   :  { %s9786_s27 = sld [smem:[%s11053_s0 + %s9613_s22]]   ;;  %s9617_s22 = smov 24  }
  0x23   :  { %s9791_s30 = sld [smem:[%s11053_s0 + %s9614_s28]]   ;;  %s9618_s28 = smov 25  }
  0x24   :  { %11107 = sst [smem:[#allocation84_spill]] %s9776_s9 }
  0x25   :  { %s9796_s9 = sld [smem:[%s11053_s0 + %s9615_s7]]   ;;  %s9619_s7 = smov 26  }
  0x26   :  { %11108 = sst [smem:[#allocation85_spill]] %s9781_s12 }
  0x27   :  { %s9801_s19 = sld [smem:[%s11053_s0 + %s9616_s15]]   ;;  %s9620_s15 = smov 27  }
  0x28   :  { %11109 = sst [smem:[#allocation86_spill]] %s9786_s27 }
  0x29   :  { %s9806_s27 = sld [smem:[%s11053_s0 + %s9617_s22]]   ;;  %s9621_s22 = smov 28  }
  0x2a   :  { %s9811_s8 = sld [smem:[%s11053_s0 + %s9618_s28]]   ;;  %s9622_s28 = smov 29  }
  0x2b   :  { %11110 = sst [smem:[#allocation87_spill]] %s9796_s9 }
  0x2c   :  { %s9816_s9 = sld [smem:[%s11053_s0 + %s9619_s7]]   ;;  %s9623_s7 = smov 30  }
  0x2d   :  { %s9821_s29 = sld [smem:[%s11053_s0 + %s9620_s15]]   ;;  %s9624_s15 = smov 31  }
  0x2e   :  { %s9831_s21 = sld [smem:[%s11053_s0 + %s9622_s28]]   ;;  %s9626_s28 = smov 33  }
  0x2f   :  { %11111 = sst [smem:[#allocation88_spill]] %s9806_s27 }
  0x30   :  { %11112 = sst [smem:[#allocation89_spill]] %s9811_s8 }
  0x31   :  { %s9826_s27 = sld [smem:[%s11053_s0 + %s9621_s22]]   ;;  %s9625_s22 = smov 32  }
  0x32   :  { %11113 = sst [smem:[#allocation90_spill]] %s9816_s9 }
  0x33   :  { %s9836_s9 = sld [smem:[%s11053_s0 + %s9623_s7]]   ;;  %s9627_s7 = smov 34  }
  0x34   :  { %s9841_s13 = sld [smem:[%s11053_s0 + %s9624_s15]]  }
  0x35   :  { %s9851_s5 = sld [smem:[%s11053_s0 + %s9626_s28]]  }
  0x37   :  { %11114 = sst [smem:[#allocation91_spill]] %s9826_s27 }
  0x38   :  { %s9846_s27 = sld [smem:[%s11053_s0 + %s9625_s22]]  }
  0x39   :  { %11115 = sst [smem:[#allocation92_spill]] %s9836_s9 }
  0x3a   :  { %11116 = sst [smem:[#allocation93_spill]] %s9841_s13 }
  0x3b   :  { %s9856_s9 = sld [smem:[%s11053_s0 + %s9627_s7]]  }
  0x3c   :  { %74 = vsyncpa [#allocation4], 0 }
  0x3d   :  { %75 = vsyncpa [#allocation3], 0 }
  0x3e   :  { %76 = vsyncpa [#allocation7], 0 }
  0x3f   :  { %77 = vsyncpa [#allocation10], 0 }
  0x40   :  { %78 = vsyncpa [#allocation13], 0 }
  0x41   :  { %79 = vsyncpa [#allocation16], 0 }
  0x42   :  { %80 = vsyncpa [#allocation19], 0 }
  0x43   :  { %81 = vsyncpa [#allocation22], 0 }
  0x44   :  { %82 = vsyncpa [#allocation25], 0 }
  0x45   :  { %83 = vsyncpa [#allocation28], 0 }
  0x46   :  { %84 = vsyncpa [#allocation31], 0 }
  0x47   :  { %85 = vsyncpa [#allocation34], 0 }
  0x48   :  { %86 = vsyncpa [#allocation37], 0 }
  0x49   :  { %87 = vsyncpa [#allocation40], 0 }
  0x4a   :  { %88 = vsyncpa [#allocation43], 0 }
  0x4b   :  { %89 = vsyncpa [#allocation46], 0 }
  0x4c   :  { %90 = vsyncpa [#allocation49], 0 }
  0x4d   :  { %91 = vsyncpa [#allocation52], 0  ;;  %s9858_s0 = smov 0  }
  0x4e LB: > { %s11117_s13 = sld [smem:[#allocation93_spill]]  ;;  %s11119_s8 = sld [smem:[#allocation89_spill]]  ;;  %s9592_s0 = sphi %s9858_s0, %s97_s0  }
  0x4f   : > { %s11118_s12 = sld [smem:[#allocation85_spill]]  ;;  %s11120_s6 = sld [smem:[#allocation80_spill]] }
  0x50   : > { %s11121_s4 = sld [smem:[#allocation83_spill]]  ;;  %s11122_s3 = sld [smem:[#allocation76_spill]] }
  0x51   : > { %s9864_s15 = sadd.s32 4294967295, %s9592_s0   ;;  %p7119_p0 = scmp.ge.s32.totalorder %s9592_s0, 1 }
  0x52   : > { %p847_p1 = scmp.lt.s32.totalorder %s9592_s0, 3 }
  0x54   : > { %p9868_p2 = pnand %p7119_p0, %p847_p1 }
  0x55   : > { %p8128_p3 = scmp.eq.s32.totalorder (!%p9868_p2), %s9864_s15, 0  ;;  %s9628_s18 = smov (!%p9868_p2), [#allocation6]  }
  0x56   : > { %851 = sbr.rel (%p9868_p2) target bundleno = 866 (0x362), region = 12  ;;  %s882_s22 = sshll.u32 (!%p9868_p2), %s9628_s18, 4  ;;  %s883_s22 = int_to_ptr.vmem [resolvable:$true] %s882_s22 }
  0x57   : > { %s9629_s23 = smov (!%p9868_p2), [#allocation9]   ;;  %s8670_s28 = scalar_lea.hbm (!%p9868_p2), %s9701_s17, 16 }
  0x58   : > { %s904_s26 = sshll.u32 (!%p9868_p2), %s9629_s23, 4  ;;  %p8671_p4 = scmp.ne.s32.totalorder (!%p9868_p2), %s9701_s17, %s8670_s28  ;;  %s905_s26 = int_to_ptr.vmem [resolvable:$true] %s904_s26 }
  0x59   : > { %p8676_p7 = scmp.lt.u32.totalorder (!%p9868_p2), %s8670_s28, %s9701_s17 }
  0x5a   : > { %p8672_p5 = pnand (!%p9868_p2), %p8671_p4, %p8128_p3 }
  0x5c   : > { %p8673_p6 = pneg (!%p9868_p2), %p8672_p5 }
  0x5e   : > { %p8678_p8 = pnand %p8676_p7, %p8673_p6 }
  0x60   : > { %8681 = shalt.err (!%p8678_p8)
}
  0x61   : > { %s8682_s1 = scalar_lea.vmem %s883_s22, 16  ;;  %s8688_s2 = scalar_lea.vmem %s883_s22, 32 }
  0x62   : > { %p8683_p9 = scmp.ne.s32.totalorder %s883_s22, %s8682_s1  ;;  %p8689_p12 = scmp.lt.s32.totalorder %s883_s22, %s883_s22 }
  0x63   : > { %p8690_p13 = scmp.lt.s32.totalorder %s8688_s2, %s8682_s1 }
  0x64   : > { %p8684_p10 = pnand %p8683_p9, %p8128_p3 }
  0x65   : > { %p8691_p0 = por %p8690_p13, %p8689_p12 }
  0x66   : > { %p8685_p11 = pneg %p8684_p10 }
  0x68   : > { %p8692_p1 = pnand %p8691_p0, %p8685_p11 }
  0x6a   : > { %8695 = shalt.err (!%p8692_p1)
}
  0x6b   : > { %8001 = dma.hbm_to_vmem [thread:$0]  (%p8128_p3), %s9701_s17, 16, %s883_s22, [#allocation7]  }
  0x6c   : > { %s8696_s7 = scalar_lea.hbm %s9711_s25, 16 }
  0x6d   : > { %p8697_p4 = scmp.ne.s32.totalorder %s9711_s25, %s8696_s7  ;;  %p8702_p7 = scmp.lt.u32.totalorder %s8696_s7, %s9711_s25 }
  0x6f   : > { %p8698_p5 = pnand %p8697_p4, %p8128_p3 }
  0x71   : > { %p8699_p6 = pneg %p8698_p5 }
  0x73   : > { %p8704_p8 = pnand %p8702_p7, %p8699_p6 }
  0x75   : > { %8707 = shalt.err (!%p8704_p8)
}
  0x76   : > { %s8708_s10 = scalar_lea.vmem %s905_s26, 16  ;;  %s8714_s11 = scalar_lea.vmem %s905_s26, 32 }
  0x77   : > { %p8709_p9 = scmp.ne.s32.totalorder %s905_s26, %s8708_s10  ;;  %p8715_p12 = scmp.lt.s32.totalorder %s905_s26, %s905_s26 }
  0x78   : > { %p8716_p13 = scmp.lt.s32.totalorder %s8714_s11, %s8708_s10 }
  0x79   : > { %p8710_p10 = pnand %p8709_p9, %p8128_p3 }
  0x7a   : > { %p8717_p0 = por %p8716_p13, %p8715_p12 }
  0x7b   : > { %p8711_p11 = pneg %p8710_p10 }
  0x7d   : > { %p8718_p1 = pnand %p8717_p0, %p8711_p11 }
  0x7f   : > { %8721 = shalt.err (!%p8718_p1)
}
  0x80   : > { %8005 = dma.hbm_to_vmem [thread:$0]  (%p8128_p3), %s9711_s25, 16, %s905_s26, [#allocation10]  }
  0x81   : > { %s9630_s18 = smov [#allocation12]   ;;  %s9631_s23 = smov [#allocation15]  }
  0x82   : > { %s928_s22 = sshll.u32 %s9630_s18, 4  ;;  %s952_s28 = sshll.u32 %s9631_s23, 4  ;;  %s929_s22 = int_to_ptr.vmem [resolvable:$true] %s928_s22  ;;  %s953_s28 = int_to_ptr.vmem [resolvable:$true] %s952_s28 }
  0x83   : > { %s8722_s1 = scalar_lea.hbm %s11122_s3, 16 }
  0x84   : > { %p8723_p4 = scmp.ne.s32.totalorder %s11122_s3, %s8722_s1  ;;  %p8728_p7 = scmp.lt.u32.totalorder %s8722_s1, %s11122_s3 }
  0x86   : > { %p8724_p5 = pnand %p8723_p4, %p8128_p3 }
  0x88   : > { %p8725_p6 = pneg %p8724_p5 }
  0x8a   : > { %p8730_p8 = pnand %p8728_p7, %p8725_p6 }
  0x8c   : > { %8733 = shalt.err (!%p8730_p8)
}
  0x8d   : > { %s8734_s2 = scalar_lea.vmem %s929_s22, 16  ;;  %s8740_s26 = scalar_lea.vmem %s929_s22, 32 }
  0x8e   : > { %p8735_p9 = scmp.ne.s32.totalorder %s929_s22, %s8734_s2  ;;  %p8741_p12 = scmp.lt.s32.totalorder %s929_s22, %s929_s22 }
  0x8f   : > { %p8742_p13 = scmp.lt.s32.totalorder %s8740_s26, %s8734_s2 }
  0x90   : > { %p8736_p10 = pnand %p8735_p9, %p8128_p3 }
  0x91   : > { %p8743_p0 = por %p8742_p13, %p8741_p12 }
  0x92   : > { %p8737_p11 = pneg %p8736_p10 }
  0x94   : > { %p8744_p1 = pnand %p8743_p0, %p8737_p11 }
  0x96   : > { %8747 = shalt.err (!%p8744_p1)
}
  0x97   : > { %8009 = dma.hbm_to_vmem [thread:$0]  (%p8128_p3), %s11122_s3, 16, %s929_s22, [#allocation13]  }
  0x98   : > { %s8748_s7 = scalar_lea.hbm %s9731_s14, 48 }
  0x99   : > { %p8749_p4 = scmp.ne.s32.totalorder %s9731_s14, %s8748_s7  ;;  %p8754_p7 = scmp.lt.u32.totalorder %s8748_s7, %s9731_s14 }
  0x9b   : > { %p8750_p5 = pnand %p8749_p4, %p8128_p3 }
  0x9d   : > { %p8751_p6 = pneg %p8750_p5 }
  0x9f   : > { %p8756_p8 = pnand %p8754_p7, %p8751_p6 }
  0xa1   : > { %8759 = shalt.err (!%p8756_p8)
}
  0xa2   : > { %s8760_s10 = scalar_lea.vmem %s953_s28, 48  ;;  %s8766_s11 = scalar_lea.vmem %s953_s28, 64 }
  0xa3   : > { %p8761_p9 = scmp.ne.s32.totalorder %s953_s28, %s8760_s10  ;;  %p8767_p12 = scmp.lt.s32.totalorder %s953_s28, %s953_s28 }
  0xa4   : > { %p8768_p13 = scmp.lt.s32.totalorder %s8766_s11, %s8760_s10 }
  0xa5   : > { %p8762_p10 = pnand %p8761_p9, %p8128_p3 }
  0xa6   : > { %p8769_p0 = por %p8768_p13, %p8767_p12 }
  0xa7   : > { %p8763_p11 = pneg %p8762_p10 }
  0xa9   : > { %p8770_p1 = pnand %p8769_p0, %p8763_p11 }
  0xab   : > { %8773 = shalt.err (!%p8770_p1)
}
  0xac   : > { %8013 = dma.hbm_to_vmem [thread:$0]  (%p8128_p3), %s9731_s14, 48, %s953_s28, [#allocation16]  }
  0xad   : > { %s9632_s18 = smov [#allocation18]   ;;  %s9633_s23 = smov [#allocation21]  }
  0xae   : > { %s976_s22 = sshll.u32 %s9632_s18, 4  ;;  %s998_s1 = sshll.u32 %s9633_s23, 4  ;;  %s977_s22 = int_to_ptr.vmem [resolvable:$true] %s976_s22  ;;  %s999_s1 = int_to_ptr.vmem [resolvable:$true] %s998_s1 }
  0xaf   : > { %s8774_s2 = scalar_lea.hbm %s9741_s24, 16 }
  0xb0   : > { %p8775_p4 = scmp.ne.s32.totalorder %s9741_s24, %s8774_s2  ;;  %p8780_p7 = scmp.lt.u32.totalorder %s8774_s2, %s9741_s24 }
  0xb2   : > { %p8776_p5 = pnand %p8775_p4, %p8128_p3 }
  0xb4   : > { %p8777_p6 = pneg %p8776_p5 }
  0xb6   : > { %p8782_p8 = pnand %p8780_p7, %p8777_p6 }
  0xb8   : > { %8785 = shalt.err (!%p8782_p8)
}
  0xb9   : > { %s8786_s26 = scalar_lea.vmem %s977_s22, 16  ;;  %s8792_s28 = scalar_lea.vmem %s977_s22, 32 }
  0xba   : > { %p8787_p9 = scmp.ne.s32.totalorder %s977_s22, %s8786_s26  ;;  %p8793_p12 = scmp.lt.s32.totalorder %s977_s22, %s977_s22 }
  0xbb   : > { %p8794_p13 = scmp.lt.s32.totalorder %s8792_s28, %s8786_s26 }
  0xbc   : > { %p8788_p10 = pnand %p8787_p9, %p8128_p3 }
  0xbd   : > { %p8795_p0 = por %p8794_p13, %p8793_p12 }
  0xbe   : > { %p8789_p11 = pneg %p8788_p10 }
  0xc0   : > { %p8796_p1 = pnand %p8795_p0, %p8789_p11 }
  0xc2   : > { %8799 = shalt.err (!%p8796_p1)
}
  0xc3   : > { %8017 = dma.hbm_to_vmem [thread:$0]  (%p8128_p3), %s9741_s24, 16, %s977_s22, [#allocation19]  }
  0xc4   : > { %s8800_s7 = scalar_lea.hbm %s11120_s6, 16 }
  0xc5   : > { %p8801_p4 = scmp.ne.s32.totalorder %s11120_s6, %s8800_s7  ;;  %p8806_p7 = scmp.lt.u32.totalorder %s8800_s7, %s11120_s6 }
  0xc7   : > { %p8802_p5 = pnand %p8801_p4, %p8128_p3 }
  0xc9   : > { %p8803_p6 = pneg %p8802_p5 }
  0xcb   : > { %p8808_p8 = pnand %p8806_p7, %p8803_p6 }
  0xcd   : > { %8811 = shalt.err (!%p8808_p8)
}
  0xce   : > { %s8812_s10 = scalar_lea.vmem %s999_s1, 16  ;;  %s8818_s11 = scalar_lea.vmem %s999_s1, 32 }
  0xcf   : > { %p8813_p9 = scmp.ne.s32.totalorder %s999_s1, %s8812_s10  ;;  %p8819_p12 = scmp.lt.s32.totalorder %s999_s1, %s999_s1 }
  0xd0   : > { %p8820_p13 = scmp.lt.s32.totalorder %s8818_s11, %s8812_s10 }
  0xd1   : > { %p8814_p10 = pnand %p8813_p9, %p8128_p3 }
  0xd2   : > { %p8821_p0 = por %p8820_p13, %p8819_p12 }
  0xd3   : > { %p8815_p11 = pneg %p8814_p10 }
  0xd5   : > { %p8822_p1 = pnand %p8821_p0, %p8815_p11 }
  0xd7   : > { %8825 = shalt.err (!%p8822_p1)
}
  0xd8   : > { %8021 = dma.hbm_to_vmem [thread:$0]  (%p8128_p3), %s11120_s6, 16, %s999_s1, [#allocation22]  }
  0xd9   : > { %s9634_s18 = smov [#allocation24]   ;;  %s9635_s23 = smov [#allocation27]  }
  0xda   : > { %s1022_s22 = sshll.u32 %s9634_s18, 4  ;;  %s1046_s2 = sshll.u32 %s9635_s23, 4  ;;  %s1023_s22 = int_to_ptr.vmem [resolvable:$true] %s1022_s22  ;;  %s1047_s2 = int_to_ptr.vmem [resolvable:$true] %s1046_s2 }
  0xdb   : > { %s8826_s26 = scalar_lea.hbm %s9761_s20, 32 }
  0xdc   : > { %p8827_p4 = scmp.ne.s32.totalorder %s9761_s20, %s8826_s26  ;;  %p8832_p7 = scmp.lt.u32.totalorder %s8826_s26, %s9761_s20 }
  0xde   : > { %p8828_p5 = pnand %p8827_p4, %p8128_p3 }
  0xe0   : > { %p8829_p6 = pneg %p8828_p5 }
  0xe2   : > { %p8834_p8 = pnand %p8832_p7, %p8829_p6 }
  0xe4   : > { %8837 = shalt.err (!%p8834_p8)
}
  0xe5   : > { %s8838_s28 = scalar_lea.vmem %s1023_s22, 32  ;;  %p8845_p12 = scmp.lt.s32.totalorder %s1023_s22, %s1023_s22 }
  0xe6   : > { %p8839_p9 = scmp.ne.s32.totalorder %s1023_s22, %s8838_s28  ;;  %p8846_p13 = scmp.lt.s32.totalorder %s8838_s28, %s8838_s28 }
  0xe8   : > { %p8840_p10 = pnand %p8839_p9, %p8128_p3  ;;  %p8847_p0 = por %p8846_p13, %p8845_p12 }
  0xea   : > { %p8841_p11 = pneg %p8840_p10 }
  0xec   : > { %p8848_p1 = pnand %p8847_p0, %p8841_p11 }
  0xee   : > { %8851 = shalt.err (!%p8848_p1)
}
  0xef   : > { %8025 = dma.hbm_to_vmem [thread:$0]  (%p8128_p3), %s9761_s20, 32, %s1023_s22, [#allocation25]  }
  0xf0   : > { %s8852_s1 = scalar_lea.hbm %s11121_s4, 16 }
  0xf1   : > { %p8853_p4 = scmp.ne.s32.totalorder %s11121_s4, %s8852_s1  ;;  %p8858_p7 = scmp.lt.u32.totalorder %s8852_s1, %s11121_s4 }
  0xf3   : > { %p8854_p5 = pnand %p8853_p4, %p8128_p3 }
  0xf5   : > { %p8855_p6 = pneg %p8854_p5 }
  0xf7   : > { %p8860_p8 = pnand %p8858_p7, %p8855_p6 }
  0xf9   : > { %8863 = shalt.err (!%p8860_p8)
}
  0xfa   : > { %s8864_s7 = scalar_lea.vmem %s1047_s2, 16  ;;  %s8870_s10 = scalar_lea.vmem %s1047_s2, 32 }
  0xfb   : > { %p8865_p9 = scmp.ne.s32.totalorder %s1047_s2, %s8864_s7  ;;  %p8871_p12 = scmp.lt.s32.totalorder %s1047_s2, %s1047_s2 }
  0xfc   : > { %p8872_p13 = scmp.lt.s32.totalorder %s8870_s10, %s8864_s7 }
  0xfd   : > { %p8866_p10 = pnand %p8865_p9, %p8128_p3 }
  0xfe   : > { %p8873_p0 = por %p8872_p13, %p8871_p12 }
  0xff   : > { %p8867_p11 = pneg %p8866_p10 }
 0x101   : > { %p8874_p1 = pnand %p8873_p0, %p8867_p11 }
 0x103   : > { %8877 = shalt.err (!%p8874_p1)
}
 0x104   : > { %8029 = dma.hbm_to_vmem [thread:$0]  (%p8128_p3), %s11121_s4, 16, %s1047_s2, [#allocation28]  }
 0x105   : > { %s9636_s11 = smov [#allocation30]   ;;  %s9637_s22 = smov [#allocation33]  }
 0x106   : > { %s1068_s18 = sshll.u32 %s9636_s11, 4  ;;  %s1092_s23 = sshll.u32 %s9637_s22, 4  ;;  %s1069_s18 = int_to_ptr.vmem [resolvable:$true] %s1068_s18  ;;  %s1093_s23 = int_to_ptr.vmem [resolvable:$true] %s1092_s23 }
 0x107   : > { %s8878_s26 = scalar_lea.hbm %s11118_s12, 16 }
 0x108   : > { %p8879_p4 = scmp.ne.s32.totalorder %s11118_s12, %s8878_s26  ;;  %p8884_p7 = scmp.lt.u32.totalorder %s8878_s26, %s11118_s12 }
 0x10a   : > { %p8880_p5 = pnand %p8879_p4, %p8128_p3 }
 0x10c   : > { %p8881_p6 = pneg %p8880_p5 }
 0x10e   : > { %p8886_p8 = pnand %p8884_p7, %p8881_p6 }
 0x110   : > { %8889 = shalt.err (!%p8886_p8)
}
 0x111   : > { %s8890_s28 = scalar_lea.vmem %s1069_s18, 16  ;;  %s8896_s2 = scalar_lea.vmem %s1069_s18, 32 }
 0x112   : > { %p8891_p9 = scmp.ne.s32.totalorder %s1069_s18, %s8890_s28  ;;  %p8897_p12 = scmp.lt.s32.totalorder %s1069_s18, %s1069_s18 }
 0x113   : > { %p8898_p13 = scmp.lt.s32.totalorder %s8896_s2, %s8890_s28 }
 0x114   : > { %p8892_p10 = pnand %p8891_p9, %p8128_p3 }
 0x115   : > { %p8899_p0 = por %p8898_p13, %p8897_p12 }
 0x116   : > { %p8893_p11 = pneg %p8892_p10 }
 0x118   : > { %p8900_p1 = pnand %p8899_p0, %p8893_p11 }
 0x11a   : > { %8903 = shalt.err (!%p8900_p1)
}
 0x11b   : > { %8033 = dma.hbm_to_vmem [thread:$0]  (%p8128_p3), %s11118_s12, 16, %s1069_s18, [#allocation31]  }
 0x11c   : > { %s8904_s1 = scalar_lea.hbm %s9791_s30, 48 }
 0x11d   : > { %p8905_p4 = scmp.ne.s32.totalorder %s9791_s30, %s8904_s1  ;;  %p8910_p7 = scmp.lt.u32.totalorder %s8904_s1, %s9791_s30 }
 0x11f   : > { %p8906_p5 = pnand %p8905_p4, %p8128_p3 }
 0x121   : > { %p8907_p6 = pneg %p8906_p5 }
 0x123   : > { %p8912_p8 = pnand %p8910_p7, %p8907_p6 }
 0x125   : > { %8915 = shalt.err (!%p8912_p8)
}
 0x126   : > { %s8916_s7 = scalar_lea.vmem %s1093_s23, 48  ;;  %s8922_s10 = scalar_lea.vmem %s1093_s23, 64 }
 0x127   : > { %p8917_p9 = scmp.ne.s32.totalorder %s1093_s23, %s8916_s7  ;;  %p8923_p12 = scmp.lt.s32.totalorder %s1093_s23, %s1093_s23 }
 0x128   : > { %p8924_p13 = scmp.lt.s32.totalorder %s8922_s10, %s8916_s7 }
 0x129   : > { %p8918_p10 = pnand %p8917_p9, %p8128_p3 }
 0x12a   : > { %p8925_p0 = por %p8924_p13, %p8923_p12 }
 0x12b   : > { %p8919_p11 = pneg %p8918_p10 }
 0x12d   : > { %p8926_p1 = pnand %p8925_p0, %p8919_p11 }
 0x12f   : > { %8929 = shalt.err (!%p8926_p1)
}
 0x130   : > { %8037 = dma.hbm_to_vmem [thread:$0]  (%p8128_p3), %s9791_s30, 48, %s1093_s23, [#allocation34]  }
 0x131   : > { %s9638_s11 = smov [#allocation36]   ;;  %s9639_s22 = smov [#allocation39]  }
 0x132   : > { %s1116_s18 = sshll.u32 %s9638_s11, 4  ;;  %s1138_s26 = sshll.u32 %s9639_s22, 4  ;;  %s1117_s18 = int_to_ptr.vmem [resolvable:$true] %s1116_s18  ;;  %s1139_s26 = int_to_ptr.vmem [resolvable:$true] %s1138_s26 }
 0x133   : > { %s8930_s28 = scalar_lea.hbm %s9801_s19, 16 }
 0x134   : > { %p8931_p4 = scmp.ne.s32.totalorder %s9801_s19, %s8930_s28  ;;  %p8936_p7 = scmp.lt.u32.totalorder %s8930_s28, %s9801_s19 }
 0x136   : > { %p8932_p5 = pnand %p8931_p4, %p8128_p3 }
 0x138   : > { %p8933_p6 = pneg %p8932_p5 }
 0x13a   : > { %p8938_p8 = pnand %p8936_p7, %p8933_p6 }
 0x13c   : > { %8941 = shalt.err (!%p8938_p8)
}
 0x13d   : > { %s8942_s2 = scalar_lea.vmem %s1117_s18, 16  ;;  %s8948_s23 = scalar_lea.vmem %s1117_s18, 32 }
 0x13e   : > { %p8943_p9 = scmp.ne.s32.totalorder %s1117_s18, %s8942_s2  ;;  %p8949_p12 = scmp.lt.s32.totalorder %s1117_s18, %s1117_s18 }
 0x13f   : > { %p8950_p13 = scmp.lt.s32.totalorder %s8948_s23, %s8942_s2 }
 0x140   : > { %p8944_p10 = pnand %p8943_p9, %p8128_p3 }
 0x141   : > { %p8951_p0 = por %p8950_p13, %p8949_p12 }
 0x142   : > { %p8945_p11 = pneg %p8944_p10 }
 0x144   : > { %p8952_p1 = pnand %p8951_p0, %p8945_p11 }
 0x146   : > { %8955 = shalt.err (!%p8952_p1)
}
 0x147   : > { %8041 = dma.hbm_to_vmem [thread:$0]  (%p8128_p3), %s9801_s19, 16, %s1117_s18, [#allocation37]  }
 0x148   : > { %s8956_s1 = scalar_lea.hbm %s11119_s8, 16 }
 0x149   : > { %p8957_p4 = scmp.ne.s32.totalorder %s11119_s8, %s8956_s1  ;;  %p8962_p7 = scmp.lt.u32.totalorder %s8956_s1, %s11119_s8 }
 0x14b   : > { %p8958_p5 = pnand %p8957_p4, %p8128_p3 }
 0x14d   : > { %p8959_p6 = pneg %p8958_p5 }
 0x14f   : > { %p8964_p8 = pnand %p8962_p7, %p8959_p6 }
 0x151   : > { %8967 = shalt.err (!%p8964_p8)
}
 0x152   : > { %s8968_s7 = scalar_lea.vmem %s1139_s26, 16  ;;  %s8974_s10 = scalar_lea.vmem %s1139_s26, 32 }
 0x153   : > { %p8969_p9 = scmp.ne.s32.totalorder %s1139_s26, %s8968_s7  ;;  %p8975_p12 = scmp.lt.s32.totalorder %s1139_s26, %s1139_s26 }
 0x154   : > { %p8976_p13 = scmp.lt.s32.totalorder %s8974_s10, %s8968_s7 }
 0x155   : > { %p8970_p10 = pnand %p8969_p9, %p8128_p3 }
 0x156   : > { %p8977_p0 = por %p8976_p13, %p8975_p12 }
 0x157   : > { %p8971_p11 = pneg %p8970_p10 }
 0x159   : > { %p8978_p1 = pnand %p8977_p0, %p8971_p11 }
 0x15b   : > { %8981 = shalt.err (!%p8978_p1)
}
 0x15c   : > { %8045 = dma.hbm_to_vmem [thread:$0]  (%p8128_p3), %s11119_s8, 16, %s1139_s26, [#allocation40]  }
 0x15d   : > { %s9640_s11 = smov [#allocation42]   ;;  %s9641_s22 = smov [#allocation45]  }
 0x15e   : > { %s1162_s18 = sshll.u32 %s9640_s11, 4  ;;  %s1186_s28 = sshll.u32 %s9641_s22, 4  ;;  %s1163_s18 = int_to_ptr.vmem [resolvable:$true] %s1162_s18  ;;  %s1187_s28 = int_to_ptr.vmem [resolvable:$true] %s1186_s28 }
 0x15f   : > { %s8982_s2 = scalar_lea.hbm %s9821_s29, 32 }
 0x160   : > { %p8983_p4 = scmp.ne.s32.totalorder %s9821_s29, %s8982_s2  ;;  %p8988_p7 = scmp.lt.u32.totalorder %s8982_s2, %s9821_s29 }
 0x162   : > { %p8984_p5 = pnand %p8983_p4, %p8128_p3 }
 0x164   : > { %p8985_p6 = pneg %p8984_p5 }
 0x166   : > { %p8990_p8 = pnand %p8988_p7, %p8985_p6 }
 0x168   : > { %8993 = shalt.err (!%p8990_p8)
}
 0x169   : > { %s8994_s23 = scalar_lea.vmem %s1163_s18, 32  ;;  %p9001_p12 = scmp.lt.s32.totalorder %s1163_s18, %s1163_s18 }
 0x16a   : > { %p8995_p9 = scmp.ne.s32.totalorder %s1163_s18, %s8994_s23  ;;  %p9002_p13 = scmp.lt.s32.totalorder %s8994_s23, %s8994_s23 }
 0x16c   : > { %p8996_p10 = pnand %p8995_p9, %p8128_p3  ;;  %p9003_p0 = por %p9002_p13, %p9001_p12 }
 0x16e   : > { %p8997_p11 = pneg %p8996_p10 }
 0x170   : > { %p9004_p1 = pnand %p9003_p0, %p8997_p11 }
 0x172   : > { %9007 = shalt.err (!%p9004_p1)
}
 0x173   : > { %8049 = dma.hbm_to_vmem [thread:$0]  (%p8128_p3), %s9821_s29, 32, %s1163_s18, [#allocation43]  }
 0x174   : > { %s9008_s26 = scalar_lea.hbm %s9831_s21, 16 }
 0x175   : > { %p9009_p4 = scmp.ne.s32.totalorder %s9831_s21, %s9008_s26  ;;  %p9014_p7 = scmp.lt.u32.totalorder %s9008_s26, %s9831_s21 }
 0x177   : > { %p9010_p5 = pnand %p9009_p4, %p8128_p3 }
 0x179   : > { %p9011_p6 = pneg %p9010_p5 }
 0x17b   : > { %p9016_p8 = pnand %p9014_p7, %p9011_p6 }
 0x17d   : > { %9019 = shalt.err (!%p9016_p8)
}
 0x17e   : > { %s9020_s1 = scalar_lea.vmem %s1187_s28, 16  ;;  %s9026_s7 = scalar_lea.vmem %s1187_s28, 32 }
 0x17f   : > { %p9021_p9 = scmp.ne.s32.totalorder %s1187_s28, %s9020_s1  ;;  %p9027_p12 = scmp.lt.s32.totalorder %s1187_s28, %s1187_s28 }
 0x180   : > { %p9028_p13 = scmp.lt.s32.totalorder %s9026_s7, %s9020_s1 }
 0x181   : > { %p9022_p10 = pnand %p9021_p9, %p8128_p3 }
 0x182   : > { %p9029_p0 = por %p9028_p13, %p9027_p12 }
 0x183   : > { %p9023_p11 = pneg %p9022_p10 }
 0x185   : > { %p9030_p1 = pnand %p9029_p0, %p9023_p11 }
 0x187   : > { %9033 = shalt.err (!%p9030_p1)
}
 0x188   : > { %8053 = dma.hbm_to_vmem [thread:$0]  (%p8128_p3), %s9831_s21, 16, %s1187_s28, [#allocation46]  }
 0x189   : > { %s9642_s10 = smov [#allocation48]   ;;  %s9034_s18 = scalar_lea.hbm %s11117_s13, 16 }
 0x18a   : > { %s1208_s11 = sshll.u32 %s9642_s10, 4  ;;  %p9035_p4 = scmp.ne.s32.totalorder %s11117_s13, %s9034_s18  ;;  %s1209_s11 = int_to_ptr.vmem [resolvable:$true] %s1208_s11 }
 0x18b   : > { %p9040_p7 = scmp.lt.u32.totalorder %s9034_s18, %s11117_s13 }
 0x18c   : > { %p9036_p5 = pnand %p9035_p4, %p8128_p3 }
 0x18e   : > { %p9037_p6 = pneg %p9036_p5 }
 0x190   : > { %p9042_p8 = pnand %p9040_p7, %p9037_p6 }
 0x192   : > { %9045 = shalt.err (!%p9042_p8)
}
 0x193   : > { %s9046_s22 = scalar_lea.vmem %s1209_s11, 16  ;;  %s9052_s2 = scalar_lea.vmem %s1209_s11, 32 }
 0x194   : > { %p9047_p9 = scmp.ne.s32.totalorder %s1209_s11, %s9046_s22  ;;  %p9053_p12 = scmp.lt.s32.totalorder %s1209_s11, %s1209_s11 }
 0x195   : > { %p9054_p13 = scmp.lt.s32.totalorder %s9052_s2, %s9046_s22 }
 0x196   : > { %p9048_p10 = pnand %p9047_p9, %p8128_p3 }
 0x197   : > { %p9055_p0 = por %p9054_p13, %p9053_p12 }
 0x198   : > { %p9049_p11 = pneg %p9048_p10 }
 0x19a   : > { %p9056_p1 = pnand %p9055_p0, %p9049_p11 }
 0x19c   : > { %9059 = shalt.err (!%p9056_p1)
}
 0x19d   : > { %s11124_s28 = sld [smem:[#allocation71_spill]] }
 0x19e   : > { %8057 = dma.hbm_to_vmem [thread:$0]  (%p8128_p3), %s11117_s13, 16, %s1209_s11, [#allocation49]  }
 0x1a3   : > { %s9060_s23 = scalar_lea.hbm %s11124_s28, 16 }
 0x1a4   : > { %p9061_p4 = scmp.ne.s32.totalorder %s11124_s28, %s9060_s23  ;;  %p9066_p7 = scmp.lt.u32.totalorder %s9060_s23, %s11124_s28 }
 0x1a6   : > { %p9062_p5 = pnand %p9061_p4, %p8128_p3 }
 0x1a8   : > { %p9063_p6 = pneg %p9062_p5 }
 0x1aa   : > { %p9068_p8 = pnand %p9066_p7, %p9063_p6 }
 0x1ac   : > { %9071 = shalt.err (!%p9068_p8)
}
 0x1ad   : > { %s9643_s26 = smov [#allocation2]   ;;  %s11125_s1 = sld [smem:[#allocation73_spill]] }
 0x1ae   : > { %7997 = dma.hbm_to_smem (%p8128_p3), %s11124_s28, 16, %s9643_s26, [#allocation4]  }
 0x1af   : > { %s9644_s7 = smov [#allocation5]  }
 0x1b0   : > { %s868_s10 = sshll.u32 %s9644_s7, 4  ;;  %s869_s10 = int_to_ptr.vmem [resolvable:$true] %s868_s10 }
 0x1b3   : > { %s9072_s11 = scalar_lea.hbm %s11125_s1, 256 }
 0x1b4   : > { %p9073_p9 = scmp.ne.s32.totalorder %s11125_s1, %s9072_s11  ;;  %p9078_p12 = scmp.lt.u32.totalorder %s9072_s11, %s11125_s1 }
 0x1b6   : > { %p9074_p10 = pnand %p9073_p9, %p8128_p3 }
 0x1b8   : > { %p9075_p11 = pneg %p9074_p10 }
 0x1ba   : > { %p9080_p13 = pnand %p9078_p12, %p9075_p11 }
 0x1bc   : > { %9083 = shalt.err (!%p9080_p13)
}
 0x1bd   : > { %s9084_s18 = scalar_lea.vmem %s869_s10, 256  ;;  %p9091_p5 = scmp.lt.s32.totalorder %s869_s10, %s869_s10 }
 0x1be   : > { %p9085_p0 = scmp.ne.s32.totalorder %s869_s10, %s9084_s18  ;;  %p9092_p6 = scmp.lt.s32.totalorder %s9084_s18, %s9084_s18 }
 0x1c0   : > { %p9086_p1 = pnand %p9085_p0, %p8128_p3  ;;  %p9093_p7 = por %p9092_p6, %p9091_p5 }
 0x1c2   : > { %p9087_p4 = pneg %p9086_p1 }
 0x1c4   : > { %p9094_p8 = pnand %p9093_p7, %p9087_p4 }
 0x1c6   : > { %9097 = shalt.err (!%p9094_p8)
}
 0x1c7   : > { %s11072_s22 = smov 64   ;;  %s11126_s2 = sld [smem:[#allocation74_spill]] }
 0x1c8   : > { %s11074_s23 = smov 4   ;;  %s9647_s26 = smov [#allocation8]  }
 0x1c9   : > { %7999 = dma.hbm_to_vmem [thread:$0]  (%p8128_p3), %s11125_s1, 256, %s869_s10, [#allocation3], %s11072_s22, %s11072_s22, %s11074_s23  }
 0x1ca   : > { %s893_s7 = sshll.u32 %s9647_s26, 4  ;;  %s9648_s11 = smov [#allocation11]   ;;  %s894_s7 = int_to_ptr.vmem [resolvable:$true] %s893_s7 }
 0x1cb   : > { %s914_s18 = sshll.u32 %s9648_s11, 4  ;;  %s915_s18 = int_to_ptr.vmem [resolvable:$true] %s914_s18 }
 0x1cd   : > { %s9098_s3 = scalar_lea.hbm %s11126_s2, 16 }
 0x1ce   : > { %p9099_p9 = scmp.ne.s32.totalorder %s11126_s2, %s9098_s3  ;;  %p9104_p12 = scmp.lt.u32.totalorder %s9098_s3, %s11126_s2 }
 0x1d0   : > { %p9100_p10 = pnand %p9099_p9, %p8128_p3 }
 0x1d2   : > { %p9101_p11 = pneg %p9100_p10 }
 0x1d4   : > { %p9106_p13 = pnand %p9104_p12, %p9101_p11 }
 0x1d6   : > { %9109 = shalt.err (!%p9106_p13)
}
 0x1d7   : > { %s9110_s4 = scalar_lea.vmem %s894_s7, 16  ;;  %s9116_s10 = scalar_lea.vmem %s894_s7, 32 }
 0x1d8   : > { %p9111_p0 = scmp.ne.s32.totalorder %s894_s7, %s9110_s4  ;;  %p9117_p5 = scmp.lt.s32.totalorder %s894_s7, %s894_s7 }
 0x1d9   : > { %p9118_p6 = scmp.lt.s32.totalorder %s9116_s10, %s9110_s4 }
 0x1da   : > { %p9112_p1 = pnand %p9111_p0, %p8128_p3 }
 0x1db   : > { %p9119_p7 = por %p9118_p6, %p9117_p5 }
 0x1dc   : > { %p9113_p4 = pneg %p9112_p1 }
 0x1de   : > { %p9120_p8 = pnand %p9119_p7, %p9113_p4 }
 0x1e0   : > { %9123 = shalt.err (!%p9120_p8)
}
 0x1e1   : > { %s11127_s26 = sld [smem:[#allocation75_spill]] }
 0x1e2   : > { %8003 = dma.hbm_to_vmem [thread:$0]  (%p8128_p3), %s11126_s2, 16, %s894_s7, [#allocation7]  }
 0x1e7   : > { %s9124_s3 = scalar_lea.hbm %s11127_s26, 1024 }
 0x1e8   : > { %p9125_p9 = scmp.ne.s32.totalorder %s11127_s26, %s9124_s3  ;;  %p9130_p12 = scmp.lt.u32.totalorder %s9124_s3, %s11127_s26 }
 0x1ea   : > { %p9126_p10 = pnand %p9125_p9, %p8128_p3 }
 0x1ec   : > { %p9127_p11 = pneg %p9126_p10 }
 0x1ee   : > { %p9132_p13 = pnand %p9130_p12, %p9127_p11 }
 0x1f0   : > { %9135 = shalt.err (!%p9132_p13)
}
 0x1f1   : > { %s9136_s4 = scalar_lea.vmem %s915_s18, 1024  ;;  %p9143_p5 = scmp.lt.s32.totalorder %s915_s18, %s915_s18 }
 0x1f2   : > { %p9137_p0 = scmp.ne.s32.totalorder %s915_s18, %s9136_s4  ;;  %p9144_p6 = scmp.lt.s32.totalorder %s9136_s4, %s9136_s4 }
 0x1f4   : > { %p9138_p1 = pnand %p9137_p0, %p8128_p3  ;;  %p9145_p7 = por %p9144_p6, %p9143_p5 }
 0x1f6   : > { %p9139_p4 = pneg %p9138_p1 }
 0x1f8   : > { %p9146_p8 = pnand %p9145_p7, %p9139_p4 }
 0x1fa   : > { %9149 = shalt.err (!%p9146_p8)
}
 0x1fb   : > { %s11128_s7 = sld [smem:[#allocation77_spill]]  ;;  %s9649_s11 = smov [#allocation14]  }
 0x1fc   : > { %8007 = dma.hbm_to_vmem [thread:$0]  (%p8128_p3), %s11127_s26, 1024, %s915_s18, [#allocation10], %s11072_s22, %s11072_s22, %s11074_s23  }
 0x1fd   : > { %s938_s10 = sshll.u32 %s9649_s11, 4  ;;  %s939_s10 = int_to_ptr.vmem [resolvable:$true] %s938_s10 }
 0x201   : > { %s9150_s3 = scalar_lea.hbm %s11128_s7, 3072 }
 0x202   : > { %p9151_p9 = scmp.ne.s32.totalorder %s11128_s7, %s9150_s3  ;;  %p9156_p12 = scmp.lt.u32.totalorder %s9150_s3, %s11128_s7 }
 0x204   : > { %p9152_p10 = pnand %p9151_p9, %p8128_p3 }
 0x206   : > { %p9153_p11 = pneg %p9152_p10 }
 0x208   : > { %p9158_p13 = pnand %p9156_p12, %p9153_p11 }
 0x20a   : > { %9161 = shalt.err (!%p9158_p13)
}
 0x20b   : > { %s9162_s4 = scalar_lea.vmem %s939_s10, 3072  ;;  %p9169_p5 = scmp.lt.s32.totalorder %s939_s10, %s939_s10 }
 0x20c   : > { %p9163_p0 = scmp.ne.s32.totalorder %s939_s10, %s9162_s4  ;;  %p9170_p6 = scmp.lt.s32.totalorder %s9162_s4, %s9162_s4 }
 0x20e   : > { %p9164_p1 = pnand %p9163_p0, %p8128_p3  ;;  %p9171_p7 = por %p9170_p6, %p9169_p5 }
 0x210   : > { %p9165_p4 = pneg %p9164_p1 }
 0x212   : > { %p9172_p8 = pnand %p9171_p7, %p9165_p4 }
 0x214   : > { %9175 = shalt.err (!%p9172_p8)
}
 0x215   : > { %s11079_s18 = smov 192   ;;  %s11129_s11 = sld [smem:[#allocation78_spill]] }
 0x216   : > { %s11080_s3 = smov 12   ;;  %s9652_s22 = smov [#allocation17]  }
 0x217   : > { %8011 = dma.hbm_to_vmem [thread:$0]  (%p8128_p3), %s11128_s7, 3072, %s939_s10, [#allocation13], %s11079_s18, %s11079_s18, %s11080_s3  }
 0x218   : > { %s962_s23 = sshll.u32 %s9652_s22, 4  ;;  %s9653_s1 = smov [#allocation20]   ;;  %s963_s23 = int_to_ptr.vmem [resolvable:$true] %s962_s23 }
 0x219   : > { %s987_s4 = sshll.u32 %s9653_s1, 4  ;;  %s10082_s4 = int_to_ptr.vmem [resolvable:$true] %s987_s4 }
 0x21b   : > { %s9176_s2 = scalar_lea.hbm %s11129_s11, 1024 }
 0x21c   : > { %p9177_p9 = scmp.ne.s32.totalorder %s11129_s11, %s9176_s2  ;;  %p9182_p12 = scmp.lt.u32.totalorder %s9176_s2, %s11129_s11 }
 0x21e   : > { %p9178_p10 = pnand %p9177_p9, %p8128_p3 }
 0x220   : > { %p9179_p11 = pneg %p9178_p10 }
 0x222   : > { %p9184_p13 = pnand %p9182_p12, %p9179_p11 }
 0x224   : > { %9187 = shalt.err (!%p9184_p13)
}
 0x225   : > { %s9188_s6 = scalar_lea.vmem %s963_s23, 1024  ;;  %p9195_p5 = scmp.lt.s32.totalorder %s963_s23, %s963_s23 }
 0x226   : > { %p9189_p0 = scmp.ne.s32.totalorder %s963_s23, %s9188_s6  ;;  %p9196_p6 = scmp.lt.s32.totalorder %s9188_s6, %s9188_s6 }
 0x228   : > { %p9190_p1 = pnand %p9189_p0, %p8128_p3  ;;  %p9197_p7 = por %p9196_p6, %p9195_p5 }
 0x22a   : > { %p9191_p4 = pneg %p9190_p1 }
 0x22c   : > { %p9198_p8 = pnand %p9197_p7, %p9191_p4 }
 0x22e   : > { %9201 = shalt.err (!%p9198_p8)
}
 0x22f   : > { %s11130_s1 = smov 4   ;;  %s11131_s22 = smov 64  }
 0x230   : > { %s11132_s2 = sld [smem:[#allocation79_spill]] }
 0x231   : > { %8015 = dma.hbm_to_vmem [thread:$0]  (%p8128_p3), %s11129_s11, 1024, %s963_s23, [#allocation16], %s11131_s22, %s11131_s22, %s11130_s1  }
 0x236   : > { %s9202_s10 = scalar_lea.hbm %s11132_s2, 16 }
 0x237   : > { %p9203_p9 = scmp.ne.s32.totalorder %s11132_s2, %s9202_s10  ;;  %p9208_p12 = scmp.lt.u32.totalorder %s9202_s10, %s11132_s2 }
 0x239   : > { %p9204_p10 = pnand %p9203_p9, %p8128_p3 }
 0x23b   : > { %p9205_p11 = pneg %p9204_p10 }
 0x23d   : > { %p9210_p13 = pnand %p9208_p12, %p9205_p11 }
 0x23f   : > { %9213 = shalt.err (!%p9210_p13)
}
 0x240   : > { %s9214_s6 = scalar_lea.vmem %s10082_s4, 16  ;;  %s9220_s18 = scalar_lea.vmem %s10082_s4, 32 }
 0x241   : > { %p9215_p0 = scmp.ne.s32.totalorder %s10082_s4, %s9214_s6  ;;  %p9221_p5 = scmp.lt.s32.totalorder %s10082_s4, %s10082_s4 }
 0x242   : > { %p9222_p6 = scmp.lt.s32.totalorder %s9220_s18, %s9214_s6 }
 0x243   : > { %p9216_p1 = pnand %p9215_p0, %p8128_p3 }
 0x244   : > { %p9223_p7 = por %p9222_p6, %p9221_p5 }
 0x245   : > { %p9217_p4 = pneg %p9216_p1 }
 0x247   : > { %p9224_p8 = pnand %p9223_p7, %p9217_p4 }
 0x249   : > { %9227 = shalt.err (!%p9224_p8)
}
 0x24a   : > { %s11133_s23 = sld [smem:[#allocation81_spill]]  ;;  %s9654_s10 = smov [#allocation23]  }
 0x24b   : > { %8019 = dma.hbm_to_vmem [thread:$0]  (%p8128_p3), %s11132_s2, 16, %s10082_s4, [#allocation19]  }
 0x24c   : > { %s1008_s3 = sshll.u32 %s9654_s10, 4  ;;  %s1009_s3 = int_to_ptr.vmem [resolvable:$true] %s1008_s3 }
 0x250   : > { %s9228_s7 = scalar_lea.hbm %s11133_s23, 2048 }
 0x251   : > { %p9229_p9 = scmp.ne.s32.totalorder %s11133_s23, %s9228_s7  ;;  %p9234_p12 = scmp.lt.u32.totalorder %s9228_s7, %s11133_s23 }
 0x253   : > { %p9230_p10 = pnand %p9229_p9, %p8128_p3 }
 0x255   : > { %p9231_p11 = pneg %p9230_p10 }
 0x257   : > { %p9236_p13 = pnand %p9234_p12, %p9231_p11 }
 0x259   : > { %9239 = shalt.err (!%p9236_p13)
}
 0x25a   : > { %s9240_s18 = scalar_lea.vmem %s1009_s3, 2048  ;;  %p9247_p5 = scmp.lt.s32.totalorder %s1009_s3, %s1009_s3 }
 0x25b   : > { %p9241_p0 = scmp.ne.s32.totalorder %s1009_s3, %s9240_s18  ;;  %p9248_p6 = scmp.lt.s32.totalorder %s9240_s18, %s9240_s18 }
 0x25d   : > { %p9242_p1 = pnand %p9241_p0, %p8128_p3  ;;  %p9249_p7 = por %p9248_p6, %p9247_p5 }
 0x25f   : > { %p9243_p4 = pneg %p9242_p1 }
 0x261   : > { %p9250_p8 = pnand %p9249_p7, %p9243_p4 }
 0x263   : > { %9253 = shalt.err (!%p9250_p8)
}
 0x264   : > { %s11086_s4 = smov 128   ;;  %s11134_s6 = sld [smem:[#allocation82_spill]] }
 0x265   : > { %s11087_s7 = smov 8   ;;  %s9657_s10 = smov [#allocation26]  }
 0x266   : > { %8023 = dma.hbm_to_vmem [thread:$0]  (%p8128_p3), %s11133_s23, 2048, %s1009_s3, [#allocation22], %s11086_s4, %s11086_s4, %s11087_s7  }
 0x267   : > { %s1032_s2 = sshll.u32 %s9657_s10, 4  ;;  %s9658_s18 = smov [#allocation29]   ;;  %s1033_s2 = int_to_ptr.vmem [resolvable:$true] %s1032_s2 }
 0x268   : > { %s1057_s8 = sshll.u32 %s9658_s18, 4  ;;  %s1058_s8 = int_to_ptr.vmem [resolvable:$true] %s1057_s8 }
 0x26a   : > { %s9254_s11 = scalar_lea.hbm %s11134_s6, 2048 }
 0x26b   : > { %p9255_p9 = scmp.ne.s32.totalorder %s11134_s6, %s9254_s11  ;;  %p9260_p12 = scmp.lt.u32.totalorder %s9254_s11, %s11134_s6 }
 0x26d   : > { %p9256_p10 = pnand %p9255_p9, %p8128_p3 }
 0x26f   : > { %p9257_p11 = pneg %p9256_p10 }
 0x271   : > { %p9262_p13 = pnand %p9260_p12, %p9257_p11 }
 0x273   : > { %9265 = shalt.err (!%p9262_p13)
}
 0x274   : > { %s9266_s12 = scalar_lea.vmem %s1033_s2, 2048  ;;  %p9273_p5 = scmp.lt.s32.totalorder %s1033_s2, %s1033_s2 }
 0x275   : > { %p9267_p0 = scmp.ne.s32.totalorder %s1033_s2, %s9266_s12  ;;  %p9274_p6 = scmp.lt.s32.totalorder %s9266_s12, %s9266_s12 }
 0x277   : > { %p9268_p1 = pnand %p9267_p0, %p8128_p3  ;;  %p9275_p7 = por %p9274_p6, %p9273_p5 }
 0x279   : > { %p9269_p4 = pneg %p9268_p1 }
 0x27b   : > { %p9276_p8 = pnand %p9275_p7, %p9269_p4 }
 0x27d   : > { %9279 = shalt.err (!%p9276_p8)
}
 0x27e   : > { %s11135_s11 = sld [smem:[#allocation84_spill]] }
 0x27f   : > { %8027 = dma.hbm_to_vmem [thread:$0]  (%p8128_p3), %s11134_s6, 2048, %s1033_s2, [#allocation25], %s11131_s22, %s11131_s22, %s11130_s1  }
 0x284   : > { %s9280_s3 = scalar_lea.hbm %s11135_s11, 16 }
 0x285   : > { %p9281_p9 = scmp.ne.s32.totalorder %s11135_s11, %s9280_s3  ;;  %p9286_p12 = scmp.lt.u32.totalorder %s9280_s3, %s11135_s11 }
 0x287   : > { %p9282_p10 = pnand %p9281_p9, %p8128_p3 }
 0x289   : > { %p9283_p11 = pneg %p9282_p10 }
 0x28b   : > { %p9288_p13 = pnand %p9286_p12, %p9283_p11 }
 0x28d   : > { %9291 = shalt.err (!%p9288_p13)
}
 0x28e   : > { %s9292_s12 = scalar_lea.vmem %s1058_s8, 16  ;;  %s9298_s10 = scalar_lea.vmem %s1058_s8, 32 }
 0x28f   : > { %p9293_p0 = scmp.ne.s32.totalorder %s1058_s8, %s9292_s12  ;;  %p9299_p5 = scmp.lt.s32.totalorder %s1058_s8, %s1058_s8 }
 0x290   : > { %p9300_p6 = scmp.lt.s32.totalorder %s9298_s10, %s9292_s12 }
 0x291   : > { %p9294_p1 = pnand %p9293_p0, %p8128_p3 }
 0x292   : > { %p9301_p7 = por %p9300_p6, %p9299_p5 }
 0x293   : > { %p9295_p4 = pneg %p9294_p1 }
 0x295   : > { %p9302_p8 = pnand %p9301_p7, %p9295_p4 }
 0x297   : > { %9305 = shalt.err (!%p9302_p8)
}
 0x298   : > { %s11136_s2 = sld [smem:[#allocation86_spill]]  ;;  %s9659_s18 = smov [#allocation32]  }
 0x299   : > { %8031 = dma.hbm_to_vmem [thread:$0]  (%p8128_p3), %s11135_s11, 16, %s1058_s8, [#allocation28]  }
 0x29a   : > { %s1078_s3 = sshll.u32 %s9659_s18, 4  ;;  %s9660_s4 = smov [#allocation35]   ;;  %s1079_s3 = int_to_ptr.vmem [resolvable:$true] %s1078_s3 }
 0x29b   : > { %s1102_s7 = sshll.u32 %s9660_s4, 4  ;;  %s1103_s7 = int_to_ptr.vmem [resolvable:$true] %s1102_s7 }
 0x29e   : > { %s9306_s6 = scalar_lea.hbm %s11136_s2, 3072 }
 0x29f   : > { %p9307_p9 = scmp.ne.s32.totalorder %s11136_s2, %s9306_s6  ;;  %p9312_p12 = scmp.lt.u32.totalorder %s9306_s6, %s11136_s2 }
 0x2a1   : > { %p9308_p10 = pnand %p9307_p9, %p8128_p3 }
 0x2a3   : > { %p9309_p11 = pneg %p9308_p10 }
 0x2a5   : > { %p9314_p13 = pnand %p9312_p12, %p9309_p11 }
 0x2a7   : > { %9317 = shalt.err (!%p9314_p13)
}
 0x2a8   : > { %s9318_s12 = scalar_lea.vmem %s1079_s3, 3072  ;;  %p9325_p5 = scmp.lt.s32.totalorder %s1079_s3, %s1079_s3 }
 0x2a9   : > { %p9319_p0 = scmp.ne.s32.totalorder %s1079_s3, %s9318_s12  ;;  %p9326_p6 = scmp.lt.s32.totalorder %s9318_s12, %s9318_s12 }
 0x2ab   : > { %p9320_p1 = pnand %p9319_p0, %p8128_p3  ;;  %p9327_p7 = por %p9326_p6, %p9325_p5 }
 0x2ad   : > { %p9321_p4 = pneg %p9320_p1 }
 0x2af   : > { %p9328_p8 = pnand %p9327_p7, %p9321_p4 }
 0x2b1   : > { %9331 = shalt.err (!%p9328_p8)
}
 0x2b2   : > { %s11137_s8 = smov 12   ;;  %s11138_s4 = smov 192  }
 0x2b3   : > { %s11139_s6 = sld [smem:[#allocation87_spill]] }
 0x2b4   : > { %8035 = dma.hbm_to_vmem [thread:$0]  (%p8128_p3), %s11136_s2, 3072, %s1079_s3, [#allocation31], %s11138_s4, %s11138_s4, %s11137_s8  }
 0x2b9   : > { %s9332_s10 = scalar_lea.hbm %s11139_s6, 1024 }
 0x2ba   : > { %p9333_p9 = scmp.ne.s32.totalorder %s11139_s6, %s9332_s10  ;;  %p9338_p12 = scmp.lt.u32.totalorder %s9332_s10, %s11139_s6 }
 0x2bc   : > { %p9334_p10 = pnand %p9333_p9, %p8128_p3 }
 0x2be   : > { %p9335_p11 = pneg %p9334_p10 }
 0x2c0   : > { %p9340_p13 = pnand %p9338_p12, %p9335_p11 }
 0x2c2   : > { %9343 = shalt.err (!%p9340_p13)
}
 0x2c3   : > { %s9344_s18 = scalar_lea.vmem %s1103_s7, 1024  ;;  %p9351_p5 = scmp.lt.s32.totalorder %s1103_s7, %s1103_s7 }
 0x2c4   : > { %p9345_p0 = scmp.ne.s32.totalorder %s1103_s7, %s9344_s18  ;;  %p9352_p6 = scmp.lt.s32.totalorder %s9344_s18, %s9344_s18 }
 0x2c6   : > { %p9346_p1 = pnand %p9345_p0, %p8128_p3  ;;  %p9353_p7 = por %p9352_p6, %p9351_p5 }
 0x2c8   : > { %p9347_p4 = pneg %p9346_p1 }
 0x2ca   : > { %p9354_p8 = pnand %p9353_p7, %p9347_p4 }
 0x2cc   : > { %9357 = shalt.err (!%p9354_p8)
}
 0x2cd   : > { %s11140_s3 = sld [smem:[#allocation88_spill]]  ;;  %s9661_s12 = smov [#allocation38]  }
 0x2ce   : > { %8039 = dma.hbm_to_vmem [thread:$0]  (%p8128_p3), %s11139_s6, 1024, %s1103_s7, [#allocation34], %s11131_s22, %s11131_s22, %s11130_s1  }
 0x2cf   : > { %s1127_s8 = sshll.u32 %s9661_s12, 4  ;;  %s9662_s4 = smov [#allocation41]   ;;  %s1128_s8 = int_to_ptr.vmem [resolvable:$true] %s1127_s8 }
 0x2d0   : > { %s1148_s10 = sshll.u32 %s9662_s4, 4  ;;  %s1149_s10 = int_to_ptr.vmem [resolvable:$true] %s1148_s10 }
 0x2d3   : > { %s9358_s18 = scalar_lea.hbm %s11140_s3, 16 }
 0x2d4   : > { %p9359_p9 = scmp.ne.s32.totalorder %s11140_s3, %s9358_s18  ;;  %p9364_p12 = scmp.lt.u32.totalorder %s9358_s18, %s11140_s3 }
 0x2d6   : > { %p9360_p10 = pnand %p9359_p9, %p8128_p3 }
 0x2d8   : > { %p9361_p11 = pneg %p9360_p10 }
 0x2da   : > { %p9366_p13 = pnand %p9364_p12, %p9361_p11 }
 0x2dc   : > { %9369 = shalt.err (!%p9366_p13)
}
 0x2dd   : > { %s9370_s2 = scalar_lea.vmem %s1128_s8, 16  ;;  %s9376_s7 = scalar_lea.vmem %s1128_s8, 32 }
 0x2de   : > { %p9371_p0 = scmp.ne.s32.totalorder %s1128_s8, %s9370_s2  ;;  %p9377_p5 = scmp.lt.s32.totalorder %s1128_s8, %s1128_s8 }
 0x2df   : > { %p9378_p6 = scmp.lt.s32.totalorder %s9376_s7, %s9370_s2 }
 0x2e0   : > { %p9372_p1 = pnand %p9371_p0, %p8128_p3 }
 0x2e1   : > { %p9379_p7 = por %p9378_p6, %p9377_p5 }
 0x2e2   : > { %p9373_p4 = pneg %p9372_p1 }
 0x2e4   : > { %p9380_p8 = pnand %p9379_p7, %p9373_p4 }
 0x2e6   : > { %9383 = shalt.err (!%p9380_p8)
}
 0x2e7   : > { %s11141_s12 = sld [smem:[#allocation90_spill]] }
 0x2e8   : > { %8043 = dma.hbm_to_vmem [thread:$0]  (%p8128_p3), %s11140_s3, 16, %s1128_s8, [#allocation37]  }
 0x2ed   : > { %s9384_s4 = scalar_lea.hbm %s11141_s12, 2048 }
 0x2ee   : > { %p9385_p9 = scmp.ne.s32.totalorder %s11141_s12, %s9384_s4  ;;  %p9390_p12 = scmp.lt.u32.totalorder %s9384_s4, %s11141_s12 }
 0x2f0   : > { %p9386_p10 = pnand %p9385_p9, %p8128_p3 }
 0x2f2   : > { %p9387_p11 = pneg %p9386_p10 }
 0x2f4   : > { %p9392_p13 = pnand %p9390_p12, %p9387_p11 }
 0x2f6   : > { %9395 = shalt.err (!%p9392_p13)
}
 0x2f7   : > { %s9396_s2 = scalar_lea.vmem %s1149_s10, 2048  ;;  %p9403_p5 = scmp.lt.s32.totalorder %s1149_s10, %s1149_s10 }
 0x2f8   : > { %p9397_p0 = scmp.ne.s32.totalorder %s1149_s10, %s9396_s2  ;;  %p9404_p6 = scmp.lt.s32.totalorder %s9396_s2, %s9396_s2 }
 0x2fa   : > { %p9398_p1 = pnand %p9397_p0, %p8128_p3  ;;  %p9405_p7 = por %p9404_p6, %p9403_p5 }
 0x2fc   : > { %p9399_p4 = pneg %p9398_p1 }
 0x2fe   : > { %p9406_p8 = pnand %p9405_p7, %p9399_p4 }
 0x300   : > { %9409 = shalt.err (!%p9406_p8)
}
 0x301   : > { %s11142_s8 = smov 8   ;;  %s11143_s18 = smov 128  }
 0x302   : > { %s11144_s7 = sld [smem:[#allocation91_spill]]  ;;  %s9663_s4 = smov [#allocation44]  }
 0x303   : > { %8047 = dma.hbm_to_vmem [thread:$0]  (%p8128_p3), %s11141_s12, 2048, %s1149_s10, [#allocation40], %s11143_s18, %s11143_s18, %s11142_s8  }
 0x304   : > { %s1172_s3 = sshll.u32 %s9663_s4, 4  ;;  %s9664_s6 = smov [#allocation47]   ;;  %s1173_s3 = int_to_ptr.vmem [resolvable:$true] %s1172_s3 }
 0x305   : > { %s1197_s11 = sshll.u32 %s9664_s6, 4  ;;  %s1198_s11 = int_to_ptr.vmem [resolvable:$true] %s1197_s11 }
 0x308   : > { %s9410_s2 = scalar_lea.hbm %s11144_s7, 2048 }
 0x309   : > { %p9411_p9 = scmp.ne.s32.totalorder %s11144_s7, %s9410_s2  ;;  %p9416_p12 = scmp.lt.u32.totalorder %s9410_s2, %s11144_s7 }
 0x30b   : > { %p9412_p10 = pnand %p9411_p9, %p8128_p3 }
 0x30d   : > { %p9413_p11 = pneg %p9412_p10 }
 0x30f   : > { %p9418_p13 = pnand %p9416_p12, %p9413_p11 }
 0x311   : > { %9421 = shalt.err (!%p9418_p13)
}
 0x312   : > { %s9422_s13 = scalar_lea.vmem %s1173_s3, 2048  ;;  %p9429_p5 = scmp.lt.s32.totalorder %s1173_s3, %s1173_s3 }
 0x313   : > { %p9423_p0 = scmp.ne.s32.totalorder %s1173_s3, %s9422_s13  ;;  %p9430_p6 = scmp.lt.s32.totalorder %s9422_s13, %s9422_s13 }
 0x315   : > { %p9424_p1 = pnand %p9423_p0, %p8128_p3  ;;  %p9431_p7 = por %p9430_p6, %p9429_p5 }
 0x317   : > { %p9425_p4 = pneg %p9424_p1 }
 0x319   : > { %p9432_p8 = pnand %p9431_p7, %p9425_p4 }
 0x31b   : > { %9435 = shalt.err (!%p9432_p8)
}
 0x31c   : > { %s11145_s6 = sld [smem:[#allocation92_spill]] }
 0x31d   : > { %8051 = dma.hbm_to_vmem [thread:$0]  (%p8128_p3), %s11144_s7, 2048, %s1173_s3, [#allocation43], %s11131_s22, %s11131_s22, %s11130_s1  }
 0x322   : > { %s9436_s10 = scalar_lea.hbm %s11145_s6, 16 }
 0x323   : > { %p9437_p9 = scmp.ne.s32.totalorder %s11145_s6, %s9436_s10  ;;  %p9442_p12 = scmp.lt.u32.totalorder %s9436_s10, %s11145_s6 }
 0x325   : > { %p9438_p10 = pnand %p9437_p9, %p8128_p3 }
 0x327   : > { %p9439_p11 = pneg %p9438_p10 }
 0x329   : > { %p9444_p13 = pnand %p9442_p12, %p9439_p11 }
 0x32b   : > { %9447 = shalt.err (!%p9444_p13)
}
 0x32c   : > { %s9448_s13 = scalar_lea.vmem %s1198_s11, 16  ;;  %s9454_s8 = scalar_lea.vmem %s1198_s11, 32 }
 0x32d   : > { %p9449_p0 = scmp.ne.s32.totalorder %s1198_s11, %s9448_s13  ;;  %p9455_p5 = scmp.lt.s32.totalorder %s1198_s11, %s1198_s11 }
 0x32e   : > { %p9456_p6 = scmp.lt.s32.totalorder %s9454_s8, %s9448_s13 }
 0x32f   : > { %p9450_p1 = pnand %p9449_p0, %p8128_p3 }
 0x330   : > { %p9457_p7 = por %p9456_p6, %p9455_p5 }
 0x331   : > { %p9451_p4 = pneg %p9450_p1 }
 0x333   : > { %p9458_p8 = pnand %p9457_p7, %p9451_p4 }
 0x335   : > { %9461 = shalt.err (!%p9458_p8)
}
 0x336   : > { %8055 = dma.hbm_to_vmem [thread:$0]  (%p8128_p3), %s11145_s6, 16, %s1198_s11, [#allocation46]  }
 0x337   : > { %s9665_s1 = smov [#allocation50]   ;;  %s9462_s18 = scalar_lea.hbm %s9846_s27, 16384 }
 0x338   : > { %s1218_s3 = sshll.u32 %s9665_s1, 4  ;;  %p9463_p9 = scmp.ne.s32.totalorder %s9846_s27, %s9462_s18  ;;  %s1219_s3 = int_to_ptr.vmem [resolvable:$true] %s1218_s3 }
 0x339   : > { %p9468_p12 = scmp.lt.u32.totalorder %s9462_s18, %s9846_s27 }
 0x33a   : > { %p9464_p10 = pnand %p9463_p9, %p8128_p3 }
 0x33c   : > { %p9465_p11 = pneg %p9464_p10 }
 0x33e   : > { %p9470_p13 = pnand %p9468_p12, %p9465_p11 }
 0x340   : > { %9473 = shalt.err (!%p9470_p13)
}
 0x341   : > { %s9474_s4 = scalar_lea.vmem %s1219_s3, 16384  ;;  %p9481_p5 = scmp.lt.s32.totalorder %s1219_s3, %s1219_s3 }
 0x342   : > { %p9475_p0 = scmp.ne.s32.totalorder %s1219_s3, %s9474_s4  ;;  %p9482_p6 = scmp.lt.s32.totalorder %s9474_s4, %s9474_s4 }
 0x344   : > { %p9476_p1 = pnand %p9475_p0, %p8128_p3  ;;  %p9483_p7 = por %p9482_p6, %p9481_p5 }
 0x346   : > { %p9477_p4 = pneg %p9476_p1 }
 0x348   : > { %p9484_p8 = pnand %p9483_p7, %p9477_p4 }
 0x34a   : > { %9487 = shalt.err (!%p9484_p8)
}
 0x34b   : > { %s9666_s11 = smov 1024   ;;  %s9667_s2 = smov [#allocation51]  }
 0x34c   : > { %8059 = dma.hbm_to_vmem [thread:$0]  (%p8128_p3), %s9846_s27, 16384, %s1219_s3, [#allocation49], %s9666_s11, %s9666_s11, %s11131_s22  }
 0x34d   : > { %s1232_s10 = sshll.u32 %s9667_s2, 4  ;;  %s9488_s13 = scalar_lea.hbm %s9851_s5, 256  ;;  %s1233_s10 = int_to_ptr.vmem [resolvable:$true] %s1232_s10 }
 0x34e   : > { %p9489_p9 = scmp.ne.s32.totalorder %s9851_s5, %s9488_s13  ;;  %p9494_p12 = scmp.lt.u32.totalorder %s9488_s13, %s9851_s5 }
 0x350   : > { %p9490_p10 = pnand %p9489_p9, %p8128_p3 }
 0x352   : > { %p9491_p11 = pneg %p9490_p10 }
 0x354   : > { %p9496_p13 = pnand %p9494_p12, %p9491_p11 }
 0x356   : > { %9499 = shalt.err (!%p9496_p13)
}
 0x357   : > { %s9500_s8 = scalar_lea.vmem %s1233_s10, 256  ;;  %p9507_p5 = scmp.lt.s32.totalorder %s1233_s10, %s1233_s10 }
 0x358   : > { %p9501_p0 = scmp.ne.s32.totalorder %s1233_s10, %s9500_s8  ;;  %p9508_p6 = scmp.lt.s32.totalorder %s9500_s8, %s9500_s8 }
 0x35a   : > { %p9502_p1 = pnand %p9501_p0, %p8128_p3  ;;  %p9509_p7 = por %p9508_p6, %p9507_p5 }
 0x35c   : > { %p9503_p4 = pneg %p9502_p1 }
 0x35e   : > { %p9510_p8 = pnand %p9509_p7, %p9503_p4 }
 0x360   : > { %9513 = shalt.err (!%p9510_p8)
}
 0x361   : > { %8061 = dma.hbm_to_vmem [thread:$0]  (%p8128_p3), %s9851_s5, 256, %s1233_s10, [#allocation52]  }
 0x362 PF: > { %1253 = sbr.rel (%p9868_p2) target bundleno = 7553 (0x1d81), region = 156  ;;  %p8161_p9 = scmp.eq.s32.totalorder (!%p9868_p2), %s9864_s15, 0 }
 0x369   : > { %9519 = dma.done.wait (%p8161_p9), [#allocation4], 16  }
 0x36a   : > { %9521 = vsyncadd (%p8161_p9), [#allocation4], 4294967280 }
 0x36b   : > { %9523 = dma.done.wait (%p8161_p9), [#allocation3], 256  }
 0x36c   : > { %9525 = vsyncadd (%p8161_p9), [#allocation3], 4294967040 }
 0x36d   : > { %9527 = dma.done.wait (%p8161_p9), [#allocation7], 32  }
 0x36e   : > { %9529 = vsyncadd (%p8161_p9), [#allocation7], 4294967264 }
 0x36f   : > { %9531 = dma.done.wait (%p8161_p9), [#allocation10], 1040  }
 0x370   : > { %9533 = vsyncadd (%p8161_p9), [#allocation10], 4294966256 }
 0x371   : > { %9535 = dma.done.wait (%p8161_p9), [#allocation13], 3088  }
 0x372   : > { %9537 = vsyncadd (%p8161_p9), [#allocation13], 4294964208 }
 0x373   : > { %9539 = dma.done.wait (%p8161_p9), [#allocation16], 1072  }
 0x374   : > { %9541 = vsyncadd (%p8161_p9), [#allocation16], 4294966224 }
 0x375   : > { %9543 = dma.done.wait (%p8161_p9), [#allocation19], 32  }
 0x376   : > { %9545 = vsyncadd (%p8161_p9), [#allocation19], 4294967264 }
 0x377   : > { %9547 = dma.done.wait (%p8161_p9), [#allocation22], 2064  }
 0x378   : > { %9549 = vsyncadd (%p8161_p9), [#allocation22], 4294965232 }
 0x379   : > { %9551 = dma.done.wait (%p8161_p9), [#allocation25], 2080  }
 0x37a   : > { %9553 = vsyncadd (%p8161_p9), [#allocation25], 4294965216 }
 0x37b   : > { %9555 = dma.done.wait (%p8161_p9), [#allocation28], 32  }
 0x37c   : > { %9557 = vsyncadd (%p8161_p9), [#allocation28], 4294967264 }
 0x37d   : > { %9559 = dma.done.wait (%p8161_p9), [#allocation31], 3088  }
 0x37e   : > { %9561 = vsyncadd (%p8161_p9), [#allocation31], 4294964208 }
 0x37f   : > { %9563 = dma.done.wait (%p8161_p9), [#allocation34], 1072  }
 0x380   : > { %9565 = vsyncadd (%p8161_p9), [#allocation34], 4294966224 }
 0x381   : > { %9567 = dma.done.wait (%p8161_p9), [#allocation37], 32  }
 0x382   : > { %9569 = vsyncadd (%p8161_p9), [#allocation37], 4294967264 }
 0x383   : > { %9571 = dma.done.wait (%p8161_p9), [#allocation40], 2064  }
 0x384   : > { %9573 = vsyncadd (%p8161_p9), [#allocation40], 4294965232 }
 0x385   : > { %9575 = dma.done.wait (%p8161_p9), [#allocation43], 2080  }
 0x386   : > { %9577 = vsyncadd (%p8161_p9), [#allocation43], 4294965216 }
 0x387   : > { %9579 = dma.done.wait (%p8161_p9), [#allocation46], 32  }
 0x388   : > { %9581 = vsyncadd (%p8161_p9), [#allocation46], 4294967264 }
 0x389   : > { %9583 = dma.done.wait (%p8161_p9), [#allocation49], 16400  }
 0x38a   : > { %9585 = vsyncadd (%p8161_p9), [#allocation49], 4294950896 }
 0x38b   : > { %9587 = dma.done.wait (%p8161_p9), [#allocation52], 256  }
 0x38c   : > { %9589 = vsyncadd (%p8161_p9), [#allocation52], 4294967040 }
 0x38d   : > { %1387 = sfence }
 0x38e   : > { %v8356_v0 = vld [vmem:[#allocation11] sm:$0xff]   ;;  %v9668_v1 = vmov 0.0   ;;  %v8357_v2 = vld [vmem:[#allocation11 + $0x8] sm:$0xff]   ;;  %vm9669_vm0 = vmmov 0   ;;  %v8358_v3 = vld [vmem:[#allocation11 + $0x10] sm:$0xff]   ;;  %s1479_s16 = sld [smem:[#allocation2 + %s9864_s15]]  ;;  %v1663_v46 = vlaneseq }
 0x38f   : > { %7696 = vmatprep.subr.bf16.mxu0 %v9668_v1  ;;  %7712 = vmatprep.mubr.msk.bf16.mxu0 %vm9669_vm0, %v9668_v1  ;;  %v8359_v4 = vld [vmem:[#allocation11 + $0x18] sm:$0xff]   ;;  %v8366_v5 = vld [vmem:[#allocation14 + $0x4] ss:$12 sps:$4 sm:$0xff]   ;;  %v8368_v6 = vld [vmem:[#allocation14] ss:$12 sps:$4 sm:$0xff]   ;;  %p1468_p2 = scmp.lt.s32.totalorder %s9864_s15, 1 }
 0x390   : > { %7697 = vmatpush3.bf16.msra.mxu0 %v8356_v0  ;;  %v8360_v7 = vld [vmem:[#allocation11 + $0x20] sm:$0xff]   ;;  %v1480_v8 = vld [vmem:[#allocation8] sm:$0x1]  ;;  %1847 = vmatprep.subr.bf16.mxu1 %v8366_v5  ;;  %v8361_v13 = vld [vmem:[#allocation11 + $0x28] sm:$0xff]   ;;  %s11146_s22 = sld [smem:[#allocation72_spill]]  ;;  %vm1618_vm1 = vcmask 261120  }
 0x391   : > { %7698 = vmatprep.subr.bf16.mxu0 %v9668_v1  ;;  %v8370_v10 = vld [vmem:[#allocation14 + $0x1c] ss:$12 sps:$4 sm:$0xff]   ;;  %1848 = vmatpush1.bf16.msra.mxu1 %v8368_v6  ;;  %v8372_v11 = vld [vmem:[#allocation14 + $0x18] ss:$12 sps:$4 sm:$0xff]   ;;  %v8374_v12 = vld [vmem:[#allocation14 + $0x34] ss:$12 sps:$4 sm:$0xff]  }
 0x392   : > { %1849 = vmatprep.subr.bf16.mxu1 %v8370_v10  ;;  %v1483_v15 = vld [vmem:[#allocation9] sm:$0x1]  ;;  %v8362_v17 = vld [vmem:[#allocation11 + $0x30] sm:$0xff]   ;;  %s11148_s15 = smov (!%p1468_p2, %s9864_s15), 1  ;;  %v8377_v31 = vld [vmem:[#allocation14 + $0x38] ss:$12 sps:$4 sm:$0xff]  }
 0x393   : > { %v8376_v16 = vld [vmem:[#allocation14 + $0x30] ss:$12 sps:$4 sm:$0xff]   ;;  %v8378_v18 = vld [vmem:[#allocation14 + $0x4c] ss:$12 sps:$4 sm:$0xff]   ;;  %v8380_v20 = vld [vmem:[#allocation14 + $0x48] ss:$12 sps:$4 sm:$0xff]  }
 0x394   : > { %7699 = vmatpush3.bf16.msra.mxu0 %v8357_v2  ;;  %v1481_v9 = vstv %s1479_s16  ;;  %v8363_v21 = vld [vmem:[#allocation11 + $0x38] sm:$0xff]   ;;  %s7522_s1 = sshll.u32 %s11148_s15, 4  ;;  %v8364_v23 = vld [vmem:[#allocation5] sm:$0xff]   ;;  %v8382_v33 = vld [vmem:[#allocation14 + $0x64] ss:$12 sps:$4 sm:$0xff]   ;;  %v9670_v45 = vmov 0  }
 0x395   : > { %7700 = vmatprep.subr.bf16.mxu0 %v9668_v1  ;;  %v1482_v14 = vmul.f32 %v1481_v9, %v1480_v8  ;;  %1850 = vmatpush1.bf16.msra.mxu1 %v8372_v11  ;;  %v8365_v25 = vld [vmem:[#allocation5 + $0x8] sm:$0xff]   ;;  %v8373_v30 = vld [vmem:[#allocation14 + $0x20] ss:$12 sps:$4 sm:$0xff]   ;;  %v8386_v36 = vld [vmem:[#allocation14 + $0x7c] ss:$12 sps:$4 sm:$0xff]   ;;  %v10352_v48 = vshrl.u32 %v1663_v46, 7 }
 0x396   : > { %1851 = vmatprep.subr.bf16.mxu1 %v8374_v12  ;;  %s1472_s3 = scalar_lea.vmem %s11146_s22, %s7522_s1  ;;  %v8369_v28 = vld [vmem:[#allocation14 + $0x8] ss:$12 sps:$4 sm:$0xff]   ;;  %v8381_v32 = vld [vmem:[#allocation14 + $0x50] ss:$12 sps:$4 sm:$0xff]   ;;  %v8384_v34 = vld [vmem:[#allocation14 + $0x60] ss:$12 sps:$4 sm:$0xff]   ;;  %1879 = vmatprep.mubr.bf16.mxu1 %v9670_v45 }
 0x397   : > { %v1484_v19 = vadd.f32 %v1483_v15, %v1482_v14  ;;  %v1592_v26 = vld [vmem:[%s1472_s3] sm:$0xff]  ;;  %v1593_v27 = vld [vmem:[%s1472_s3 + $0x8] sm:$0xff]  ;;  %v8388_v37 = vld [vmem:[#allocation14 + $0x78] ss:$12 sps:$4 sm:$0xff]   ;;  %v10355_v54 = vsub.s32 0, %v10352_v48  ;;  %v10372_v5 = vsub.s32 1, %v10352_v48 }
 0x398   : > { %7701 = vmatpush3.bf16.msra.mxu0 %v8358_v3  ;;  %v1594_v29 = vpack.c.bf16 %v1593_v27, %v1592_v26  ;;  %v8385_v35 = vld [vmem:[#allocation14 + $0x68] ss:$12 sps:$4 sm:$0xff]   ;;  %v8389_v38 = vld [vmem:[#allocation14 + $0x80] ss:$12 sps:$4 sm:$0xff]   ;;  %v8392_v40 = vld [vmem:[#allocation14 + $0x90] ss:$12 sps:$4 sm:$0xff]  }
 0x399   : > { %7702 = vmatprep.subr.bf16.mxu0 %v9668_v1  ;;  %1852 = vmatpush1.bf16.msra.mxu1 %v8376_v16  ;;  %v1485_v22 = vmax.f32 %v1484_v19, 0.0  ;;  %v8390_v39 = vld [vmem:[#allocation14 + $0x94] ss:$12 sps:$4 sm:$0xff]   ;;  %v8393_v41 = vld [vmem:[#allocation14 + $0x98] ss:$12 sps:$4 sm:$0xff]   ;;  %v10369_v3 = vsub.s32 2, %v10352_v48 }
 0x39a   : > { %1853 = vmatprep.subr.bf16.mxu1 %v8378_v18  ;;  %v8394_v42 = vld [vmem:[#allocation14 + $0xac] ss:$12 sps:$4 sm:$0xff]   ;;  %v8396_v43 = vld [vmem:[#allocation14 + $0xa8] ss:$12 sps:$4 sm:$0xff]   ;;  %v8397_v44 = vld [vmem:[#allocation14 + $0xb0] ss:$12 sps:$4 sm:$0xff]  }
 0x39b   : > { %v1486_v24 = vpack.c.bf16 %v1485_v22, %v1485_v22  ;;  %v1503_v50 = vld [vmem:[#allocation12] sm:$0x1]  ;;  %v7200_v55 = vld [vmem:[#allocation6] ss:$0 sm:$0xff]  ;;  %vm1934_vm2 = vcmask 130048   ;;  %s9671_s18 = smov 112  }
 0x39c   : > { %7703 = vmatpush3.bf16.msra.mxu0 %v8359_v4  ;;  %v1702_v4 = vld [vmem:[#allocation15] sm:$0x7]  ;;  %s9672_s4 = smov 80   ;;  %s9673_s11 = smov 64   ;;  %vm2975_vm3 = vcmask 392192   ;;  %vm2978_vm4 = vcmask 523264  }
 0x39d   : > { %7704 = vmatprep.subr.bf16.mxu0 %v9668_v1  ;;  %1854 = vmatpush1.bf16.msra.mxu1 %v8380_v20  ;;  %v1707_v6 = vrot.slane %v1702_v4, %v10355_v54  ;;  %v1711_v10 = vrot.slane %v1702_v4, %v10372_v5  ;;  %s9674_s2 = smov 48   ;;  %s9675_s10 = smov 32   ;;  %vm2981_vm5 = vcmask 654336   ;;  %vm2984_vm6 = vcmask 785408  }
 0x39e   : > { %1855 = vmatprep.subr.bf16.mxu1 %v8382_v33  ;;  %s9676_s13 = smov 16   ;;  %s9677_s8 = smov 96   ;;  %vm2987_vm7 = vcmask 916480  }
 0x39f   : > { %s7523_s16 = sshll.u32 %s11148_s15, 7 }
 0x3a0   : > { %7705 = vmatpush3.bf16.msra.mxu0 %v8360_v7  ;;  %v1715_v7 = vrot.slane %v1702_v4, %v10369_v3  ;;  %s11007_s22 = scalar_lea.vmem %s9856_s9, %s7523_s16 }
 0x3a1   : > { %7706 = vmatprep.subr.bf16.mxu0 %v9668_v1  ;;  %1856 = vmatpush1.bf16.msra.mxu1 %v8384_v34 }
 0x3a2   : > { %1857 = vmatprep.subr.bf16.mxu1 %v8386_v36 }
 0x3a4   : > { %7707 = vmatpush3.bf16.msra.mxu0 %v8361_v13 }
 0x3a5   : > { %7708 = vmatprep.subr.bf16.mxu0 %v9668_v1  ;;  %1858 = vmatpush1.bf16.msra.mxu1 %v8388_v37 }
 0x3a6   : > { %1859 = vmatprep.subr.bf16.mxu1 %v8390_v39 }
 0x3a8   : > { %7709 = vmatpush3.bf16.msra.mxu0 %v8362_v17 }
 0x3a9   : > { %7710 = vmatprep.subr.bf16.mxu0 %v9668_v1  ;;  %1860 = vmatpush1.bf16.msra.mxu1 %v8392_v40 }
 0x3aa   : > { %1861 = vmatprep.subr.bf16.mxu1 %v8394_v42 }
 0x3ac   : > { %7711 = vmatpush3.bf16.msra.mxu0 %v8363_v21 }
 0x3ad   : > { %7716 = vmatprep.subr.bf16.mxu0 %v9668_v1  ;;  %1862 = vmatpush1.bf16.msra.mxu1 %v8396_v43 }
 0x3ae   : > { %7744 = vmatprep.subr.bf16.mxu1 %v9668_v1 }
 0x3af   : > { %7713 = vmatmul.mubr.bf16.vlgmr.msra.gmra.mrb[0].mxu0 %v1486_v24 }
 0x3b0   : > { %7717 = vmatpush3.bf16.msra.mxu0 %v8364_v23  ;;  %7720 = vmatprep.mubr.msk.bf16.mxu0 %vm9669_vm0, %v9668_v1 }
 0x3b1   : > { %7718 = vmatprep.subr.bf16.mxu0 %v9668_v1 }
 0x3b4   : > { %7719 = vmatpush3.bf16.msra.mxu0 %v8365_v25 }
 0x3b5   : > { %7724 = vmatprep.subr.bf16.mxu0 %v9668_v1 }
 0x3b7   : > { %7721 = vmatmul.mubr.msk.bf16.vlgmr.msra.gmra.mrb[4].mxu0 %vm1618_vm1, %v1594_v29 }
 0x3b8   : > { %7725 = vmatpush3.bf16.msra.mxu0 %v8369_v28  ;;  %7740 = vmatprep.mubr.msk.bf16.mxu0 %vm9669_vm0, %v9668_v1 }
 0x3b9   : > { %7726 = vmatprep.subr.bf16.mxu0 %v9668_v1 }
 0x3bc   : > { %7727 = vmatpush3.bf16.msra.mxu0 %v8373_v30 }
 0x3bd   : > { %7728 = vmatprep.subr.bf16.mxu0 %v9668_v1 }
 0x3c0   : > { %7729 = vmatpush3.bf16.msra.mxu0 %v8377_v31 }
 0x3c1   : > { %7730 = vmatprep.subr.bf16.mxu0 %v9668_v1 }
 0x3c4   : > { %7731 = vmatpush3.bf16.msra.mxu0 %v8381_v32 }
 0x3c5   : > { %7732 = vmatprep.subr.bf16.mxu0 %v9668_v1 }
 0x3c8   : > { %7733 = vmatpush3.bf16.msra.mxu0 %v8385_v35 }
 0x3c9   : > { %7734 = vmatprep.subr.bf16.mxu0 %v9668_v1 }
 0x3cc   : > { %7735 = vmatpush3.bf16.msra.mxu0 %v8389_v38 }
 0x3cd   : > { %7736 = vmatprep.subr.bf16.mxu0 %v9668_v1 }
 0x3d0   : > { %7737 = vmatpush3.bf16.msra.mxu0 %v8393_v41 }
 0x3d1   : > { %7738 = vmatprep.subr.bf16.mxu0 %v9668_v1 }
 0x3d4   : > { %7739 = vmatpush3.bf16.msra.mxu0 %v8397_v44 }
 0x3d5   : > { %7762 = vmatprep.subr.bf16.mxu0 %v9668_v1 }
 0x482   : > { %v1586_v47 = vpop.f32.mrb[0].mxu0 }
 0x483   : > { %v7714_v49 = vpop.f32.mrb[1].mxu0  ;;  %v1587_v53 = vadd.f32 %v1586_v47, %v1503_v50 }
 0x484   : > { %v1589_v51 = vpop.f32.mrb[2].mxu0 }
 0x485   : > { %v7715_v52 = vpop.f32.mrb[3].mxu0  ;;  %v1666_v57 = vrot.slane %v1587_v53, %v10355_v54 }
 0x48a   : > { %v1656_v56 = vpop.f32.mrb[4].mxu0 }
 0x48b   : > { %v1657_v58 = vadd.f32 %v7200_v55, %v1656_v56  ;;  %v7722_v59 = vpop.f32.mrb[5].mxu0 }
 0x48c   : > { %v1659_v60 = vpop.f32.mrb[6].mxu0 }
 0x48d   : > { %v10358_v61 = vadd.f32 %v1666_v57, %v1657_v58  ;;  %v1660_v62 = vadd.f32 %v7200_v55, %v1659_v60  ;;  %v7723_v63 = vpop.f32.mrb[7].mxu0 }
 0x48f   : > { %v10360_v0 = vadd.f32 %v1666_v57, %v1660_v62 }
 0x491   : > { %v1669_v2 = vpack.c.bf16 %v10360_v0, %v10358_v61 }
 0x493   : > { %1880 = vmatmul.mubr.bf16.vlgmr.msra.gmra.mrb[0].mxu1 %v1669_v2  ;;  %7741 = vmatmul.mubr.bf16.vlgmr.msra.gmra.mrb[8].mxu0 %v1669_v2 }
 0x494   : > { %7746 = vmatprep.mubr.msk.bf16.mxu1 %vm9669_vm0, %v9668_v1  ;;  %7764 = vmatprep.mubr.msk.bf16.mxu0 %vm9669_vm0, %v9668_v1 }
 0x566   : > { %v1881_v8 = vpop.f32.mrb[0].mxu1  ;;  %v1924_v9 = vpop.f32.mrb[8].mxu0 }
 0x567   : > { %v1883_v11 = vpop.f32.mrb[1].mxu1  ;;  %v7742_v12 = vpop.f32.mrb[9].mxu0  ;;  %v1882_v15 = vadd.f32 %v1881_v8, %v1707_v6  ;;  %v1925_v16 = vadd.f32 %v1924_v9, %v1715_v7 }
 0x568   : > { %v1885_v13 = vpop.f32.mrb[2].mxu1  ;;  %v1927_v14 = vpop.f32.mrb[10].mxu0  ;;  %v1884_v21 = vadd.f32 %v1883_v11, %v1711_v10 }
 0x569   : > { %v1886_v17 = vadd.f32 %v1885_v13, %v1707_v6  ;;  %v1928_v18 = vadd.f32 %v1927_v14, %v1715_v7  ;;  %v1887_v19 = vpop.f32.mrb[3].mxu1  ;;  %v7743_v20 = vpop.f32.mrb[11].mxu0 }
 0x56a   : > { %v1888_v22 = vadd.f32 %v1887_v19, %v1711_v10 }
 0x56b   : > { %v1931_v23 = vpack.c.bf16 %v1886_v17, %v1882_v15  ;;  %v10377_v24 = vpack.c.bf16 %v1928_v18, %v1925_v16 }
 0x56c   : > { %v1932_v25 = vpack.c.bf16 %v1888_v22, %v1884_v21 }
 0x56e   : > { %v1939_v26 = vsel %vm1934_vm2, %v1932_v25, 0 }
 0x56f   : > { %7745 = vmatpush3.bf16.xpose.msra.mxu1 %v1939_v26 }
 0x570   : > { %7750 = vmatprep.subr.bf16.mxu1 %v9668_v1 }
 0x576   : > { %7747 = vmatmul.mubr.msk.bf16.vlgmr.msra.gmra.mrb[4].mxu1 %vm1934_vm2, %v1931_v23 }
 0x577   : > { %7751 = vmatpush3.bf16.msra.mxu1 %v10377_v24  ;;  %7752 = vmatprep.mubr.msk.bf16.mxu1 %vm9669_vm0, %v9668_v1 }
 0x578   : > { %7756 = vmatprep.subr.bf16.mxu1 %v9668_v1 }
 0x649   : > { %v1975_v27 = vpop.f32.mrb[4].mxu1 }
 0x64a   : > { %v1982_v28 = vmul.f32 0.25, %v1975_v27  ;;  %v7748_v29 = vpop.f32.mrb[5].mxu1 }
 0x64b   : > { %v1978_v30 = vpop.f32.mrb[6].mxu1 }
 0x64c   : > { %v1983_v31 = vmul.f32 0.25, %v1978_v30  ;;  %v7749_v32 = vpop.f32.mrb[7].mxu1  ;;  %v1984_v33 = vsel %vm1934_vm2, %v1982_v28, -inf }
 0x64d   : > { %1985 = vmax.xlane.f32.xlu0 %v1984_v33 }
 0x64e   : > { %v1987_v34 = vsel %vm1934_vm2, %v1983_v31, -inf }
 0x651   : > { %1988 = vmax.xlane.f32.xlu0 %v1987_v34 }
 0x667   : > { %2055 = vrot.lane.b32.xlu0 %v1932_v25, %s9671_s18 }
 0x66b   : > { %2302 = vrot.lane.b32.xlu0 %v1932_v25, %s9672_s4 }
 0x66f   : > { %2425 = vrot.lane.b32.xlu0 %v1932_v25, %s9673_s11 }
 0x673   : > { %2548 = vrot.lane.b32.xlu0 %v1932_v25, %s9674_s2 }
 0x677   : > { %2671 = vrot.lane.b32.xlu0 %v1932_v25, %s9675_s10 }
 0x67b   : > { %2794 = vrot.lane.b32.xlu0 %v1932_v25, %s9676_s13 }
 0x6da   : > { %v1986_v35 = vpop.xlane.xlu0 %1985 }
 0x6db   : > { %v1990_v36 = vsub.f32 %v1982_v28, %v1986_v35 }
 0x6dd   : > { %v1992_v37 = vmul.f32 1.442695, %v1990_v36 }
 0x6de   : > { %v1989_v38 = vpop.xlane.xlu0 %1988 }
 0x6df   : > { %8526 = vpow2.f32 %v1992_v37  ;;  %v1991_v39 = vsub.f32 %v1983_v31, %v1989_v38 }
 0x6e1   : > { %v1994_v40 = vmul.f32 1.442695, %v1991_v39 }
 0x6e2   : > { %v2056_v53 = vpop.permute.xlu0 %2055 }
 0x6e3   : > { %8528 = vpow2.f32 %v1994_v40  ;;  %v2061_v57 = vsel %vm1934_vm2, %v2056_v53, 0 }
 0x6e6   : > { %v2303_v60 = vpop.permute.xlu0 %2302 }
 0x6e7   : > { %v2308_v63 = vsel %vm1934_vm2, %v2303_v60, 0 }
 0x6e9   : > { %v8527_v41 = vpop.eup %8526 }
 0x6ea   : > { %v1996_v42 = vsel %vm1934_vm2, %v8527_v41, 0.0  ;;  %v2426_v2 = vpop.permute.xlu0 %2425 }
 0x6eb   : > { %1997 = vadd.xlane.f32.xlu1 %v1996_v42  ;;  %v2431_v6 = vsel %vm1934_vm2, %v2426_v2, 0 }
 0x6ed   : > { %v8529_v43 = vpop.eup %8528 }
 0x6ee   : > { %v1999_v44 = vsel %vm1934_vm2, %v8529_v43, 0.0  ;;  %v2549_v7 = vpop.permute.xlu0 %2548 }
 0x6ef   : > { %2000 = vadd.xlane.f32.xlu1 %v1999_v44  ;;  %v2554_v9 = vsel %vm1934_vm2, %v2549_v7, 0 }
 0x6f2   : > { %v2672_v10 = vpop.permute.xlu0 %2671 }
 0x6f3   : > { %v2677_v12 = vsel %vm1934_vm2, %v2672_v10, 0 }
 0x6f6   : > { %v2795_v13 = vpop.permute.xlu0 %2794 }
 0x6f7   : > { %v2800_v15 = vsel %vm1934_vm2, %v2795_v13, 0 }
 0x700   : > { %2052 = vrot.lane.b32.xlu1 %v1931_v23, %s9671_s18 }
 0x704   : > { %2179 = vrot.lane.b32.xlu1 %v1932_v25, %s9677_s8 }
 0x708   : > { %2177 = vrot.lane.b32.xlu1 %v1931_v23, %s9677_s8 }
 0x70c   : > { %2300 = vrot.lane.b32.xlu1 %v1931_v23, %s9672_s4 }
 0x710   : > { %2423 = vrot.lane.b32.xlu1 %v1931_v23, %s9673_s11 }
 0x714   : > { %2546 = vrot.lane.b32.xlu1 %v1931_v23, %s9674_s2 }
 0x718   : > { %2669 = vrot.lane.b32.xlu1 %v1931_v23, %s9675_s10 }
 0x71c   : > { %2792 = vrot.lane.b32.xlu1 %v1931_v23, %s9676_s13 }
 0x778   : > { %v1998_v46 = vpop.xlane.xlu1 %1997 }
 0x779   : > { %8530 = vrcp.f32 %v1998_v46 }
 0x77c   : > { %v2001_v47 = vpop.xlane.xlu1 %2000 }
 0x77d   : > { %8532 = vrcp.f32 %v2001_v47 }
 0x780   : > { %v2053_v56 = vpop.permute.xlu1 %2052 }
 0x783   : > { %v8531_v49 = vpop.eup %8530 }
 0x784   : > { %v2003_v51 = vmul.f32 %v8531_v49, %v8527_v41  ;;  %v2180_v58 = vpop.permute.xlu1 %2179 }
 0x785   : > { %v2185_v59 = vsel %vm1934_vm2, %v2180_v58, 0 }
 0x787   : > { %v8533_v50 = vpop.eup %8532 }
 0x788   : > { %v2005_v52 = vmul.f32 %v8533_v50, %v8529_v43  ;;  %v2178_v62 = vpop.permute.xlu1 %2177 }
 0x78a   : > { %v2006_v55 = vpack.c.bf16 %v2005_v52, %v2003_v51 }
 0x78c   : > { %7753 = vmatmul.mubr.msk.bf16.vlgmr.msra.gmra.mrb[8].mxu1 %vm1934_vm2, %v2006_v55  ;;  %v2301_v4 = vpop.permute.xlu1 %2300 }
 0x78d   : > { %7757 = vmatpush3.bf16.xpose.msra.mxu1 %v2061_v57  ;;  %7758 = vmatprep.mubr.msk.bf16.mxu1 %vm9669_vm0, %v9668_v1 }
 0x78e   : > { %7768 = vmatprep.subr.bf16.mxu1 %v9668_v1 }
 0x790   : > { %v2424_v8 = vpop.permute.xlu1 %2423 }
 0x794   : > { %7759 = vmatmul.mubr.msk.bf16.vlgmr.msra.gmra.mrb[12].mxu1 %vm1934_vm2, %v2053_v56  ;;  %v2547_v11 = vpop.permute.xlu1 %2546 }
 0x795   : > { %7769 = vmatpush3.bf16.xpose.msra.mxu1 %v2185_v59  ;;  %7770 = vmatprep.mubr.msk.bf16.mxu1 %vm9669_vm0, %v9668_v1 }
 0x796   : > { %7780 = vmatprep.subr.bf16.mxu1 %v9668_v1 }
 0x798   : > { %v2670_v14 = vpop.permute.xlu1 %2669 }
 0x79c   : > { %7771 = vmatmul.mubr.msk.bf16.vlgmr.msra.gmra.mrb[16].mxu1 %vm1934_vm2, %v2178_v62  ;;  %v2793_v16 = vpop.permute.xlu1 %2792 }
 0x79d   : > { %7781 = vmatpush3.bf16.xpose.msra.mxu1 %v2308_v63  ;;  %7782 = vmatprep.mubr.msk.bf16.mxu1 %vm9669_vm0, %v9668_v1 }
 0x79e   : > { %7792 = vmatprep.subr.bf16.mxu1 %v9668_v1 }
 0x7a4   : > { %7783 = vmatmul.mubr.msk.bf16.vlgmr.msra.gmra.mrb[20].mxu1 %vm1934_vm2, %v2301_v4 }
 0x7a5   : > { %7793 = vmatpush3.bf16.xpose.msra.mxu1 %v2431_v6  ;;  %7794 = vmatprep.mubr.msk.bf16.mxu1 %vm9669_vm0, %v9668_v1 }
 0x7a6   : > { %7804 = vmatprep.subr.bf16.mxu1 %v9668_v1 }
 0x7ac   : > { %7795 = vmatmul.mubr.msk.bf16.vlgmr.msra.gmra.mrb[24].mxu1 %vm1934_vm2, %v2424_v8 }
 0x7ad   : > { %7805 = vmatpush3.bf16.xpose.msra.mxu1 %v2554_v9  ;;  %7806 = vmatprep.mubr.msk.bf16.mxu1 %vm9669_vm0, %v9668_v1 }
 0x7ae   : > { %7816 = vmatprep.subr.bf16.mxu1 %v9668_v1 }
 0x7b4   : > { %7807 = vmatmul.mubr.msk.bf16.vlgmr.msra.gmra.mrb[28].mxu1 %vm1934_vm2, %v2547_v11 }
 0x7b5   : > { %7817 = vmatpush3.bf16.xpose.msra.mxu1 %v2677_v12  ;;  %7818 = vmatprep.mubr.msk.bf16.mxu1 %vm9669_vm0, %v9668_v1 }
 0x7b6   : > { %7828 = vmatprep.subr.bf16.mxu1 %v9668_v1 }
 0x7bc   : > { %7819 = vmatmul.mubr.msk.bf16.vlgmr.msra.gmra.mrb[32].mxu1 %vm1934_vm2, %v2670_v14 }
 0x7bd   : > { %7829 = vmatpush3.bf16.xpose.msra.mxu1 %v2800_v15  ;;  %7830 = vmatprep.mubr.msk.bf16.mxu1 %vm9669_vm0, %v9668_v1 }
 0x7be   : > { %7840 = vmatprep.subr.bf16.mxu1 %v9668_v1 }
 0x7c4   : > { %7831 = vmatmul.mubr.msk.bf16.vlgmr.msra.gmra.mrb[36].mxu1 %vm1934_vm2, %v2793_v16 }
 0x7c5   : > { %7856 = vmatprep.mubr.msk.bf16.mxu1 %vm9669_vm0, %v9668_v1 }
 0x85f   : > { %v10442_v17 = vpop.f32.mrb[8].mxu1 }
 0x860   : > { %v7754_v18 = vpop.f32.mrb[9].mxu1 }
 0x861   : > { %v10444_v19 = vpop.f32.mrb[10].mxu1 }
 0x862   : > { %v7755_v20 = vpop.f32.mrb[11].mxu1 }
 0x867   : > { %v2097_v21 = vpop.f32.mrb[12].mxu1 }
 0x868   : > { %v10446_v22 = vmul.f32 0.25, %v2097_v21  ;;  %v7760_v23 = vpop.f32.mrb[13].mxu1 }
 0x869   : > { %v2100_v25 = vpop.f32.mrb[14].mxu1 }
 0x86a   : > { %v10448_v26 = vmul.f32 0.25, %v2100_v25  ;;  %v7761_v27 = vpop.f32.mrb[15].mxu1  ;;  %v2106_v28 = vsel %vm1934_vm2, %v10446_v22, -inf }
 0x86b   : > { %2107 = vmax.xlane.f32.xlu0 %v2106_v28 }
 0x86c   : > { %v2109_v29 = vsel %vm1934_vm2, %v10448_v26, -inf }
 0x86d   : > { %2110 = vmax.xlane.f32.xlu1 %v2109_v29 }
 0x86f   : > { %v2221_v30 = vpop.f32.mrb[16].mxu1 }
 0x870   : > { %v10454_v31 = vmul.f32 0.25, %v2221_v30  ;;  %v7772_v32 = vpop.f32.mrb[17].mxu1 }
 0x871   : > { %v2224_v33 = vpop.f32.mrb[18].mxu1 }
 0x872   : > { %v10456_v34 = vmul.f32 0.25, %v2224_v33  ;;  %v7773_v35 = vpop.f32.mrb[19].mxu1  ;;  %v2230_v36 = vsel %vm1934_vm2, %v10454_v31, -inf }
 0x873   : > { %2231 = vmax.xlane.f32.xlu0 %v2230_v36 }
 0x874   : > { %v2233_v37 = vsel %vm1934_vm2, %v10456_v34, -inf }
 0x877   : > { %2234 = vmax.xlane.f32.xlu0 %v2233_v37  ;;  %v2344_v38 = vpop.f32.mrb[20].mxu1 }
 0x878   : > { %v10462_v39 = vmul.f32 0.25, %v2344_v38  ;;  %v7784_v40 = vpop.f32.mrb[21].mxu1 }
 0x879   : > { %v2347_v41 = vpop.f32.mrb[22].mxu1 }
 0x87a   : > { %v10464_v42 = vmul.f32 0.25, %v2347_v41  ;;  %v7785_v43 = vpop.f32.mrb[23].mxu1  ;;  %v2353_v44 = vsel %vm1934_vm2, %v10462_v39, -inf }
 0x87b   : > { %2354 = vmax.xlane.f32.xlu0 %v2353_v44 }
 0x87c   : > { %v2356_v46 = vsel %vm1934_vm2, %v10464_v42, -inf }
 0x87d   : > { %2357 = vmax.xlane.f32.xlu1 %v2356_v46 }
 0x87f   : > { %v2467_v47 = vpop.f32.mrb[24].mxu1 }
 0x880   : > { %v10470_v49 = vmul.f32 0.25, %v2467_v47  ;;  %v7796_v50 = vpop.f32.mrb[25].mxu1 }
 0x881   : > { %v2470_v51 = vpop.f32.mrb[26].mxu1 }
 0x882   : > { %v10472_v52 = vmul.f32 0.25, %v2470_v51  ;;  %v7797_v53 = vpop.f32.mrb[27].mxu1  ;;  %v2476_v55 = vsel %vm1934_vm2, %v10470_v49, -inf }
 0x883   : > { %2477 = vmax.xlane.f32.xlu0 %v2476_v55 }
 0x884   : > { %v2479_v56 = vsel %vm1934_vm2, %v10472_v52, -inf }
 0x885   : > { %2480 = vmax.xlane.f32.xlu1 %v2479_v56 }
 0x887   : > { %v2590_v57 = vpop.f32.mrb[28].mxu1 }
 0x888   : > { %v10478_v58 = vmul.f32 0.25, %v2590_v57  ;;  %v7808_v59 = vpop.f32.mrb[29].mxu1 }
 0x889   : > { %v2593_v60 = vpop.f32.mrb[30].mxu1 }
 0x88a   : > { %v10480_v62 = vmul.f32 0.25, %v2593_v60  ;;  %v7809_v63 = vpop.f32.mrb[31].mxu1  ;;  %v2599_v2 = vsel %vm1934_vm2, %v10478_v58, -inf }
 0x88b   : > { %2600 = vmax.xlane.f32.xlu0 %v2599_v2 }
 0x88c   : > { %v2602_v4 = vsel %vm1934_vm2, %v10480_v62, -inf }
 0x88d   : > { %2603 = vmax.xlane.f32.xlu1 %v2602_v4 }
 0x88f   : > { %v2713_v6 = vpop.f32.mrb[32].mxu1 }
 0x890   : > { %v10486_v7 = vmul.f32 0.25, %v2713_v6  ;;  %v7820_v8 = vpop.f32.mrb[33].mxu1 }
 0x891   : > { %v2716_v9 = vpop.f32.mrb[34].mxu1 }
 0x892   : > { %v10488_v10 = vmul.f32 0.25, %v2716_v9  ;;  %v7821_v11 = vpop.f32.mrb[35].mxu1  ;;  %v2722_v12 = vsel %vm1934_vm2, %v10486_v7, -inf }
 0x893   : > { %2723 = vmax.xlane.f32.xlu0 %v2722_v12 }
 0x894   : > { %v2725_v13 = vsel %vm1934_vm2, %v10488_v10, -inf }
 0x895   : > { %2726 = vmax.xlane.f32.xlu1 %v2725_v13 }
 0x897   : > { %v2836_v14 = vpop.f32.mrb[36].mxu1 }
 0x898   : > { %v7832_v15 = vpop.f32.mrb[37].mxu1  ;;  %v10502_v23 = vmul.f32 0.25, %v2836_v14 }
 0x899   : > { %v2839_v16 = vpop.f32.mrb[38].mxu1 }
 0x89a   : > { %v10494_v18 = vmul.f32 0.25, %v2839_v16  ;;  %v7833_v20 = vpop.f32.mrb[39].mxu1  ;;  %v2845_v25 = vsel %vm1934_vm2, %v10502_v23, -inf }
 0x89c   : > { %v2848_v21 = vsel %vm1934_vm2, %v10494_v18, -inf }
 0x89d   : > { %2849 = vmax.xlane.f32.xlu1 %v2848_v21 }
 0x8a9   : > { %2130 = vrot.lane.b32.xlu0 %v10377_v24, %s9671_s18 }
 0x8ae   : > { %2253 = vrot.lane.b32.xlu1 %v10377_v24, %s9677_s8 }
 0x8c8   : > { %2846 = vmax.xlane.f32.xlu0 %v2845_v25 }
 0x8f8   : > { %v2108_v27 = vpop.xlane.xlu0 %2107 }
 0x8f9   : > { %v2112_v28 = vsub.f32 %v10446_v22, %v2108_v27 }
 0x8fa   : > { %v2111_v29 = vpop.xlane.xlu1 %2110 }
 0x8fb   : > { %v2114_v30 = vmul.f32 1.442695, %v2112_v28  ;;  %v2113_v32 = vsub.f32 %v10448_v26, %v2111_v29 }
 0x8fd   : > { %8534 = vpow2.f32 %v2114_v30  ;;  %v2116_v33 = vmul.f32 1.442695, %v2113_v32 }
 0x8ff   : > { %8536 = vpow2.f32 %v2116_v33 }
 0x900   : > { %v2232_v35 = vpop.xlane.xlu0 %2231 }
 0x901   : > { %v2236_v36 = vsub.f32 %v10454_v31, %v2232_v35 }
 0x903   : > { %v2238_v37 = vmul.f32 1.442695, %v2236_v36 }
 0x904   : > { %v2235_v38 = vpop.xlane.xlu0 %2234 }
 0x905   : > { %8538 = vpow2.f32 %v2238_v37  ;;  %v2237_v40 = vsub.f32 %v10456_v34, %v2235_v38 }
 0x907   : > { %v10510_v41 = vpop.eup %8534  ;;  %v2240_v43 = vmul.f32 1.442695, %v2237_v40 }
 0x908   : > { %v2355_v44 = vpop.xlane.xlu0 %2354  ;;  %v2118_v22 = vsel %vm1934_vm2, %v10510_v41, 0.0 }
 0x909   : > { %v10514_v46 = vpop.eup %8536  ;;  %8540 = vpow2.f32 %v2240_v43  ;;  %v2359_v26 = vsub.f32 %v10462_v39, %v2355_v44  ;;  %2119 = vadd.xlane.f32.xlu0 %v2118_v22 }
 0x90a   : > { %v2358_v47 = vpop.xlane.xlu1 %2357  ;;  %v2121_v31 = vsel %vm1934_vm2, %v10514_v46, 0.0 }
 0x90b   : > { %v2361_v50 = vmul.f32 1.442695, %v2359_v26  ;;  %v2360_v34 = vsub.f32 %v10464_v42, %v2358_v47  ;;  %2122 = vadd.xlane.f32.xlu1 %v2121_v31 }
 0x90d   : > { %8542 = vpow2.f32 %v2361_v50  ;;  %v2363_v51 = vmul.f32 1.442695, %v2360_v34 }
 0x90f   : > { %v10520_v53 = vpop.eup %8538  ;;  %8544 = vpow2.f32 %v2363_v51 }
 0x910   : > { %v2242_v55 = vsel %vm1934_vm2, %v10520_v53, 0.0  ;;  %v2478_v59 = vpop.xlane.xlu0 %2477 }
 0x911   : > { %2243 = vadd.xlane.f32.xlu0 %v2242_v55  ;;  %v2482_v32 = vsub.f32 %v10470_v49, %v2478_v59 }
 0x912   : > { %v2481_v56 = vpop.xlane.xlu1 %2480 }
 0x913   : > { %v10524_v39 = vpop.eup %8540  ;;  %v2483_v57 = vsub.f32 %v10472_v52, %v2481_v56  ;;  %v2484_v33 = vmul.f32 1.442695, %v2482_v32 }
 0x914   : > { %v2245_v60 = vsel %vm1934_vm2, %v10524_v39, 0.0 }
 0x915   : > { %v2486_v42 = vmul.f32 1.442695, %v2483_v57  ;;  %2246 = vadd.xlane.f32.xlu1 %v2245_v60 }
 0x917   : > { %v10529_v63 = vpop.eup %8542  ;;  %8546 = vpow2.f32 %v2486_v42 }
 0x918   : > { %v2601_v2 = vpop.xlane.xlu0 %2600  ;;  %v2365_v4 = vsel %vm1934_vm2, %v10529_v63, 0.0 }
 0x919   : > { %v10533_v6 = vpop.eup %8544  ;;  %v2605_v8 = vsub.f32 %v10478_v58, %v2601_v2  ;;  %2366 = vadd.xlane.f32.xlu0 %v2365_v4 }
 0x91a   : > { %v2604_v9 = vpop.xlane.xlu1 %2603  ;;  %v2368_v52 = vsel %vm1934_vm2, %v10533_v6, 0.0 }
 0x91b   : > { %v2607_v11 = vmul.f32 1.442695, %v2605_v8  ;;  %v2606_v12 = vsub.f32 %v10480_v62, %v2604_v9  ;;  %2369 = vadd.xlane.f32.xlu1 %v2368_v52 }
 0x91d   : > { %8548 = vpow2.f32 %v2607_v11  ;;  %v2609_v13 = vmul.f32 1.442695, %v2606_v12 }
 0x91f   : > { %8550 = vpow2.f32 %v2609_v13 }
 0x920   : > { %v2724_v14 = vpop.xlane.xlu0 %2723 }
 0x921   : > { %v10539_v15 = vpop.eup %8546  ;;  %v2728_v35 = vsub.f32 %v10486_v7, %v2724_v14 }
 0x922   : > { %v2727_v16 = vpop.xlane.xlu1 %2726  ;;  %v2491_v20 = vsel %vm1934_vm2, %v10539_v15, 0.0 }
 0x923   : > { %v2729_v58 = vsub.f32 %v10488_v10, %v2727_v16  ;;  %2492 = vadd.xlane.f32.xlu1 %v2491_v20  ;;  %v2730_v36 = vmul.f32 1.442695, %v2728_v35 }
 0x924   : > { %v2131_v21 = vpop.permute.xlu0 %2130 }
 0x925   : > { %v2732_v25 = vmul.f32 1.442695, %v2729_v58  ;;  %7763 = vmatpush3.bf16.msra.mxu0 %v2131_v21 }
 0x926   : > { %7774 = vmatprep.subr.bf16.mxu0 %v9668_v1 }
 0x927   : > { %v10545_v62 = vpop.eup %8548  ;;  %8552 = vpow2.f32 %v2732_v25 }
 0x928   : > { %v2611_v27 = vsel %vm1934_vm2, %v10545_v62, 0.0  ;;  %8554 = vpow2.f32 %v2484_v33 }
 0x929   : > { %v10549_v28 = vpop.eup %8550  ;;  %2612 = vadd.xlane.f32.xlu1 %v2611_v27  ;;  %8556 = vpow2.f32 %v2730_v36 }
 0x92a   : > { %v2614_v29 = vsel %vm1934_vm2, %v10549_v28, 0.0  ;;  %v2850_v43 = vpop.xlane.xlu1 %2849 }
 0x92b   : > { %v2852_v49 = vsub.f32 %v10494_v18, %v2850_v43 }
 0x92d   : > { %2615 = vadd.xlane.f32.xlu1 %v2614_v29  ;;  %v2855_v26 = vmul.f32 1.442695, %v2852_v49 }
 0x92f   : > { %2376 = vrot.lane.b32.xlu0 %v10377_v24, %s9672_s4 }
 0x931   : > { %v10555_v10 = vpop.eup %8552 }
 0x932   : > { %v2737_v30 = vsel %vm1934_vm2, %v10555_v10, 0.0  ;;  %v10561_v37 = vpop.eup %8554 }
 0x933   : > { %2738 = vadd.xlane.f32.xlu1 %v2737_v30  ;;  %v2488_v38 = vsel %vm1934_vm2, %v10561_v37, 0.0  ;;  %v10565_v40 = vpop.eup %8556 }
 0x934   : > { %v2734_v44 = vsel %vm1934_vm2, %v10565_v40, 0.0 }
 0x94e   : > { %2489 = vadd.xlane.f32.xlu0 %v2488_v38 }
 0x952   : > { %2735 = vadd.xlane.f32.xlu0 %v2734_v44 }
 0x955   : > { %v2847_v22 = vpop.xlane.xlu0 %2846 }
 0x956   : > { %v2851_v7 = vsub.f32 %v10502_v23, %v2847_v22  ;;  %v2254_v23 = vpop.permute.xlu1 %2253 }
 0x958   : > { %v2853_v47 = vmul.f32 1.442695, %v2851_v7 }
 0x95a   : > { %8558 = vpow2.f32 %v2853_v47 }
 0x95b   : > { %8560 = vpow2.f32 %v2855_v26 }
 0x964   : > { %v10571_v31 = vpop.eup %8558 }
 0x965   : > { %v2857_v50 = vsel %vm1934_vm2, %v10571_v31, 0.0  ;;  %v10575_v34 = vpop.eup %8560 }
 0x966   : > { %2858 = vadd.xlane.f32.xlu1 %v2857_v50  ;;  %v2860_v18 = vsel %vm1934_vm2, %v10575_v34, 0.0 }
 0x968   : > { %2622 = vrot.lane.b32.xlu0 %v10377_v24, %s9674_s2 }
 0x96a   : > { %2861 = vadd.xlane.f32.xlu1 %v2860_v18 }
 0x96c   : > { %2745 = vrot.lane.b32.xlu0 %v10377_v24, %s9675_s10 }
 0x970   : > { %2868 = vrot.lane.b32.xlu0 %v10377_v24, %s9676_s13 }
 0x97b   : > { %2499 = vrot.lane.b32.xlu1 %v10377_v24, %s9673_s11 }
 0x996   : > { %v2120_v51 = vpop.xlane.xlu0 %2119 }
 0x997   : > { %8562 = vrcp.f32 %v2120_v51 }
 0x998   : > { %v2123_v55 = vpop.xlane.xlu1 %2122 }
 0x999   : > { %8564 = vrcp.f32 %v2123_v55 }
 0x99e   : > { %v2244_v56 = vpop.xlane.xlu0 %2243 }
 0x99f   : > { %8566 = vrcp.f32 %v2244_v56 }
 0x9a1   : > { %v8563_v57 = vpop.eup %8562 }
 0x9a2   : > { %v2247_v59 = vpop.xlane.xlu1 %2246  ;;  %v2125_v42 = vmul.f32 %v8563_v57, %v10510_v41 }
 0x9a3   : > { %v8565_v60 = vpop.eup %8564  ;;  %8568 = vrcp.f32 %v2247_v59 }
 0x9a4   : > { %v2127_v2 = vmul.f32 %v8565_v60, %v10514_v46 }
 0x9a6   : > { %v2367_v4 = vpop.xlane.xlu0 %2366  ;;  %v2128_v8 = vpack.c.bf16 %v2127_v2, %v2125_v42 }
 0x9a7   : > { %8570 = vrcp.f32 %v2367_v4 }
 0x9a8   : > { %7765 = vmatmul.mubr.msk.bf16.vlgmr.msra.gmra.mrb[12].mxu0 %vm1934_vm2, %v2128_v8  ;;  %v2370_v24 = vpop.xlane.xlu1 %2369 }
 0x9a9   : > { %7775 = vmatpush3.bf16.msra.mxu0 %v2254_v23  ;;  %8572 = vrcp.f32 %v2370_v24  ;;  %7776 = vmatprep.mubr.msk.bf16.mxu0 %vm9669_vm0, %v9668_v1  ;;  %v8567_v9 = vpop.eup %8566  ;;  %v8398_v24 = vld [vmem:[#allocation17] sm:$0xff]  }
 0x9aa   : > { %7786 = vmatprep.subr.bf16.mxu0 %v9668_v1  ;;  %v2249_v11 = vmul.f32 %v8567_v9, %v10520_v53  ;;  %v2377_v13 = vpop.permute.xlu0 %2376  ;;  %7841 = vmatpush3.bf16.msra.mxu1 %v8398_v24 }
 0x9ab   : > { %7842 = vmatprep.subr.bf16.mxu1 %v9668_v1 }
 0x9ad   : > { %v8569_v52 = vpop.eup %8568 }
 0x9ae   : > { %v2251_v41 = vmul.f32 %v8569_v52, %v10524_v39 }
 0x9b0   : > { %v2252_v46 = vpack.c.bf16 %v2251_v41, %v2249_v11  ;;  %v2493_v53 = vpop.xlane.xlu1 %2492 }
 0x9b1   : > { %v8571_v12 = vpop.eup %8570 }
 0x9b2   : > { %7777 = vmatmul.mubr.msk.bf16.vlgmr.msra.gmra.mrb[16].mxu0 %vm1934_vm2, %v2252_v46  ;;  %v2372_v20 = vmul.f32 %v8571_v12, %v10529_v63  ;;  %v8399_v12 = vld [vmem:[#allocation17 + $0x8] sm:$0xff]  }
 0x9b3   : > { %v8573_v14 = vpop.eup %8572  ;;  %7787 = vmatpush3.bf16.msra.mxu0 %v2377_v13  ;;  %7788 = vmatprep.mubr.msk.bf16.mxu0 %vm9669_vm0, %v9668_v1  ;;  %v8400_v13 = vld [vmem:[#allocation17 + $0x10] sm:$0xff]  }
 0x9b4   : > { %v2374_v16 = vmul.f32 %v8573_v14, %v10533_v6  ;;  %7798 = vmatprep.subr.bf16.mxu0 %v9668_v1  ;;  %7843 = vmatpush3.bf16.msra.mxu1 %v8399_v12 }
 0x9b5   : > { %7844 = vmatprep.subr.bf16.mxu1 %v9668_v1 }
 0x9b6   : > { %v2375_v58 = vpack.c.bf16 %v2374_v16, %v2372_v20  ;;  %v2613_v39 = vpop.xlane.xlu1 %2612  ;;  %v8401_v20 = vld [vmem:[#allocation17 + $0x18] sm:$0xff]  }
 0x9b8   : > { %7845 = vmatpush3.bf16.msra.mxu1 %v8400_v13 }
 0x9b9   : > { %7846 = vmatprep.subr.bf16.mxu1 %v9668_v1 }
 0x9ba   : > { %7789 = vmatmul.mubr.msk.bf16.vlgmr.msra.gmra.mrb[20].mxu0 %vm1934_vm2, %v2375_v58  ;;  %v2616_v25 = vpop.xlane.xlu1 %2615 }
 0x9bb   : > { %7800 = vmatprep.mubr.msk.bf16.mxu0 %vm9669_vm0, %v9668_v1 }
 0x9bc   : > { %7847 = vmatpush3.bf16.msra.mxu1 %v8401_v20 }
 0x9bd   : > { %7848 = vmatprep.subr.bf16.mxu1 %v9668_v1 }
 0x9c0   : > { %v2739_v27 = vpop.xlane.xlu1 %2738 }
 0x9db   : > { %v2490_v21 = vpop.xlane.xlu0 %2489 }
 0x9dc   : > { %8574 = vrcp.f32 %v2490_v21  ;;  %v8402_v21 = vld [vmem:[#allocation17 + $0x20] sm:$0xff]  }
 0x9dd   : > { %8576 = vrcp.f32 %v2493_v53  ;;  %7849 = vmatpush3.bf16.msra.mxu1 %v8402_v21 }
 0x9de   : > { %8578 = vrcp.f32 %v2616_v25  ;;  %7850 = vmatprep.subr.bf16.mxu1 %v9668_v1 }
 0x9df   : > { %8580 = vrcp.f32 %v2613_v39  ;;  %v2736_v33 = vpop.xlane.xlu0 %2735 }
 0x9e0   : > { %8582 = vrcp.f32 %v2736_v33 }
 0x9e1   : > { %8584 = vrcp.f32 %v2739_v27 }
 0x9e3   : > { %v2623_v44 = vpop.permute.xlu0 %2622 }
 0x9e6   : > { %v8575_v6 = vpop.eup %8574 }
 0x9e7   : > { %v8577_v32 = vpop.eup %8576  ;;  %v2495_v63 = vmul.f32 %v8575_v6, %v10561_v37  ;;  %v2746_v26 = vpop.permute.xlu0 %2745 }
 0x9e8   : > { %v2497_v35 = vmul.f32 %v8577_v32, %v10539_v15  ;;  %v8579_v43 = vpop.eup %8578 }
 0x9e9   : > { %v8581_v49 = vpop.eup %8580  ;;  %v2620_v37 = vmul.f32 %v8579_v43, %v10549_v28 }
 0x9ea   : > { %v2498_v38 = vpack.c.bf16 %v2497_v35, %v2495_v63  ;;  %v2618_v15 = vmul.f32 %v8581_v49, %v10545_v62  ;;  %v8583_v7 = vpop.eup %8582  ;;  %v8404_v63 = vld [vmem:[#allocation17 + $0x30] sm:$0xff]  }
 0x9eb   : > { %v8585_v47 = vpop.eup %8584  ;;  %v2741_v50 = vmul.f32 %v8583_v7, %v10565_v40  ;;  %v2869_v23 = vpop.permute.xlu0 %2868 }
 0x9ec   : > { %v2621_v22 = vpack.c.bf16 %v2620_v37, %v2618_v15  ;;  %v2743_v28 = vmul.f32 %v8585_v47, %v10555_v10 }
 0x9ee   : > { %v2744_v18 = vpack.c.bf16 %v2743_v28, %v2741_v50 }
 0x9f3   : > { %v2859_v29 = vpop.xlane.xlu1 %2858 }
 0x9f7   : > { %v2862_v30 = vpop.xlane.xlu1 %2861 }
 0x9f8   : > { %8586 = vrcp.f32 %v2862_v30 }
 0x9f9   : > { %8588 = vrcp.f32 %v2859_v29  ;;  %v8403_v29 = vld [vmem:[#allocation17 + $0x28] sm:$0xff]  }
 0x9fa   : > { %7851 = vmatpush3.bf16.msra.mxu1 %v8403_v29 }
 0x9fb   : > { %v2500_v36 = vpop.permute.xlu1 %2499  ;;  %7852 = vmatprep.subr.bf16.mxu1 %v9668_v1 }
 0x9fc   : > { %7799 = vmatpush3.bf16.msra.mxu0 %v2500_v36  ;;  %v8405_v36 = vld [vmem:[#allocation17 + $0x38] sm:$0xff]  }
 0x9fd   : > { %7810 = vmatprep.subr.bf16.mxu0 %v9668_v1 }
 0x9fe   : > { %7853 = vmatpush3.bf16.msra.mxu1 %v8404_v63 }
 0x9ff   : > { %7801 = vmatmul.mubr.msk.bf16.vlgmr.msra.gmra.mrb[24].mxu0 %vm1934_vm2, %v2498_v38  ;;  %7854 = vmatprep.subr.bf16.mxu1 %v9668_v1 }
 0xa00   : > { %7811 = vmatpush3.bf16.msra.mxu0 %v2623_v44  ;;  %7812 = vmatprep.mubr.msk.bf16.mxu0 %vm9669_vm0, %v9668_v1 }
 0xa01   : > { %7822 = vmatprep.subr.bf16.mxu0 %v9668_v1 }
 0xa02   : > { %v8587_v62 = vpop.eup %8586  ;;  %7855 = vmatpush3.bf16.msra.mxu1 %v8405_v36  ;;  %v8411_v36 = vld [vmem:[#allocation23 + $0x14] ss:$8 sps:$4 sm:$0xff]  }
 0xa03   : > { %v8589_v51 = vpop.eup %8588  ;;  %v2866_v55 = vmul.f32 %v8587_v62, %v10575_v34 }
 0xa04   : > { %v2864_v56 = vmul.f32 %v8589_v51, %v10571_v31 }
 0xa06   : > { %v2867_v57 = vpack.c.bf16 %v2866_v55, %v2864_v56 }
 0xa07   : > { %7813 = vmatmul.mubr.msk.bf16.vlgmr.msra.gmra.mrb[28].mxu0 %vm1934_vm2, %v2621_v22 }
 0xa08   : > { %7823 = vmatpush3.bf16.msra.mxu0 %v2746_v26  ;;  %7824 = vmatprep.mubr.msk.bf16.mxu0 %vm9669_vm0, %v9668_v1 }
 0xa09   : > { %7834 = vmatprep.subr.bf16.mxu0 %v9668_v1 }
 0xa0f   : > { %7825 = vmatmul.mubr.msk.bf16.vlgmr.msra.gmra.mrb[32].mxu0 %vm1934_vm2, %v2744_v18 }
 0xa10   : > { %7835 = vmatpush3.bf16.msra.mxu0 %v2869_v23  ;;  %7836 = vmatprep.mubr.msk.bf16.mxu0 %vm9669_vm0, %v9668_v1 }
 0xa17   : > { %7837 = vmatmul.mubr.msk.bf16.vlgmr.msra.gmra.mrb[36].mxu0 %vm1934_vm2, %v2867_v57 }
 0xa18   : > { %3287 = vmatprep.mubr.bf16.mxu0 %v9670_v45 }
 0xa7b   : > { %v2170_v10 = vpop.f32.mrb[12].mxu0 }
 0xa7c   : > { %v7766_v40 = vpop.f32.mrb[13].mxu0 }
 0xa7d   : > { %v2173_v59 = vpop.f32.mrb[14].mxu0 }
 0xa7e   : > { %v8286_v60 = vpack.i.bf16 %v2173_v59, %v2170_v10  ;;  %v7767_v42 = vpop.f32.mrb[15].mxu0 }
 0xa80   : > { %8287 = vrot.lane.b32.xlu1 %v8286_v60, %s9676_s13 }
 0xa85   : > { %v2293_v2 = vpop.f32.mrb[16].mxu0 }
 0xa86   : > { %v7778_v4 = vpop.f32.mrb[17].mxu0 }
 0xa87   : > { %v2296_v8 = vpop.f32.mrb[18].mxu0 }
 0xa88   : > { %v8291_v9 = vpack.i.bf16 %v2296_v8, %v2293_v2  ;;  %v7779_v34 = vpop.f32.mrb[19].mxu0 }
 0xa8a   : > { %8292 = vrot.lane.b32.xlu0 %v8291_v9, %s9675_s10 }
 0xa8d   : > { %v2416_v31 = vpop.f32.mrb[20].mxu0 }
 0xa8e   : > { %v7790_v52 = vpop.f32.mrb[21].mxu0 }
 0xa8f   : > { %v2419_v11 = vpop.f32.mrb[22].mxu0 }
 0xa90   : > { %v8296_v41 = vpack.i.bf16 %v2419_v11, %v2416_v31  ;;  %v7791_v46 = vpop.f32.mrb[23].mxu0 }
 0xa92   : > { %8297 = vrot.lane.b32.xlu1 %v8296_v41, %s9674_s2 }
 0xad2   : > { %v2539_v14 = vpop.f32.mrb[24].mxu0 }
 0xad3   : > { %v7802_v16 = vpop.f32.mrb[25].mxu0 }
 0xad4   : > { %v2542_v58 = vpop.f32.mrb[26].mxu0 }
 0xad5   : > { %v8301_v53 = vpack.i.bf16 %v2542_v58, %v2539_v14  ;;  %v7803_v39 = vpop.f32.mrb[27].mxu0 }
 0xad6   : > { %v7244_v39 = vld [vmem:[#allocation18] ss:$0 sm:$0xff] }
 0xad7   : > { %8302 = vrot.lane.b32.xlu0 %v8301_v53, %s9673_s11 }
 0xada   : > { %v2662_v25 = vpop.f32.mrb[28].mxu0 }
 0xadb   : > { %v7814_v27 = vpop.f32.mrb[29].mxu0 }
 0xadc   : > { %v2665_v6 = vpop.f32.mrb[30].mxu0 }
 0xadd   : > { %v8306_v30 = vpack.i.bf16 %v2665_v6, %v2662_v25  ;;  %v7815_v32 = vpop.f32.mrb[31].mxu0 }
 0xadf   : > { %8307 = vrot.lane.b32.xlu1 %v8306_v30, %s9672_s4 }
 0xae2   : > { %v2785_v33 = vpop.f32.mrb[32].mxu0 }
 0xae3   : > { %v7826_v35 = vpop.f32.mrb[33].mxu0 }
 0xae4   : > { %v2788_v38 = vpop.f32.mrb[34].mxu0  ;;  %v8408_v35 = vld [vmem:[#allocation23 + $0x4] ss:$8 sps:$4 sm:$0xff]  }
 0xae5   : > { %v8311_v43 = vpack.i.bf16 %v2788_v38, %v2785_v33  ;;  %v7827_v44 = vpop.f32.mrb[35].mxu0  ;;  %v8406_v33 = vld [vmem:[#allocation23] ss:$8 sps:$4 sm:$0xff]   ;;  %3255 = vmatprep.subr.bf16.mxu0 %v8408_v35  ;;  %v8409_v38 = vld [vmem:[#allocation23 + $0x10] ss:$8 sps:$4 sm:$0xff]  }
 0xae6   : > { %3256 = vmatpush1.bf16.msra.mxu0 %v8406_v33 }
 0xae7   : > { %8312 = vrot.lane.b32.xlu0 %v8311_v43, %s9677_s8  ;;  %3257 = vmatprep.subr.bf16.mxu0 %v8411_v36 }
 0xaea   : > { %v2908_v49 = vpop.f32.mrb[36].mxu0  ;;  %3258 = vmatpush1.bf16.msra.mxu0 %v8409_v38 }
 0xaeb   : > { %v7838_v37 = vpop.f32.mrb[37].mxu0 }
 0xaec   : > { %v2911_v15 = vpop.f32.mrb[38].mxu0 }
 0xaed   : > { %v8316_v22 = vpack.i.bf16 %v2911_v15, %v2908_v49  ;;  %v7839_v7 = vpop.f32.mrb[39].mxu0 }
 0xaee   : > { %v8414_v7 = vld [vmem:[#allocation23 + $0x24] ss:$8 sps:$4 sm:$0xff]  }
 0xaef   : > { %8317 = vrot.lane.b32.xlu1 %v8316_v22, %s9671_s18  ;;  %3259 = vmatprep.subr.bf16.mxu0 %v8414_v7 }
 0xaf2   : > { %v8288_v26 = vpop.permute.xlu1 %8287 }
 0xaf3   : > { %v8290_v18 = vunpack.i.h.bf16 %v8288_v26  ;;  %v8289_v62 = vunpack.i.l.bf16 %v8288_v26  ;;  %v8412_v26 = vld [vmem:[#allocation23 + $0x20] ss:$8 sps:$4 sm:$0xff]  }
 0xaf4   : > { %3260 = vmatpush1.bf16.msra.mxu0 %v8412_v26 }
 0xaf5   : > { %v2972_v60 = vsel %vm1934_vm2, %v10444_v19, %v8290_v18  ;;  %v2971_v42 = vsel %vm1934_vm2, %v10442_v17, %v8289_v62  ;;  %v8418_v18 = vld [vmem:[#allocation23 + $0x40] ss:$8 sps:$4 sm:$0xff]   ;;  %v8423_v62 = vld [vmem:[#allocation23 + $0x54] ss:$8 sps:$4 sm:$0xff]  }
 0xafc   : > { %v8293_v47 = vpop.permute.xlu0 %8292 }
 0xafd   : > { %v8295_v23 = vunpack.i.h.bf16 %v8293_v47  ;;  %v8294_v51 = vunpack.i.l.bf16 %v8293_v47  ;;  %v8417_v47 = vld [vmem:[#allocation23 + $0x34] ss:$8 sps:$4 sm:$0xff]  }
 0xafe   : > { %3261 = vmatprep.subr.bf16.mxu0 %v8417_v47 }
 0xaff   : > { %v2974_v8 = vsel %vm1618_vm1, %v2972_v60, %v8295_v23  ;;  %v2973_v24 = vsel %vm1618_vm1, %v2971_v42, %v8294_v51  ;;  %v8421_v23 = vld [vmem:[#allocation23 + $0x50] ss:$8 sps:$4 sm:$0xff]   ;;  %v8426_v51 = vld [vmem:[#allocation23 + $0x64] ss:$8 sps:$4 sm:$0xff]  }
 0xb00   : > { %v8433_v60 = vld [vmem:[#allocation26 + $0x8] sm:$0xff]   ;;  %v8434_v42 = vld [vmem:[#allocation26 + $0x50] sm:$0xff]  }
 0xb04   : > { %v8298_v50 = vpop.permute.xlu1 %8297 }
 0xb05   : > { %v8300_v56 = vunpack.i.h.bf16 %v8298_v50  ;;  %v8299_v57 = vunpack.i.l.bf16 %v8298_v50  ;;  %v8415_v50 = vld [vmem:[#allocation23 + $0x30] ss:$8 sps:$4 sm:$0xff]  }
 0xb06   : > { %3262 = vmatpush1.bf16.msra.mxu0 %v8415_v50 }
 0xb07   : > { %v2977_v31 = vsel %vm2975_vm3, %v2974_v8, %v8300_v56  ;;  %v2976_v52 = vsel %vm2975_vm3, %v2973_v24, %v8299_v57  ;;  %v8429_v56 = vld [vmem:[#allocation23 + $0x74] ss:$8 sps:$4 sm:$0xff]   ;;  %v8427_v57 = vld [vmem:[#allocation23 + $0x70] ss:$8 sps:$4 sm:$0xff]   ;;  %v8438_v24 = vld [vmem:[#allocation26 + $0x60] sm:$0xff]  }
 0xb08   : > { %v8437_v8 = vld [vmem:[#allocation26 + $0x18] sm:$0xff]  }
 0xb49   : > { %v8303_v28 = vpop.permute.xlu0 %8302 }
 0xb4a   : > { %v8305_v40 = vunpack.i.h.bf16 %v8303_v28  ;;  %v8304_v59 = vunpack.i.l.bf16 %v8303_v28  ;;  %v8420_v28 = vld [vmem:[#allocation23 + $0x44] ss:$8 sps:$4 sm:$0xff]  }
 0xb4b   : > { %3263 = vmatprep.subr.bf16.mxu0 %v8420_v28 }
 0xb4c   : > { %v2980_v11 = vsel %vm2978_vm4, %v2977_v31, %v8305_v40  ;;  %v2979_v19 = vsel %vm2978_vm4, %v2976_v52, %v8304_v59  ;;  %3264 = vmatpush1.bf16.msra.mxu0 %v8418_v18  ;;  %v8431_v40 = vld [vmem:[#allocation26] sm:$0xff]   ;;  %v8432_v59 = vld [vmem:[#allocation26 + $0x48] sm:$0xff]  }
 0xb4d   : > { %3265 = vmatprep.subr.bf16.mxu0 %v8423_v62  ;;  %v7271_v18 = vld [vmem:[#allocation27] ss:$0 sm:$0xff] }
 0xb50   : > { %3266 = vmatpush1.bf16.msra.mxu0 %v8421_v23 }
 0xb51   : > { %v8308_v55 = vpop.permute.xlu1 %8307  ;;  %3267 = vmatprep.subr.bf16.mxu0 %v8426_v51 }
 0xb52   : > { %v8310_v2 = vunpack.i.h.bf16 %v8308_v55  ;;  %v8309_v4 = vunpack.i.l.bf16 %v8308_v55  ;;  %v8424_v55 = vld [vmem:[#allocation23 + $0x60] ss:$8 sps:$4 sm:$0xff]  }
 0xb54   : > { %v2983_v17 = vsel %vm2981_vm5, %v2980_v11, %v8310_v2  ;;  %v2982_v46 = vsel %vm2981_vm5, %v2979_v19, %v8309_v4  ;;  %3268 = vmatpush1.bf16.msra.mxu0 %v8424_v55  ;;  %v8435_v2 = vld [vmem:[#allocation26 + $0x10] sm:$0xff]   ;;  %v8436_v4 = vld [vmem:[#allocation26 + $0x58] sm:$0xff]  }
 0xb55   : > { %3269 = vmatprep.subr.bf16.mxu0 %v8429_v56 }
 0xb58   : > { %3270 = vmatpush1.bf16.msra.mxu0 %v8427_v57 }
 0xb59   : > { %v8313_v10 = vpop.permute.xlu0 %8312 }
 0xb5a   : > { %v8315_v9 = vunpack.i.h.bf16 %v8313_v10  ;;  %v8314_v34 = vunpack.i.l.bf16 %v8313_v10  ;;  %v8430_v10 = vld [vmem:[#allocation26 + $0x40] sm:$0xff]  }
 0xb5b   : > { %7602 = vmatprep.subr.bf16.mxu1 %v8430_v10 }
 0xb5c   : > { %v2986_v14 = vsel %vm2984_vm6, %v2983_v17, %v8315_v9  ;;  %v2985_v16 = vsel %vm2984_vm6, %v2982_v46, %v8314_v34  ;;  %v8439_v9 = vld [vmem:[#allocation26 + $0x20] sm:$0xff]   ;;  %v8440_v34 = vld [vmem:[#allocation26 + $0x68] sm:$0xff]  }
 0xb61   : > { %v8318_v41 = vpop.permute.xlu1 %8317 }
 0xb62   : > { %v8320_v12 = vunpack.i.h.bf16 %v8318_v41  ;;  %v8319_v13 = vunpack.i.l.bf16 %v8318_v41 }
 0xb64   : > { %v2989_v20 = vsel %vm2987_vm7, %v2986_v14, %v8320_v12  ;;  %v2988_v58 = vsel %vm2987_vm7, %v2985_v16, %v8319_v13  ;;  %v7253_v13 = vld [vmem:[#allocation20] ss:$0 sm:$0xff] }
 0xb65   : > { %v2990_v53 = vpack.c.bf16 %v2989_v20, %v2988_v58  ;;  %v7254_v58 = vld [vmem:[#allocation21] ss:$0 sm:$0xff] }
 0xb67   : > { %7857 = vmatmul.mubr.bf16.vlgmr.msra.gmra.mrb[40].mxu1 %v2990_v53 }
 0xb68   : > { %7603 = vmatpush3.bf16.msra.mxu1 %v8431_v40 }
 0xb69   : > { %7604 = vmatprep.subr.bf16.mxu1 %v8432_v59 }
 0xb6c   : > { %7605 = vmatpush3.bf16.msra.mxu1 %v8433_v60  ;;  %v8446_v60 = vld [vmem:[#allocation32] ss:$12 sps:$4 sm:$0xff]  }
 0xb6d   : > { %7606 = vmatprep.subr.bf16.mxu1 %v8434_v42  ;;  %v8448_v42 = vld [vmem:[#allocation32 + $0x4] ss:$12 sps:$4 sm:$0xff]  }
 0xb6e   : > { %3700 = vmatprep.subr.bf16.mxu0 %v8448_v42 }
 0xb70   : > { %7607 = vmatpush3.bf16.msra.mxu1 %v8435_v2  ;;  %v8449_v2 = vld [vmem:[#allocation32 + $0x8] ss:$12 sps:$4 sm:$0xff]  }
 0xb71   : > { %7608 = vmatprep.subr.bf16.mxu1 %v8436_v4  ;;  %v8452_v4 = vld [vmem:[#allocation32 + $0x1c] ss:$12 sps:$4 sm:$0xff]  }
 0xb74   : > { %7609 = vmatpush3.bf16.msra.mxu1 %v8437_v8  ;;  %v8453_v8 = vld [vmem:[#allocation32 + $0x20] ss:$12 sps:$4 sm:$0xff]  }
 0xb75   : > { %7610 = vmatprep.subr.bf16.mxu1 %v8438_v24  ;;  %v8450_v24 = vld [vmem:[#allocation32 + $0x18] ss:$12 sps:$4 sm:$0xff]  }
 0xb78   : > { %7611 = vmatpush3.bf16.msra.mxu1 %v8439_v9 }
 0xb79   : > { %7612 = vmatprep.subr.bf16.mxu1 %v8440_v34 }
 0xc3a   : > { %v3096_v21 = vpop.f32.mrb[40].mxu1 }
 0xc3b   : > { %v3097_v25 = vadd.f32 %v7244_v39, %v3096_v21  ;;  %v7858_v27 = vpop.f32.mrb[41].mxu1 }
 0xc3c   : > { %v3099_v29 = vpop.f32.mrb[42].mxu1  ;;  %v8441_v27 = vld [vmem:[#allocation26 + $0x28] sm:$0xff]  }
 0xc3d   : > { %v3100_v6 = vadd.f32 %v7244_v39, %v3099_v29  ;;  %v7859_v30 = vpop.f32.mrb[43].mxu1  ;;  %v3103_v32 = vadd.f32 %v3097_v25, %v10358_v61  ;;  %7613 = vmatpush3.bf16.msra.mxu1 %v8441_v27  ;;  %v8442_v29 = vld [vmem:[#allocation26 + $0x70] sm:$0xff]  }
 0xc3e   : > { %7614 = vmatprep.subr.bf16.mxu1 %v8442_v29  ;;  %v8444_v30 = vld [vmem:[#allocation26 + $0x78] sm:$0xff]   ;;  %v8469_v27 = vld [vmem:[#allocation32 + $0x80] ss:$12 sps:$4 sm:$0xff]  }
 0xc3f   : > { %3105 = vadd.xlane.f32.xlu0 %v3103_v32  ;;  %v3104_v63 = vadd.f32 %v3100_v6, %v10360_v0  ;;  %v8443_v6 = vld [vmem:[#allocation26 + $0x30] sm:$0xff]   ;;  %v8472_v29 = vld [vmem:[#allocation32 + $0x94] ss:$12 sps:$4 sm:$0xff]  }
 0xc41   : > { %3107 = vadd.xlane.f32.xlu1 %v3104_v63  ;;  %7615 = vmatpush3.bf16.msra.mxu1 %v8443_v6  ;;  %v8470_v6 = vld [vmem:[#allocation32 + $0x90] ss:$12 sps:$4 sm:$0xff]  }
 0xc42   : > { %7616 = vmatprep.subr.bf16.mxu1 %v8444_v30  ;;  %v8473_v30 = vld [vmem:[#allocation32 + $0x98] ss:$12 sps:$4 sm:$0xff]  }
 0xccc   : > { %v3106_v43 = vpop.xlane.xlu0 %3105 }
 0xccd   : > { %v3110_v44 = vmul.f32 0.0078125, %v3106_v43 }
 0xcce   : > { %v3108_v49 = vpop.xlane.xlu1 %3107 }
 0xccf   : > { %v3112_v37 = vsub.f32 %v3103_v32, %v3110_v44  ;;  %v3111_v15 = vmul.f32 0.0078125, %v3108_v49  ;;  %v8445_v32 = vld [vmem:[#allocation26 + $0x38] sm:$0xff]  }
 0xcd0   : > { %7617 = vmatpush3.bf16.msra.mxu1 %v8445_v32  ;;  %v8476_v32 = vld [vmem:[#allocation32 + $0xac] ss:$12 sps:$4 sm:$0xff]  }
 0xcd1   : > { %v10658_v22 = vsub.f32 %v3104_v63, %v3111_v15  ;;  %v3114_v61 = vmul.f32 %v3112_v37, %v3112_v37  ;;  %7860 = vmatprep.subr.bf16.mxu1 %v9668_v1  ;;  %v3163_v63 = vld [vmem:[#allocation24] sm:$0x3] }
 0xcd2   : > { %v3168_v33 = vrot.slane %v3163_v63, %v10355_v54  ;;  %v3172_v35 = vrot.slane %v3163_v63, %v10372_v5  ;;  %v8474_v63 = vld [vmem:[#allocation32 + $0xa8] ss:$12 sps:$4 sm:$0xff]  }
 0xcd3   : > { %3116 = vadd.xlane.f32.xlu0 %v3114_v61  ;;  %v3115_v0 = vmul.f32 %v10658_v22, %v10658_v22 }
 0xcd7   : > { %3118 = vadd.xlane.f32.xlu0 %v3115_v0 }
 0xd60   : > { %v3117_v31 = vpop.xlane.xlu0 %3116 }
 0xd61   : > { %v3120_v52 = vmul.f32 0.0078125, %v3117_v31 }
 0xd63   : > { %v3122_v11 = vadd.f32 1e-05, %v3120_v52 }
 0xd64   : > { %v3119_v19 = vpop.xlane.xlu0 %3118 }
 0xd65   : > { %8590 = vrsqrt.f32 %v3122_v11  ;;  %v3121_v41 = vmul.f32 0.0078125, %v3119_v19 }
 0xd67   : > { %v3123_v17 = vadd.f32 1e-05, %v3121_v41 }
 0xd69   : > { %8592 = vrsqrt.f32 %v3123_v17 }
 0xd6f   : > { %v8591_v46 = vpop.eup %8590 }
 0xd70   : > { %v3126_v12 = vmul.f32 %v8591_v46, %v3112_v37  ;;  %v8456_v46 = vld [vmem:[#allocation32 + $0x34] ss:$12 sps:$4 sm:$0xff]  }
 0xd72   : > { %v3135_v20 = vmul.f32 %v7253_v13, %v3126_v12  ;;  %v8454_v12 = vld [vmem:[#allocation32 + $0x30] ss:$12 sps:$4 sm:$0xff]  }
 0xd73   : > { %v8593_v14 = vpop.eup %8592 }
 0xd74   : > { %v3127_v16 = vmul.f32 %v8593_v14, %v10658_v22  ;;  %v3144_v39 = vadd.f32 %v7254_v58, %v3135_v20  ;;  %v8460_v14 = vld [vmem:[#allocation32 + $0x4c] ss:$12 sps:$4 sm:$0xff]   ;;  %v8461_v20 = vld [vmem:[#allocation32 + $0x50] ss:$12 sps:$4 sm:$0xff]  }
 0xd76   : > { %v3136_v53 = vmul.f32 %v7253_v13, %v3127_v16  ;;  %v8457_v13 = vld [vmem:[#allocation32 + $0x38] ss:$12 sps:$4 sm:$0xff]   ;;  %v8458_v16 = vld [vmem:[#allocation32 + $0x48] ss:$12 sps:$4 sm:$0xff]  }
 0xd78   : > { %v3145_v21 = vadd.f32 %v7254_v58, %v3136_v53  ;;  %v8464_v58 = vld [vmem:[#allocation32 + $0x64] ss:$12 sps:$4 sm:$0xff]   ;;  %v8462_v53 = vld [vmem:[#allocation32 + $0x60] ss:$12 sps:$4 sm:$0xff]  }
 0xd7a   : > { %v3146_v25 = vpack.c.bf16 %v3145_v21, %v3144_v39 }
 0xd7c   : > { %3288 = vmatmul.mubr.bf16.vlgmr.msra.gmra.mrb[40].mxu0 %v3146_v25  ;;  %v8466_v25 = vld [vmem:[#allocation32 + $0x78] ss:$12 sps:$4 sm:$0xff]  }
 0xd7d   : > { %3732 = vmatprep.mubr.bf16.mxu0 %v9670_v45  ;;  %3701 = vmatpush1.bf16.msra.mxu0 %v8446_v60 }
 0xd7e   : > { %3702 = vmatprep.subr.bf16.mxu0 %v8452_v4 }
 0xd81   : > { %3703 = vmatpush1.bf16.msra.mxu0 %v8450_v24 }
 0xd82   : > { %3704 = vmatprep.subr.bf16.mxu0 %v8456_v46 }
 0xd85   : > { %3705 = vmatpush1.bf16.msra.mxu0 %v8454_v12 }
 0xd86   : > { %3706 = vmatprep.subr.bf16.mxu0 %v8460_v14 }
 0xd89   : > { %3707 = vmatpush1.bf16.msra.mxu0 %v8458_v16 }
 0xd8a   : > { %3708 = vmatprep.subr.bf16.mxu0 %v8464_v58 }
 0xd8d   : > { %3709 = vmatpush1.bf16.msra.mxu0 %v8462_v53 }
 0xe4f   : > { %v3289_v36 = vpop.f32.mrb[40].mxu0 }
 0xe50   : > { %v3290_v38 = vadd.f32 %v3289_v36, %v3168_v33  ;;  %v3291_v43 = vpop.f32.mrb[41].mxu0 }
 0xe51   : > { %v3292_v44 = vadd.f32 %v3291_v43, %v3172_v35  ;;  %v3293_v49 = vpop.f32.mrb[42].mxu0 }
 0xe52   : > { %v3294_v37 = vadd.f32 %v3293_v49, %v3168_v33  ;;  %v3295_v15 = vpop.f32.mrb[43].mxu0  ;;  %v3298_v61 = vmax.f32 %v3290_v38, 0.0  ;;  %v8477_v33 = vld [vmem:[#allocation32 + $0xb0] ss:$12 sps:$4 sm:$0xff]  }
 0xe53   : > { %v3296_v22 = vadd.f32 %v3295_v15, %v3172_v35  ;;  %v3299_v7 = vmax.f32 %v3292_v44, 0.0  ;;  %v7288_v15 = vld [vmem:[#allocation29] ss:$0 sm:$0xff] }
 0xe54   : > { %v3300_v0 = vmax.f32 %v3294_v37, 0.0 }
 0xe55   : > { %v3301_v26 = vmax.f32 %v3296_v22, 0.0 }
 0xe56   : > { %v3302_v47 = vpack.c.bf16 %v3300_v0, %v3298_v61 }
 0xe57   : > { %v3303_v50 = vpack.c.bf16 %v3301_v26, %v3299_v7  ;;  %v7289_v26 = vld [vmem:[#allocation30] ss:$0 sm:$0xff] }
 0xe59   : > { %3471 = vmatprep.mubr.bf16.mxu1 %v3303_v50 }
 0xe5a   : > { %3472 = vmatmul.mubr.bf16.vlgmr.msra.gmra.mrb[44].mxu1 %v3302_v47 }
 0xe5b   : > { %7876 = vmatprep.mubr.msk.bf16.mxu1 %vm9669_vm0, %v9668_v1  ;;  %7861 = vmatpush3.bf16.msra.mxu1 %v8449_v2 }
 0xe5c   : > { %7862 = vmatprep.subr.bf16.mxu1 %v9668_v1 }
 0xe5f   : > { %7863 = vmatpush3.bf16.msra.mxu1 %v8453_v8 }
 0xe60   : > { %7864 = vmatprep.subr.bf16.mxu1 %v9668_v1 }
 0xe63   : > { %7865 = vmatpush3.bf16.msra.mxu1 %v8457_v13 }
 0xe64   : > { %7866 = vmatprep.subr.bf16.mxu1 %v9668_v1 }
 0xe67   : > { %7867 = vmatpush3.bf16.msra.mxu1 %v8461_v20 }
 0xe68   : > { %7868 = vmatprep.subr.bf16.mxu1 %v9668_v1 }
 0xf2d   : > { %v7618_v28 = vpop.f32.mrb[44].mxu1 }
 0xf2e   : > { %v7619_v62 = vpop.f32.mrb[45].mxu1 }
 0xf2f   : > { %v7620_v23 = vadd.f32 %v7619_v62, %v7618_v28  ;;  %v7621_v51 = vpop.f32.mrb[46].mxu1  ;;  %v3555_v62 = vld [vmem:[#allocation33] sm:$0x7] }
 0xf30   : > { %v7622_v55 = vpop.f32.mrb[47].mxu1 }
 0xf31   : > { %v3474_v56 = vadd.f32 %v7620_v23, %v7271_v18  ;;  %v7623_v57 = vadd.f32 %v7622_v55, %v7621_v51  ;;  %v3560_v23 = vrot.slane %v3555_v62, %v10355_v54  ;;  %v3568_v51 = vrot.slane %v3555_v62, %v10369_v3 }
 0xf33   : > { %v3477_v10 = vadd.f32 %v7623_v57, %v7271_v18  ;;  %v3480_v40 = vadd.f32 %v3474_v56, %v3144_v39  ;;  %v8465_v39 = vld [vmem:[#allocation32 + $0x68] ss:$12 sps:$4 sm:$0xff]   ;;  %v3564_v57 = vrot.slane %v3555_v62, %v10372_v5 }
 0xf34   : > { %7869 = vmatpush3.bf16.msra.mxu1 %v8465_v39 }
 0xf35   : > { %3482 = vadd.xlane.f32.xlu0 %v3480_v40  ;;  %v3481_v59 = vadd.f32 %v3477_v10, %v3145_v21  ;;  %v8468_v21 = vld [vmem:[#allocation32 + $0x7c] ss:$12 sps:$4 sm:$0xff]   ;;  %7870 = vmatprep.subr.bf16.mxu1 %v9668_v1 }
 0xf36   : > { %3710 = vmatprep.subr.bf16.mxu0 %v8468_v21 }
 0xf37   : > { %3484 = vadd.xlane.f32.xlu1 %v3481_v59  ;;  %3711 = vmatpush1.bf16.msra.mxu0 %v8466_v25 }
 0xf38   : > { %7871 = vmatpush3.bf16.msra.mxu1 %v8469_v27  ;;  %3712 = vmatprep.subr.bf16.mxu0 %v8472_v29 }
 0xf39   : > { %7872 = vmatprep.subr.bf16.mxu1 %v9668_v1 }
 0xf3b   : > { %3713 = vmatpush1.bf16.msra.mxu0 %v8470_v6 }
 0xf3c   : > { %7873 = vmatpush3.bf16.msra.mxu1 %v8473_v30  ;;  %3714 = vmatprep.subr.bf16.mxu0 %v8476_v32 }
 0xf3d   : > { %7874 = vmatprep.subr.bf16.mxu1 %v9668_v1 }
 0xf3f   : > { %3715 = vmatpush1.bf16.msra.mxu0 %v8474_v63 }
 0xf40   : > { %7875 = vmatpush3.bf16.msra.mxu1 %v8477_v33  ;;  %7880 = vmatprep.subr.bf16.mxu0 %v9668_v1 }
 0xf41   : > { %7904 = vmatprep.subr.bf16.mxu1 %v9668_v1 }
 0xfc2   : > { %v3483_v9 = vpop.xlane.xlu0 %3482 }
 0xfc3   : > { %v3486_v34 = vmul.f32 0.0078125, %v3483_v9 }
 0xfc4   : > { %v3485_v31 = vpop.xlane.xlu1 %3484 }
 0xfc5   : > { %v3488_v52 = vsub.f32 %v3480_v40, %v3486_v34  ;;  %v3487_v11 = vmul.f32 0.0078125, %v3485_v31 }
 0xfc7   : > { %v3489_v19 = vsub.f32 %v3481_v59, %v3487_v11  ;;  %v3490_v41 = vmul.f32 %v3488_v52, %v3488_v52 }
 0xfc9   : > { %3492 = vadd.xlane.f32.xlu0 %v3490_v41  ;;  %v3491_v17 = vmul.f32 %v3489_v19, %v3489_v19 }
 0xfcb   : > { %3494 = vadd.xlane.f32.xlu1 %v3491_v17 }
0x1056   : > { %v3493_v35 = vpop.xlane.xlu0 %3492 }
0x1057   : > { %v3496_v36 = vmul.f32 0.0078125, %v3493_v35 }
0x1058   : > { %v3495_v38 = vpop.xlane.xlu1 %3494 }
0x1059   : > { %v3498_v43 = vadd.f32 1e-05, %v3496_v36  ;;  %v3497_v44 = vmul.f32 0.0078125, %v3495_v38 }
0x105b   : > { %8594 = vrsqrt.f32 %v3498_v43  ;;  %v3499_v49 = vadd.f32 1e-05, %v3497_v44 }
0x105d   : > { %8596 = vrsqrt.f32 %v3499_v49 }
0x1065   : > { %v8595_v37 = vpop.eup %8594 }
0x1066   : > { %v3502_v22 = vmul.f32 %v8595_v37, %v3488_v52 }
0x1067   : > { %v8597_v61 = vpop.eup %8596 }
0x1068   : > { %v3503_v0 = vmul.f32 %v8597_v61, %v3489_v19  ;;  %v3511_v7 = vmul.f32 %v7288_v15, %v3502_v22 }
0x106a   : > { %v3512_v47 = vmul.f32 %v7288_v15, %v3503_v0  ;;  %v10678_v50 = vadd.f32 %v7289_v26, %v3511_v7 }
0x106c   : > { %v10680_v28 = vadd.f32 %v7289_v26, %v3512_v47 }
0x106e   : > { %v3522_v18 = vpack.c.bf16 %v10680_v28, %v10678_v50 }
0x1070   : > { %3733 = vmatmul.mubr.bf16.vlgmr.msra.gmra.mrb[44].mxu0 %v3522_v18  ;;  %7877 = vmatmul.mubr.bf16.vlgmr.msra.gmra.mrb[48].mxu1 %v3522_v18 }
0x1071   : > { %7882 = vmatprep.mubr.msk.bf16.mxu0 %vm9669_vm0, %v9668_v1  ;;  %7906 = vmatprep.mubr.msk.bf16.mxu1 %vm9669_vm0, %v9668_v1 }
0x1143   : > { %v3734_v55 = vpop.f32.mrb[44].mxu0  ;;  %v3777_v56 = vpop.f32.mrb[48].mxu1 }
0x1144   : > { %v3736_v10 = vpop.f32.mrb[45].mxu0  ;;  %v7878_v40 = vpop.f32.mrb[49].mxu1  ;;  %v3735_v42 = vadd.f32 %v3734_v55, %v3560_v23  ;;  %v3778_v2 = vadd.f32 %v3777_v56, %v3568_v51 }
0x1145   : > { %v3738_v59 = vpop.f32.mrb[46].mxu0  ;;  %v3780_v60 = vpop.f32.mrb[50].mxu1  ;;  %v3737_v34 = vadd.f32 %v3736_v10, %v3564_v57 }
0x1146   : > { %v3739_v4 = vadd.f32 %v3738_v59, %v3560_v23  ;;  %v3781_v8 = vadd.f32 %v3780_v60, %v3568_v51  ;;  %v3740_v24 = vpop.f32.mrb[47].mxu0  ;;  %v7879_v9 = vpop.f32.mrb[51].mxu1 }
0x1147   : > { %v3741_v31 = vadd.f32 %v3740_v24, %v3564_v57 }
0x1148   : > { %v3784_v52 = vpack.c.bf16 %v3739_v4, %v3735_v42  ;;  %v10691_v11 = vpack.c.bf16 %v3781_v8, %v3778_v2 }
0x1149   : > { %v3785_v19 = vpack.c.bf16 %v3741_v31, %v3737_v34 }
0x114b   : > { %v3791_v41 = vsel %vm1934_vm2, %v3785_v19, 0 }
0x114c   : > { %7881 = vmatpush3.bf16.xpose.msra.mxu0 %v3791_v41 }
0x114d   : > { %7886 = vmatprep.subr.bf16.mxu0 %v9668_v1 }
0x1153   : > { %7883 = vmatmul.mubr.msk.bf16.vlgmr.msra.gmra.mrb[48].mxu0 %vm1934_vm2, %v3784_v52 }
0x1154   : > { %7887 = vmatpush3.bf16.msra.mxu0 %v10691_v11  ;;  %7888 = vmatprep.mubr.msk.bf16.mxu0 %vm9669_vm0, %v9668_v1 }
0x1155   : > { %7892 = vmatprep.subr.bf16.mxu0 %v9668_v1 }
0x1226   : > { %v3827_v17 = vpop.f32.mrb[48].mxu0 }
0x1227   : > { %v3834_v46 = vmul.f32 0.25, %v3827_v17  ;;  %v7884_v12 = vpop.f32.mrb[49].mxu0 }
0x1228   : > { %v3830_v13 = vpop.f32.mrb[50].mxu0 }
0x1229   : > { %v3835_v14 = vmul.f32 0.25, %v3830_v13  ;;  %v7885_v16 = vpop.f32.mrb[51].mxu0  ;;  %v3836_v20 = vsel %vm1934_vm2, %v3834_v46, -inf }
0x122a   : > { %3837 = vmax.xlane.f32.xlu0 %v3836_v20 }
0x122b   : > { %v3839_v58 = vsel %vm1934_vm2, %v3835_v14, -inf }
0x122c   : > { %3840 = vmax.xlane.f32.xlu1 %v3839_v58 }
0x12b7   : > { %v3838_v53 = vpop.xlane.xlu0 %3837 }
0x12b8   : > { %v3842_v39 = vsub.f32 %v3834_v46, %v3838_v53 }
0x12b9   : > { %v3841_v21 = vpop.xlane.xlu1 %3840 }
0x12ba   : > { %v3844_v25 = vmul.f32 1.442695, %v3842_v39  ;;  %v3843_v27 = vsub.f32 %v3835_v14, %v3841_v21 }
0x12bc   : > { %8598 = vpow2.f32 %v3844_v25  ;;  %v3846_v29 = vmul.f32 1.442695, %v3843_v27 }
0x12be   : > { %8600 = vpow2.f32 %v3846_v29 }
0x12c6   : > { %v8599_v6 = vpop.eup %8598 }
0x12c7   : > { %v3848_v30 = vsel %vm1934_vm2, %v8599_v6, 0.0 }
0x12c8   : > { %v8601_v32 = vpop.eup %8600  ;;  %3849 = vadd.xlane.f32.xlu0 %v3848_v30 }
0x12c9   : > { %v3851_v63 = vsel %vm1934_vm2, %v8601_v32, 0.0 }
0x12ca   : > { %3852 = vadd.xlane.f32.xlu1 %v3851_v63 }
0x12db   : > { %3904 = vrot.lane.b32.xlu1 %v3784_v52, %s9671_s18 }
0x12de   : > { %3907 = vrot.lane.b32.xlu0 %v3785_v19, %s9671_s18 }
0x12df   : > { %4031 = vrot.lane.b32.xlu1 %v3785_v19, %s9677_s8 }
0x12e2   : > { %4154 = vrot.lane.b32.xlu0 %v3785_v19, %s9672_s4 }
0x12e3   : > { %4029 = vrot.lane.b32.xlu1 %v3784_v52, %s9677_s8 }
0x12e6   : > { %4277 = vrot.lane.b32.xlu0 %v3785_v19, %s9673_s11 }
0x12e7   : > { %4152 = vrot.lane.b32.xlu1 %v3784_v52, %s9672_s4 }
0x12ea   : > { %4400 = vrot.lane.b32.xlu0 %v3785_v19, %s9674_s2 }
0x12eb   : > { %4275 = vrot.lane.b32.xlu1 %v3784_v52, %s9673_s11 }
0x12ee   : > { %4523 = vrot.lane.b32.xlu0 %v3785_v19, %s9675_s10 }
0x12ef   : > { %4398 = vrot.lane.b32.xlu1 %v3784_v52, %s9674_s2 }
0x12f2   : > { %4646 = vrot.lane.b32.xlu0 %v3785_v19, %s9676_s13 }
0x12f3   : > { %4521 = vrot.lane.b32.xlu1 %v3784_v52, %s9675_s10 }
0x12f7   : > { %4644 = vrot.lane.b32.xlu1 %v3784_v52, %s9676_s13 }
0x1355   : > { %v3850_v33 = vpop.xlane.xlu0 %3849 }
0x1356   : > { %8602 = vrcp.f32 %v3850_v33 }
0x1357   : > { %v3853_v35 = vpop.xlane.xlu1 %3852 }
0x1358   : > { %8604 = vrcp.f32 %v3853_v35 }
0x1359   : > { %v3908_v38 = vpop.permute.xlu0 %3907 }
0x135a   : > { %v3913_v7 = vsel %vm1934_vm2, %v3908_v38, 0 }
0x135b   : > { %v3905_v36 = vpop.permute.xlu1 %3904 }
0x135d   : > { %v4155_v61 = vpop.permute.xlu0 %4154 }
0x135e   : > { %v4160_v47 = vsel %vm1934_vm2, %v4155_v61, 0 }
0x135f   : > { %v4032_v43 = vpop.permute.xlu1 %4031 }
0x1360   : > { %v8603_v44 = vpop.eup %8602  ;;  %v4037_v49 = vsel %vm1934_vm2, %v4032_v43, 0 }
0x1361   : > { %7905 = vmatpush3.bf16.xpose.msra.mxu1 %v4037_v49  ;;  %v3855_v15 = vmul.f32 %v8603_v44, %v8599_v6  ;;  %v4278_v18 = vpop.permute.xlu0 %4277 }
0x1362   : > { %v8605_v37 = vpop.eup %8604  ;;  %7916 = vmatprep.subr.bf16.mxu1 %v9668_v1  ;;  %v4283_v23 = vsel %vm1934_vm2, %v4278_v18, 0 }
0x1363   : > { %v3857_v22 = vmul.f32 %v8605_v37, %v8601_v32  ;;  %v4030_v26 = vpop.permute.xlu1 %4029 }
0x1365   : > { %v3858_v0 = vpack.c.bf16 %v3857_v22, %v3855_v15  ;;  %v4401_v51 = vpop.permute.xlu0 %4400 }
0x1366   : > { %v4406_v56 = vsel %vm1934_vm2, %v4401_v51, 0 }
0x1367   : > { %7889 = vmatmul.mubr.msk.bf16.vlgmr.msra.gmra.mrb[52].mxu0 %vm1934_vm2, %v3858_v0  ;;  %v4153_v62 = vpop.permute.xlu1 %4152 }
0x1368   : > { %7893 = vmatpush3.bf16.xpose.msra.mxu0 %v3913_v7  ;;  %7907 = vmatmul.mubr.msk.bf16.vlgmr.msra.gmra.mrb[52].mxu1 %vm1934_vm2, %v4030_v26 }
0x1369   : > { %7917 = vmatpush3.bf16.xpose.msra.mxu1 %v4160_v47  ;;  %7894 = vmatprep.mubr.msk.bf16.mxu0 %vm9669_vm0, %v9668_v1  ;;  %v4524_v57 = vpop.permute.xlu0 %4523 }
0x136a   : > { %7918 = vmatprep.mubr.msk.bf16.mxu1 %vm9669_vm0, %v9668_v1  ;;  %7928 = vmatprep.subr.bf16.mxu1 %v9668_v1  ;;  %v4529_v40 = vsel %vm1934_vm2, %v4524_v57, 0 }
0x136b   : > { %7898 = vmatprep.subr.bf16.mxu0 %v9668_v1  ;;  %v4276_v55 = vpop.permute.xlu1 %4275 }
0x136d   : > { %v4647_v59 = vpop.permute.xlu0 %4646 }
0x136e   : > { %v4652_v42 = vsel %vm1934_vm2, %v4647_v59, 0 }
0x136f   : > { %7895 = vmatmul.mubr.msk.bf16.vlgmr.msra.gmra.mrb[56].mxu0 %vm1934_vm2, %v3905_v36  ;;  %v4399_v10 = vpop.permute.xlu1 %4398 }
0x1370   : > { %7919 = vmatmul.mubr.msk.bf16.vlgmr.msra.gmra.mrb[56].mxu1 %vm1934_vm2, %v4153_v62  ;;  %7900 = vmatprep.mubr.msk.bf16.mxu0 %vm9669_vm0, %v9668_v1 }
0x1371   : > { %7929 = vmatpush3.bf16.xpose.msra.mxu1 %v4283_v23  ;;  %7930 = vmatprep.mubr.msk.bf16.mxu1 %vm9669_vm0, %v9668_v1 }
0x1372   : > { %7940 = vmatprep.subr.bf16.mxu1 %v9668_v1 }
0x1373   : > { %v4522_v60 = vpop.permute.xlu1 %4521 }
0x1377   : > { %v4645_v2 = vpop.permute.xlu1 %4644 }
0x1378   : > { %7931 = vmatmul.mubr.msk.bf16.vlgmr.msra.gmra.mrb[60].mxu1 %vm1934_vm2, %v4276_v55 }
0x1379   : > { %7941 = vmatpush3.bf16.xpose.msra.mxu1 %v4406_v56  ;;  %7942 = vmatprep.mubr.msk.bf16.mxu1 %vm9669_vm0, %v9668_v1 }
0x137a   : > { %7952 = vmatprep.subr.bf16.mxu1 %v9668_v1 }
0x1380   : > { %7943 = vmatmul.mubr.msk.bf16.vlgmr.msra.gmra.mrb[64].mxu1 %vm1934_vm2, %v4399_v10 }
0x1381   : > { %7953 = vmatpush3.bf16.xpose.msra.mxu1 %v4529_v40  ;;  %7954 = vmatprep.mubr.msk.bf16.mxu1 %vm9669_vm0, %v9668_v1 }
0x1382   : > { %7964 = vmatprep.subr.bf16.mxu1 %v9668_v1 }
0x1388   : > { %7955 = vmatmul.mubr.msk.bf16.vlgmr.msra.gmra.mrb[68].mxu1 %vm1934_vm2, %v4522_v60 }
0x1389   : > { %7965 = vmatpush3.bf16.xpose.msra.mxu1 %v4652_v42  ;;  %7966 = vmatprep.mubr.msk.bf16.mxu1 %vm9669_vm0, %v9668_v1 }
0x138a   : > { %7976 = vmatprep.subr.bf16.mxu1 %v9668_v1 }
0x1390   : > { %7967 = vmatmul.mubr.msk.bf16.vlgmr.msra.gmra.mrb[72].mxu1 %vm1934_vm2, %v4645_v2 }
0x1391   : > { %7992 = vmatprep.mubr.msk.bf16.mxu1 %vm9669_vm0, %v9668_v1 }
0x143a   : > { %v10756_v4 = vpop.f32.mrb[52].mxu0 }
0x143b   : > { %v7890_v8 = vpop.f32.mrb[53].mxu0  ;;  %v4073_v24 = vpop.f32.mrb[52].mxu1 }
0x143c   : > { %v10758_v9 = vpop.f32.mrb[54].mxu0  ;;  %v7908_v34 = vpop.f32.mrb[53].mxu1  ;;  %v10762_v16 = vmul.f32 0.25, %v4073_v24 }
0x143d   : > { %v7891_v31 = vpop.f32.mrb[55].mxu0  ;;  %v4076_v52 = vpop.f32.mrb[54].mxu1 }
0x143e   : > { %v7909_v19 = vpop.f32.mrb[55].mxu1  ;;  %v4081_v29 = vmul.f32 0.25, %v4076_v52  ;;  %v4082_v6 = vsel %vm1934_vm2, %v10762_v16, -inf }
0x1440   : > { %v4085_v36 = vsel %vm1934_vm2, %v4081_v29, -inf }
0x1442   : > { %v3949_v41 = vpop.f32.mrb[56].mxu0 }
0x1443   : > { %v10760_v17 = vmul.f32 0.25, %v3949_v41  ;;  %v7896_v46 = vpop.f32.mrb[57].mxu0  ;;  %v4196_v12 = vpop.f32.mrb[56].mxu1 }
0x1444   : > { %v3952_v13 = vpop.f32.mrb[58].mxu0  ;;  %v7920_v14 = vpop.f32.mrb[57].mxu1  ;;  %v10776_v33 = vmul.f32 0.25, %v4196_v12 }
0x1445   : > { %v10764_v20 = vmul.f32 0.25, %v3952_v13  ;;  %v7897_v58 = vpop.f32.mrb[59].mxu0  ;;  %v4199_v53 = vpop.f32.mrb[58].mxu1  ;;  %v3958_v39 = vsel %vm1934_vm2, %v10760_v17, -inf }
0x1446   : > { %v7921_v21 = vpop.f32.mrb[59].mxu1  ;;  %3959 = vmax.xlane.f32.xlu0 %v3958_v39  ;;  %v10768_v25 = vmul.f32 0.25, %v4199_v53  ;;  %v4205_v37 = vsel %vm1934_vm2, %v10776_v33, -inf }
0x1447   : > { %v3961_v27 = vsel %vm1934_vm2, %v10764_v20, -inf }
0x1448   : > { %3962 = vmax.xlane.f32.xlu1 %v3961_v27  ;;  %v4208_v32 = vsel %vm1934_vm2, %v10768_v25, -inf }
0x144a   : > { %4083 = vmax.xlane.f32.xlu0 %v4082_v6 }
0x144b   : > { %v4319_v30 = vpop.f32.mrb[60].mxu1 }
0x144c   : > { %v7932_v63 = vpop.f32.mrb[61].mxu1  ;;  %4209 = vmax.xlane.f32.xlu1 %v4208_v32  ;;  %v10780_v49 = vmul.f32 0.25, %v4319_v30 }
0x144d   : > { %v4322_v35 = vpop.f32.mrb[62].mxu1 }
0x144e   : > { %v4327_v38 = vmul.f32 0.25, %v4322_v35  ;;  %v7933_v43 = vpop.f32.mrb[63].mxu1  ;;  %4086 = vmax.xlane.f32.xlu0 %v4085_v36  ;;  %v4328_v7 = vsel %vm1934_vm2, %v10780_v49, -inf }
0x1450   : > { %v4331_v44 = vsel %vm1934_vm2, %v4327_v38, -inf }
0x1451   : > { %4332 = vmax.xlane.f32.xlu1 %v4331_v44 }
0x1452   : > { %4206 = vmax.xlane.f32.xlu0 %v4205_v37 }
0x1453   : > { %v4442_v15 = vpop.f32.mrb[64].mxu1 }
0x1454   : > { %v7944_v22 = vpop.f32.mrb[65].mxu1  ;;  %v10784_v61 = vmul.f32 0.25, %v4442_v15 }
0x1455   : > { %v4445_v0 = vpop.f32.mrb[66].mxu1 }
0x1456   : > { %v10788_v26 = vmul.f32 0.25, %v4445_v0  ;;  %v7945_v47 = vpop.f32.mrb[67].mxu1  ;;  %4329 = vmax.xlane.f32.xlu0 %v4328_v7  ;;  %v4451_v62 = vsel %vm1934_vm2, %v10784_v61, -inf }
0x1458   : > { %v4454_v18 = vsel %vm1934_vm2, %v10788_v26, -inf }
0x1459   : > { %4455 = vmax.xlane.f32.xlu1 %v4454_v18 }
0x145a   : > { %4452 = vmax.xlane.f32.xlu0 %v4451_v62 }
0x145b   : > { %v4565_v23 = vpop.f32.mrb[68].mxu1 }
0x145c   : > { %v10794_v51 = vmul.f32 0.25, %v4565_v23  ;;  %v7956_v55 = vpop.f32.mrb[69].mxu1 }
0x145d   : > { %v4568_v56 = vpop.f32.mrb[70].mxu1 }
0x145e   : > { %v10796_v57 = vmul.f32 0.25, %v4568_v56  ;;  %v7957_v10 = vpop.f32.mrb[71].mxu1  ;;  %v4574_v40 = vsel %vm1934_vm2, %v10794_v51, -inf }
0x145f   : > { %4575 = vmax.xlane.f32.xlu0 %v4574_v40 }
0x1460   : > { %v4577_v59 = vsel %vm1934_vm2, %v10796_v57, -inf }
0x1461   : > { %4578 = vmax.xlane.f32.xlu1 %v4577_v59 }
0x1463   : > { %v4688_v60 = vpop.f32.mrb[72].mxu1 }
0x1464   : > { %v10802_v42 = vmul.f32 0.25, %v4688_v60  ;;  %v7968_v2 = vpop.f32.mrb[73].mxu1 }
0x1465   : > { %v4691_v8 = vpop.f32.mrb[74].mxu1 }
0x1466   : > { %v10804_v24 = vmul.f32 0.25, %v4691_v8  ;;  %v7969_v34 = vpop.f32.mrb[75].mxu1  ;;  %v4697_v31 = vsel %vm1934_vm2, %v10802_v42, -inf }
0x1467   : > { %4698 = vmax.xlane.f32.xlu0 %v4697_v31 }
0x1468   : > { %v4700_v52 = vsel %vm1934_vm2, %v10804_v24, -inf }
0x1469   : > { %4701 = vmax.xlane.f32.xlu1 %v4700_v52 }
0x14d3   : > { %v3960_v19 = vpop.xlane.xlu0 %3959 }
0x14d4   : > { %v3964_v35 = vsub.f32 %v10760_v17, %v3960_v19 }
0x14d5   : > { %v3963_v41 = vpop.xlane.xlu1 %3962 }
0x14d7   : > { %v4084_v46 = vpop.xlane.xlu0 %4083 }
0x14d8   : > { %v4088_v12 = vsub.f32 %v10762_v16, %v4084_v46 }
0x14d9   : > { %v4210_v13 = vpop.xlane.xlu1 %4209 }
0x14da   : > { %v4090_v14 = vmul.f32 1.442695, %v4088_v12  ;;  %v4212_v58 = vsub.f32 %v10768_v25, %v4210_v13 }
0x14db   : > { %v4087_v53 = vpop.xlane.xlu0 %4086 }
0x14dc   : > { %8606 = vpow2.f32 %v4090_v14  ;;  %v4089_v39 = vsub.f32 %v4081_v29, %v4087_v53  ;;  %v4215_v21 = vmul.f32 1.442695, %v4212_v58  ;;  %v3966_v29 = vmul.f32 1.442695, %v3964_v35 }
0x14de   : > { %v4092_v27 = vmul.f32 1.442695, %v4089_v39  ;;  %v4333_v6 = vpop.xlane.xlu1 %4332 }
0x14df   : > { %v4335_v30 = vsub.f32 %v4327_v38, %v4333_v6  ;;  %v4207_v32 = vpop.xlane.xlu0 %4206 }
0x14e0   : > { %8608 = vpow2.f32 %v4092_v27  ;;  %v4211_v63 = vsub.f32 %v10776_v33, %v4207_v32 }
0x14e1   : > { %8610 = vpow2.f32 %v4215_v21  ;;  %v4338_v36 = vmul.f32 1.442695, %v4335_v30 }
0x14e2   : > { %v4213_v16 = vmul.f32 1.442695, %v4211_v63 }
0x14e3   : > { %v4330_v43 = vpop.xlane.xlu0 %4329 }
0x14e4   : > { %8612 = vpow2.f32 %v4213_v16  ;;  %v4334_v25 = vsub.f32 %v10780_v49, %v4330_v43  ;;  %v3965_v49 = vsub.f32 %v10764_v20, %v3963_v41 }
0x14e5   : > { %8614 = vpow2.f32 %v4338_v36 }
0x14e6   : > { %v10815_v44 = vpop.eup %8606  ;;  %v4336_v37 = vmul.f32 1.442695, %v4334_v25  ;;  %v4456_v15 = vpop.xlane.xlu1 %4455  ;;  %v3968_v23 = vmul.f32 1.442695, %v3965_v49 }
0x14e7   : > { %v4458_v38 = vsub.f32 %v10788_v26, %v4456_v15  ;;  %v4453_v22 = vpop.xlane.xlu0 %4452  ;;  %v4094_v33 = vsel %vm1934_vm2, %v10815_v44, 0.0 }
0x14e8   : > { %8616 = vpow2.f32 %v4336_v37  ;;  %v4457_v17 = vsub.f32 %v10784_v61, %v4453_v22  ;;  %4095 = vadd.xlane.f32.xlu0 %v4094_v33 }
0x14e9   : > { %8618 = vpow2.f32 %v3966_v29  ;;  %v4461_v7 = vmul.f32 1.442695, %v4458_v38 }
0x14ea   : > { %v10821_v0 = vpop.eup %8608  ;;  %v4459_v47 = vmul.f32 1.442695, %v4457_v17 }
0x14eb   : > { %v4097_v18 = vsel %vm1934_vm2, %v10821_v0, 0.0  ;;  %v10826_v62 = vpop.eup %8610 }
0x14ec   : > { %8620 = vpow2.f32 %v4459_v47  ;;  %4098 = vadd.xlane.f32.xlu1 %v4097_v18  ;;  %v4220_v55 = vsel %vm1934_vm2, %v10826_v62, 0.0  ;;  %v4576_v41 = vpop.xlane.xlu0 %4575 }
0x14ed   : > { %8622 = vpow2.f32 %v4461_v7  ;;  %v4580_v46 = vsub.f32 %v10794_v51, %v4576_v41 }
0x14ee   : > { %v10828_v26 = vpop.eup %8612  ;;  %8624 = vpow2.f32 %v3968_v23  ;;  %v4579_v13 = vpop.xlane.xlu1 %4578 }
0x14ef   : > { %v4217_v61 = vsel %vm1934_vm2, %v10828_v26, 0.0  ;;  %v10834_v20 = vpop.eup %8614  ;;  %v4582_v12 = vmul.f32 1.442695, %v4580_v46  ;;  %v4581_v14 = vsub.f32 %v10796_v57, %v4579_v13 }
0x14f0   : > { %4218 = vadd.xlane.f32.xlu0 %v4217_v61  ;;  %4221 = vadd.xlane.f32.xlu1 %v4220_v55  ;;  %v4343_v40 = vsel %vm1934_vm2, %v10834_v20, 0.0 }
0x14f1   : > { %8626 = vpow2.f32 %v4582_v12  ;;  %v4584_v53 = vmul.f32 1.442695, %v4581_v14 }
0x14f2   : > { %v10836_v56 = vpop.eup %8616 }
0x14f3   : > { %v4340_v10 = vsel %vm1934_vm2, %v10836_v56, 0.0  ;;  %v10842_v59 = vpop.eup %8618  ;;  %8628 = vpow2.f32 %v4584_v53 }
0x14f4   : > { %4341 = vadd.xlane.f32.xlu0 %v4340_v10  ;;  %4344 = vadd.xlane.f32.xlu1 %v4343_v40  ;;  %v3970_v2 = vsel %vm1934_vm2, %v10842_v59, 0.0  ;;  %v4699_v58 = vpop.xlane.xlu0 %4698 }
0x14f5   : > { %v4703_v39 = vsub.f32 %v10802_v42, %v4699_v58 }
0x14f6   : > { %v10844_v60 = vpop.eup %8620  ;;  %v4702_v21 = vpop.xlane.xlu1 %4701 }
0x14f7   : > { %v4463_v8 = vsel %vm1934_vm2, %v10844_v60, 0.0  ;;  %v10850_v34 = vpop.eup %8622  ;;  %v4705_v27 = vmul.f32 1.442695, %v4703_v39  ;;  %v4704_v6 = vsub.f32 %v10804_v24, %v4702_v21 }
0x14f8   : > { %3971 = vadd.xlane.f32.xlu0 %v3970_v2  ;;  %4464 = vadd.xlane.f32.xlu1 %v4463_v8  ;;  %v4466_v31 = vsel %vm1934_vm2, %v10850_v34, 0.0  ;;  %v10854_v52 = vpop.eup %8624 }
0x14f9   : > { %v3973_v19 = vsel %vm1934_vm2, %v10854_v52, 0.0  ;;  %8630 = vpow2.f32 %v4705_v27  ;;  %v4707_v32 = vmul.f32 1.442695, %v4704_v6 }
0x14fb   : > { %v10866_v30 = vpop.eup %8626  ;;  %8632 = vpow2.f32 %v4707_v32 }
0x14fc   : > { %4467 = vadd.xlane.f32.xlu1 %v4466_v31  ;;  %v4586_v51 = vsel %vm1934_vm2, %v10866_v30, 0.0 }
0x14fd   : > { %v10870_v63 = vpop.eup %8628 }
0x14fe   : > { %v4589_v57 = vsel %vm1934_vm2, %v10870_v63, 0.0 }
0x1500   : > { %3974 = vadd.xlane.f32.xlu1 %v3973_v19 }
0x1503   : > { %v10874_v42 = vpop.eup %8630 }
0x1504   : > { %v4709_v24 = vsel %vm1934_vm2, %v10874_v42, 0.0 }
0x1505   : > { %v10878_v35 = vpop.eup %8632 }
0x1506   : > { %v4712_v36 = vsel %vm1934_vm2, %v10878_v35, 0.0 }
0x150e   : > { %3982 = vrot.lane.b32.xlu0 %v10691_v11, %s9671_s18 }
0x1511   : > { %4105 = vrot.lane.b32.xlu1 %v10691_v11, %s9677_s8 }
0x152d   : > { %4587 = vadd.xlane.f32.xlu0 %v4586_v51 }
0x1535   : > { %4590 = vadd.xlane.f32.xlu1 %v4589_v57 }
0x1539   : > { %4710 = vadd.xlane.f32.xlu1 %v4709_v24 }
0x153d   : > { %4713 = vadd.xlane.f32.xlu1 %v4712_v36 }
0x1543   : > { %4228 = vrot.lane.b32.xlu0 %v10691_v11, %s9672_s4 }
0x1547   : > { %4474 = vrot.lane.b32.xlu0 %v10691_v11, %s9674_s2 }
0x154b   : > { %4597 = vrot.lane.b32.xlu0 %v10691_v11, %s9675_s10 }
0x154e   : > { %4351 = vrot.lane.b32.xlu1 %v10691_v11, %s9673_s11 }
0x154f   : > { %4720 = vrot.lane.b32.xlu0 %v10691_v11, %s9676_s13 }
0x1575   : > { %v4096_v16 = vpop.xlane.xlu0 %4095 }
0x1579   : > { %v4099_v43 = vpop.xlane.xlu1 %4098 }
0x157d   : > { %v4219_v25 = vpop.xlane.xlu0 %4218  ;;  %v4222_v29 = vpop.xlane.xlu1 %4221 }
0x1581   : > { %v4342_v37 = vpop.xlane.xlu0 %4341  ;;  %v4345_v15 = vpop.xlane.xlu1 %4344 }
0x1582   : > { %8634 = vrcp.f32 %v4342_v37 }
0x1583   : > { %8636 = vrcp.f32 %v4345_v15 }
0x1585   : > { %v3972_v38 = vpop.xlane.xlu0 %3971  ;;  %v4465_v22 = vpop.xlane.xlu1 %4464 }
0x1586   : > { %8638 = vrcp.f32 %v4465_v22 }
0x1589   : > { %v3983_v33 = vpop.permute.xlu0 %3982  ;;  %v4468_v17 = vpop.xlane.xlu1 %4467 }
0x158a   : > { %8640 = vrcp.f32 %v4468_v17  ;;  %7899 = vmatpush3.bf16.msra.mxu0 %v3983_v33 }
0x158b   : > { %7910 = vmatprep.subr.bf16.mxu0 %v9668_v1  ;;  %8642 = vrcp.f32 %v3972_v38 }
0x158c   : > { %v8635_v49 = vpop.eup %8634 }
0x158d   : > { %v8637_v11 = vpop.eup %8636  ;;  %v4347_v7 = vmul.f32 %v8635_v49, %v10836_v56  ;;  %v3975_v47 = vpop.xlane.xlu1 %3974 }
0x158e   : > { %v4349_v18 = vmul.f32 %v8637_v11, %v10834_v20  ;;  %8644 = vrcp.f32 %v3975_v47 }
0x158f   : > { %8646 = vrcp.f32 %v4099_v43 }
0x1590   : > { %v4350_v23 = vpack.c.bf16 %v4349_v18, %v4347_v7  ;;  %v8639_v61 = vpop.eup %8638  ;;  %8648 = vrcp.f32 %v4096_v16 }
0x1591   : > { %v4470_v10 = vmul.f32 %v8639_v61, %v10844_v60  ;;  %v4106_v20 = vpop.permute.xlu1 %4105  ;;  %8650 = vrcp.f32 %v4219_v25 }
0x1592   : > { %8652 = vrcp.f32 %v4222_v29 }
0x1594   : > { %v8641_v55 = vpop.eup %8640 }
0x1595   : > { %v4472_v40 = vmul.f32 %v8641_v55, %v10850_v34  ;;  %v8643_v2 = vpop.eup %8642 }
0x1596   : > { %v3977_v19 = vmul.f32 %v8643_v2, %v10842_v59 }
0x1597   : > { %v4473_v8 = vpack.c.bf16 %v4472_v40, %v4470_v10  ;;  %v8479_v10 = vld [vmem:[#allocation35 + $0x8] sm:$0xff]   ;;  %v8480_v40 = vld [vmem:[#allocation35 + $0x10] sm:$0xff]  }
0x1598   : > { %v8645_v31 = vpop.eup %8644 }
0x1599   : > { %v3979_v56 = vmul.f32 %v8645_v31, %v10854_v52  ;;  %v8647_v46 = vpop.eup %8646  ;;  %v8481_v31 = vld [vmem:[#allocation35 + $0x18] sm:$0xff]  }
0x159a   : > { %v8649_v12 = vpop.eup %8648  ;;  %v4103_v60 = vmul.f32 %v8647_v46, %v10821_v0  ;;  %v8482_v46 = vld [vmem:[#allocation35 + $0x20] sm:$0xff]  }
0x159b   : > { %v3980_v41 = vpack.c.bf16 %v3979_v56, %v3977_v19  ;;  %v4101_v34 = vmul.f32 %v8649_v12, %v10815_v44  ;;  %v8651_v59 = vpop.eup %8650 }
0x159c   : > { %v8653_v52 = vpop.eup %8652  ;;  %v4224_v58 = vmul.f32 %v8651_v59, %v10828_v26 }
0x159d   : > { %7901 = vmatmul.mubr.msk.bf16.vlgmr.msra.gmra.mrb[60].mxu0 %vm1934_vm2, %v3980_v41  ;;  %v4104_v13 = vpack.c.bf16 %v4103_v60, %v4101_v34  ;;  %v4226_v53 = vmul.f32 %v8653_v52, %v10826_v62  ;;  %v8483_v60 = vld [vmem:[#allocation35 + $0x28] sm:$0xff]   ;;  %v8484_v52 = vld [vmem:[#allocation35 + $0x30] sm:$0xff]  }
0x159e   : > { %7911 = vmatpush3.bf16.msra.mxu0 %v4106_v20  ;;  %7912 = vmatprep.mubr.msk.bf16.mxu0 %vm9669_vm0, %v9668_v1 }
0x159f   : > { %7922 = vmatprep.subr.bf16.mxu0 %v9668_v1  ;;  %v4227_v39 = vpack.c.bf16 %v4226_v53, %v4224_v58  ;;  %v8485_v53 = vld [vmem:[#allocation35 + $0x38] sm:$0xff]  }
0x15a5   : > { %7913 = vmatmul.mubr.msk.bf16.vlgmr.msra.gmra.mrb[64].mxu0 %vm1934_vm2, %v4104_v13 }
0x15a6   : > { %7924 = vmatprep.mubr.msk.bf16.mxu0 %vm9669_vm0, %v9668_v1 }
0x15ba   : > { %v4588_v14 = vpop.xlane.xlu0 %4587 }
0x15be   : > { %v4229_v0 = vpop.permute.xlu0 %4228 }
0x15bf   : > { %7923 = vmatpush3.bf16.msra.mxu0 %v4229_v0 }
0x15c0   : > { %7934 = vmatprep.subr.bf16.mxu0 %v9668_v1 }
0x15c2   : > { %7925 = vmatmul.mubr.msk.bf16.vlgmr.msra.gmra.mrb[68].mxu0 %vm1934_vm2, %v4227_v39  ;;  %v4591_v44 = vpop.xlane.xlu1 %4590  ;;  %v4475_v62 = vpop.permute.xlu0 %4474 }
0x15c3   : > { %7936 = vmatprep.mubr.msk.bf16.mxu0 %vm9669_vm0, %v9668_v1  ;;  %8654 = vrcp.f32 %v4591_v44 }
0x15c4   : > { %8656 = vrcp.f32 %v4588_v14 }
0x15c6   : > { %v4711_v21 = vpop.xlane.xlu1 %4710  ;;  %v4598_v32 = vpop.permute.xlu0 %4597 }
0x15ca   : > { %v4714_v27 = vpop.xlane.xlu1 %4713  ;;  %v4721_v43 = vpop.permute.xlu0 %4720 }
0x15cb   : > { %8658 = vrcp.f32 %v4714_v27 }
0x15cc   : > { %8660 = vrcp.f32 %v4711_v21 }
0x15cd   : > { %v8655_v26 = vpop.eup %8654 }
0x15ce   : > { %v4352_v6 = vpop.permute.xlu1 %4351  ;;  %v8657_v51 = vpop.eup %8656  ;;  %v4595_v57 = vmul.f32 %v8655_v26, %v10870_v63 }
0x15cf   : > { %7935 = vmatpush3.bf16.msra.mxu0 %v4352_v6  ;;  %v4593_v24 = vmul.f32 %v8657_v51, %v10866_v30 }
0x15d0   : > { %7946 = vmatprep.subr.bf16.mxu0 %v9668_v1 }
0x15d1   : > { %v4596_v36 = vpack.c.bf16 %v4595_v57, %v4593_v24 }
0x15d2   : > { %7937 = vmatmul.mubr.msk.bf16.vlgmr.msra.gmra.mrb[72].mxu0 %vm1934_vm2, %v4350_v23 }
0x15d3   : > { %7947 = vmatpush3.bf16.msra.mxu0 %v4475_v62  ;;  %7948 = vmatprep.mubr.msk.bf16.mxu0 %vm9669_vm0, %v9668_v1 }
0x15d4   : > { %7958 = vmatprep.subr.bf16.mxu0 %v9668_v1 }
0x15d5   : > { %v8659_v16 = vpop.eup %8658 }
0x15d6   : > { %v8661_v25 = vpop.eup %8660  ;;  %v4718_v29 = vmul.f32 %v8659_v16, %v10878_v35 }
0x15d7   : > { %v4716_v37 = vmul.f32 %v8661_v25, %v10874_v42  ;;  %v8478_v42 = vld [vmem:[#allocation35] sm:$0xff]  }
0x15d8   : > { %7977 = vmatpush3.bf16.msra.mxu1 %v8478_v42 }
0x15d9   : > { %v4719_v15 = vpack.c.bf16 %v4718_v29, %v4716_v37  ;;  %7978 = vmatprep.subr.bf16.mxu1 %v9668_v1 }
0x15da   : > { %7949 = vmatmul.mubr.msk.bf16.vlgmr.msra.gmra.mrb[76].mxu0 %vm1934_vm2, %v4473_v8 }
0x15db   : > { %7959 = vmatpush3.bf16.msra.mxu0 %v4598_v32  ;;  %7960 = vmatprep.mubr.msk.bf16.mxu0 %vm9669_vm0, %v9668_v1 }
0x15dc   : > { %7970 = vmatprep.subr.bf16.mxu0 %v9668_v1  ;;  %7979 = vmatpush3.bf16.msra.mxu1 %v8479_v10 }
0x15dd   : > { %7980 = vmatprep.subr.bf16.mxu1 %v9668_v1 }
0x15e0   : > { %7981 = vmatpush3.bf16.msra.mxu1 %v8480_v40 }
0x15e1   : > { %7982 = vmatprep.subr.bf16.mxu1 %v9668_v1 }
0x15e2   : > { %7961 = vmatmul.mubr.msk.bf16.vlgmr.msra.gmra.mrb[80].mxu0 %vm1934_vm2, %v4596_v36 }
0x15e3   : > { %7971 = vmatpush3.bf16.msra.mxu0 %v4721_v43  ;;  %7972 = vmatprep.mubr.msk.bf16.mxu0 %vm9669_vm0, %v9668_v1 }
0x15e4   : > { %7983 = vmatpush3.bf16.msra.mxu1 %v8481_v31 }
0x15e5   : > { %7984 = vmatprep.subr.bf16.mxu1 %v9668_v1 }
0x15e8   : > { %7985 = vmatpush3.bf16.msra.mxu1 %v8482_v46 }
0x15e9   : > { %7986 = vmatprep.subr.bf16.mxu1 %v9668_v1 }
0x15ea   : > { %7973 = vmatmul.mubr.msk.bf16.vlgmr.msra.gmra.mrb[84].mxu0 %vm1934_vm2, %v4719_v15 }
0x15eb   : > { %5133 = vmatprep.mubr.bf16.mxu0 %v9670_v45 }
0x15ec   : > { %7987 = vmatpush3.bf16.msra.mxu1 %v8483_v60 }
0x15ed   : > { %7988 = vmatprep.subr.bf16.mxu1 %v9668_v1 }
0x15f0   : > { %7989 = vmatpush3.bf16.msra.mxu1 %v8484_v52  ;;  %v8486_v52 = vld [vmem:[#allocation41] ss:$8 sps:$4 sm:$0xff]  }
0x15f1   : > { %7990 = vmatprep.subr.bf16.mxu1 %v9668_v1 }
0x15f4   : > { %7991 = vmatpush3.bf16.msra.mxu1 %v8485_v53  ;;  %v8489_v53 = vld [vmem:[#allocation41 + $0x10] ss:$8 sps:$4 sm:$0xff]  }
0x1670   : > { %v4022_v30 = vpop.f32.mrb[60].mxu0 }
0x1671   : > { %v7902_v63 = vpop.f32.mrb[61].mxu0 }
0x1672   : > { %v4025_v38 = vpop.f32.mrb[62].mxu0 }
0x1673   : > { %v8321_v22 = vpack.i.bf16 %v4025_v38, %v4022_v30  ;;  %v7903_v33 = vpop.f32.mrb[63].mxu0 }
0x1675   : > { %8322 = vrot.lane.b32.xlu1 %v8321_v22, %s9676_s13 }
0x1678   : > { %v4145_v17 = vpop.f32.mrb[64].mxu0 }
0x1679   : > { %v7914_v49 = vpop.f32.mrb[65].mxu0 }
0x167a   : > { %v4148_v11 = vpop.f32.mrb[66].mxu0 }
0x167b   : > { %v8326_v7 = vpack.i.bf16 %v4148_v11, %v4145_v17  ;;  %v7915_v47 = vpop.f32.mrb[67].mxu0 }
0x167d   : > { %8327 = vrot.lane.b32.xlu0 %v8326_v7, %s9675_s10 }
0x1695   : > { %v4268_v35 = vpop.f32.mrb[68].mxu0 }
0x1696   : > { %v7926_v18 = vpop.f32.mrb[69].mxu0 }
0x1697   : > { %v4271_v23 = vpop.f32.mrb[70].mxu0 }
0x1698   : > { %v8331_v61 = vpack.i.bf16 %v4271_v23, %v4268_v35  ;;  %v7927_v55 = vpop.f32.mrb[71].mxu0 }
0x169a   : > { %8332 = vrot.lane.b32.xlu1 %v8331_v61, %s9674_s2 }
0x16a5   : > { %v4391_v2 = vpop.f32.mrb[72].mxu0 }
0x16a6   : > { %v7938_v8 = vpop.f32.mrb[73].mxu0 }
0x16a7   : > { %v4394_v19 = vpop.f32.mrb[74].mxu0 }
0x16a8   : > { %v8336_v56 = vpack.i.bf16 %v4394_v19, %v4391_v2  ;;  %v7939_v41 = vpop.f32.mrb[75].mxu0 }
0x16aa   : > { %8337 = vrot.lane.b32.xlu0 %v8336_v56, %s9673_s11  ;;  %v7330_v56 = vld [vmem:[#allocation36] ss:$0 sm:$0xff] }
0x16ad   : > { %v4514_v20 = vpop.f32.mrb[76].mxu0 }
0x16ae   : > { %v7950_v12 = vpop.f32.mrb[77].mxu0 }
0x16af   : > { %v4517_v34 = vpop.f32.mrb[78].mxu0 }
0x16b0   : > { %v8341_v13 = vpack.i.bf16 %v4517_v34, %v4514_v20  ;;  %v7951_v59 = vpop.f32.mrb[79].mxu0 }
0x16b2   : > { %8342 = vrot.lane.b32.xlu1 %v8341_v13, %s9672_s4 }
0x16b5   : > { %v4637_v14 = vpop.f32.mrb[80].mxu0 }
0x16b6   : > { %v7962_v58 = vpop.f32.mrb[81].mxu0 }
0x16b7   : > { %v4640_v0 = vpop.f32.mrb[82].mxu0  ;;  %v8491_v58 = vld [vmem:[#allocation41 + $0x14] ss:$8 sps:$4 sm:$0xff]  }
0x16b8   : > { %v8346_v39 = vpack.i.bf16 %v4640_v0, %v4637_v14  ;;  %v7963_v44 = vpop.f32.mrb[83].mxu0  ;;  %v8488_v14 = vld [vmem:[#allocation41 + $0x4] ss:$8 sps:$4 sm:$0xff]  }
0x16b9   : > { %5101 = vmatprep.subr.bf16.mxu0 %v8488_v14 }
0x16ba   : > { %8347 = vrot.lane.b32.xlu0 %v8346_v39, %s9677_s8  ;;  %5102 = vmatpush1.bf16.msra.mxu0 %v8486_v52 }
0x16bb   : > { %5103 = vmatprep.subr.bf16.mxu0 %v8491_v58 }
0x16bd   : > { %v4760_v21 = vpop.f32.mrb[84].mxu0 }
0x16be   : > { %v7974_v27 = vpop.f32.mrb[85].mxu0  ;;  %5104 = vmatpush1.bf16.msra.mxu0 %v8489_v53 }
0x16bf   : > { %v4763_v6 = vpop.f32.mrb[86].mxu0 }
0x16c0   : > { %v8351_v62 = vpack.i.bf16 %v4763_v6, %v4760_v21  ;;  %v7975_v26 = vpop.f32.mrb[87].mxu0 }
0x16c1   : > { %v8492_v26 = vld [vmem:[#allocation41 + $0x20] ss:$8 sps:$4 sm:$0xff]  }
0x16c2   : > { %8352 = vrot.lane.b32.xlu1 %v8351_v62, %s9671_s18  ;;  %v8494_v62 = vld [vmem:[#allocation41 + $0x24] ss:$8 sps:$4 sm:$0xff]  }
0x16c3   : > { %5105 = vmatprep.subr.bf16.mxu0 %v8494_v62 }
0x16c4   : > { %5106 = vmatpush1.bf16.msra.mxu0 %v8492_v26 }
0x16e7   : > { %v8323_v32 = vpop.permute.xlu1 %8322 }
0x16e8   : > { %v8325_v1 = vunpack.i.h.bf16 %v8323_v32  ;;  %v8324_v36 = vunpack.i.l.bf16 %v8323_v32  ;;  %v8497_v32 = vld [vmem:[#allocation41 + $0x34] ss:$8 sps:$4 sm:$0xff]  }
0x16e9   : > { %5107 = vmatprep.subr.bf16.mxu0 %v8497_v32 }
0x16ea   : > { %v4824_v38 = vsel %vm1934_vm2, %v10758_v9, %v8325_v1  ;;  %v4823_v22 = vsel %vm1934_vm2, %v10756_v4, %v8324_v36  ;;  %v8503_v1 = vld [vmem:[#allocation41 + $0x54] ss:$8 sps:$4 sm:$0xff]   ;;  %v8501_v36 = vld [vmem:[#allocation41 + $0x50] ss:$8 sps:$4 sm:$0xff]  }
0x16ef   : > { %v8328_v51 = vpop.permute.xlu0 %8327 }
0x16f0   : > { %v8330_v16 = vunpack.i.h.bf16 %v8328_v51  ;;  %v8329_v43 = vunpack.i.l.bf16 %v8328_v51  ;;  %v8495_v51 = vld [vmem:[#allocation41 + $0x30] ss:$8 sps:$4 sm:$0xff]  }
0x16f1   : > { %5108 = vmatpush1.bf16.msra.mxu0 %v8495_v51 }
0x16f2   : > { %v4826_v49 = vsel %vm1618_vm1, %v4824_v38, %v8330_v16  ;;  %v4825_v11 = vsel %vm1618_vm1, %v4823_v22, %v8329_v43  ;;  %v8506_v16 = vld [vmem:[#allocation41 + $0x64] ss:$8 sps:$4 sm:$0xff]   ;;  %v8504_v43 = vld [vmem:[#allocation41 + $0x60] ss:$8 sps:$4 sm:$0xff]   ;;  %v8514_v38 = vld [vmem:[#allocation44 + $0x50] sm:$0xff]  }
0x16f3   : > { %v8515_v22 = vld [vmem:[#allocation44 + $0x10] sm:$0xff]  }
0x170c   : > { %v8333_v57 = vpop.permute.xlu1 %8332 }
0x170d   : > { %v8335_v29 = vunpack.i.h.bf16 %v8333_v57  ;;  %v8334_v37 = vunpack.i.l.bf16 %v8333_v57  ;;  %v8500_v57 = vld [vmem:[#allocation41 + $0x44] ss:$8 sps:$4 sm:$0xff]  }
0x170e   : > { %5109 = vmatprep.subr.bf16.mxu0 %v8500_v57  ;;  %v7357_v57 = vld [vmem:[#allocation45] ss:$0 sm:$0xff] }
0x170f   : > { %v4828_v42 = vsel %vm2975_vm3, %v4826_v49, %v8335_v29  ;;  %v4827_v35 = vsel %vm2975_vm3, %v4825_v11, %v8334_v37  ;;  %v8507_v29 = vld [vmem:[#allocation41 + $0x70] ss:$8 sps:$4 sm:$0xff]   ;;  %v8510_v37 = vld [vmem:[#allocation44 + $0x40] sm:$0xff]  }
0x1710   : > { %7674 = vmatprep.subr.bf16.mxu1 %v8510_v37  ;;  %v8518_v49 = vld [vmem:[#allocation44 + $0x60] sm:$0xff]  }
0x1711   : > { %v8519_v11 = vld [vmem:[#allocation44 + $0x20] sm:$0xff]  }
0x171c   : > { %v8338_v24 = vpop.permute.xlu0 %8337 }
0x171d   : > { %v8340_v30 = vunpack.i.h.bf16 %v8338_v24  ;;  %v8339_v63 = vunpack.i.l.bf16 %v8338_v24  ;;  %v8498_v24 = vld [vmem:[#allocation41 + $0x40] ss:$8 sps:$4 sm:$0xff]  }
0x171e   : > { %5110 = vmatpush1.bf16.msra.mxu0 %v8498_v24 }
0x171f   : > { %v4830_v18 = vsel %vm2978_vm4, %v4828_v42, %v8340_v30  ;;  %v4829_v23 = vsel %vm2978_vm4, %v4827_v35, %v8339_v63  ;;  %5111 = vmatprep.subr.bf16.mxu0 %v8503_v1  ;;  %v8512_v30 = vld [vmem:[#allocation44 + $0x48] sm:$0xff]  }
0x1720   : > { %v8513_v63 = vld [vmem:[#allocation44 + $0x8] sm:$0xff]  }
0x1722   : > { %5112 = vmatpush1.bf16.msra.mxu0 %v8501_v36 }
0x1723   : > { %5113 = vmatprep.subr.bf16.mxu0 %v8506_v16 }
0x1724   : > { %v8343_v25 = vpop.permute.xlu1 %8342 }
0x1725   : > { %v8345_v33 = vunpack.i.h.bf16 %v8343_v25  ;;  %v8344_v17 = vunpack.i.l.bf16 %v8343_v25  ;;  %v8509_v25 = vld [vmem:[#allocation41 + $0x74] ss:$8 sps:$4 sm:$0xff]  }
0x1726   : > { %5114 = vmatpush1.bf16.msra.mxu0 %v8504_v43 }
0x1727   : > { %v4832_v61 = vsel %vm2981_vm5, %v4830_v18, %v8345_v33  ;;  %v4831_v4 = vsel %vm2981_vm5, %v4829_v23, %v8344_v17  ;;  %5115 = vmatprep.subr.bf16.mxu0 %v8509_v25  ;;  %v8516_v33 = vld [vmem:[#allocation44 + $0x58] sm:$0xff]  }
0x1728   : > { %v8517_v17 = vld [vmem:[#allocation44 + $0x18] sm:$0xff]  }
0x172a   : > { %5116 = vmatpush1.bf16.msra.mxu0 %v8507_v29 }
0x172c   : > { %v8348_v15 = vpop.permute.xlu0 %8347 }
0x172d   : > { %v8350_v7 = vunpack.i.h.bf16 %v8348_v15  ;;  %v8349_v47 = vunpack.i.l.bf16 %v8348_v15  ;;  %v8511_v15 = vld [vmem:[#allocation44] sm:$0xff]  }
0x172f   : > { %v4834_v40 = vsel %vm2984_vm6, %v4832_v61, %v8350_v7  ;;  %v4833_v2 = vsel %vm2984_vm6, %v4831_v4, %v8349_v47  ;;  %v8520_v7 = vld [vmem:[#allocation44 + $0x68] sm:$0xff]  }
0x1734   : > { %v8353_v9 = vpop.permute.xlu1 %8352 }
0x1735   : > { %v8355_v55 = vunpack.i.h.bf16 %v8353_v9  ;;  %v8354_v10 = vunpack.i.l.bf16 %v8353_v9 }
0x1737   : > { %v4836_v8 = vsel %vm2987_vm7, %v4834_v40, %v8355_v55  ;;  %v4835_v31 = vsel %vm2987_vm7, %v4833_v2, %v8354_v10  ;;  %v7339_v55 = vld [vmem:[#allocation38] ss:$0 sm:$0xff] }
0x1738   : > { %v4837_v19 = vpack.c.bf16 %v4836_v8, %v4835_v31  ;;  %v7340_v8 = vld [vmem:[#allocation39] ss:$0 sm:$0xff] }
0x173a   : > { %7993 = vmatmul.mubr.bf16.vlgmr.msra.gmra.mrb[76].mxu1 %v4837_v19 }
0x173b   : > { %7675 = vmatpush3.bf16.msra.mxu1 %v8511_v15 }
0x173c   : > { %7676 = vmatprep.subr.bf16.mxu1 %v8512_v30  ;;  %v5369_v30 = vld [vmem:[#allocation50] sm:$0xff] }
0x173f   : > { %7677 = vmatpush3.bf16.msra.mxu1 %v8513_v63  ;;  %v5377_v63 = vld [vmem:[#allocation50 + $0x40] sm:$0xff] }
0x1740   : > { %7678 = vmatprep.subr.bf16.mxu1 %v8514_v38  ;;  %v5370_v38 = vld [vmem:[#allocation50 + $0x8] sm:$0xff] }
0x1743   : > { %7679 = vmatpush3.bf16.msra.mxu1 %v8515_v22  ;;  %v7376_v22 = vcombine.low %v5369_v30, %v5377_v63 }
0x1744   : > { %7680 = vmatprep.subr.bf16.mxu1 %v8516_v33  ;;  %v7377_v33 = vcombine.high %v5369_v30, %v5377_v63  ;;  %v5474_v63 = vld [vmem:[#allocation50 + $0x348] sm:$0xff] }
0x1746   : > { %6221 = vmatprep.subr.bf16.mxu0 %v7377_v33 }
0x1747   : > { %7681 = vmatpush3.bf16.msra.mxu1 %v8517_v17  ;;  %v5378_v17 = vld [vmem:[#allocation50 + $0x48] sm:$0xff] }
0x1748   : > { %7682 = vmatprep.subr.bf16.mxu1 %v8518_v49  ;;  %v5385_v49 = vld [vmem:[#allocation50 + $0x80] sm:$0xff] }
0x174b   : > { %7683 = vmatpush3.bf16.msra.mxu1 %v8519_v11  ;;  %v5393_v11 = vld [vmem:[#allocation50 + $0xc0] sm:$0xff] }
0x174c   : > { %7684 = vmatprep.subr.bf16.mxu1 %v8520_v7  ;;  %v7378_v7 = vcombine.low %v5370_v38, %v5378_v17 }
0x180d   : > { %v4943_v41 = vpop.f32.mrb[76].mxu1 }
0x180e   : > { %v4944_v46 = vadd.f32 %v7330_v56, %v4943_v41  ;;  %v7994_v20 = vpop.f32.mrb[77].mxu1 }
0x180f   : > { %v4946_v12 = vpop.f32.mrb[78].mxu1  ;;  %v8522_v20 = vld [vmem:[#allocation44 + $0x70] sm:$0xff]  }
0x1810   : > { %v4950_v60 = vadd.f32 %v4944_v46, %v10678_v50  ;;  %v4947_v34 = vadd.f32 %v7330_v56, %v4946_v12  ;;  %v7995_v13 = vpop.f32.mrb[79].mxu1  ;;  %v8521_v46 = vld [vmem:[#allocation44 + $0x28] sm:$0xff]   ;;  %v8523_v12 = vld [vmem:[#allocation44 + $0x30] sm:$0xff]  }
0x1811   : > { %7685 = vmatpush3.bf16.msra.mxu1 %v8521_v46  ;;  %v5009_v13 = vld [vmem:[#allocation42] sm:$0x3]  ;;  %v5402_v46 = vld [vmem:[#allocation50 + $0x108] sm:$0xff] }
0x1812   : > { %v4951_v59 = vadd.f32 %v4947_v34, %v10680_v28  ;;  %4952 = vadd.xlane.f32.xlu0 %v4950_v60  ;;  %7686 = vmatprep.subr.bf16.mxu1 %v8522_v20  ;;  %v8525_v34 = vld [vmem:[#allocation44 + $0x38] sm:$0xff]   ;;  %v5018_v52 = vrot.slane %v5009_v13, %v10372_v5 }
0x1814   : > { %4954 = vadd.xlane.f32.xlu1 %v4951_v59 }
0x1815   : > { %7687 = vmatpush3.bf16.msra.mxu1 %v8523_v12  ;;  %v5410_v12 = vld [vmem:[#allocation50 + $0x148] sm:$0xff] }
0x189f   : > { %v4953_v0 = vpop.xlane.xlu0 %4952 }
0x18a0   : > { %v4956_v39 = vmul.f32 0.0078125, %v4953_v0 }
0x18a1   : > { %v4955_v44 = vpop.xlane.xlu1 %4954 }
0x18a2   : > { %v4958_v21 = vsub.f32 %v4950_v60, %v4956_v39  ;;  %v4957_v27 = vmul.f32 0.0078125, %v4955_v44  ;;  %v8524_v60 = vld [vmem:[#allocation44 + $0x78] sm:$0xff]  }
0x18a3   : > { %7688 = vmatprep.subr.bf16.mxu1 %v8524_v60 }
0x18a4   : > { %v10964_v50 = vsub.f32 %v4951_v59, %v4957_v27  ;;  %v4960_v6 = vmul.f32 %v4958_v21, %v4958_v21  ;;  %7689 = vmatpush3.bf16.msra.mxu1 %v8525_v34  ;;  %v5014_v59 = vrot.slane %v5009_v13, %v10355_v54  ;;  %v7410_v34 = vcombine.low %v5402_v46, %v5410_v12 }
0x18a5   : > { %v7411_v13 = vcombine.high %v5402_v46, %v5410_v12 }
0x18a6   : > { %4962 = vadd.xlane.f32.xlu0 %v4960_v6  ;;  %v4961_v28 = vmul.f32 %v10964_v50, %v10964_v50 }
0x18aa   : > { %4964 = vadd.xlane.f32.xlu0 %v4961_v28 }
0x1933   : > { %v4963_v47 = vpop.xlane.xlu0 %4962 }
0x1934   : > { %v4966_v42 = vmul.f32 0.0078125, %v4963_v47  ;;  %v7379_v47 = vcombine.high %v5370_v38, %v5378_v17  ;;  %v5481_v17 = vld [vmem:[#allocation50 + $0x380] sm:$0xff] }
0x1936   : > { %v4968_v35 = vadd.f32 1e-05, %v4966_v42  ;;  %v7393_v42 = vcombine.high %v5385_v49, %v5393_v11  ;;  %6264 = vmatprep.subr.bf16.mxu1 %v7379_v47  ;;  %v5490_v47 = vld [vmem:[#allocation50 + $0x3c8] sm:$0xff] }
0x1937   : > { %v4965_v18 = vpop.xlane.xlu0 %4964 }
0x1938   : > { %8662 = vrsqrt.f32 %v4968_v35  ;;  %v4967_v23 = vmul.f32 0.0078125, %v4965_v18  ;;  %v5386_v35 = vld [vmem:[#allocation50 + $0x88] sm:$0xff] }
0x1939   : > { %v5394_v18 = vld [vmem:[#allocation50 + $0xc8] sm:$0xff] }
0x193a   : > { %v4969_v9 = vadd.f32 1e-05, %v4967_v23  ;;  %v7395_v23 = vcombine.high %v5386_v35, %v5394_v18 }
0x193c   : > { %8664 = vrsqrt.f32 %v4969_v9  ;;  %v7392_v9 = vcombine.low %v5385_v49, %v5393_v11  ;;  %v5489_v49 = vld [vmem:[#allocation50 + $0x3c0] sm:$0xff]  ;;  %v5482_v11 = vld [vmem:[#allocation50 + $0x388] sm:$0xff] }
0x1942   : > { %v8663_v61 = vpop.eup %8662 }
0x1943   : > { %v4972_v4 = vmul.f32 %v8663_v61, %v4958_v21  ;;  %v7394_v61 = vcombine.low %v5386_v35, %v5394_v18  ;;  %v7490_v35 = vcombine.low %v5482_v11, %v5490_v47  ;;  %v7491_v18 = vcombine.high %v5482_v11, %v5490_v47  ;;  %v5451_v47 = vld [vmem:[#allocation50 + $0x290] sm:$0xff] }
0x1945   : > { %v4981_v2 = vmul.f32 %v7339_v55, %v4972_v4 }
0x1946   : > { %v8665_v10 = vpop.eup %8664 }
0x1947   : > { %v4973_v40 = vmul.f32 %v8665_v10, %v10964_v50  ;;  %v4990_v19 = vadd.f32 %v7340_v8, %v4981_v2 }
0x1949   : > { %v4982_v31 = vmul.f32 %v7339_v55, %v4973_v40 }
0x194b   : > { %v4991_v56 = vadd.f32 %v7340_v8, %v4982_v31 }
0x194d   : > { %v4992_v41 = vpack.c.bf16 %v4991_v56, %v4990_v19 }
0x194f   : > { %5134 = vmatmul.mubr.bf16.vlgmr.msra.gmra.mrb[88].mxu0 %v4992_v41  ;;  %v5409_v41 = vld [vmem:[#allocation50 + $0x140] sm:$0xff] }
0x1950   : > { %6253 = vmatprep.mubr.bf16.mxu0 %v9670_v45  ;;  %6222 = vmatpush1.bf16.msra.mxu0 %v7376_v22 }
0x1951   : > { %6223 = vmatprep.subr.bf16.mxu0 %v7393_v42  ;;  %v7488_v42 = vcombine.low %v5481_v17, %v5489_v49 }
0x1954   : > { %6224 = vmatpush1.bf16.msra.mxu0 %v7392_v9  ;;  %v5379_v9 = vld [vmem:[#allocation50 + $0x50] sm:$0xff] }
0x1a22   : > { %v5135_v14 = vpop.f32.mrb[88].mxu0 }
0x1a23   : > { %v5136_v58 = vadd.f32 %v5135_v14, %v5014_v59  ;;  %v5137_v53 = vpop.f32.mrb[89].mxu0  ;;  %v5418_v14 = vld [vmem:[#allocation50 + $0x188] sm:$0xff] }
0x1a24   : > { %v5138_v0 = vadd.f32 %v5137_v53, %v5018_v52  ;;  %v5139_v39 = vpop.f32.mrb[90].mxu0  ;;  %v5426_v53 = vld [vmem:[#allocation50 + $0x1c8] sm:$0xff] }
0x1a25   : > { %v5140_v44 = vadd.f32 %v5139_v39, %v5014_v59  ;;  %v5141_v21 = vpop.f32.mrb[91].mxu0  ;;  %v5144_v50 = vmax.f32 %v5136_v58, 0.0  ;;  %v5417_v59 = vld [vmem:[#allocation50 + $0x180] sm:$0xff]  ;;  %v7426_v39 = vcombine.low %v5418_v14, %v5426_v53 }
0x1a26   : > { %v5142_v27 = vadd.f32 %v5141_v21, %v5018_v52  ;;  %v5145_v28 = vmax.f32 %v5138_v0, 0.0  ;;  %v5425_v52 = vld [vmem:[#allocation50 + $0x1c0] sm:$0xff] }
0x1a27   : > { %v5146_v6 = vmax.f32 %v5140_v44, 0.0  ;;  %v7425_v58 = vcombine.high %v5417_v59, %v5425_v52  ;;  %v7424_v0 = vcombine.low %v5417_v59, %v5425_v52  ;;  %v7427_v44 = vcombine.high %v5418_v14, %v5426_v53  ;;  %v5433_v21 = vld [vmem:[#allocation50 + $0x200] sm:$0xff] }
0x1a28   : > { %v5147_v62 = vmax.f32 %v5142_v27, 0.0  ;;  %v5441_v27 = vld [vmem:[#allocation50 + $0x240] sm:$0xff] }
0x1a29   : > { %v5148_v26 = vpack.c.bf16 %v5146_v6, %v5144_v50  ;;  %v5434_v50 = vld [vmem:[#allocation50 + $0x208] sm:$0xff]  ;;  %v7441_v6 = vcombine.high %v5433_v21, %v5441_v27 }
0x1a2a   : > { %v5149_v32 = vpack.c.bf16 %v5147_v62, %v5145_v28  ;;  %v5442_v28 = vld [vmem:[#allocation50 + $0x248] sm:$0xff]  ;;  %v7440_v62 = vcombine.low %v5433_v21, %v5441_v27  ;;  %v5396_v21 = vld [vmem:[#allocation50 + $0xd8] sm:$0xff] }
0x1a2c   : > { %5317 = vmatprep.mubr.bf16.mxu1 %v5149_v32  ;;  %v7443_v32 = vcombine.high %v5434_v50, %v5442_v28 }
0x1a2d   : > { %5318 = vmatmul.mubr.bf16.vlgmr.msra.gmra.mrb[80].mxu1 %v5148_v26  ;;  %v7442_v26 = vcombine.low %v5434_v50, %v5442_v28 }
0x1a2e   : > { %6296 = vmatprep.mubr.bf16.mxu1 %v9670_v45  ;;  %6265 = vmatpush1.bf16.msra.mxu1 %v7378_v7  ;;  %v7489_v7 = vcombine.high %v5481_v17, %v5489_v49 }
0x1a2f   : > { %6266 = vmatprep.subr.bf16.mxu1 %v7395_v23  ;;  %v5371_v23 = vld [vmem:[#allocation50 + $0x10] sm:$0xff] }
0x1a32   : > { %6267 = vmatpush1.bf16.msra.mxu1 %v7394_v61  ;;  %v5372_v61 = vld [vmem:[#allocation50 + $0x18] sm:$0xff] }
0x1a33   : > { %6268 = vmatprep.subr.bf16.mxu1 %v7411_v13 }
0x1a36   : > { %6269 = vmatpush1.bf16.msra.mxu1 %v7410_v34  ;;  %v7374_v34 = vld [vmem:[#allocation47] ss:$0 sm:$0xff] }
0x1a37   : > { %6270 = vmatprep.subr.bf16.mxu1 %v7427_v44  ;;  %v5388_v44 = vld [vmem:[#allocation50 + $0x98] sm:$0xff] }
0x1a3a   : > { %6271 = vmatpush1.bf16.msra.mxu1 %v7426_v39  ;;  %v5395_v39 = vld [vmem:[#allocation50 + $0xd0] sm:$0xff] }
0x1a3b   : > { %6272 = vmatprep.subr.bf16.mxu1 %v7443_v32  ;;  %v5411_v32 = vld [vmem:[#allocation50 + $0x150] sm:$0xff] }
0x1a3e   : > { %6273 = vmatpush1.bf16.msra.mxu1 %v7442_v26  ;;  %v5403_v26 = vld [vmem:[#allocation50 + $0x110] sm:$0xff] }
0x1b00   : > { %v7690_v51 = vpop.f32.mrb[80].mxu1 }
0x1b01   : > { %v7691_v24 = vpop.f32.mrb[81].mxu1 }
0x1b02   : > { %v7692_v1 = vadd.f32 %v7691_v24, %v7690_v51  ;;  %v7693_v36 = vpop.f32.mrb[82].mxu1  ;;  %v5449_v51 = vld [vmem:[#allocation50 + $0x280] sm:$0xff]  ;;  %v5450_v24 = vld [vmem:[#allocation50 + $0x288] sm:$0xff] }
0x1b03   : > { %v7694_v16 = vpop.f32.mrb[83].mxu1 }
0x1b04   : > { %v5320_v43 = vadd.f32 %v7692_v1, %v7357_v57  ;;  %v7695_v25 = vadd.f32 %v7694_v16, %v7693_v36  ;;  %v5458_v36 = vld [vmem:[#allocation50 + $0x2c8] sm:$0xff] }
0x1b06   : > { %v5323_v29 = vadd.f32 %v7695_v25, %v7357_v57  ;;  %v5326_v37 = vadd.f32 %v5320_v43, %v4990_v19  ;;  %v5457_v57 = vld [vmem:[#allocation50 + $0x2c0] sm:$0xff]  ;;  %v7458_v43 = vcombine.low %v5450_v24, %v5458_v36  ;;  %v7459_v25 = vcombine.high %v5450_v24, %v5458_v36  ;;  %v5419_v36 = vld [vmem:[#allocation50 + $0x190] sm:$0xff] }
0x1b07   : > { %v7457_v1 = vcombine.high %v5449_v51, %v5457_v57  ;;  %v7456_v16 = vcombine.low %v5449_v51, %v5457_v57  ;;  %v5404_v51 = vld [vmem:[#allocation50 + $0x118] sm:$0xff]  ;;  %v7398_v57 = vcombine.low %v5388_v44, %v5396_v21  ;;  %v7413_v24 = vcombine.high %v5403_v26, %v5411_v32 }
0x1b08   : > { %5328 = vadd.xlane.f32.xlu0 %v5326_v37  ;;  %v5327_v15 = vadd.f32 %v5323_v29, %v4991_v56  ;;  %v5401_v56 = vld [vmem:[#allocation50 + $0x100] sm:$0xff]  ;;  %6274 = vmatprep.subr.bf16.mxu1 %v7459_v25  ;;  %v5428_v25 = vld [vmem:[#allocation50 + $0x1d8] sm:$0xff] }
0x1b09   : > { %v7409_v20 = vcombine.high %v5401_v56, %v5409_v41  ;;  %v7408_v60 = vcombine.low %v5401_v56, %v5409_v41  ;;  %v5465_v29 = vld [vmem:[#allocation50 + $0x300] sm:$0xff]  ;;  %6275 = vmatpush1.bf16.msra.mxu1 %v7458_v43  ;;  %v5420_v43 = vld [vmem:[#allocation50 + $0x198] sm:$0xff] }
0x1b0a   : > { %5330 = vadd.xlane.f32.xlu1 %v5327_v15  ;;  %v7430_v49 = vcombine.low %v5420_v43, %v5428_v25 }
0x1b0b   : > { %6225 = vmatprep.subr.bf16.mxu0 %v7409_v20 }
0x1b0c   : > { %6226 = vmatpush1.bf16.msra.mxu0 %v7408_v60 }
0x1b0d   : > { %6227 = vmatprep.subr.bf16.mxu0 %v7425_v58  ;;  %v7375_v58 = vld [vmem:[#allocation48] ss:$0 sm:$0xff] }
0x1b10   : > { %6228 = vmatpush1.bf16.msra.mxu0 %v7424_v0  ;;  %v5387_v0 = vld [vmem:[#allocation50 + $0x90] sm:$0xff] }
0x1b11   : > { %6229 = vmatprep.subr.bf16.mxu0 %v7441_v6  ;;  %v7397_v28 = vcombine.high %v5387_v0, %v5395_v39 }
0x1b14   : > { %6230 = vmatpush1.bf16.msra.mxu0 %v7440_v62  ;;  %v7399_v62 = vcombine.high %v5388_v44, %v5396_v21 }
0x1b15   : > { %6231 = vmatprep.subr.bf16.mxu0 %v7457_v1 }
0x1b18   : > { %6232 = vmatpush1.bf16.msra.mxu0 %v7456_v16  ;;  %v5427_v16 = vld [vmem:[#allocation50 + $0x1d0] sm:$0xff] }
0x1b19   : > { %v7428_v17 = vcombine.low %v5419_v36, %v5427_v16 }
0x1b95   : > { %v5329_v4 = vpop.xlane.xlu0 %5328 }
0x1b96   : > { %v5332_v55 = vmul.f32 0.0078125, %v5329_v4  ;;  %v7380_v4 = vcombine.low %v5371_v23, %v5379_v9 }
0x1b97   : > { %v5331_v10 = vpop.xlane.xlu1 %5330 }
0x1b98   : > { %v10973_v40 = vsub.f32 %v5326_v37, %v5332_v55  ;;  %v5333_v2 = vmul.f32 0.0078125, %v5331_v10  ;;  %v5473_v37 = vld [vmem:[#allocation50 + $0x340] sm:$0xff]  ;;  %v7381_v55 = vcombine.high %v5371_v23, %v5379_v9  ;;  %v5380_v10 = vld [vmem:[#allocation50 + $0x58] sm:$0xff] }
0x1b99   : > { %v7473_v30 = vcombine.high %v5465_v29, %v5473_v37  ;;  %v7472_v38 = vcombine.low %v5465_v29, %v5473_v37  ;;  %v7412_v29 = vcombine.low %v5403_v26, %v5411_v32  ;;  %v5390_v26 = vld [vmem:[#allocation50 + $0xa8] sm:$0xff] }
0x1b9a   : > { %v10975_v8 = vsub.f32 %v5327_v15, %v5333_v2  ;;  %v5336_v31 = vmul.f32 %v10973_v40, %v10973_v40  ;;  %v5466_v15 = vld [vmem:[#allocation50 + $0x308] sm:$0xff]  ;;  %v7382_v2 = vcombine.low %v5372_v61, %v5380_v10 }
0x1b9b   : > { %v7474_v22 = vcombine.low %v5466_v15, %v5474_v63  ;;  %v7475_v33 = vcombine.high %v5466_v15, %v5474_v63  ;;  %6233 = vmatprep.subr.bf16.mxu0 %v7473_v30  ;;  %v7429_v15 = vcombine.high %v5419_v36, %v5427_v16  ;;  %v7431_v30 = vcombine.high %v5420_v43, %v5428_v25  ;;  %v5435_v63 = vld [vmem:[#allocation50 + $0x210] sm:$0xff]  ;;  %v5398_v32 = vld [vmem:[#allocation50 + $0xe8] sm:$0xff] }
0x1b9c   : > { %5338 = vadd.xlane.f32.xlu0 %v5336_v31  ;;  %v5337_v19 = vmul.f32 %v10975_v8, %v10975_v8  ;;  %6234 = vmatpush1.bf16.msra.mxu0 %v7472_v38  ;;  %v7383_v31 = vcombine.high %v5372_v61, %v5380_v10  ;;  %v5443_v38 = vld [vmem:[#allocation50 + $0x250] sm:$0xff]  ;;  %v5406_v36 = vld [vmem:[#allocation50 + $0x128] sm:$0xff]  ;;  %v7402_v25 = vcombine.low %v5390_v26, %v5398_v32 }
0x1b9d   : > { %6276 = vmatprep.subr.bf16.mxu1 %v7475_v33  ;;  %6235 = vmatprep.subr.bf16.mxu0 %v7489_v7  ;;  %v5444_v33 = vld [vmem:[#allocation50 + $0x258] sm:$0xff]  ;;  %v7445_v11 = vcombine.high %v5435_v63, %v5443_v38  ;;  %v7444_v23 = vcombine.low %v5435_v63, %v5443_v38  ;;  %v5475_v10 = vld [vmem:[#allocation50 + $0x350] sm:$0xff]  ;;  %v5414_v16 = vld [vmem:[#allocation50 + $0x168] sm:$0xff] }
0x1b9e   : > { %5340 = vadd.xlane.f32.xlu1 %v5337_v19  ;;  %6277 = vmatpush1.bf16.msra.mxu1 %v7474_v22  ;;  %v5436_v22 = vld [vmem:[#allocation50 + $0x218] sm:$0xff]  ;;  %v5422_v63 = vld [vmem:[#allocation50 + $0x1a8] sm:$0xff] }
0x1b9f   : > { %6278 = vmatprep.subr.bf16.mxu1 %v7491_v18  ;;  %v7447_v7 = vcombine.high %v5436_v22, %v5444_v33  ;;  %v5460_v18 = vld [vmem:[#allocation50 + $0x2d8] sm:$0xff]  ;;  %v7446_v9 = vcombine.low %v5436_v22, %v5444_v33  ;;  %v5430_v38 = vld [vmem:[#allocation50 + $0x1e8] sm:$0xff]  ;;  %v7418_v33 = vcombine.low %v5406_v36, %v5414_v16 }
0x1ba0   : > { %6236 = vmatpush1.bf16.msra.mxu0 %v7488_v42  ;;  %v5459_v42 = vld [vmem:[#allocation50 + $0x2d0] sm:$0xff] }
0x1ba1   : > { %6307 = vmatprep.subr.bf16.mxu0 %v7381_v55  ;;  %v7461_v61 = vcombine.high %v5451_v47, %v5459_v42  ;;  %v5467_v55 = vld [vmem:[#allocation50 + $0x310] sm:$0xff] }
0x1ba2   : > { %6279 = vmatpush1.bf16.msra.mxu1 %v7490_v35  ;;  %v5452_v35 = vld [vmem:[#allocation50 + $0x298] sm:$0xff] }
0x1ba3   : > { %6350 = vmatprep.subr.bf16.mxu1 %v7383_v31  ;;  %v5476_v31 = vld [vmem:[#allocation50 + $0x358] sm:$0xff] }
0x1c29   : > { %v5339_v19 = vpop.xlane.xlu0 %5338 }
0x1c2a   : > { %v5342_v56 = vmul.f32 0.0078125, %v5339_v19  ;;  %v7460_v19 = vcombine.low %v5451_v47, %v5459_v42  ;;  %v5438_v47 = vld [vmem:[#allocation50 + $0x228] sm:$0xff] }
0x1c2b   : > { %v5341_v41 = vpop.xlane.xlu1 %5340  ;;  %v5446_v42 = vld [vmem:[#allocation50 + $0x268] sm:$0xff] }
0x1c2c   : > { %v5344_v46 = vadd.f32 1e-05, %v5342_v56  ;;  %v5343_v20 = vmul.f32 0.0078125, %v5341_v41  ;;  %v7462_v56 = vcombine.low %v5452_v35, %v5460_v18  ;;  %v7477_v41 = vcombine.high %v5467_v55, %v5475_v10 }
0x1c2e   : > { %8666 = vrsqrt.f32 %v5344_v46  ;;  %v5345_v12 = vadd.f32 1e-05, %v5343_v20  ;;  %v5483_v20 = vld [vmem:[#allocation50 + $0x390] sm:$0xff] }
0x1c30   : > { %8668 = vrsqrt.f32 %v5345_v12  ;;  %v5491_v12 = vld [vmem:[#allocation50 + $0x3d0] sm:$0xff] }
0x1c31   : > { %v7492_v44 = vcombine.low %v5483_v20, %v5491_v12 }
0x1c38   : > { %v8667_v60 = vpop.eup %8666 }
0x1c39   : > { %v5348_v13 = vmul.f32 %v8667_v60, %v10973_v40  ;;  %v5412_v40 = vld [vmem:[#allocation50 + $0x158] sm:$0xff] }
0x1c3a   : > { %v8669_v59 = vpop.eup %8668  ;;  %v7415_v1 = vcombine.high %v5404_v51, %v5412_v40  ;;  %v7414_v37 = vcombine.low %v5404_v51, %v5412_v40  ;;  %v5484_v60 = vld [vmem:[#allocation50 + $0x398] sm:$0xff] }
0x1c3b   : > { %v5357_v52 = vmul.f32 %v7374_v34, %v5348_v13  ;;  %v5349_v14 = vmul.f32 %v8669_v59, %v10975_v8  ;;  %v7396_v8 = vcombine.low %v5387_v0, %v5395_v39  ;;  %v7476_v13 = vcombine.low %v5467_v55, %v5475_v10  ;;  %v5374_v0 = vld [vmem:[#allocation50 + $0x28] sm:$0xff] }
0x1c3c   : > { %v5382_v39 = vld [vmem:[#allocation50 + $0x68] sm:$0xff] }
0x1c3d   : > { %v5358_v53 = vmul.f32 %v7374_v34, %v5349_v14  ;;  %v5366_v27 = vadd.f32 %v7375_v58, %v5357_v52  ;;  %v5492_v34 = vld [vmem:[#allocation50 + $0x3d8] sm:$0xff]  ;;  %v7493_v52 = vcombine.high %v5483_v20, %v5491_v12  ;;  %v7386_v40 = vcombine.low %v5374_v0, %v5382_v39  ;;  %v5454_v55 = vld [vmem:[#allocation50 + $0x2a8] sm:$0xff] }
0x1c3e   : > { %v7495_v14 = vcombine.high %v5484_v60, %v5492_v34  ;;  %v7494_v21 = vcombine.low %v5484_v60, %v5492_v34  ;;  %v5462_v10 = vld [vmem:[#allocation50 + $0x2e8] sm:$0xff] }
0x1c3f   : > { %v5367_v50 = vadd.f32 %v7375_v58, %v5358_v53  ;;  %v5373_v58 = vld [vmem:[#allocation50 + $0x20] sm:$0xff]  ;;  %v5470_v20 = vld [vmem:[#allocation50 + $0x328] sm:$0xff]  ;;  %v7466_v34 = vcombine.low %v5454_v55, %v5462_v10 }
0x1c40   : > { %v5381_v53 = vld [vmem:[#allocation50 + $0x60] sm:$0xff]  ;;  %v5478_v12 = vld [vmem:[#allocation50 + $0x368] sm:$0xff] }
0x1c41   : > { %v10983_v6 = vpack.c.bf16 %v5367_v50, %v5366_v27  ;;  %v7385_v27 = vcombine.high %v5373_v58, %v5381_v53  ;;  %v7387_v50 = vcombine.high %v5374_v0, %v5382_v39  ;;  %v7384_v51 = vcombine.low %v5373_v58, %v5381_v53  ;;  %v5486_v58 = vld [vmem:[#allocation50 + $0x3a8] sm:$0xff] }
0x1c42   : > { %v5494_v53 = vld [vmem:[#allocation50 + $0x3e8] sm:$0xff]  ;;  %v7482_v39 = vcombine.low %v5470_v20, %v5478_v12 }
0x1c43   : > { %6254 = vmatmul.mubr.bf16.vlgmr.msra.gmra.mrb[92].mxu0 %v10983_v6  ;;  %6297 = vmatmul.mubr.bf16.vlgmr.msra.gmra.mrb[84].mxu1 %v10983_v6 }
0x1c44   : > { %6308 = vmatpush1.bf16.msra.mxu0 %v7380_v4  ;;  %6351 = vmatpush1.bf16.msra.mxu1 %v7382_v2  ;;  %v7463_v4 = vcombine.high %v5452_v35, %v5460_v18  ;;  %v5468_v2 = vld [vmem:[#allocation50 + $0x318] sm:$0xff]  ;;  %v7434_v18 = vcombine.low %v5422_v63, %v5430_v38 }
0x1c45   : > { %6309 = vmatprep.subr.bf16.mxu0 %v7397_v28  ;;  %6352 = vmatprep.subr.bf16.mxu1 %v7399_v62  ;;  %v7479_v46 = vcombine.high %v5468_v2, %v5476_v31  ;;  %v7478_v59 = vcombine.low %v5468_v2, %v5476_v31  ;;  %v5389_v28 = vld [vmem:[#allocation50 + $0xa0] sm:$0xff]  ;;  %v7450_v31 = vcombine.low %v5438_v47, %v5446_v42 }
0x1c46   : > { %6339 = vmatprep.mubr.bf16.mxu0 %v9670_v45  ;;  %6382 = vmatprep.mubr.bf16.mxu1 %v9670_v45  ;;  %v5397_v62 = vld [vmem:[#allocation50 + $0xe0] sm:$0xff] }
0x1c47   : > { %v7400_v43 = vcombine.low %v5389_v28, %v5397_v62 }
0x1c48   : > { %6310 = vmatpush1.bf16.msra.mxu0 %v7396_v8  ;;  %6353 = vmatpush1.bf16.msra.mxu1 %v7398_v57  ;;  %v7401_v8 = vcombine.high %v5389_v28, %v5397_v62  ;;  %v7403_v57 = vcombine.high %v5390_v26, %v5398_v32  ;;  %v5376_v28 = vld [vmem:[#allocation50 + $0x38] sm:$0xff]  ;;  %v7498_v32 = vcombine.low %v5486_v58, %v5494_v53 }
0x1c49   : > { %6311 = vmatprep.subr.bf16.mxu0 %v7413_v24  ;;  %6354 = vmatprep.subr.bf16.mxu1 %v7415_v1  ;;  %v5405_v24 = vld [vmem:[#allocation50 + $0x120] sm:$0xff]  ;;  %v5384_v62 = vld [vmem:[#allocation50 + $0x78] sm:$0xff] }
0x1c4a   : > { %v5413_v1 = vld [vmem:[#allocation50 + $0x160] sm:$0xff] }
0x1c4b   : > { %v7416_v22 = vcombine.low %v5405_v24, %v5413_v1 }
0x1c4c   : > { %6312 = vmatpush1.bf16.msra.mxu0 %v7412_v29  ;;  %6355 = vmatpush1.bf16.msra.mxu1 %v7414_v37  ;;  %v7417_v29 = vcombine.high %v5405_v24, %v5413_v1  ;;  %v7419_v37 = vcombine.high %v5406_v36, %v5414_v16  ;;  %v5392_v24 = vld [vmem:[#allocation50 + $0xb8] sm:$0xff]  ;;  %v7390_v16 = vcombine.low %v5376_v28, %v5384_v62 }
0x1c4d   : > { %6313 = vmatprep.subr.bf16.mxu0 %v7429_v15  ;;  %6356 = vmatprep.subr.bf16.mxu1 %v7431_v30  ;;  %v5421_v15 = vld [vmem:[#allocation50 + $0x1a0] sm:$0xff]  ;;  %v5400_v1 = vld [vmem:[#allocation50 + $0xf8] sm:$0xff] }
0x1c4e   : > { %v5429_v30 = vld [vmem:[#allocation50 + $0x1e0] sm:$0xff] }
0x1c4f   : > { %v7432_v35 = vcombine.low %v5421_v15, %v5429_v30 }
0x1c50   : > { %6314 = vmatpush1.bf16.msra.mxu0 %v7428_v17  ;;  %6357 = vmatpush1.bf16.msra.mxu1 %v7430_v49  ;;  %v7433_v17 = vcombine.high %v5421_v15, %v5429_v30  ;;  %v7435_v49 = vcombine.high %v5422_v63, %v5430_v38  ;;  %v5408_v15 = vld [vmem:[#allocation50 + $0x138] sm:$0xff]  ;;  %v7406_v38 = vcombine.low %v5392_v24, %v5400_v1 }
0x1c51   : > { %6315 = vmatprep.subr.bf16.mxu0 %v7445_v11  ;;  %6358 = vmatprep.subr.bf16.mxu1 %v7447_v7  ;;  %v5437_v11 = vld [vmem:[#allocation50 + $0x220] sm:$0xff]  ;;  %v5416_v30 = vld [vmem:[#allocation50 + $0x178] sm:$0xff] }
0x1c52   : > { %v5445_v7 = vld [vmem:[#allocation50 + $0x260] sm:$0xff] }
0x1c53   : > { %v7448_v2 = vcombine.low %v5437_v11, %v5445_v7 }
0x1c54   : > { %6316 = vmatpush1.bf16.msra.mxu0 %v7444_v23  ;;  %6359 = vmatpush1.bf16.msra.mxu1 %v7446_v9  ;;  %v7449_v23 = vcombine.high %v5437_v11, %v5445_v7  ;;  %v7451_v9 = vcombine.high %v5438_v47, %v5446_v42  ;;  %v5424_v11 = vld [vmem:[#allocation50 + $0x1b8] sm:$0xff]  ;;  %v7422_v42 = vcombine.low %v5408_v15, %v5416_v30 }
0x1c55   : > { %6317 = vmatprep.subr.bf16.mxu0 %v7461_v61  ;;  %6360 = vmatprep.subr.bf16.mxu1 %v7463_v4  ;;  %v5453_v61 = vld [vmem:[#allocation50 + $0x2a0] sm:$0xff]  ;;  %v5432_v7 = vld [vmem:[#allocation50 + $0x1f8] sm:$0xff] }
0x1c56   : > { %v5461_v4 = vld [vmem:[#allocation50 + $0x2e0] sm:$0xff] }
0x1c57   : > { %v7464_v60 = vcombine.low %v5453_v61, %v5461_v4 }
0x1c58   : > { %6318 = vmatpush1.bf16.msra.mxu0 %v7460_v19  ;;  %6361 = vmatpush1.bf16.msra.mxu1 %v7462_v56  ;;  %v7465_v19 = vcombine.high %v5453_v61, %v5461_v4  ;;  %v7467_v56 = vcombine.high %v5454_v55, %v5462_v10  ;;  %v5440_v61 = vld [vmem:[#allocation50 + $0x238] sm:$0xff]  ;;  %v7438_v10 = vcombine.low %v5424_v11, %v5432_v7 }
0x1c59   : > { %6319 = vmatprep.subr.bf16.mxu0 %v7477_v41  ;;  %6362 = vmatprep.subr.bf16.mxu1 %v7479_v46  ;;  %v5469_v41 = vld [vmem:[#allocation50 + $0x320] sm:$0xff]  ;;  %v5448_v4 = vld [vmem:[#allocation50 + $0x278] sm:$0xff] }
0x1c5a   : > { %v5477_v46 = vld [vmem:[#allocation50 + $0x360] sm:$0xff] }
0x1c5b   : > { %v7480_v0 = vcombine.low %v5469_v41, %v5477_v46 }
0x1c5c   : > { %6320 = vmatpush1.bf16.msra.mxu0 %v7476_v13  ;;  %6363 = vmatpush1.bf16.msra.mxu1 %v7478_v59  ;;  %v7481_v13 = vcombine.high %v5469_v41, %v5477_v46  ;;  %v7483_v59 = vcombine.high %v5470_v20, %v5478_v12  ;;  %v5464_v41 = vld [vmem:[#allocation50 + $0x2f8] sm:$0xff]  ;;  %v7454_v20 = vcombine.low %v5440_v61, %v5448_v4 }
0x1c5d   : > { %6321 = vmatprep.subr.bf16.mxu0 %v7493_v52  ;;  %6364 = vmatprep.subr.bf16.mxu1 %v7495_v14  ;;  %v5485_v52 = vld [vmem:[#allocation50 + $0x3a0] sm:$0xff] }
0x1c5e   : > { %v5493_v14 = vld [vmem:[#allocation50 + $0x3e0] sm:$0xff] }
0x1c5f   : > { %v7496_v26 = vcombine.low %v5485_v52, %v5493_v14 }
0x1c60   : > { %6322 = vmatpush1.bf16.msra.mxu0 %v7492_v44  ;;  %6365 = vmatpush1.bf16.msra.mxu1 %v7494_v21  ;;  %v7497_v44 = vcombine.high %v5485_v52, %v5493_v14  ;;  %v7499_v21 = vcombine.high %v5486_v58, %v5494_v53  ;;  %v5480_v52 = vld [vmem:[#allocation50 + $0x378] sm:$0xff] }
0x1c61   : > { %6393 = vmatprep.subr.bf16.mxu0 %v7385_v27  ;;  %6436 = vmatprep.subr.bf16.mxu1 %v7387_v50  ;;  %v5375_v27 = vld [vmem:[#allocation50 + $0x30] sm:$0xff] }
0x1c62   : > { %v5383_v50 = vld [vmem:[#allocation50 + $0x70] sm:$0xff] }
0x1c63   : > { %6340 = vmatmul.mubr.bf16.vlgmr.msra.gmra.mrb[96].mxu0 %v10983_v6  ;;  %6383 = vmatmul.mubr.bf16.vlgmr.msra.gmra.mrb[88].mxu1 %v10983_v6  ;;  %v7388_v36 = vcombine.low %v5375_v27, %v5383_v50 }
0x1c64   : > { %6394 = vmatpush1.bf16.msra.mxu0 %v7384_v51  ;;  %6437 = vmatpush1.bf16.msra.mxu1 %v7386_v40  ;;  %v7389_v51 = vcombine.high %v5375_v27, %v5383_v50  ;;  %v7391_v40 = vcombine.high %v5376_v28, %v5384_v62  ;;  %v5496_v27 = vld [vmem:[#allocation50 + $0x3f8] sm:$0xff] }
0x1c65   : > { %6395 = vmatprep.subr.bf16.mxu0 %v7401_v8  ;;  %6438 = vmatprep.subr.bf16.mxu1 %v7403_v57  ;;  %v5391_v8 = vld [vmem:[#allocation50 + $0xb0] sm:$0xff] }
0x1c66   : > { %6425 = vmatprep.mubr.bf16.mxu0 %v9670_v45  ;;  %6468 = vmatprep.mubr.bf16.mxu1 %v9670_v45  ;;  %v5399_v57 = vld [vmem:[#allocation50 + $0xf0] sm:$0xff] }
0x1c67   : > { %v7404_v63 = vcombine.low %v5391_v8, %v5399_v57 }
0x1c68   : > { %6396 = vmatpush1.bf16.msra.mxu0 %v7400_v43  ;;  %6439 = vmatpush1.bf16.msra.mxu1 %v7402_v25  ;;  %v7405_v43 = vcombine.high %v5391_v8, %v5399_v57  ;;  %v7407_v25 = vcombine.high %v5392_v24, %v5400_v1  ;;  %v5515_v8 = vsub.s32 3, %v10352_v48 }
0x1c69   : > { %6397 = vmatprep.subr.bf16.mxu0 %v7417_v29  ;;  %6440 = vmatprep.subr.bf16.mxu1 %v7419_v37  ;;  %v5407_v29 = vld [vmem:[#allocation50 + $0x130] sm:$0xff] }
0x1c6a   : > { %v5415_v37 = vld [vmem:[#allocation50 + $0x170] sm:$0xff] }
0x1c6b   : > { %v7420_v47 = vcombine.low %v5407_v29, %v5415_v37 }
0x1c6c   : > { %6398 = vmatpush1.bf16.msra.mxu0 %v7416_v22  ;;  %6441 = vmatpush1.bf16.msra.mxu1 %v7418_v33  ;;  %v7421_v22 = vcombine.high %v5407_v29, %v5415_v37  ;;  %v7423_v33 = vcombine.high %v5408_v15, %v5416_v30 }
0x1c6d   : > { %6399 = vmatprep.subr.bf16.mxu0 %v7433_v17  ;;  %6442 = vmatprep.subr.bf16.mxu1 %v7435_v49  ;;  %v5423_v17 = vld [vmem:[#allocation50 + $0x1b0] sm:$0xff] }
0x1c6e   : > { %v5431_v49 = vld [vmem:[#allocation50 + $0x1f0] sm:$0xff] }
0x1c6f   : > { %v7436_v55 = vcombine.low %v5423_v17, %v5431_v49 }
0x1c70   : > { %6400 = vmatpush1.bf16.msra.mxu0 %v7432_v35  ;;  %6443 = vmatpush1.bf16.msra.mxu1 %v7434_v18  ;;  %v7437_v35 = vcombine.high %v5423_v17, %v5431_v49  ;;  %v7439_v18 = vcombine.high %v5424_v11, %v5432_v7 }
0x1c71   : > { %6401 = vmatprep.subr.bf16.mxu0 %v7449_v23  ;;  %6444 = vmatprep.subr.bf16.mxu1 %v7451_v9  ;;  %v5439_v23 = vld [vmem:[#allocation50 + $0x230] sm:$0xff] }
0x1c72   : > { %v5447_v9 = vld [vmem:[#allocation50 + $0x270] sm:$0xff] }
0x1c73   : > { %v7452_v46 = vcombine.low %v5439_v23, %v5447_v9 }
0x1c74   : > { %6402 = vmatpush1.bf16.msra.mxu0 %v7448_v2  ;;  %6445 = vmatpush1.bf16.msra.mxu1 %v7450_v31  ;;  %v7453_v2 = vcombine.high %v5439_v23, %v5447_v9  ;;  %v5455_v31 = vld [vmem:[#allocation50 + $0x2b0] sm:$0xff] }
0x1c75   : > { %6403 = vmatprep.subr.bf16.mxu0 %v7465_v19  ;;  %6446 = vmatprep.subr.bf16.mxu1 %v7467_v56  ;;  %v5463_v19 = vld [vmem:[#allocation50 + $0x2f0] sm:$0xff]  ;;  %v5456_v56 = vld [vmem:[#allocation50 + $0x2b8] sm:$0xff] }
0x1c76   : > { %v7469_v12 = vcombine.high %v5455_v31, %v5463_v19  ;;  %v7468_v14 = vcombine.low %v5455_v31, %v5463_v19  ;;  %v7470_v58 = vcombine.low %v5456_v56, %v5464_v41  ;;  %v5519_v31 = vsub.s32 4, %v10352_v48 }
0x1c77   : > { %v5527_v19 = vsub.s32 6, %v10352_v48 }
0x1c78   : > { %6404 = vmatpush1.bf16.msra.mxu0 %v7464_v60  ;;  %6447 = vmatpush1.bf16.msra.mxu1 %v7466_v34  ;;  %v7471_v60 = vcombine.high %v5456_v56, %v5464_v41  ;;  %v5471_v34 = vld [vmem:[#allocation50 + $0x330] sm:$0xff]  ;;  %v5523_v56 = vsub.s32 5, %v10352_v48  ;;  %v5531_v41 = vsub.s32 7, %v10352_v48 }
0x1c79   : > { %6405 = vmatprep.subr.bf16.mxu0 %v7481_v13  ;;  %6448 = vmatprep.subr.bf16.mxu1 %v7483_v59  ;;  %v5479_v13 = vld [vmem:[#allocation50 + $0x370] sm:$0xff]  ;;  %v5472_v59 = vld [vmem:[#allocation50 + $0x338] sm:$0xff] }
0x1c7a   : > { %v7485_v53 = vcombine.high %v5471_v34, %v5479_v13  ;;  %v7484_v50 = vcombine.low %v5471_v34, %v5479_v13  ;;  %v7486_v28 = vcombine.low %v5472_v59, %v5480_v52 }
0x1c7c   : > { %6406 = vmatpush1.bf16.msra.mxu0 %v7480_v0  ;;  %6449 = vmatpush1.bf16.msra.mxu1 %v7482_v39  ;;  %v7487_v0 = vcombine.high %v5472_v59, %v5480_v52  ;;  %v5487_v39 = vld [vmem:[#allocation50 + $0x3b0] sm:$0xff] }
0x1c7d   : > { %6407 = vmatprep.subr.bf16.mxu0 %v7497_v44  ;;  %6450 = vmatprep.subr.bf16.mxu1 %v7499_v21  ;;  %v5495_v44 = vld [vmem:[#allocation50 + $0x3f0] sm:$0xff]  ;;  %v5488_v21 = vld [vmem:[#allocation50 + $0x3b8] sm:$0xff] }
0x1c7e   : > { %v7501_v62 = vcombine.high %v5487_v39, %v5495_v44 }
0x1c80   : > { %6408 = vmatpush1.bf16.msra.mxu0 %v7496_v26  ;;  %6451 = vmatpush1.bf16.msra.mxu1 %v7498_v32  ;;  %v7503_v26 = vcombine.high %v5488_v21, %v5496_v27  ;;  %v7500_v32 = vcombine.low %v5487_v39, %v5495_v44 }
0x1c81   : > { %6479 = vmatprep.subr.bf16.mxu0 %v7389_v51  ;;  %6522 = vmatprep.subr.bf16.mxu1 %v7391_v40  ;;  %v7502_v51 = vcombine.low %v5488_v21, %v5496_v27  ;;  %v5497_v40 = vld [vmem:[#allocation51] sm:$0xff] }
0x1c82   : > { %v5504_v57 = vrot.slane %v5497_v40, %v10355_v54  ;;  %v5512_v24 = vrot.slane %v5497_v40, %v10369_v3  ;;  %v5508_v1 = vrot.slane %v5497_v40, %v10372_v5 }
0x1c83   : > { %6426 = vmatmul.mubr.bf16.vlgmr.msra.gmra.mrb[100].mxu0 %v10983_v6  ;;  %6469 = vmatmul.mubr.bf16.vlgmr.msra.gmra.mrb[92].mxu1 %v10983_v6 }
0x1c84   : > { %6480 = vmatpush1.bf16.msra.mxu0 %v7388_v36  ;;  %6523 = vmatpush1.bf16.msra.mxu1 %v7390_v16  ;;  %v5516_v36 = vrot.slane %v5497_v40, %v5515_v8 }
0x1c85   : > { %6481 = vmatprep.subr.bf16.mxu0 %v7405_v43  ;;  %6524 = vmatprep.subr.bf16.mxu1 %v7407_v25 }
0x1c86   : > { %6511 = vmatprep.mubr.bf16.mxu0 %v9670_v45  ;;  %6554 = vmatprep.mubr.bf16.mxu1 %v9670_v45  ;;  %v7455_v45 = vcombine.high %v5440_v61, %v5448_v4 }
0x1c88   : > { %6482 = vmatpush1.bf16.msra.mxu0 %v7404_v63  ;;  %6525 = vmatpush1.bf16.msra.mxu1 %v7406_v38 }
0x1c89   : > { %6483 = vmatprep.subr.bf16.mxu0 %v7421_v22  ;;  %6526 = vmatprep.subr.bf16.mxu1 %v7423_v33 }
0x1c8c   : > { %6484 = vmatpush1.bf16.msra.mxu0 %v7420_v47  ;;  %6527 = vmatpush1.bf16.msra.mxu1 %v7422_v42 }
0x1c8d   : > { %6485 = vmatprep.subr.bf16.mxu0 %v7437_v35  ;;  %6528 = vmatprep.subr.bf16.mxu1 %v7439_v18 }
0x1c90   : > { %6486 = vmatpush1.bf16.msra.mxu0 %v7436_v55  ;;  %6529 = vmatpush1.bf16.msra.mxu1 %v7438_v10 }
0x1c91   : > { %6487 = vmatprep.subr.bf16.mxu0 %v7453_v2  ;;  %6530 = vmatprep.subr.bf16.mxu1 %v7455_v45 }
0x1c94   : > { %6488 = vmatpush1.bf16.msra.mxu0 %v7452_v46  ;;  %6531 = vmatpush1.bf16.msra.mxu1 %v7454_v20  ;;  %v5520_v46 = vrot.slane %v5497_v40, %v5519_v31  ;;  %v5528_v20 = vrot.slane %v5497_v40, %v5527_v19 }
0x1c95   : > { %6489 = vmatprep.subr.bf16.mxu0 %v7469_v12  ;;  %6532 = vmatprep.subr.bf16.mxu1 %v7471_v60  ;;  %v5524_v12 = vrot.slane %v5497_v40, %v5523_v56  ;;  %v5532_v60 = vrot.slane %v5497_v40, %v5531_v41 }
0x1c98   : > { %6490 = vmatpush1.bf16.msra.mxu0 %v7468_v14  ;;  %6533 = vmatpush1.bf16.msra.mxu1 %v7470_v58 }
0x1c99   : > { %6491 = vmatprep.subr.bf16.mxu0 %v7485_v53  ;;  %6534 = vmatprep.subr.bf16.mxu1 %v7487_v0 }
0x1c9c   : > { %6492 = vmatpush1.bf16.msra.mxu0 %v7484_v50  ;;  %6535 = vmatpush1.bf16.msra.mxu1 %v7486_v28 }
0x1c9d   : > { %6493 = vmatprep.subr.bf16.mxu0 %v7501_v62  ;;  %6536 = vmatprep.subr.bf16.mxu1 %v7503_v26 }
0x1ca0   : > { %6494 = vmatpush1.bf16.msra.mxu0 %v7500_v32  ;;  %6537 = vmatpush1.bf16.msra.mxu1 %v7502_v51 }
0x1ca3   : > { %6512 = vmatmul.mubr.bf16.vlgmr.msra.gmra.mrb[104].mxu0 %v10983_v6  ;;  %6555 = vmatmul.mubr.bf16.vlgmr.msra.gmra.mrb[96].mxu1 %v10983_v6 }
0x1d16   : > { %v6255_v16 = vpop.f32.mrb[92].mxu0  ;;  %v6298_v43 = vpop.f32.mrb[84].mxu1 }
0x1d17   : > { %v6256_v25 = vadd.f32 %v6255_v16, %v5504_v57  ;;  %v6299_v29 = vadd.f32 %v6298_v43, %v5512_v24  ;;  %v6257_v37 = vpop.f32.mrb[93].mxu0  ;;  %v6300_v15 = vpop.f32.mrb[85].mxu1 }
0x1d18   : > { %v6258_v6 = vadd.f32 %v6257_v37, %v5508_v1  ;;  %v6301_v30 = vadd.f32 %v6300_v15, %v5516_v36  ;;  %v6259_v63 = vpop.f32.mrb[94].mxu0  ;;  %v6302_v38 = vpop.f32.mrb[86].mxu1  ;;  %v5498_v15 = vld [vmem:[#allocation51 + $0x8] sm:$0xff] }
0x1d19   : > { %v6565_v22 = vmax.f32 %v6256_v25, 0.0  ;;  %v6567_v33 = vmax.f32 %v6299_v29, 0.0  ;;  %v6260_v17 = vadd.f32 %v6259_v63, %v5504_v57  ;;  %v6303_v49 = vadd.f32 %v6302_v38, %v5512_v24  ;;  %v6261_v11 = vpop.f32.mrb[95].mxu0  ;;  %v6304_v7 = vpop.f32.mrb[87].mxu1 }
0x1d1a   : > { %v6566_v47 = vmax.f32 %v6258_v6, 0.0  ;;  %v6568_v42 = vmax.f32 %v6301_v30, 0.0  ;;  %v6262_v35 = vadd.f32 %v6261_v11, %v5508_v1  ;;  %v6305_v18 = vadd.f32 %v6304_v7, %v5516_v36 }
0x1d1b   : > { %v6581_v23 = vmax.f32 %v6260_v17, 0.0  ;;  %v6583_v9 = vmax.f32 %v6303_v49, 0.0  ;;  %v5536_v6 = vrot.slane %v5498_v15, %v10355_v54  ;;  %v5544_v30 = vrot.slane %v5498_v15, %v10369_v3 }
0x1d1c   : > { %v7524_v61 = vpack.c.bf16 %v6566_v47, %v6565_v22  ;;  %v7525_v4 = vpack.c.bf16 %v6568_v42, %v6567_v33  ;;  %v6582_v55 = vmax.f32 %v6262_v35, 0.0  ;;  %v6584_v10 = vmax.f32 %v6305_v18, 0.0 }
0x1d1d   : > { %v5540_v63 = vrot.slane %v5498_v15, %v10372_v5  ;;  %v5548_v38 = vrot.slane %v5498_v15, %v5515_v8 }
0x1d1e   : > { %6693 = vst [vmem:[%s11007_s22] sm:$0xff] %v7524_v61  ;;  %6694 = vst [vmem:[%s11007_s22 + $0x8] sm:$0xff] %v7525_v4  ;;  %v7532_v2 = vpack.c.bf16 %v6582_v55, %v6581_v23  ;;  %v7533_v45 = vpack.c.bf16 %v6584_v10, %v6583_v9 }
0x1d20   : > { %6701 = vst [vmem:[%s11007_s22 + $0x40] sm:$0xff] %v7532_v2  ;;  %6702 = vst [vmem:[%s11007_s22 + $0x48] sm:$0xff] %v7533_v45 }
0x1d36   : > { %v6341_v34 = vpop.f32.mrb[96].mxu0  ;;  %v6384_v13 = vpop.f32.mrb[88].mxu1 }
0x1d37   : > { %v6342_v59 = vadd.f32 %v6341_v34, %v5520_v46  ;;  %v6385_v52 = vadd.f32 %v6384_v13, %v5528_v20  ;;  %v6343_v14 = vpop.f32.mrb[97].mxu0  ;;  %v6386_v58 = vpop.f32.mrb[89].mxu1 }
0x1d38   : > { %v6344_v53 = vadd.f32 %v6343_v14, %v5524_v12  ;;  %v6387_v0 = vadd.f32 %v6386_v58, %v5532_v60  ;;  %v6345_v39 = vpop.f32.mrb[98].mxu0  ;;  %v6388_v44 = vpop.f32.mrb[90].mxu1  ;;  %v5556_v14 = vrot.slane %v5498_v15, %v5523_v56  ;;  %v5564_v58 = vrot.slane %v5498_v15, %v5531_v41 }
0x1d39   : > { %v6569_v21 = vmax.f32 %v6342_v59, 0.0  ;;  %v6571_v27 = vmax.f32 %v6385_v52, 0.0  ;;  %v6346_v50 = vadd.f32 %v6345_v39, %v5520_v46  ;;  %v6389_v28 = vadd.f32 %v6388_v44, %v5528_v20  ;;  %v6347_v62 = vpop.f32.mrb[99].mxu0  ;;  %v6390_v26 = vpop.f32.mrb[91].mxu1 }
0x1d3a   : > { %v6570_v32 = vmax.f32 %v6344_v53, 0.0  ;;  %v6572_v51 = vmax.f32 %v6387_v0, 0.0  ;;  %v6348_v40 = vadd.f32 %v6347_v62, %v5524_v12  ;;  %v6391_v57 = vadd.f32 %v6390_v26, %v5532_v60 }
0x1d3b   : > { %v6585_v24 = vmax.f32 %v6346_v50, 0.0  ;;  %v6587_v1 = vmax.f32 %v6389_v28, 0.0  ;;  %v5552_v59 = vrot.slane %v5498_v15, %v5519_v31  ;;  %v5560_v52 = vrot.slane %v5498_v15, %v5527_v19 }
0x1d3c   : > { %v7526_v36 = vpack.c.bf16 %v6570_v32, %v6569_v21  ;;  %v7527_v16 = vpack.c.bf16 %v6572_v51, %v6571_v27  ;;  %v6586_v43 = vmax.f32 %v6348_v40, 0.0  ;;  %v6588_v25 = vmax.f32 %v6391_v57, 0.0 }
0x1d3e   : > { %6695 = vst [vmem:[%s11007_s22 + $0x10] sm:$0xff] %v7526_v36  ;;  %6696 = vst [vmem:[%s11007_s22 + $0x18] sm:$0xff] %v7527_v16  ;;  %v7534_v29 = vpack.c.bf16 %v6586_v43, %v6585_v24  ;;  %v7535_v37 = vpack.c.bf16 %v6588_v25, %v6587_v1 }
0x1d40   : > { %6703 = vst [vmem:[%s11007_s22 + $0x50] sm:$0xff] %v7534_v29  ;;  %6704 = vst [vmem:[%s11007_s22 + $0x58] sm:$0xff] %v7535_v37 }
0x1d56   : > { %v6427_v22 = vpop.f32.mrb[100].mxu0  ;;  %v6470_v33 = vpop.f32.mrb[92].mxu1 }
0x1d57   : > { %v6428_v17 = vadd.f32 %v6427_v22, %v5536_v6  ;;  %v6471_v49 = vadd.f32 %v6470_v33, %v5544_v30  ;;  %v6429_v11 = vpop.f32.mrb[101].mxu0  ;;  %v6472_v7 = vpop.f32.mrb[93].mxu1 }
0x1d58   : > { %v6430_v47 = vadd.f32 %v6429_v11, %v5540_v63  ;;  %v6473_v42 = vadd.f32 %v6472_v7, %v5548_v38  ;;  %v6431_v35 = vpop.f32.mrb[102].mxu0  ;;  %v6474_v18 = vpop.f32.mrb[94].mxu1 }
0x1d59   : > { %v6573_v23 = vmax.f32 %v6428_v17, 0.0  ;;  %v6575_v54 = vmax.f32 %v6471_v49, 0.0  ;;  %v6432_v3 = vadd.f32 %v6431_v35, %v5536_v6  ;;  %v6475_v9 = vadd.f32 %v6474_v18, %v5544_v30  ;;  %v6433_v5 = vpop.f32.mrb[103].mxu0  ;;  %v6476_v61 = vpop.f32.mrb[95].mxu1 }
0x1d5a   : > { %v6574_v8 = vmax.f32 %v6430_v47, 0.0  ;;  %v6576_v4 = vmax.f32 %v6473_v42, 0.0  ;;  %v6434_v55 = vadd.f32 %v6433_v5, %v5540_v63  ;;  %v6477_v10 = vadd.f32 %v6476_v61, %v5548_v38 }
0x1d5b   : > { %v6589_v2 = vmax.f32 %v6432_v3, 0.0  ;;  %v6591_v45 = vmax.f32 %v6475_v9, 0.0 }
0x1d5c   : > { %v7528_v46 = vpack.c.bf16 %v6574_v8, %v6573_v23  ;;  %v7529_v20 = vpack.c.bf16 %v6576_v4, %v6575_v54  ;;  %v6590_v12 = vmax.f32 %v6434_v55, 0.0  ;;  %v6592_v60 = vmax.f32 %v6477_v10, 0.0 }
0x1d5e   : > { %6697 = vst [vmem:[%s11007_s22 + $0x20] sm:$0xff] %v7528_v46  ;;  %6698 = vst [vmem:[%s11007_s22 + $0x28] sm:$0xff] %v7529_v20  ;;  %v7536_v34 = vpack.c.bf16 %v6590_v12, %v6589_v2  ;;  %v7537_v13 = vpack.c.bf16 %v6592_v60, %v6591_v45 }
0x1d60   : > { %6705 = vst [vmem:[%s11007_s22 + $0x60] sm:$0xff] %v7536_v34  ;;  %6706 = vst [vmem:[%s11007_s22 + $0x68] sm:$0xff] %v7537_v13 }
0x1d76   : > { %v6513_v53 = vpop.f32.mrb[104].mxu0  ;;  %v6556_v0 = vpop.f32.mrb[96].mxu1 }
0x1d77   : > { %v6514_v39 = vadd.f32 %v6513_v53, %v5552_v59  ;;  %v6557_v44 = vadd.f32 %v6556_v0, %v5560_v52  ;;  %v6515_v21 = vpop.f32.mrb[105].mxu0  ;;  %v6558_v27 = vpop.f32.mrb[97].mxu1 }
0x1d78   : > { %v6516_v50 = vadd.f32 %v6515_v21, %v5556_v14  ;;  %v6559_v28 = vadd.f32 %v6558_v27, %v5564_v58  ;;  %v6517_v62 = vpop.f32.mrb[106].mxu0  ;;  %v6560_v26 = vpop.f32.mrb[98].mxu1 }
0x1d79   : > { %v6577_v31 = vmax.f32 %v6514_v39, 0.0  ;;  %v6579_v32 = vmax.f32 %v6557_v44, 0.0  ;;  %v6518_v19 = vadd.f32 %v6517_v62, %v5552_v59  ;;  %v6561_v51 = vadd.f32 %v6560_v26, %v5560_v52  ;;  %v6519_v56 = vpop.f32.mrb[107].mxu0  ;;  %v6562_v48 = vpop.f32.mrb[99].mxu1 }
0x1d7a   : > { %v6578_v41 = vmax.f32 %v6516_v50, 0.0  ;;  %v6580_v40 = vmax.f32 %v6559_v28, 0.0  ;;  %v6520_v57 = vadd.f32 %v6519_v56, %v5556_v14  ;;  %v6563_v24 = vadd.f32 %v6562_v48, %v5564_v58 }
0x1d7b   : > { %v6593_v1 = vmax.f32 %v6518_v19, 0.0  ;;  %v6595_v36 = vmax.f32 %v6561_v51, 0.0 }
0x1d7c   : > { %v7530_v16 = vpack.c.bf16 %v6578_v41, %v6577_v31  ;;  %v7531_v43 = vpack.c.bf16 %v6580_v40, %v6579_v32  ;;  %v6594_v25 = vmax.f32 %v6520_v57, 0.0  ;;  %v6596_v29 = vmax.f32 %v6563_v24, 0.0 }
0x1d7e   : > { %6699 = vst [vmem:[%s11007_s22 + $0x30] sm:$0xff] %v7530_v16  ;;  %6700 = vst [vmem:[%s11007_s22 + $0x38] sm:$0xff] %v7531_v43  ;;  %v7538_v37 = vpack.c.bf16 %v6594_v25, %v6593_v1  ;;  %v7539_v15 = vpack.c.bf16 %v6596_v29, %v6595_v36 }
0x1d80   : > { %6707 = vst [vmem:[%s11007_s22 + $0x70] sm:$0xff] %v7538_v37  ;;  %6708 = vst [vmem:[%s11007_s22 + $0x78] sm:$0xff] %v7539_v15 }
0x1d81 PF: > { %s97_s0 = sadd.s32 1, %s9592_s0  }
0x1d82   : > { %p94_p3 = scmp.ge.s32.totalorder %s97_s0, 4  }
0x1d84   :  { %96 = sbr.rel (!%p94_p3) target bundleno = 78 (0x4e), region = 354 }
0x1d8b   :  { %6730 = vsyncpa [#allocation3], 1 }
0x1d8c   :  { %6732 = vsyncpa [#allocation3 + $0x1], 1 }
0x1d8d   :  { %6733 = vsyncpa [#allocation7], 1 }
0x1d8e   :  { %6734 = vsyncpa [#allocation10], 1 }
0x1d8f   :  { %6735 = vsyncpa [#allocation13], 1 }
0x1d90   :  { %6736 = vsyncpa [#allocation16], 1 }
0x1d91   :  { %6737 = vsyncpa [#allocation19], 1 }
0x1d92   :  { %6738 = vsyncpa [#allocation22], 1 }
0x1d93   :  { %6739 = vsyncpa [#allocation25], 1 }
0x1d94   :  { %6740 = vsyncpa [#allocation28], 1 }
0x1d95   :  { %6741 = vsyncpa [#allocation31], 1 }
0x1d96   :  { %6742 = vsyncpa [#allocation34], 1 }
0x1d97   :  { %6743 = vsyncpa [#allocation37], 1 }
0x1d98   :  { %6744 = vsyncpa [#allocation40], 1 }
0x1d99   :  { %6745 = vsyncpa [#allocation43], 1 }
0x1d9a   :  { %6746 = vsyncpa [#allocation46], 1 }
0x1d9b   :  { %6747 = vsyncpa [#allocation49], 1 }
0x1d9c   :  { %6748 = vsyncpa [#allocation52], 1 }
0x1d9d   :  { %6749 = vsyncpa [#allocation4], 1 }
0x1d9e   :  { %6751 = vsyncpa [#allocation4 + $0x1], 1 }

// kernel: unet_forward.3
= control target key start
LH: loop header
LB: loop body
LE: loop exit
PB: predicated region body
PF: predicated region fallthrough
CT: control target
= control target key end

     0   :  { %s1822_s12 = smov 0   ;;  %s2039_s0 = inlined_call_operand.vmem [shape: bf16[2,1152,256], index: 0, kind: input, shape index: {}]   ;;  %s2040_s1 = inlined_call_operand.vmem [shape: bf16[2,1152], index: 1, kind: input, shape index: {}]   ;;  %s2041_s2 = inlined_call_operand.vmem [shape: f32[2,1], index: 2, kind: input, shape index: {}]   ;;  %s2042_s3 = inlined_call_operand.vmem [shape: f32[2,2,256], index: 3, kind: output, shape index: {}]  }
   0x1 LB: > { %s1390_s13 = sadd.s32 4294967295, %s1798_s12   ;;  %p1394_p0 = scmp.ge.s32.totalorder %s1798_s12, 1  ;;  %s1798_s12 = sphi %s1822_s12, %s13_s12  }
   0x2   : > { %p137_p1 = scmp.lt.s32.totalorder %s1798_s12, 3 }
   0x4   : > { %p138_p2 = pnand %p1394_p0, %p137_p1 }
   0x5   : > { %p161_p3 = scmp.lt.s32.totalorder (!%p138_p2), %s1390_s13, 1  ;;  %v172_v0 = vld [vmem:[%s2040_s1] sm:$0xff] (!%p138_p2)  ;;  %v330_v1 = vlaneseq (!%p138_p2)  ;;  %v1800_v2 = vmov (!%p138_p2), 1966171168   ;;  %v1801_v52 = vmov (!%p138_p2), 0  }
   0x6   : > { %141 = sbr.rel (%p138_p2) target bundleno = 397 (0x18d), region = 32  ;;  %v328_v3 = vunpack.c.l.s4 (!%p138_p2), %v1800_v2  ;;  %v326_v6 = vcombine.high (!%p138_p2), %v172_v0, %v172_v0  ;;  %1574 = vset.pattern.permute.xlu0 (!%p138_p2), %v1801_v52 }
   0x7   : > { %v331_v4 = vshrl.u32 (!%p138_p2), %v330_v1, 7 }
   0x8   : > { %v329_v5 = vunpack.c.0.s8 (!%p138_p2), %v328_v3 }
   0xa   : > { %v1836_v7 = vsub.s32 (!%p138_p2), %v329_v5, %v331_v4 }
   0xc   : > { %v1845_v9 = vrot.slane (!%p138_p2), %v172_v0, %v1836_v7  ;;  %v1848_v10 = vrot.slane (!%p138_p2), %v326_v6, %v1836_v7 }
   0xd   : > { %s2044_s13 = smov (!%p161_p3, %s1390_s13), 1 }
   0xe   : > { %s1563_s16 = smul.u32 1152, %s2044_s13  ;;  %v341_v14 = vcombine.high %v1845_v9, %v1845_v9  ;;  %v342_v15 = vcombine.high %v1848_v10, %v1848_v10  ;;  %s1546_s24 = sshll.u32 %s2044_s13, 2 }
   0xf   : > { %s170_s27 = scalar_lea.vmem %s2042_s3, %s1546_s24 }
  0x10   : > { %s1841_s19 = scalar_lea.vmem %s2039_s0, %s1563_s16  ;;  %v1861_v19 = vrot.slane %v341_v14, %v1836_v7  ;;  %v1864_v20 = vrot.slane %v342_v15, %v1836_v7 }
  0x11   : > { %v1575_v8 = vld [vmem:[%s1841_s19 + $0x4] ss:$8 sps:$4 sm:$0xff]   ;;  %v1579_v12 = vld [vmem:[%s1841_s19] ss:$8 sps:$4 sm:$0xff]   ;;  %v1581_v16 = vld [vmem:[%s1841_s19 + $0x14] ss:$8 sps:$4 sm:$0xff]  }
  0x12   : > { %v1577_v11 = vld [vmem:[%s1841_s19 + $0x204] ss:$8 sps:$4 sm:$0xff]   ;;  %1118 = vmatprep.subr.bf16.mxu1 %v1575_v8  ;;  %v1580_v13 = vld [vmem:[%s1841_s19 + $0x200] ss:$8 sps:$4 sm:$0xff]   ;;  %v1583_v17 = vld [vmem:[%s1841_s19 + $0x214] ss:$8 sps:$4 sm:$0xff]   ;;  %1150 = vmatprep.mubr.bf16.mxu1 %v1861_v19 }
  0x13   : > { %1200 = vmatprep.subr.bf16.mxu0 %v1577_v11  ;;  %1119 = vmatpush1.bf16.msra.mxu1 %v1579_v12  ;;  %v1585_v18 = vld [vmem:[%s1841_s19 + $0x10] ss:$8 sps:$4 sm:$0xff]   ;;  %v1587_v22 = vld [vmem:[%s1841_s19 + $0x24] ss:$8 sps:$4 sm:$0xff]   ;;  %v1591_v24 = vld [vmem:[%s1841_s19 + $0x20] ss:$8 sps:$4 sm:$0xff]  }
  0x14   : > { %1201 = vmatpush1.bf16.msra.mxu0 %v1580_v13  ;;  %1120 = vmatprep.subr.bf16.mxu1 %v1581_v16  ;;  %v1586_v21 = vld [vmem:[%s1841_s19 + $0x210] ss:$8 sps:$4 sm:$0xff]   ;;  %v1589_v23 = vld [vmem:[%s1841_s19 + $0x224] ss:$8 sps:$4 sm:$0xff]   ;;  %v1592_v25 = vld [vmem:[%s1841_s19 + $0x220] ss:$8 sps:$4 sm:$0xff]  }
  0x15   : > { %1202 = vmatprep.subr.bf16.mxu0 %v1583_v17  ;;  %1232 = vmatprep.mubr.bf16.mxu0 %v1864_v20  ;;  %v1593_v26 = vld [vmem:[%s1841_s19 + $0x34] ss:$8 sps:$4 sm:$0xff]   ;;  %v1597_v28 = vld [vmem:[%s1841_s19 + $0x30] ss:$8 sps:$4 sm:$0xff]   ;;  %v1599_v30 = vld [vmem:[%s1841_s19 + $0x44] ss:$8 sps:$4 sm:$0xff]  }
  0x16   : > { %v1595_v27 = vld [vmem:[%s1841_s19 + $0x234] ss:$8 sps:$4 sm:$0xff]   ;;  %v1598_v29 = vld [vmem:[%s1841_s19 + $0x230] ss:$8 sps:$4 sm:$0xff]   ;;  %v1601_v31 = vld [vmem:[%s1841_s19 + $0x244] ss:$8 sps:$4 sm:$0xff]  }
  0x17   : > { %1121 = vmatpush1.bf16.msra.mxu1 %v1585_v18  ;;  %v1603_v32 = vld [vmem:[%s1841_s19 + $0x40] ss:$8 sps:$4 sm:$0xff]   ;;  %v1605_v34 = vld [vmem:[%s1841_s19 + $0x54] ss:$8 sps:$4 sm:$0xff]   ;;  %v1609_v36 = vld [vmem:[%s1841_s19 + $0x50] ss:$8 sps:$4 sm:$0xff]  }
  0x18   : > { %1203 = vmatpush1.bf16.msra.mxu0 %v1586_v21  ;;  %1122 = vmatprep.subr.bf16.mxu1 %v1587_v22  ;;  %v1604_v33 = vld [vmem:[%s1841_s19 + $0x240] ss:$8 sps:$4 sm:$0xff]   ;;  %v1607_v35 = vld [vmem:[%s1841_s19 + $0x254] ss:$8 sps:$4 sm:$0xff]   ;;  %v1610_v37 = vld [vmem:[%s1841_s19 + $0x250] ss:$8 sps:$4 sm:$0xff]  }
  0x19   : > { %1204 = vmatprep.subr.bf16.mxu0 %v1589_v23  ;;  %v1611_v38 = vld [vmem:[%s1841_s19 + $0x64] ss:$8 sps:$4 sm:$0xff]   ;;  %v1615_v40 = vld [vmem:[%s1841_s19 + $0x60] ss:$8 sps:$4 sm:$0xff]   ;;  %v1617_v42 = vld [vmem:[%s1841_s19 + $0x74] ss:$8 sps:$4 sm:$0xff]  }
  0x1a   : > { %v1613_v39 = vld [vmem:[%s1841_s19 + $0x264] ss:$8 sps:$4 sm:$0xff]   ;;  %v1616_v41 = vld [vmem:[%s1841_s19 + $0x260] ss:$8 sps:$4 sm:$0xff]   ;;  %v1619_v43 = vld [vmem:[%s1841_s19 + $0x274] ss:$8 sps:$4 sm:$0xff]  }
  0x1b   : > { %1123 = vmatpush1.bf16.msra.mxu1 %v1591_v24  ;;  %v1621_v44 = vld [vmem:[%s1841_s19 + $0x70] ss:$8 sps:$4 sm:$0xff]   ;;  %v1623_v46 = vld [vmem:[%s1841_s19 + $0x84] ss:$8 sps:$4 sm:$0xff]   ;;  %v1627_v48 = vld [vmem:[%s1841_s19 + $0x80] ss:$8 sps:$4 sm:$0xff]   ;;  %v1932_v24 = vrot.slane %v1845_v9, %v1836_v7  ;;  %v374_v9 = vcombine.high %v1864_v20, %v1864_v20 }
  0x1c   : > { %1205 = vmatpush1.bf16.msra.mxu0 %v1592_v25  ;;  %1124 = vmatprep.subr.bf16.mxu1 %v1593_v26  ;;  %v1622_v45 = vld [vmem:[%s1841_s19 + $0x270] ss:$8 sps:$4 sm:$0xff]   ;;  %v1625_v47 = vld [vmem:[%s1841_s19 + $0x284] ss:$8 sps:$4 sm:$0xff]   ;;  %v1628_v49 = vld [vmem:[%s1841_s19 + $0x280] ss:$8 sps:$4 sm:$0xff]   ;;  %v1936_v25 = vrot.slane %v1848_v10, %v1836_v7 }
  0x1d   : > { %1206 = vmatprep.subr.bf16.mxu0 %v1595_v27  ;;  %v1629_v50 = vld [vmem:[%s1841_s19 + $0x94] ss:$8 sps:$4 sm:$0xff]   ;;  %v1633_v53 = vld [vmem:[%s1841_s19 + $0x90] ss:$8 sps:$4 sm:$0xff]   ;;  %v1635_v55 = vld [vmem:[%s1841_s19 + $0xa4] ss:$8 sps:$4 sm:$0xff]  }
  0x1e   : > { %v1631_v51 = vld [vmem:[%s1841_s19 + $0x294] ss:$8 sps:$4 sm:$0xff]   ;;  %v1634_v54 = vld [vmem:[%s1841_s19 + $0x290] ss:$8 sps:$4 sm:$0xff]   ;;  %v1637_v56 = vld [vmem:[%s1841_s19 + $0x2a4] ss:$8 sps:$4 sm:$0xff]  }
  0x1f   : > { %1125 = vmatpush1.bf16.msra.mxu1 %v1597_v28  ;;  %v1639_v57 = vld [vmem:[%s1841_s19 + $0xa0] ss:$8 sps:$4 sm:$0xff]   ;;  %v1641_v59 = vld [vmem:[%s1841_s19 + $0xb4] ss:$8 sps:$4 sm:$0xff]   ;;  %v1645_v61 = vld [vmem:[%s1841_s19 + $0xb0] ss:$8 sps:$4 sm:$0xff]   ;;  %v373_v28 = vcombine.high %v1861_v19, %v1861_v19 }
  0x20   : > { %1207 = vmatpush1.bf16.msra.mxu0 %v1598_v29  ;;  %1126 = vmatprep.subr.bf16.mxu1 %v1599_v30  ;;  %v1640_v58 = vld [vmem:[%s1841_s19 + $0x2a0] ss:$8 sps:$4 sm:$0xff]   ;;  %v1643_v60 = vld [vmem:[%s1841_s19 + $0x2b4] ss:$8 sps:$4 sm:$0xff]   ;;  %v1646_v62 = vld [vmem:[%s1841_s19 + $0x2b0] ss:$8 sps:$4 sm:$0xff]  }
  0x21   : > { %1208 = vmatprep.subr.bf16.mxu0 %v1601_v31  ;;  %v1647_v63 = vld [vmem:[%s1841_s19 + $0xc4] ss:$8 sps:$4 sm:$0xff]   ;;  %v1651_v1 = vld [vmem:[%s1841_s19 + $0xc0] ss:$8 sps:$4 sm:$0xff]   ;;  %v1653_v3 = vld [vmem:[%s1841_s19 + $0xd4] ss:$8 sps:$4 sm:$0xff]  }
  0x22   : > { %v1649_v0 = vld [vmem:[%s1841_s19 + $0x2c4] ss:$8 sps:$4 sm:$0xff]   ;;  %v1652_v2 = vld [vmem:[%s1841_s19 + $0x2c0] ss:$8 sps:$4 sm:$0xff]   ;;  %v1655_v4 = vld [vmem:[%s1841_s19 + $0x2d4] ss:$8 sps:$4 sm:$0xff]  }
  0x23   : > { %1127 = vmatpush1.bf16.msra.mxu1 %v1603_v32  ;;  %v1657_v5 = vld [vmem:[%s1841_s19 + $0xd0] ss:$8 sps:$4 sm:$0xff]   ;;  %v1659_v8 = vld [vmem:[%s1841_s19 + $0xe4] ss:$8 sps:$4 sm:$0xff]   ;;  %v1663_v12 = vld [vmem:[%s1841_s19 + $0xe0] ss:$8 sps:$4 sm:$0xff]  }
  0x24   : > { %1209 = vmatpush1.bf16.msra.mxu0 %v1604_v33  ;;  %1128 = vmatprep.subr.bf16.mxu1 %v1605_v34  ;;  %v1658_v6 = vld [vmem:[%s1841_s19 + $0x2d0] ss:$8 sps:$4 sm:$0xff]   ;;  %v1661_v11 = vld [vmem:[%s1841_s19 + $0x2e4] ss:$8 sps:$4 sm:$0xff]   ;;  %v1664_v13 = vld [vmem:[%s1841_s19 + $0x2e0] ss:$8 sps:$4 sm:$0xff]  }
  0x25   : > { %1210 = vmatprep.subr.bf16.mxu0 %v1607_v35  ;;  %v1665_v14 = vld [vmem:[%s1841_s19 + $0xf4] ss:$8 sps:$4 sm:$0xff]   ;;  %v1669_v16 = vld [vmem:[%s1841_s19 + $0xf0] ss:$8 sps:$4 sm:$0xff]   ;;  %v1673_v18 = vld [vmem:[%s1841_s19 + $0x104] ss:$8 sps:$4 sm:$0xff]  }
  0x26   : > { %v1667_v15 = vld [vmem:[%s1841_s19 + $0x2f4] ss:$8 sps:$4 sm:$0xff]   ;;  %v1670_v17 = vld [vmem:[%s1841_s19 + $0x2f0] ss:$8 sps:$4 sm:$0xff]   ;;  %v1677_v21 = vld [vmem:[%s1841_s19 + $0x304] ss:$8 sps:$4 sm:$0xff]  }
  0x27   : > { %1129 = vmatpush1.bf16.msra.mxu1 %v1609_v36  ;;  %v1671_v22 = vld [vmem:[%s1841_s19 + $0x100] ss:$8 sps:$4 sm:$0xff]   ;;  %v1680_v26 = vld [vmem:[%s1841_s19 + $0x114] ss:$8 sps:$4 sm:$0xff]   ;;  %v1678_v10 = vld [vmem:[%s1841_s19 + $0x110] ss:$8 sps:$4 sm:$0xff]  }
  0x28   : > { %1211 = vmatpush1.bf16.msra.mxu0 %v1610_v37  ;;  %1130 = vmatprep.subr.bf16.mxu1 %v1611_v38  ;;  %v1675_v23 = vld [vmem:[%s1841_s19 + $0x300] ss:$8 sps:$4 sm:$0xff]   ;;  %v1683_v27 = vld [vmem:[%s1841_s19 + $0x314] ss:$8 sps:$4 sm:$0xff]   ;;  %v1681_v29 = vld [vmem:[%s1841_s19 + $0x310] ss:$8 sps:$4 sm:$0xff]  }
  0x29   : > { %1212 = vmatprep.subr.bf16.mxu0 %v1613_v39  ;;  %v1686_v30 = vld [vmem:[%s1841_s19 + $0x124] ss:$8 sps:$4 sm:$0xff]   ;;  %v1684_v20 = vld [vmem:[%s1841_s19 + $0x120] ss:$8 sps:$4 sm:$0xff]   ;;  %v1692_v32 = vld [vmem:[%s1841_s19 + $0x134] ss:$8 sps:$4 sm:$0xff]  }
  0x2a   : > { %v1689_v19 = vld [vmem:[%s1841_s19 + $0x324] ss:$8 sps:$4 sm:$0xff]   ;;  %v1687_v31 = vld [vmem:[%s1841_s19 + $0x320] ss:$8 sps:$4 sm:$0xff]   ;;  %v1695_v33 = vld [vmem:[%s1841_s19 + $0x334] ss:$8 sps:$4 sm:$0xff]  }
  0x2b   : > { %1131 = vmatpush1.bf16.msra.mxu1 %v1615_v40  ;;  %v1690_v34 = vld [vmem:[%s1841_s19 + $0x130] ss:$8 sps:$4 sm:$0xff]   ;;  %v1698_v36 = vld [vmem:[%s1841_s19 + $0x144] ss:$8 sps:$4 sm:$0xff]   ;;  %v1696_v38 = vld [vmem:[%s1841_s19 + $0x140] ss:$8 sps:$4 sm:$0xff]  }
  0x2c   : > { %1213 = vmatpush1.bf16.msra.mxu0 %v1616_v41  ;;  %1132 = vmatprep.subr.bf16.mxu1 %v1617_v42  ;;  %v1693_v35 = vld [vmem:[%s1841_s19 + $0x330] ss:$8 sps:$4 sm:$0xff]   ;;  %v1701_v37 = vld [vmem:[%s1841_s19 + $0x344] ss:$8 sps:$4 sm:$0xff]   ;;  %v1699_v39 = vld [vmem:[%s1841_s19 + $0x340] ss:$8 sps:$4 sm:$0xff]  }
  0x2d   : > { %1214 = vmatprep.subr.bf16.mxu0 %v1619_v43  ;;  %v1704_v40 = vld [vmem:[%s1841_s19 + $0x154] ss:$8 sps:$4 sm:$0xff]   ;;  %v1702_v42 = vld [vmem:[%s1841_s19 + $0x150] ss:$8 sps:$4 sm:$0xff]  }
  0x2e   : > { %v1707_v41 = vld [vmem:[%s1841_s19 + $0x354] ss:$8 sps:$4 sm:$0xff]   ;;  %v1705_v43 = vld [vmem:[%s1841_s19 + $0x350] ss:$8 sps:$4 sm:$0xff]  }
  0x2f   : > { %1133 = vmatpush1.bf16.msra.mxu1 %v1621_v44  ;;  %v1710_v44 = vld [vmem:[%s1841_s19 + $0x164] ss:$8 sps:$4 sm:$0xff]  }
  0x30   : > { %1215 = vmatpush1.bf16.msra.mxu0 %v1622_v45  ;;  %1134 = vmatprep.subr.bf16.mxu1 %v1623_v46  ;;  %v1713_v45 = vld [vmem:[%s1841_s19 + $0x364] ss:$8 sps:$4 sm:$0xff]   ;;  %v1708_v46 = vld [vmem:[%s1841_s19 + $0x160] ss:$8 sps:$4 sm:$0xff]  }
  0x31   : > { %1216 = vmatprep.subr.bf16.mxu0 %v1625_v47  ;;  %v1711_v47 = vld [vmem:[%s1841_s19 + $0x360] ss:$8 sps:$4 sm:$0xff]  }
  0x33   : > { %1135 = vmatpush1.bf16.msra.mxu1 %v1627_v48  ;;  %v1716_v48 = vld [vmem:[%s1841_s19 + $0x174] ss:$8 sps:$4 sm:$0xff]  }
  0x34   : > { %1217 = vmatpush1.bf16.msra.mxu0 %v1628_v49  ;;  %1136 = vmatprep.subr.bf16.mxu1 %v1629_v50  ;;  %v1719_v49 = vld [vmem:[%s1841_s19 + $0x374] ss:$8 sps:$4 sm:$0xff]   ;;  %v1714_v50 = vld [vmem:[%s1841_s19 + $0x170] ss:$8 sps:$4 sm:$0xff]  }
  0x35   : > { %1218 = vmatprep.subr.bf16.mxu0 %v1631_v51  ;;  %v1717_v51 = vld [vmem:[%s1841_s19 + $0x370] ss:$8 sps:$4 sm:$0xff]  }
  0x37   : > { %1137 = vmatpush1.bf16.msra.mxu1 %v1633_v53  ;;  %v1722_v53 = vld [vmem:[%s1841_s19 + $0x184] ss:$8 sps:$4 sm:$0xff]  }
  0x38   : > { %1219 = vmatpush1.bf16.msra.mxu0 %v1634_v54  ;;  %1138 = vmatprep.subr.bf16.mxu1 %v1635_v55  ;;  %v1725_v54 = vld [vmem:[%s1841_s19 + $0x384] ss:$8 sps:$4 sm:$0xff]   ;;  %v1720_v55 = vld [vmem:[%s1841_s19 + $0x180] ss:$8 sps:$4 sm:$0xff]  }
  0x39   : > { %1220 = vmatprep.subr.bf16.mxu0 %v1637_v56  ;;  %v1723_v56 = vld [vmem:[%s1841_s19 + $0x380] ss:$8 sps:$4 sm:$0xff]  }
  0x3b   : > { %1139 = vmatpush1.bf16.msra.mxu1 %v1639_v57  ;;  %v318_v57 = vld [vmem:[%s2041_s2] sm:$0x3] }
  0x3c   : > { %1221 = vmatpush1.bf16.msra.mxu0 %v1640_v58  ;;  %1140 = vmatprep.subr.bf16.mxu1 %v1641_v59  ;;  %v1728_v58 = vld [vmem:[%s1841_s19 + $0x194] ss:$8 sps:$4 sm:$0xff]  }
  0x3d   : > { %1222 = vmatprep.subr.bf16.mxu0 %v1643_v60  ;;  %v1731_v59 = vld [vmem:[%s1841_s19 + $0x394] ss:$8 sps:$4 sm:$0xff]   ;;  %321 = vperm.xlu0 %1574, %v318_v57   ;;  %v1726_v60 = vld [vmem:[%s1841_s19 + $0x190] ss:$8 sps:$4 sm:$0xff]  }
  0x3f   : > { %1141 = vmatpush1.bf16.msra.mxu1 %v1645_v61  ;;  %v1729_v61 = vld [vmem:[%s1841_s19 + $0x390] ss:$8 sps:$4 sm:$0xff]  }
  0x40   : > { %1223 = vmatpush1.bf16.msra.mxu0 %v1646_v62  ;;  %1142 = vmatprep.subr.bf16.mxu1 %v1647_v63  ;;  %v1734_v62 = vld [vmem:[%s1841_s19 + $0x1a4] ss:$8 sps:$4 sm:$0xff]  }
  0x41   : > { %1224 = vmatprep.subr.bf16.mxu0 %v1649_v0  ;;  %v1737_v63 = vld [vmem:[%s1841_s19 + $0x3a4] ss:$8 sps:$4 sm:$0xff]   ;;  %v1732_v0 = vld [vmem:[%s1841_s19 + $0x1a0] ss:$8 sps:$4 sm:$0xff]  }
  0x43   : > { %1143 = vmatpush1.bf16.msra.mxu1 %v1651_v1  ;;  %v1735_v1 = vld [vmem:[%s1841_s19 + $0x3a0] ss:$8 sps:$4 sm:$0xff]  }
  0x44   : > { %1225 = vmatpush1.bf16.msra.mxu0 %v1652_v2  ;;  %1144 = vmatprep.subr.bf16.mxu1 %v1653_v3  ;;  %v1740_v2 = vld [vmem:[%s1841_s19 + $0x1b4] ss:$8 sps:$4 sm:$0xff]  }
  0x45   : > { %1226 = vmatprep.subr.bf16.mxu0 %v1655_v4  ;;  %v1743_v3 = vld [vmem:[%s1841_s19 + $0x3b4] ss:$8 sps:$4 sm:$0xff]   ;;  %v1738_v4 = vld [vmem:[%s1841_s19 + $0x1b0] ss:$8 sps:$4 sm:$0xff]  }
  0x47   : > { %1145 = vmatpush1.bf16.msra.mxu1 %v1657_v5  ;;  %v1741_v5 = vld [vmem:[%s1841_s19 + $0x3b0] ss:$8 sps:$4 sm:$0xff]  }
  0x48   : > { %1227 = vmatpush1.bf16.msra.mxu0 %v1658_v6  ;;  %1146 = vmatprep.subr.bf16.mxu1 %v1659_v8  ;;  %v1746_v6 = vld [vmem:[%s1841_s19 + $0x1c4] ss:$8 sps:$4 sm:$0xff]  }
  0x49   : > { %1228 = vmatprep.subr.bf16.mxu0 %v1661_v11  ;;  %v1749_v8 = vld [vmem:[%s1841_s19 + $0x3c4] ss:$8 sps:$4 sm:$0xff]   ;;  %v1744_v11 = vld [vmem:[%s1841_s19 + $0x1c0] ss:$8 sps:$4 sm:$0xff]  }
  0x4b   : > { %1147 = vmatpush1.bf16.msra.mxu1 %v1663_v12  ;;  %v1747_v12 = vld [vmem:[%s1841_s19 + $0x3c0] ss:$8 sps:$4 sm:$0xff]  }
  0x4c   : > { %1229 = vmatpush1.bf16.msra.mxu0 %v1664_v13  ;;  %1148 = vmatprep.subr.bf16.mxu1 %v1665_v14  ;;  %v1752_v13 = vld [vmem:[%s1841_s19 + $0x1d4] ss:$8 sps:$4 sm:$0xff]  }
  0x4d   : > { %1230 = vmatprep.subr.bf16.mxu0 %v1667_v15  ;;  %v1755_v14 = vld [vmem:[%s1841_s19 + $0x3d4] ss:$8 sps:$4 sm:$0xff]   ;;  %v1750_v15 = vld [vmem:[%s1841_s19 + $0x1d0] ss:$8 sps:$4 sm:$0xff]  }
  0x4f   : > { %1149 = vmatpush1.bf16.msra.mxu1 %v1669_v16  ;;  %v1753_v16 = vld [vmem:[%s1841_s19 + $0x3d0] ss:$8 sps:$4 sm:$0xff]  }
  0x50   : > { %1231 = vmatpush1.bf16.msra.mxu0 %v1670_v17  ;;  %1159 = vmatprep.subr.bf16.mxu1 %v1673_v18  ;;  %v1758_v17 = vld [vmem:[%s1841_s19 + $0x1e4] ss:$8 sps:$4 sm:$0xff]  }
  0x51   : > { %1241 = vmatprep.subr.bf16.mxu0 %v1677_v21  ;;  %v1761_v18 = vld [vmem:[%s1841_s19 + $0x3e4] ss:$8 sps:$4 sm:$0xff]   ;;  %v1756_v21 = vld [vmem:[%s1841_s19 + $0x1e0] ss:$8 sps:$4 sm:$0xff]  }
  0x52   : > { %1151 = vmatmul.mubr.bf16.vlgmr.msra.gmra.mrb[0].mxu1 %v1932_v24 }
  0x53   : > { %1233 = vmatmul.mubr.bf16.vlgmr.msra.gmra.mrb[0].mxu0 %v1936_v25  ;;  %1160 = vmatpush1.bf16.msra.mxu1 %v1671_v22  ;;  %v1759_v22 = vld [vmem:[%s1841_s19 + $0x3e0] ss:$8 sps:$4 sm:$0xff]  }
  0x54   : > { %1242 = vmatpush1.bf16.msra.mxu0 %v1675_v23  ;;  %1161 = vmatprep.subr.bf16.mxu1 %v1680_v26  ;;  %v1764_v23 = vld [vmem:[%s1841_s19 + $0x1f4] ss:$8 sps:$4 sm:$0xff]  }
  0x55   : > { %1243 = vmatprep.subr.bf16.mxu0 %v1683_v27  ;;  %1191 = vmatprep.mubr.bf16.mxu1 %v373_v28  ;;  %v1767_v26 = vld [vmem:[%s1841_s19 + $0x3f4] ss:$8 sps:$4 sm:$0xff]   ;;  %v1762_v27 = vld [vmem:[%s1841_s19 + $0x1f0] ss:$8 sps:$4 sm:$0xff]  }
  0x56   : > { %1273 = vmatprep.mubr.bf16.mxu0 %v374_v9  ;;  %v1765_v28 = vld [vmem:[%s1841_s19 + $0x3f0] ss:$8 sps:$4 sm:$0xff]   ;;  %v1770_v9 = vld [vmem:[%s1841_s19 + $0x404] ss:$8 sps:$4 sm:$0xff]  }
  0x57   : > { %1162 = vmatpush1.bf16.msra.mxu1 %v1678_v10  ;;  %v371_v10 = vcombine.high %v1932_v24, %v1932_v24  ;;  %v1776_v24 = vld [vmem:[%s1841_s19 + $0x424] ss:$8 sps:$4 sm:$0xff]  }
  0x58   : > { %1244 = vmatpush1.bf16.msra.mxu0 %v1681_v29  ;;  %1163 = vmatprep.subr.bf16.mxu1 %v1686_v30  ;;  %v372_v29 = vcombine.high %v1936_v25, %v1936_v25  ;;  %v1768_v30 = vld [vmem:[%s1841_s19 + $0x400] ss:$8 sps:$4 sm:$0xff]  }
  0x59   : > { %1245 = vmatprep.subr.bf16.mxu0 %v1689_v19  ;;  %v1773_v19 = vld [vmem:[%s1841_s19 + $0x414] ss:$8 sps:$4 sm:$0xff]   ;;  %v1774_v25 = vld [vmem:[%s1841_s19 + $0x420] ss:$8 sps:$4 sm:$0xff]  }
  0x5b   : > { %1164 = vmatpush1.bf16.msra.mxu1 %v1684_v20  ;;  %v1771_v20 = vld [vmem:[%s1841_s19 + $0x410] ss:$8 sps:$4 sm:$0xff]  }
  0x5c   : > { %1246 = vmatpush1.bf16.msra.mxu0 %v1687_v31  ;;  %1165 = vmatprep.subr.bf16.mxu1 %v1692_v32  ;;  %v1779_v31 = vld [vmem:[%s1841_s19 + $0x434] ss:$8 sps:$4 sm:$0xff]   ;;  %v1777_v32 = vld [vmem:[%s1841_s19 + $0x430] ss:$8 sps:$4 sm:$0xff]  }
  0x5d   : > { %1247 = vmatprep.subr.bf16.mxu0 %v1695_v33  ;;  %v1782_v33 = vld [vmem:[%s1841_s19 + $0x444] ss:$8 sps:$4 sm:$0xff]  }
  0x5f   : > { %1166 = vmatpush1.bf16.msra.mxu1 %v1690_v34  ;;  %v1780_v34 = vld [vmem:[%s1841_s19 + $0x440] ss:$8 sps:$4 sm:$0xff]  }
  0x60   : > { %1248 = vmatpush1.bf16.msra.mxu0 %v1693_v35  ;;  %1167 = vmatprep.subr.bf16.mxu1 %v1698_v36  ;;  %v1785_v35 = vld [vmem:[%s1841_s19 + $0x454] ss:$8 sps:$4 sm:$0xff]   ;;  %v1788_v36 = vld [vmem:[%s1841_s19 + $0x464] ss:$8 sps:$4 sm:$0xff]  }
  0x61   : > { %1249 = vmatprep.subr.bf16.mxu0 %v1701_v37  ;;  %v1786_v37 = vld [vmem:[%s1841_s19 + $0x460] ss:$8 sps:$4 sm:$0xff]  }
  0x63   : > { %1168 = vmatpush1.bf16.msra.mxu1 %v1696_v38  ;;  %v1791_v38 = vld [vmem:[%s1841_s19 + $0x474] ss:$8 sps:$4 sm:$0xff]  }
  0x64   : > { %1250 = vmatpush1.bf16.msra.mxu0 %v1699_v39  ;;  %1169 = vmatprep.subr.bf16.mxu1 %v1704_v40  ;;  %v1789_v39 = vld [vmem:[%s1841_s19 + $0x470] ss:$8 sps:$4 sm:$0xff]   ;;  %v1398_v40 = vld.sshfl [vmem:[%s2040_s1 + $0x8] sm:$0x1 pattern:$0x75316420] }
  0x65   : > { %1251 = vmatprep.subr.bf16.mxu0 %v1707_v41  ;;  %v388_v41 = vrot.slane %v1398_v40, %v1836_v7 }
  0x67   : > { %1170 = vmatpush1.bf16.msra.mxu1 %v1702_v42 }
  0x68   : > { %1252 = vmatpush1.bf16.msra.mxu0 %v1705_v43  ;;  %1171 = vmatprep.subr.bf16.mxu1 %v1710_v44 }
  0x69   : > { %1253 = vmatprep.subr.bf16.mxu0 %v1713_v45 }
  0x6b   : > { %1172 = vmatpush1.bf16.msra.mxu1 %v1708_v46 }
  0x6c   : > { %1254 = vmatpush1.bf16.msra.mxu0 %v1711_v47  ;;  %1173 = vmatprep.subr.bf16.mxu1 %v1716_v48 }
  0x6d   : > { %1255 = vmatprep.subr.bf16.mxu0 %v1719_v49 }
  0x6f   : > { %1174 = vmatpush1.bf16.msra.mxu1 %v1714_v50 }
  0x70   : > { %1256 = vmatpush1.bf16.msra.mxu0 %v1717_v51  ;;  %1175 = vmatprep.subr.bf16.mxu1 %v1722_v53 }
  0x71   : > { %1257 = vmatprep.subr.bf16.mxu0 %v1725_v54 }
  0x73   : > { %1176 = vmatpush1.bf16.msra.mxu1 %v1720_v55 }
  0x74   : > { %1258 = vmatpush1.bf16.msra.mxu0 %v1723_v56  ;;  %1177 = vmatprep.subr.bf16.mxu1 %v1728_v58 }
  0x75   : > { %1259 = vmatprep.subr.bf16.mxu0 %v1731_v59 }
  0x77   : > { %1178 = vmatpush1.bf16.msra.mxu1 %v1726_v60 }
  0x78   : > { %1260 = vmatpush1.bf16.msra.mxu0 %v1729_v61  ;;  %1179 = vmatprep.subr.bf16.mxu1 %v1734_v62 }
  0x79   : > { %1261 = vmatprep.subr.bf16.mxu0 %v1737_v63 }
  0x7b   : > { %1180 = vmatpush1.bf16.msra.mxu1 %v1732_v0 }
  0x7c   : > { %1262 = vmatpush1.bf16.msra.mxu0 %v1735_v1  ;;  %1181 = vmatprep.subr.bf16.mxu1 %v1740_v2 }
  0x7d   : > { %1263 = vmatprep.subr.bf16.mxu0 %v1743_v3 }
  0x7f   : > { %1182 = vmatpush1.bf16.msra.mxu1 %v1738_v4 }
  0x80   : > { %1264 = vmatpush1.bf16.msra.mxu0 %v1741_v5  ;;  %1183 = vmatprep.subr.bf16.mxu1 %v1746_v6 }
  0x81   : > { %1265 = vmatprep.subr.bf16.mxu0 %v1749_v8 }
  0x83   : > { %1184 = vmatpush1.bf16.msra.mxu1 %v1744_v11 }
  0x84   : > { %1266 = vmatpush1.bf16.msra.mxu0 %v1747_v12  ;;  %1185 = vmatprep.subr.bf16.mxu1 %v1752_v13 }
  0x85   : > { %1267 = vmatprep.subr.bf16.mxu0 %v1755_v14 }
  0x87   : > { %1186 = vmatpush1.bf16.msra.mxu1 %v1750_v15 }
  0x88   : > { %1268 = vmatpush1.bf16.msra.mxu0 %v1753_v16  ;;  %1187 = vmatprep.subr.bf16.mxu1 %v1758_v17 }
  0x89   : > { %1269 = vmatprep.subr.bf16.mxu0 %v1761_v18 }
  0x8b   : > { %1188 = vmatpush1.bf16.msra.mxu1 %v1756_v21 }
  0x8c   : > { %1270 = vmatpush1.bf16.msra.mxu0 %v1759_v22  ;;  %1189 = vmatprep.subr.bf16.mxu1 %v1764_v23 }
  0x8d   : > { %1271 = vmatprep.subr.bf16.mxu0 %v1767_v26 }
  0x8f   : > { %1190 = vmatpush1.bf16.msra.mxu1 %v1762_v27 }
  0x90   : > { %1272 = vmatpush1.bf16.msra.mxu0 %v1765_v28 }
  0x91   : > { %1282 = vmatprep.subr.bf16.mxu0 %v1770_v9 }
  0x92   : > { %1192 = vmatmul.mubr.bf16.vlgmr.msra.gmra.mrb[0].mxu1 %v371_v10 }
  0x93   : > { %1274 = vmatmul.mubr.bf16.vlgmr.msra.gmra.mrb[0].mxu0 %v372_v29 }
  0x94   : > { %1283 = vmatpush1.bf16.msra.mxu0 %v1768_v30  ;;  %1314 = vmatprep.mubr.bf16.mxu0 %v1801_v52  ;;  %v1783_v52 = vld [vmem:[%s1841_s19 + $0x450] ss:$8 sps:$4 sm:$0xff]  }
  0x95   : > { %1284 = vmatprep.subr.bf16.mxu0 %v1773_v19 }
  0x98   : > { %1285 = vmatpush1.bf16.msra.mxu0 %v1771_v20 }
  0x99   : > { %1286 = vmatprep.subr.bf16.mxu0 %v1776_v24 }
  0x9c   : > { %1287 = vmatpush1.bf16.msra.mxu0 %v1774_v25 }
  0x9d   : > { %1288 = vmatprep.subr.bf16.mxu0 %v1779_v31 }
  0xa0   : > { %1289 = vmatpush1.bf16.msra.mxu0 %v1777_v32 }
  0xa1   : > { %1290 = vmatprep.subr.bf16.mxu0 %v1782_v33 }
  0xa4   : > { %1291 = vmatpush1.bf16.msra.mxu0 %v1780_v34 }
  0xa5   : > { %1292 = vmatprep.subr.bf16.mxu0 %v1785_v35 }
  0xa8   : > { %1293 = vmatpush1.bf16.msra.mxu0 %v1783_v52 }
  0xa9   : > { %1294 = vmatprep.subr.bf16.mxu0 %v1788_v36 }
  0xac   : > { %1295 = vmatpush1.bf16.msra.mxu0 %v1786_v37 }
  0xad   : > { %1296 = vmatprep.subr.bf16.mxu0 %v1791_v38 }
  0xb0   : > { %1297 = vmatpush1.bf16.msra.mxu0 %v1789_v39 }
  0xb3   : > { %1315 = vmatmul.mubr.bf16.vlgmr.msra.gmra.mrb[0].mxu0 %v388_v41 }
  0xbc   : > { %v322_v46 = vpop.permute.xlu0 %321 }
 0x165   : > { %v1193_v42 = vpop.f32.mrb[0].mxu1 }
 0x166   : > { %v1195_v43 = vpop.f32.mrb[1].mxu1  ;;  %v1547_v47 = vadd.f32 %v1193_v42, %v322_v46 }
 0x167   : > { %v1197_v44 = vpop.f32.mrb[2].mxu1  ;;  %v1549_v48 = vadd.f32 %v1195_v43, %v322_v46 }
 0x168   : > { %v1198_v45 = vpop.f32.mrb[3].mxu1 }
 0x186   : > { %v1316_v49 = vpop.f32.mrb[0].mxu0 }
 0x187   : > { %v1548_v50 = vadd.f32 %v1547_v47, %v1316_v49  ;;  %v1318_v51 = vpop.f32.mrb[1].mxu0 }
 0x188   : > { %v1550_v53 = vadd.f32 %v1549_v48, %v1318_v51  ;;  %v1320_v54 = vpop.f32.mrb[2].mxu0 }
 0x189   : > { %v1321_v7 = vpop.f32.mrb[3].mxu0 }
 0x18a   : > { %v1325_v55 = vcombine.low %v1548_v50, %v1550_v53 }
 0x18c   : > { %1543 = vst.sshfl [vmem:[%s170_s27] sm:$0x33 pattern:$0x76325410] %v1325_v55 }
 0x18d PF: > { %s13_s12 = sadd.s32 1, %s1798_s12  }
 0x18e   : > { %p10_p4 = scmp.ge.s32.totalorder %s13_s12, 4  }
 0x190   :  { %12 = sbr.rel (!%p10_p4) target bundleno = 1 (0x1), region = 62 }

</bundles_post_ra>
